<compile_context>
chip_gen: v7x
topology: tpu7x:2x2x1
jax: 0.10.0
libtpu: 0.0.40
codegen_flags: <defaults>
</compile_context>

<pallas_src>
import functools

import jax
import jax.numpy as jnp
from jax.experimental import pallas as pl
from jax.experimental.pallas import tpu as pltpu


# ----------------------------- static geometry ------------------------------

def _round8(n):
    return ((n + 7) // 8) * 8


def canvas_sizes(bx, by):
    """Row counts of the flattened conv canvases (canvas width = by + 4)."""
    wc = by + 4
    offmax = 2 * wc + 2                       # largest 3x3 tap row-offset
    m4 = (bx - 4) * wc                        # conv4 output canvas
    m3 = _round8(m4 + offmax)                 # conv3 output canvas
    m2 = _round8(m3 + offmax)                 # conv2 output canvas
    m1 = _round8(m2 + offmax)                 # conv1 output canvas (h1 padded by 1)
    m0 = max(_round8(m1 + offmax), (bx + 4) * wc)   # input canvas (x padded by 2)
    return wc, m0, m1, m2, m3, m4


def _pick_tk(k1):
    for t in (2048, 1024, 256):
        if k1 % t == 0 and k1 >= t:
            return t
    return k1


# ----------------------------- Pallas kernels -------------------------------

def conv_stack_kernel(x_ref, mask1_ref, w1_ref, s1_ref, w2_ref, s2_ref,
                      w3_ref, s3_ref, w4_ref, s4_ref, o_ref,
                      *, wc, m1, m2, m3, m4):
    x2d = x_ref[0]                                   # (M0, 1) f32

    # conv1 (Cin=1): 9 VPU broadcast-multiply taps, BN-folded shift, ReLU,
    # then the border mask turns this into h1 zero-padded by 1 on the canvas.
    c = w1_ref.shape[1]
    acc1 = jnp.zeros((m1, c), jnp.float32)
    for di in range(3):
        for dj in range(3):
            k = di * 3 + dj
            off = di * wc + dj
            acc1 = acc1 + x2d[off:off + m1, :] * w1_ref[k:k + 1, :]
    p1 = jnp.maximum(acc1 + s1_ref[...], 0.0) * mask1_ref[...]    # (M1, C)

    def conv3x3(x2d_in, w_ref, s_ref, m_out):
        cin = w_ref.shape[0] // 9
        acc = jnp.zeros((m_out, w_ref.shape[1]), jnp.float32)
        for di in range(3):
            for dj in range(3):
                k = di * 3 + dj
                off = di * wc + dj
                patch = x2d_in[off:off + m_out, :].astype(jnp.bfloat16)
                acc = acc + jnp.dot(patch, w_ref[k * cin:(k + 1) * cin, :],
                                    preferred_element_type=jnp.float32)
        return jnp.maximum(acc + s_ref[...], 0.0)

    h2 = conv3x3(p1, w2_ref, s2_ref, m2)             # conv2 (pad=1 via p1)
    h3 = conv3x3(h2, w3_ref, s3_ref, m3)             # conv3 (valid)
    h4 = conv3x3(h3, w4_ref, s4_ref, m4)             # conv4 (valid)
    o_ref[0] = h4


def fc_head_kernel(s_ref, w1_ref, b1_ref, w2_ref, b2_ref, wh_ref, bh_ref,
                   pi_ref, v_ref, acc_ref, *, action_size):
    k = pl.program_id(0)

    @pl.when(k == 0)
    def _init():
        acc_ref[...] = jnp.zeros_like(acc_ref)

    acc_ref[...] += jnp.dot(s_ref[...].astype(jnp.bfloat16), w1_ref[...],
                            preferred_element_type=jnp.float32)

    @pl.when(k == pl.num_programs(0) - 1)
    def _finalize():
        h1 = jnp.maximum(acc_ref[...] + b1_ref[...], 0.0)
        # TODO(synk): F.dropout is identity in eval mode; training-mode dropout not implemented.
        h2 = jnp.dot(h1.astype(jnp.bfloat16), w2_ref[...],
                     preferred_element_type=jnp.float32) + b2_ref[...]
        h2 = jnp.maximum(h2, 0.0)
        logits = jnp.dot(h2.astype(jnp.bfloat16), wh_ref[...],
                         preferred_element_type=jnp.float32) + bh_ref[...]
        col = jax.lax.broadcasted_iota(jnp.int32, logits.shape, 1)
        pol = jnp.where(col < action_size, logits, -1e30)
        m = jnp.max(pol, axis=1, keepdims=True)
        e = jnp.exp(pol - m)
        denom = jnp.sum(e, axis=1, keepdims=True)
        pi_ref[...] = e * pl.reciprocal(denom, approx=True)
        v_col = jnp.sum(jnp.where(col == action_size, logits, 0.0),
                        axis=1, keepdims=True)
        v_ref[...] = jnp.tanh(v_col)


# --------------------------------- forward ----------------------------------

def othello_forward(x, p, action_size):
    """x: (B, board_x, board_y) f32.  Returns (pi, v) as OthelloNet.forward (eval)."""
    B, bx, by = x.shape
    wc, m0, m1, m2, m3, m4 = canvas_sizes(bx, by)
    c = p['w1'].shape[1]

    # Flattened input canvas: x padded by 2, row = h*wc + w, trailing zero rows.
    xpad = jnp.pad(x.astype(jnp.float32), ((0, 0), (2, 2), (2, 2)))
    xc = xpad.reshape(B, (bx + 4) * wc, 1)
    xc = jnp.pad(xc, ((0, 0), (0, m0 - (bx + 4) * wc), (0, 0)))

    conv_out = pl.pallas_call(
        functools.partial(conv_stack_kernel, wc=wc, m1=m1, m2=m2, m3=m3, m4=m4),
        grid_spec=pltpu.PrefetchScalarGridSpec(
            num_scalar_prefetch=0,
            grid=(B,),
            in_specs=[
                pl.BlockSpec((1, m0, 1), lambda b: (b, 0, 0)),
                pl.BlockSpec((m1, 1), lambda b: (0, 0)),
                pl.BlockSpec((9, c), lambda b: (0, 0)),
                pl.BlockSpec((1, c), lambda b: (0, 0)),
                pl.BlockSpec((9 * c, c), lambda b: (0, 0)),
                pl.BlockSpec((1, c), lambda b: (0, 0)),
                pl.BlockSpec((9 * c, c), lambda b: (0, 0)),
                pl.BlockSpec((1, c), lambda b: (0, 0)),
                pl.BlockSpec((9 * c, c), lambda b: (0, 0)),
                pl.BlockSpec((1, c), lambda b: (0, 0)),
            ],
            out_specs=pl.BlockSpec((1, m4, c), lambda b: (b, 0, 0)),
        ),
        out_shape=jax.ShapeDtypeStruct((B, m4, c), jnp.float32),
        compiler_params=pltpu.CompilerParams(
            dimension_semantics=("parallel",),
            vmem_limit_bytes=64 * 1024 * 1024),
    )(xc, p['p1_mask'], p['w1'], p['s1'], p['w2'], p['s2'],
      p['w3'], p['s3'], p['w4'], p['s4'])

    # Extract the valid (bx-4, by-4) grid; fc1_w rows were permuted at prep
    # time to consume this NHWC flatten directly (no runtime NCHW transpose).
    s = conv_out.reshape(B, bx - 4, wc, c)[:, :, :by - 4, :]
    s = s.reshape(B, (bx - 4) * (by - 4) * c)

    k1, n1 = p['fc1_w'].shape
    n2 = p['fc2_w'].shape[1]
    head_n = p['head_w'].shape[1]
    tk = _pick_tk(k1)
    nk = k1 // tk

    pi_pad, v = pl.pallas_call(
        functools.partial(fc_head_kernel, action_size=action_size),
        grid_spec=pltpu.PrefetchScalarGridSpec(
            num_scalar_prefetch=0,
            grid=(nk,),
            in_specs=[
                pl.BlockSpec((B, tk), lambda k: (0, k)),
                pl.BlockSpec((tk, n1), lambda k: (k, 0)),
                pl.BlockSpec((1, n1), lambda k: (0, 0)),
                pl.BlockSpec((n1, n2), lambda k: (0, 0)),
                pl.BlockSpec((1, n2), lambda k: (0, 0)),
                pl.BlockSpec((n2, head_n), lambda k: (0, 0)),
                pl.BlockSpec((1, head_n), lambda k: (0, 0)),
            ],
            out_specs=(pl.BlockSpec((B, head_n), lambda k: (0, 0)),
                       pl.BlockSpec((B, 1), lambda k: (0, 0))),
            scratch_shapes=[pltpu.VMEM((B, n1), jnp.float32)],
        ),
        out_shape=(jax.ShapeDtypeStruct((B, head_n), jnp.float32),
                   jax.ShapeDtypeStruct((B, 1), jnp.float32)),
        compiler_params=pltpu.CompilerParams(
            dimension_semantics=("arbitrary",),
            vmem_limit_bytes=64 * 1024 * 1024),
    )(s, p['fc1_w'], p['fc1_b'], p['fc2_w'], p['fc2_b'],
      p['head_w'], p['head_b'])

    return pi_pad[:, :action_size], v


# ------------------------- parameter init / prep ----------------------------

def init_torch_params(key, c, bx, by, action_size):
    """Random parameters in the PyTorch layouts (conv OIHW, Linear (out, in))."""
    ks = iter(jax.random.split(key, 48))

    def rnd(shape, scale=0.05):
        return scale * jax.random.normal(next(ks), shape, jnp.float32)

    def bn(n):
        gamma = 1.0 + 0.1 * jax.random.normal(next(ks), (n,), jnp.float32)
        beta = 0.1 * jax.random.normal(next(ks), (n,), jnp.float32)
        mean = 0.1 * jax.random.normal(next(ks), (n,), jnp.float32)
        var = 1.0 + jnp.abs(jax.random.normal(next(ks), (n,), jnp.float32))
        return gamma, beta, mean, var

    flat = c * (bx - 4) * (by - 4)
    return {
        'conv1_w': rnd((c, 1, 3, 3)), 'conv1_b': rnd((c,)), 'bn1': bn(c),
        'conv2_w': rnd((c, c, 3, 3)), 'conv2_b': rnd((c,)), 'bn2': bn(c),
        'conv3_w': rnd((c, c, 3, 3)), 'conv3_b': rnd((c,)), 'bn3': bn(c),
        'conv4_w': rnd((c, c, 3, 3)), 'conv4_b': rnd((c,)), 'bn4': bn(c),
        'fc1_w': rnd((1024, flat)), 'fc1_b': rnd((1024,)), 'fc_bn1': bn(1024),
        'fc2_w': rnd((512, 1024)), 'fc2_b': rnd((512,)), 'fc_bn2': bn(512),
        'fc3_w': rnd((action_size, 512)), 'fc3_b': rnd((action_size,)),
        'fc4_w': rnd((1, 512)), 'fc4_b': rnd((1,)),
    }


def prepare_params(tp, bx, by, action_size):
    """One-time host-side transforms: BN folding, layout changes, bf16 cast."""
    eps = 1e-5

    def fold(gamma, beta, mean, var):
        scale = gamma / jnp.sqrt(var + eps)
        return scale, beta - mean * scale

    def conv_w(w):                       # (Cout, Cin, 3, 3) -> (9*Cin, Cout)
        cout, cin = w.shape[0], w.shape[1]
        return jnp.transpose(w, (2, 3, 1, 0)).reshape(9 * cin, cout)

    c = tp['conv1_w'].shape[0]
    wc, _, m1, _, _, _ = canvas_sizes(bx, by)
    p = {}

    for i in (1, 2, 3, 4):
        scale, shift = fold(*tp[f'bn{i}'])
        w = conv_w(tp[f'conv{i}_w']) * scale[None, :]
        p[f'w{i}'] = w.astype(jnp.float32 if i == 1 else jnp.bfloat16)
        p[f's{i}'] = (tp[f'conv{i}_b'] * scale + shift).reshape(1, c).astype(jnp.float32)

    # 0/1 mask turning the conv1 canvas into h1 zero-padded by 1.
    rows = jnp.arange(m1)
    ri, ci = rows // wc, rows % wc
    inside = (ri >= 1) & (ri <= bx) & (ci >= 1) & (ci <= by)
    p['p1_mask'] = inside.astype(jnp.float32).reshape(m1, 1)

    # fc1: fold BN, permute rows from PyTorch's NCHW flatten to our NHWC flatten.
    hh, ww = bx - 4, by - 4
    scale, shift = fold(*tp['fc_bn1'])
    w = tp['fc1_w'].T * scale[None, :]                    # (flat, 1024), NCHW rows
    perm = (jnp.arange(c)[None, None, :] * (hh * ww)
            + jnp.arange(hh)[:, None, None] * ww
            + jnp.arange(ww)[None, :, None]).reshape(-1)
    p['fc1_w'] = w[perm].astype(jnp.bfloat16)
    p['fc1_b'] = (tp['fc1_b'] * scale + shift).reshape(1, -1).astype(jnp.float32)

    scale, shift = fold(*tp['fc_bn2'])
    p['fc2_w'] = (tp['fc2_w'].T * scale[None, :]).astype(jnp.bfloat16)
    p['fc2_b'] = (tp['fc2_b'] * scale + shift).reshape(1, -1).astype(jnp.float32)

    # Fused, lane-dense policy+value head: cols [0:A)=fc3, A=fc4, rest padded.
    head_n = max(128, ((action_size + 1 + 127) // 128) * 128)
    wh = jnp.concatenate([tp['fc3_w'].T, tp['fc4_w'].T], axis=1)  # (512, A+1)
    wh = jnp.pad(wh, ((0, 0), (0, head_n - (action_size + 1))))
    p['head_w'] = wh.astype(jnp.bfloat16)
    bh = jnp.concatenate([tp['fc3_b'], tp['fc4_b']])
    bh = jnp.pad(bh, (0, head_n - (action_size + 1)), constant_values=-1e30)
    p['head_b'] = bh.reshape(1, head_n).astype(jnp.float32)
    return p


# --------------------------- plain-JAX reference ----------------------------

def reference_forward(x, tp, action_size):
    eps = 1e-5
    B, bx, by = x.shape
    s = x.astype(jnp.float32).reshape(B, 1, bx, by)

    def conv_bn_relu(s, w, b, bn, pad):
        out = jax.lax.conv_general_dilated(
            s, w, window_strides=(1, 1), padding=[(pad, pad), (pad, pad)],
            dimension_numbers=('NCHW', 'OIHW', 'NCHW'))
        gamma, beta, mean, var = bn
        out = out + b[None, :, None, None]
        out = ((out - mean[None, :, None, None])
               / jnp.sqrt(var[None, :, None, None] + eps)
               * gamma[None, :, None, None] + beta[None, :, None, None])
        return jnp.maximum(out, 0.0)

    s = conv_bn_relu(s, tp['conv1_w'], tp['conv1_b'], tp['bn1'], 1)
    s = conv_bn_relu(s, tp['conv2_w'], tp['conv2_b'], tp['bn2'], 1)
    s = conv_bn_relu(s, tp['conv3_w'], tp['conv3_b'], tp['bn3'], 0)
    s = conv_bn_relu(s, tp['conv4_w'], tp['conv4_b'], tp['bn4'], 0)
    s = s.reshape(B, -1)

    def fc_bn_relu(s, w, b, bn):
        gamma, beta, mean, var = bn
        out = s @ w.T + b
        out = (out - mean) / jnp.sqrt(var + eps) * gamma + beta
        return jnp.maximum(out, 0.0)

    s = fc_bn_relu(s, tp['fc1_w'], tp['fc1_b'], tp['fc_bn1'])
    s = fc_bn_relu(s, tp['fc2_w'], tp['fc2_b'], tp['fc_bn2'])
    pi = jax.nn.softmax(s @ tp['fc3_w'].T + tp['fc3_b'], axis=1)
    v = jnp.tanh(s @ tp['fc4_w'].T + tp['fc4_b'])
    return pi, v


# ----------------------------------- main ------------------------------------

if __name__ == "__main__":
    BOARD_X = BOARD_Y = 8                   # Othello board
    ACTION_SIZE = BOARD_X * BOARD_Y + 1     # 65 (moves + pass)
    NUM_CHANNELS = 32                       # small stand-in for the module's 512
    BATCH = 2

    key = jax.random.PRNGKey(0)
    k_x, k_p = jax.random.split(key)
    x = jax.random.normal(k_x, (BATCH, BOARD_X, BOARD_Y), jnp.float32)
    torch_params = init_torch_params(k_p, NUM_CHANNELS, BOARD_X, BOARD_Y, ACTION_SIZE)
    params = prepare_params(torch_params, BOARD_X, BOARD_Y, ACTION_SIZE)

    forward = jax.jit(othello_forward, static_argnames=('action_size',))
    pi, v = forward(x, params, action_size=ACTION_SIZE)
    pi, v = jax.block_until_ready((pi, v))

    assert pi.shape == (BATCH, ACTION_SIZE) and v.shape == (BATCH, 1)
    assert bool(jnp.all(jnp.isfinite(pi))) and bool(jnp.all(jnp.isfinite(v)))
    # softmax rows sum to 1 (approx reciprocal on the EUP), tanh output in [-1, 1]
    assert bool(jnp.allclose(jnp.sum(pi, axis=1), 1.0, atol=2e-3))
    assert bool(jnp.all(jnp.abs(v) <= 1.0))

    # match the eval-mode PyTorch semantics (f32 reference; kernel uses bf16 matmuls)
    pi_gold, v_gold = reference_forward(x, torch_params, ACTION_SIZE)
    assert bool(jnp.allclose(pi, pi_gold, atol=1e-2))
    assert bool(jnp.allclose(v, v_gold, atol=1e-2))

    print("KERNEL_OK")
</pallas_src>

<mosaic_0001>
module attributes {stable_mosaic.version = 11 : i64} {
  func.func @conv_stack_kernel(%arg0: i32, %arg1: memref<1x176x1xf32, #tpu.memory_space<vmem>>, %arg2: memref<144x1xf32, #tpu.memory_space<vmem>>, %arg3: memref<9x32xf32, #tpu.memory_space<vmem>>, %arg4: memref<1x32xf32, #tpu.memory_space<vmem>>, %arg5: memref<288x32xbf16, #tpu.memory_space<vmem>>, %arg6: memref<1x32xf32, #tpu.memory_space<vmem>>, %arg7: memref<288x32xbf16, #tpu.memory_space<vmem>>, %arg8: memref<1x32xf32, #tpu.memory_space<vmem>>, %arg9: memref<288x32xbf16, #tpu.memory_space<vmem>>, %arg10: memref<1x32xf32, #tpu.memory_space<vmem>>, %arg11: memref<1x48x32xf32, #tpu.memory_space<vmem>>) attributes {dimension_semantics = [#tpu.dimension_semantics<parallel>], iteration_bounds = array<i64: 2>, scalar_prefetch = 0 : i64, scratch_operands = 0 : i64, tpu.core_type = #tpu.core_type<tc>, window_params = [{transform_indices = @transform_0, window_bounds = array<i64: 1, 176, 1>}, {pipeline_mode = #tpu.pipeline_mode<synchronous>, transform_indices = @transform_1, window_bounds = array<i64: 144, 1>}, {pipeline_mode = #tpu.pipeline_mode<synchronous>, transform_indices = @transform_2, window_bounds = array<i64: 9, 32>}, {pipeline_mode = #tpu.pipeline_mode<synchronous>, transform_indices = @transform_3, window_bounds = array<i64: 1, 32>}, {pipeline_mode = #tpu.pipeline_mode<synchronous>, transform_indices = @transform_4, window_bounds = array<i64: 288, 32>}, {pipeline_mode = #tpu.pipeline_mode<synchronous>, transform_indices = @transform_5, window_bounds = array<i64: 1, 32>}, {pipeline_mode = #tpu.pipeline_mode<synchronous>, transform_indices = @transform_6, window_bounds = array<i64: 288, 32>}, {pipeline_mode = #tpu.pipeline_mode<synchronous>, transform_indices = @transform_7, window_bounds = array<i64: 1, 32>}, {pipeline_mode = #tpu.pipeline_mode<synchronous>, transform_indices = @transform_8, window_bounds = array<i64: 288, 32>}, {pipeline_mode = #tpu.pipeline_mode<synchronous>, transform_indices = @transform_9, window_bounds = array<i64: 1, 32>}, {transform_indices = @transform_10, window_bounds = array<i64: 1, 48, 32>}]} {
    %c0 = arith.constant 0 : index
    %c0_0 = arith.constant 0 : index
    %c0_1 = arith.constant 0 : index
    %0 = vector.load %arg1[%c0, %c0_0, %c0_1] : memref<1x176x1xf32, #tpu.memory_space<vmem>>, vector<1x176x1xf32>
    %1 = vector.shape_cast %0 : vector<1x176x1xf32> to vector<176x1xf32>
    %cst = arith.constant 0.000000e+00 : f32
    %2 = vector.broadcast %cst : f32 to vector<144x32xf32>
    %3 = vector.extract_strided_slice %1 {offsets = [0, 0], sizes = [144, 1], strides = [1, 1]} : vector<176x1xf32> to vector<144x1xf32>
    %c0_2 = arith.constant 0 : index
    %c0_3 = arith.constant 0 : index
    %4 = vector.load %arg3[%c0_2, %c0_3] : memref<9x32xf32, #tpu.memory_space<vmem>>, vector<1x32xf32>
    %5 = vector.broadcast %3 : vector<144x1xf32> to vector<144x32xf32>
    %6 = vector.broadcast %4 : vector<1x32xf32> to vector<144x32xf32>
    %7 = arith.mulf %5, %6 : vector<144x32xf32>
    %8 = arith.addf %2, %7 : vector<144x32xf32>
    %9 = vector.extract_strided_slice %1 {offsets = [1, 0], sizes = [144, 1], strides = [1, 1]} : vector<176x1xf32> to vector<144x1xf32>
    %c1 = arith.constant 1 : index
    %c0_4 = arith.constant 0 : index
    %10 = vector.load %arg3[%c1, %c0_4] : memref<9x32xf32, #tpu.memory_space<vmem>>, vector<1x32xf32>
    %11 = vector.broadcast %9 : vector<144x1xf32> to vector<144x32xf32>
    %12 = vector.broadcast %10 : vector<1x32xf32> to vector<144x32xf32>
    %13 = arith.mulf %11, %12 : vector<144x32xf32>
    %14 = arith.addf %8, %13 : vector<144x32xf32>
    %15 = vector.extract_strided_slice %1 {offsets = [2, 0], sizes = [144, 1], strides = [1, 1]} : vector<176x1xf32> to vector<144x1xf32>
    %c2 = arith.constant 2 : index
    %c0_5 = arith.constant 0 : index
    %16 = vector.load %arg3[%c2, %c0_5] : memref<9x32xf32, #tpu.memory_space<vmem>>, vector<1x32xf32>
    %17 = vector.broadcast %15 : vector<144x1xf32> to vector<144x32xf32>
    %18 = vector.broadcast %16 : vector<1x32xf32> to vector<144x32xf32>
    %19 = arith.mulf %17, %18 : vector<144x32xf32>
    %20 = arith.addf %14, %19 : vector<144x32xf32>
    %21 = vector.extract_strided_slice %1 {offsets = [12, 0], sizes = [144, 1], strides = [1, 1]} : vector<176x1xf32> to vector<144x1xf32>
    %c3 = arith.constant 3 : index
    %c0_6 = arith.constant 0 : index
    %22 = vector.load %arg3[%c3, %c0_6] : memref<9x32xf32, #tpu.memory_space<vmem>>, vector<1x32xf32>
    %23 = vector.broadcast %21 : vector<144x1xf32> to vector<144x32xf32>
    %24 = vector.broadcast %22 : vector<1x32xf32> to vector<144x32xf32>
    %25 = arith.mulf %23, %24 : vector<144x32xf32>
    %26 = arith.addf %20, %25 : vector<144x32xf32>
    %27 = vector.extract_strided_slice %1 {offsets = [13, 0], sizes = [144, 1], strides = [1, 1]} : vector<176x1xf32> to vector<144x1xf32>
    %c4 = arith.constant 4 : index
    %c0_7 = arith.constant 0 : index
    %28 = vector.load %arg3[%c4, %c0_7] : memref<9x32xf32, #tpu.memory_space<vmem>>, vector<1x32xf32>
    %29 = vector.broadcast %27 : vector<144x1xf32> to vector<144x32xf32>
    %30 = vector.broadcast %28 : vector<1x32xf32> to vector<144x32xf32>
    %31 = arith.mulf %29, %30 : vector<144x32xf32>
    %32 = arith.addf %26, %31 : vector<144x32xf32>
    %33 = vector.extract_strided_slice %1 {offsets = [14, 0], sizes = [144, 1], strides = [1, 1]} : vector<176x1xf32> to vector<144x1xf32>
    %c5 = arith.constant 5 : index
    %c0_8 = arith.constant 0 : index
    %34 = vector.load %arg3[%c5, %c0_8] : memref<9x32xf32, #tpu.memory_space<vmem>>, vector<1x32xf32>
    %35 = vector.broadcast %33 : vector<144x1xf32> to vector<144x32xf32>
    %36 = vector.broadcast %34 : vector<1x32xf32> to vector<144x32xf32>
    %37 = arith.mulf %35, %36 : vector<144x32xf32>
    %38 = arith.addf %32, %37 : vector<144x32xf32>
    %39 = vector.extract_strided_slice %1 {offsets = [24, 0], sizes = [144, 1], strides = [1, 1]} : vector<176x1xf32> to vector<144x1xf32>
    %c6 = arith.constant 6 : index
    %c0_9 = arith.constant 0 : index
    %40 = vector.load %arg3[%c6, %c0_9] : memref<9x32xf32, #tpu.memory_space<vmem>>, vector<1x32xf32>
    %41 = vector.broadcast %39 : vector<144x1xf32> to vector<144x32xf32>
    %42 = vector.broadcast %40 : vector<1x32xf32> to vector<144x32xf32>
    %43 = arith.mulf %41, %42 : vector<144x32xf32>
    %44 = arith.addf %38, %43 : vector<144x32xf32>
    %45 = vector.extract_strided_slice %1 {offsets = [25, 0], sizes = [144, 1], strides = [1, 1]} : vector<176x1xf32> to vector<144x1xf32>
    %c7 = arith.constant 7 : index
    %c0_10 = arith.constant 0 : index
    %46 = vector.load %arg3[%c7, %c0_10] : memref<9x32xf32, #tpu.memory_space<vmem>>, vector<1x32xf32>
    %47 = vector.broadcast %45 : vector<144x1xf32> to vector<144x32xf32>
    %48 = vector.broadcast %46 : vector<1x32xf32> to vector<144x32xf32>
    %49 = arith.mulf %47, %48 : vector<144x32xf32>
    %50 = arith.addf %44, %49 : vector<144x32xf32>
    %51 = vector.extract_strided_slice %1 {offsets = [26, 0], sizes = [144, 1], strides = [1, 1]} : vector<176x1xf32> to vector<144x1xf32>
    %c8 = arith.constant 8 : index
    %c0_11 = arith.constant 0 : index
    %52 = vector.load %arg3[%c8, %c0_11] : memref<9x32xf32, #tpu.memory_space<vmem>>, vector<1x32xf32>
    %53 = vector.broadcast %51 : vector<144x1xf32> to vector<144x32xf32>
    %54 = vector.broadcast %52 : vector<1x32xf32> to vector<144x32xf32>
    %55 = arith.mulf %53, %54 : vector<144x32xf32>
    %56 = arith.addf %50, %55 : vector<144x32xf32>
    %c0_12 = arith.constant 0 : index
    %c0_13 = arith.constant 0 : index
    %57 = vector.load %arg4[%c0_12, %c0_13] : memref<1x32xf32, #tpu.memory_space<vmem>>, vector<1x32xf32>
    %58 = vector.broadcast %57 : vector<1x32xf32> to vector<144x32xf32>
    %59 = arith.addf %56, %58 : vector<144x32xf32>
    %cst_14 = arith.constant 0.000000e+00 : f32
    %60 = vector.broadcast %cst_14 : f32 to vector<144x32xf32>
    %61 = arith.maximumf %59, %60 : vector<144x32xf32>
    %c0_15 = arith.constant 0 : index
    %c0_16 = arith.constant 0 : index
    %62 = vector.load %arg2[%c0_15, %c0_16] : memref<144x1xf32, #tpu.memory_space<vmem>>, vector<144x1xf32>
    %63 = vector.broadcast %62 : vector<144x1xf32> to vector<144x32xf32>
    %64 = arith.mulf %61, %63 : vector<144x32xf32>
    %cst_17 = arith.constant 0.000000e+00 : f32
    %65 = vector.broadcast %cst_17 : f32 to vector<112x32xf32>
    %66 = vector.extract_strided_slice %64 {offsets = [0, 0], sizes = [112, 32], strides = [1, 1]} : vector<144x32xf32> to vector<112x32xf32>
    %67 = arith.truncf %66 : vector<112x32xf32> to vector<112x32xbf16>
    %c0_18 = arith.constant 0 : index
    %c0_19 = arith.constant 0 : index
    %68 = vector.load %arg5[%c0_18, %c0_19] : memref<288x32xbf16, #tpu.memory_space<vmem>>, vector<32x32xbf16>
    %cst_20 = arith.constant dense<0.000000e+00> : vector<112x32xf32>
    %69 = tpu.matmul %67, %68, %cst_20 {dimension_numbers = #tpu.dot_dimension_numbers<[1], [0], [0], [1], [0, 0, 1, 1], [], []>} : vector<112x32xbf16>, vector<32x32xbf16>, vector<112x32xf32> -> vector<112x32xf32>
    %70 = arith.addf %65, %69 : vector<112x32xf32>
    %71 = vector.extract_strided_slice %64 {offsets = [1, 0], sizes = [112, 32], strides = [1, 1]} : vector<144x32xf32> to vector<112x32xf32>
    %72 = arith.truncf %71 : vector<112x32xf32> to vector<112x32xbf16>
    %c32 = arith.constant 32 : index
    %c0_21 = arith.constant 0 : index
    %73 = vector.load %arg5[%c32, %c0_21] : memref<288x32xbf16, #tpu.memory_space<vmem>>, vector<32x32xbf16>
    %cst_22 = arith.constant dense<0.000000e+00> : vector<112x32xf32>
    %74 = tpu.matmul %72, %73, %cst_22 {dimension_numbers = #tpu.dot_dimension_numbers<[1], [0], [0], [1], [0, 0, 1, 1], [], []>} : vector<112x32xbf16>, vector<32x32xbf16>, vector<112x32xf32> -> vector<112x32xf32>
    %75 = arith.addf %70, %74 : vector<112x32xf32>
    %76 = vector.extract_strided_slice %64 {offsets = [2, 0], sizes = [112, 32], strides = [1, 1]} : vector<144x32xf32> to vector<112x32xf32>
    %77 = arith.truncf %76 : vector<112x32xf32> to vector<112x32xbf16>
    %c64 = arith.constant 64 : index
    %c0_23 = arith.constant 0 : index
    %78 = vector.load %arg5[%c64, %c0_23] : memref<288x32xbf16, #tpu.memory_space<vmem>>, vector<32x32xbf16>
    %cst_24 = arith.constant dense<0.000000e+00> : vector<112x32xf32>
    %79 = tpu.matmul %77, %78, %cst_24 {dimension_numbers = #tpu.dot_dimension_numbers<[1], [0], [0], [1], [0, 0, 1, 1], [], []>} : vector<112x32xbf16>, vector<32x32xbf16>, vector<112x32xf32> -> vector<112x32xf32>
    %80 = arith.addf %75, %79 : vector<112x32xf32>
    %81 = vector.extract_strided_slice %64 {offsets = [12, 0], sizes = [112, 32], strides = [1, 1]} : vector<144x32xf32> to vector<112x32xf32>
    %82 = arith.truncf %81 : vector<112x32xf32> to vector<112x32xbf16>
    %c96 = arith.constant 96 : index
    %c0_25 = arith.constant 0 : index
    %83 = vector.load %arg5[%c96, %c0_25] : memref<288x32xbf16, #tpu.memory_space<vmem>>, vector<32x32xbf16>
    %cst_26 = arith.constant dense<0.000000e+00> : vector<112x32xf32>
    %84 = tpu.matmul %82, %83, %cst_26 {dimension_numbers = #tpu.dot_dimension_numbers<[1], [0], [0], [1], [0, 0, 1, 1], [], []>} : vector<112x32xbf16>, vector<32x32xbf16>, vector<112x32xf32> -> vector<112x32xf32>
    %85 = arith.addf %80, %84 : vector<112x32xf32>
    %86 = vector.extract_strided_slice %64 {offsets = [13, 0], sizes = [112, 32], strides = [1, 1]} : vector<144x32xf32> to vector<112x32xf32>
    %87 = arith.truncf %86 : vector<112x32xf32> to vector<112x32xbf16>
    %c128 = arith.constant 128 : index
    %c0_27 = arith.constant 0 : index
    %88 = vector.load %arg5[%c128, %c0_27] : memref<288x32xbf16, #tpu.memory_space<vmem>>, vector<32x32xbf16>
    %cst_28 = arith.constant dense<0.000000e+00> : vector<112x32xf32>
    %89 = tpu.matmul %87, %88, %cst_28 {dimension_numbers = #tpu.dot_dimension_numbers<[1], [0], [0], [1], [0, 0, 1, 1], [], []>} : vector<112x32xbf16>, vector<32x32xbf16>, vector<112x32xf32> -> vector<112x32xf32>
    %90 = arith.addf %85, %89 : vector<112x32xf32>
    %91 = vector.extract_strided_slice %64 {offsets = [14, 0], sizes = [112, 32], strides = [1, 1]} : vector<144x32xf32> to vector<112x32xf32>
    %92 = arith.truncf %91 : vector<112x32xf32> to vector<112x32xbf16>
    %c160 = arith.constant 160 : index
    %c0_29 = arith.constant 0 : index
    %93 = vector.load %arg5[%c160, %c0_29] : memref<288x32xbf16, #tpu.memory_space<vmem>>, vector<32x32xbf16>
    %cst_30 = arith.constant dense<0.000000e+00> : vector<112x32xf32>
    %94 = tpu.matmul %92, %93, %cst_30 {dimension_numbers = #tpu.dot_dimension_numbers<[1], [0], [0], [1], [0, 0, 1, 1], [], []>} : vector<112x32xbf16>, vector<32x32xbf16>, vector<112x32xf32> -> vector<112x32xf32>
    %95 = arith.addf %90, %94 : vector<112x32xf32>
    %96 = vector.extract_strided_slice %64 {offsets = [24, 0], sizes = [112, 32], strides = [1, 1]} : vector<144x32xf32> to vector<112x32xf32>
    %97 = arith.truncf %96 : vector<112x32xf32> to vector<112x32xbf16>
    %c192 = arith.constant 192 : index
    %c0_31 = arith.constant 0 : index
    %98 = vector.load %arg5[%c192, %c0_31] : memref<288x32xbf16, #tpu.memory_space<vmem>>, vector<32x32xbf16>
    %cst_32 = arith.constant dense<0.000000e+00> : vector<112x32xf32>
    %99 = tpu.matmul %97, %98, %cst_32 {dimension_numbers = #tpu.dot_dimension_numbers<[1], [0], [0], [1], [0, 0, 1, 1], [], []>} : vector<112x32xbf16>, vector<32x32xbf16>, vector<112x32xf32> -> vector<112x32xf32>
    %100 = arith.addf %95, %99 : vector<112x32xf32>
    %101 = vector.extract_strided_slice %64 {offsets = [25, 0], sizes = [112, 32], strides = [1, 1]} : vector<144x32xf32> to vector<112x32xf32>
    %102 = arith.truncf %101 : vector<112x32xf32> to vector<112x32xbf16>
    %c224 = arith.constant 224 : index
    %c0_33 = arith.constant 0 : index
    %103 = vector.load %arg5[%c224, %c0_33] : memref<288x32xbf16, #tpu.memory_space<vmem>>, vector<32x32xbf16>
    %cst_34 = arith.constant dense<0.000000e+00> : vector<112x32xf32>
    %104 = tpu.matmul %102, %103, %cst_34 {dimension_numbers = #tpu.dot_dimension_numbers<[1], [0], [0], [1], [0, 0, 1, 1], [], []>} : vector<112x32xbf16>, vector<32x32xbf16>, vector<112x32xf32> -> vector<112x32xf32>
    %105 = arith.addf %100, %104 : vector<112x32xf32>
    %106 = vector.extract_strided_slice %64 {offsets = [26, 0], sizes = [112, 32], strides = [1, 1]} : vector<144x32xf32> to vector<112x32xf32>
    %107 = arith.truncf %106 : vector<112x32xf32> to vector<112x32xbf16>
    %c256 = arith.constant 256 : index
    %c0_35 = arith.constant 0 : index
    %108 = vector.load %arg5[%c256, %c0_35] : memref<288x32xbf16, #tpu.memory_space<vmem>>, vector<32x32xbf16>
    %cst_36 = arith.constant dense<0.000000e+00> : vector<112x32xf32>
    %109 = tpu.matmul %107, %108, %cst_36 {dimension_numbers = #tpu.dot_dimension_numbers<[1], [0], [0], [1], [0, 0, 1, 1], [], []>} : vector<112x32xbf16>, vector<32x32xbf16>, vector<112x32xf32> -> vector<112x32xf32>
    %110 = arith.addf %105, %109 : vector<112x32xf32>
    %c0_37 = arith.constant 0 : index
    %c0_38 = arith.constant 0 : index
    %111 = vector.load %arg6[%c0_37, %c0_38] : memref<1x32xf32, #tpu.memory_space<vmem>>, vector<1x32xf32>
    %112 = vector.broadcast %111 : vector<1x32xf32> to vector<112x32xf32>
    %113 = arith.addf %110, %112 : vector<112x32xf32>
    %cst_39 = arith.constant 0.000000e+00 : f32
    %114 = vector.broadcast %cst_39 : f32 to vector<112x32xf32>
    %115 = arith.maximumf %113, %114 : vector<112x32xf32>
    %cst_40 = arith.constant 0.000000e+00 : f32
    %116 = vector.broadcast %cst_40 : f32 to vector<80x32xf32>
    %117 = vector.extract_strided_slice %115 {offsets = [0, 0], sizes = [80, 32], strides = [1, 1]} : vector<112x32xf32> to vector<80x32xf32>
    %118 = arith.truncf %117 : vector<80x32xf32> to vector<80x32xbf16>
    %c0_41 = arith.constant 0 : index
    %c0_42 = arith.constant 0 : index
    %119 = vector.load %arg7[%c0_41, %c0_42] : memref<288x32xbf16, #tpu.memory_space<vmem>>, vector<32x32xbf16>
    %cst_43 = arith.constant dense<0.000000e+00> : vector<80x32xf32>
    %120 = tpu.matmul %118, %119, %cst_43 {dimension_numbers = #tpu.dot_dimension_numbers<[1], [0], [0], [1], [0, 0, 1, 1], [], []>} : vector<80x32xbf16>, vector<32x32xbf16>, vector<80x32xf32> -> vector<80x32xf32>
    %121 = arith.addf %116, %120 : vector<80x32xf32>
    %122 = vector.extract_strided_slice %115 {offsets = [1, 0], sizes = [80, 32], strides = [1, 1]} : vector<112x32xf32> to vector<80x32xf32>
    %123 = arith.truncf %122 : vector<80x32xf32> to vector<80x32xbf16>
    %c32_44 = arith.constant 32 : index
    %c0_45 = arith.constant 0 : index
    %124 = vector.load %arg7[%c32_44, %c0_45] : memref<288x32xbf16, #tpu.memory_space<vmem>>, vector<32x32xbf16>
    %cst_46 = arith.constant dense<0.000000e+00> : vector<80x32xf32>
    %125 = tpu.matmul %123, %124, %cst_46 {dimension_numbers = #tpu.dot_dimension_numbers<[1], [0], [0], [1], [0, 0, 1, 1], [], []>} : vector<80x32xbf16>, vector<32x32xbf16>, vector<80x32xf32> -> vector<80x32xf32>
    %126 = arith.addf %121, %125 : vector<80x32xf32>
    %127 = vector.extract_strided_slice %115 {offsets = [2, 0], sizes = [80, 32], strides = [1, 1]} : vector<112x32xf32> to vector<80x32xf32>
    %128 = arith.truncf %127 : vector<80x32xf32> to vector<80x32xbf16>
    %c64_47 = arith.constant 64 : index
    %c0_48 = arith.constant 0 : index
    %129 = vector.load %arg7[%c64_47, %c0_48] : memref<288x32xbf16, #tpu.memory_space<vmem>>, vector<32x32xbf16>
    %cst_49 = arith.constant dense<0.000000e+00> : vector<80x32xf32>
    %130 = tpu.matmul %128, %129, %cst_49 {dimension_numbers = #tpu.dot_dimension_numbers<[1], [0], [0], [1], [0, 0, 1, 1], [], []>} : vector<80x32xbf16>, vector<32x32xbf16>, vector<80x32xf32> -> vector<80x32xf32>
    %131 = arith.addf %126, %130 : vector<80x32xf32>
    %132 = vector.extract_strided_slice %115 {offsets = [12, 0], sizes = [80, 32], strides = [1, 1]} : vector<112x32xf32> to vector<80x32xf32>
    %133 = arith.truncf %132 : vector<80x32xf32> to vector<80x32xbf16>
    %c96_50 = arith.constant 96 : index
    %c0_51 = arith.constant 0 : index
    %134 = vector.load %arg7[%c96_50, %c0_51] : memref<288x32xbf16, #tpu.memory_space<vmem>>, vector<32x32xbf16>
    %cst_52 = arith.constant dense<0.000000e+00> : vector<80x32xf32>
    %135 = tpu.matmul %133, %134, %cst_52 {dimension_numbers = #tpu.dot_dimension_numbers<[1], [0], [0], [1], [0, 0, 1, 1], [], []>} : vector<80x32xbf16>, vector<32x32xbf16>, vector<80x32xf32> -> vector<80x32xf32>
    %136 = arith.addf %131, %135 : vector<80x32xf32>
    %137 = vector.extract_strided_slice %115 {offsets = [13, 0], sizes = [80, 32], strides = [1, 1]} : vector<112x32xf32> to vector<80x32xf32>
    %138 = arith.truncf %137 : vector<80x32xf32> to vector<80x32xbf16>
    %c128_53 = arith.constant 128 : index
    %c0_54 = arith.constant 0 : index
    %139 = vector.load %arg7[%c128_53, %c0_54] : memref<288x32xbf16, #tpu.memory_space<vmem>>, vector<32x32xbf16>
    %cst_55 = arith.constant dense<0.000000e+00> : vector<80x32xf32>
    %140 = tpu.matmul %138, %139, %cst_55 {dimension_numbers = #tpu.dot_dimension_numbers<[1], [0], [0], [1], [0, 0, 1, 1], [], []>} : vector<80x32xbf16>, vector<32x32xbf16>, vector<80x32xf32> -> vector<80x32xf32>
    %141 = arith.addf %136, %140 : vector<80x32xf32>
    %142 = vector.extract_strided_slice %115 {offsets = [14, 0], sizes = [80, 32], strides = [1, 1]} : vector<112x32xf32> to vector<80x32xf32>
    %143 = arith.truncf %142 : vector<80x32xf32> to vector<80x32xbf16>
    %c160_56 = arith.constant 160 : index
    %c0_57 = arith.constant 0 : index
    %144 = vector.load %arg7[%c160_56, %c0_57] : memref<288x32xbf16, #tpu.memory_space<vmem>>, vector<32x32xbf16>
    %cst_58 = arith.constant dense<0.000000e+00> : vector<80x32xf32>
    %145 = tpu.matmul %143, %144, %cst_58 {dimension_numbers = #tpu.dot_dimension_numbers<[1], [0], [0], [1], [0, 0, 1, 1], [], []>} : vector<80x32xbf16>, vector<32x32xbf16>, vector<80x32xf32> -> vector<80x32xf32>
    %146 = arith.addf %141, %145 : vector<80x32xf32>
    %147 = vector.extract_strided_slice %115 {offsets = [24, 0], sizes = [80, 32], strides = [1, 1]} : vector<112x32xf32> to vector<80x32xf32>
    %148 = arith.truncf %147 : vector<80x32xf32> to vector<80x32xbf16>
    %c192_59 = arith.constant 192 : index
    %c0_60 = arith.constant 0 : index
    %149 = vector.load %arg7[%c192_59, %c0_60] : memref<288x32xbf16, #tpu.memory_space<vmem>>, vector<32x32xbf16>
    %cst_61 = arith.constant dense<0.000000e+00> : vector<80x32xf32>
    %150 = tpu.matmul %148, %149, %cst_61 {dimension_numbers = #tpu.dot_dimension_numbers<[1], [0], [0], [1], [0, 0, 1, 1], [], []>} : vector<80x32xbf16>, vector<32x32xbf16>, vector<80x32xf32> -> vector<80x32xf32>
    %151 = arith.addf %146, %150 : vector<80x32xf32>
    %152 = vector.extract_strided_slice %115 {offsets = [25, 0], sizes = [80, 32], strides = [1, 1]} : vector<112x32xf32> to vector<80x32xf32>
    %153 = arith.truncf %152 : vector<80x32xf32> to vector<80x32xbf16>
    %c224_62 = arith.constant 224 : index
    %c0_63 = arith.constant 0 : index
    %154 = vector.load %arg7[%c224_62, %c0_63] : memref<288x32xbf16, #tpu.memory_space<vmem>>, vector<32x32xbf16>
    %cst_64 = arith.constant dense<0.000000e+00> : vector<80x32xf32>
    %155 = tpu.matmul %153, %154, %cst_64 {dimension_numbers = #tpu.dot_dimension_numbers<[1], [0], [0], [1], [0, 0, 1, 1], [], []>} : vector<80x32xbf16>, vector<32x32xbf16>, vector<80x32xf32> -> vector<80x32xf32>
    %156 = arith.addf %151, %155 : vector<80x32xf32>
    %157 = vector.extract_strided_slice %115 {offsets = [26, 0], sizes = [80, 32], strides = [1, 1]} : vector<112x32xf32> to vector<80x32xf32>
    %158 = arith.truncf %157 : vector<80x32xf32> to vector<80x32xbf16>
    %c256_65 = arith.constant 256 : index
    %c0_66 = arith.constant 0 : index
    %159 = vector.load %arg7[%c256_65, %c0_66] : memref<288x32xbf16, #tpu.memory_space<vmem>>, vector<32x32xbf16>
    %cst_67 = arith.constant dense<0.000000e+00> : vector<80x32xf32>
    %160 = tpu.matmul %158, %159, %cst_67 {dimension_numbers = #tpu.dot_dimension_numbers<[1], [0], [0], [1], [0, 0, 1, 1], [], []>} : vector<80x32xbf16>, vector<32x32xbf16>, vector<80x32xf32> -> vector<80x32xf32>
    %161 = arith.addf %156, %160 : vector<80x32xf32>
    %c0_68 = arith.constant 0 : index
    %c0_69 = arith.constant 0 : index
    %162 = vector.load %arg8[%c0_68, %c0_69] : memref<1x32xf32, #tpu.memory_space<vmem>>, vector<1x32xf32>
    %163 = vector.broadcast %162 : vector<1x32xf32> to vector<80x32xf32>
    %164 = arith.addf %161, %163 : vector<80x32xf32>
    %cst_70 = arith.constant 0.000000e+00 : f32
    %165 = vector.broadcast %cst_70 : f32 to vector<80x32xf32>
    %166 = arith.maximumf %164, %165 : vector<80x32xf32>
    %cst_71 = arith.constant 0.000000e+00 : f32
    %167 = vector.broadcast %cst_71 : f32 to vector<48x32xf32>
    %168 = vector.extract_strided_slice %166 {offsets = [0, 0], sizes = [48, 32], strides = [1, 1]} : vector<80x32xf32> to vector<48x32xf32>
    %169 = arith.truncf %168 : vector<48x32xf32> to vector<48x32xbf16>
    %c0_72 = arith.constant 0 : index
    %c0_73 = arith.constant 0 : index
    %170 = vector.load %arg9[%c0_72, %c0_73] : memref<288x32xbf16, #tpu.memory_space<vmem>>, vector<32x32xbf16>
    %cst_74 = arith.constant dense<0.000000e+00> : vector<48x32xf32>
    %171 = tpu.matmul %169, %170, %cst_74 {dimension_numbers = #tpu.dot_dimension_numbers<[1], [0], [0], [1], [0, 0, 1, 1], [], []>} : vector<48x32xbf16>, vector<32x32xbf16>, vector<48x32xf32> -> vector<48x32xf32>
    %172 = arith.addf %167, %171 : vector<48x32xf32>
    %173 = vector.extract_strided_slice %166 {offsets = [1, 0], sizes = [48, 32], strides = [1, 1]} : vector<80x32xf32> to vector<48x32xf32>
    %174 = arith.truncf %173 : vector<48x32xf32> to vector<48x32xbf16>
    %c32_75 = arith.constant 32 : index
    %c0_76 = arith.constant 0 : index
    %175 = vector.load %arg9[%c32_75, %c0_76] : memref<288x32xbf16, #tpu.memory_space<vmem>>, vector<32x32xbf16>
    %cst_77 = arith.constant dense<0.000000e+00> : vector<48x32xf32>
    %176 = tpu.matmul %174, %175, %cst_77 {dimension_numbers = #tpu.dot_dimension_numbers<[1], [0], [0], [1], [0, 0, 1, 1], [], []>} : vector<48x32xbf16>, vector<32x32xbf16>, vector<48x32xf32> -> vector<48x32xf32>
    %177 = arith.addf %172, %176 : vector<48x32xf32>
    %178 = vector.extract_strided_slice %166 {offsets = [2, 0], sizes = [48, 32], strides = [1, 1]} : vector<80x32xf32> to vector<48x32xf32>
    %179 = arith.truncf %178 : vector<48x32xf32> to vector<48x32xbf16>
    %c64_78 = arith.constant 64 : index
    %c0_79 = arith.constant 0 : index
    %180 = vector.load %arg9[%c64_78, %c0_79] : memref<288x32xbf16, #tpu.memory_space<vmem>>, vector<32x32xbf16>
    %cst_80 = arith.constant dense<0.000000e+00> : vector<48x32xf32>
    %181 = tpu.matmul %179, %180, %cst_80 {dimension_numbers = #tpu.dot_dimension_numbers<[1], [0], [0], [1], [0, 0, 1, 1], [], []>} : vector<48x32xbf16>, vector<32x32xbf16>, vector<48x32xf32> -> vector<48x32xf32>
    %182 = arith.addf %177, %181 : vector<48x32xf32>
    %183 = vector.extract_strided_slice %166 {offsets = [12, 0], sizes = [48, 32], strides = [1, 1]} : vector<80x32xf32> to vector<48x32xf32>
    %184 = arith.truncf %183 : vector<48x32xf32> to vector<48x32xbf16>
    %c96_81 = arith.constant 96 : index
    %c0_82 = arith.constant 0 : index
    %185 = vector.load %arg9[%c96_81, %c0_82] : memref<288x32xbf16, #tpu.memory_space<vmem>>, vector<32x32xbf16>
    %cst_83 = arith.constant dense<0.000000e+00> : vector<48x32xf32>
    %186 = tpu.matmul %184, %185, %cst_83 {dimension_numbers = #tpu.dot_dimension_numbers<[1], [0], [0], [1], [0, 0, 1, 1], [], []>} : vector<48x32xbf16>, vector<32x32xbf16>, vector<48x32xf32> -> vector<48x32xf32>
    %187 = arith.addf %182, %186 : vector<48x32xf32>
    %188 = vector.extract_strided_slice %166 {offsets = [13, 0], sizes = [48, 32], strides = [1, 1]} : vector<80x32xf32> to vector<48x32xf32>
    %189 = arith.truncf %188 : vector<48x32xf32> to vector<48x32xbf16>
    %c128_84 = arith.constant 128 : index
    %c0_85 = arith.constant 0 : index
    %190 = vector.load %arg9[%c128_84, %c0_85] : memref<288x32xbf16, #tpu.memory_space<vmem>>, vector<32x32xbf16>
    %cst_86 = arith.constant dense<0.000000e+00> : vector<48x32xf32>
    %191 = tpu.matmul %189, %190, %cst_86 {dimension_numbers = #tpu.dot_dimension_numbers<[1], [0], [0], [1], [0, 0, 1, 1], [], []>} : vector<48x32xbf16>, vector<32x32xbf16>, vector<48x32xf32> -> vector<48x32xf32>
    %192 = arith.addf %187, %191 : vector<48x32xf32>
    %193 = vector.extract_strided_slice %166 {offsets = [14, 0], sizes = [48, 32], strides = [1, 1]} : vector<80x32xf32> to vector<48x32xf32>
    %194 = arith.truncf %193 : vector<48x32xf32> to vector<48x32xbf16>
    %c160_87 = arith.constant 160 : index
    %c0_88 = arith.constant 0 : index
    %195 = vector.load %arg9[%c160_87, %c0_88] : memref<288x32xbf16, #tpu.memory_space<vmem>>, vector<32x32xbf16>
    %cst_89 = arith.constant dense<0.000000e+00> : vector<48x32xf32>
    %196 = tpu.matmul %194, %195, %cst_89 {dimension_numbers = #tpu.dot_dimension_numbers<[1], [0], [0], [1], [0, 0, 1, 1], [], []>} : vector<48x32xbf16>, vector<32x32xbf16>, vector<48x32xf32> -> vector<48x32xf32>
    %197 = arith.addf %192, %196 : vector<48x32xf32>
    %198 = vector.extract_strided_slice %166 {offsets = [24, 0], sizes = [48, 32], strides = [1, 1]} : vector<80x32xf32> to vector<48x32xf32>
    %199 = arith.truncf %198 : vector<48x32xf32> to vector<48x32xbf16>
    %c192_90 = arith.constant 192 : index
    %c0_91 = arith.constant 0 : index
    %200 = vector.load %arg9[%c192_90, %c0_91] : memref<288x32xbf16, #tpu.memory_space<vmem>>, vector<32x32xbf16>
    %cst_92 = arith.constant dense<0.000000e+00> : vector<48x32xf32>
    %201 = tpu.matmul %199, %200, %cst_92 {dimension_numbers = #tpu.dot_dimension_numbers<[1], [0], [0], [1], [0, 0, 1, 1], [], []>} : vector<48x32xbf16>, vector<32x32xbf16>, vector<48x32xf32> -> vector<48x32xf32>
    %202 = arith.addf %197, %201 : vector<48x32xf32>
    %203 = vector.extract_strided_slice %166 {offsets = [25, 0], sizes = [48, 32], strides = [1, 1]} : vector<80x32xf32> to vector<48x32xf32>
    %204 = arith.truncf %203 : vector<48x32xf32> to vector<48x32xbf16>
    %c224_93 = arith.constant 224 : index
    %c0_94 = arith.constant 0 : index
    %205 = vector.load %arg9[%c224_93, %c0_94] : memref<288x32xbf16, #tpu.memory_space<vmem>>, vector<32x32xbf16>
    %cst_95 = arith.constant dense<0.000000e+00> : vector<48x32xf32>
    %206 = tpu.matmul %204, %205, %cst_95 {dimension_numbers = #tpu.dot_dimension_numbers<[1], [0], [0], [1], [0, 0, 1, 1], [], []>} : vector<48x32xbf16>, vector<32x32xbf16>, vector<48x32xf32> -> vector<48x32xf32>
    %207 = arith.addf %202, %206 : vector<48x32xf32>
    %208 = vector.extract_strided_slice %166 {offsets = [26, 0], sizes = [48, 32], strides = [1, 1]} : vector<80x32xf32> to vector<48x32xf32>
    %209 = arith.truncf %208 : vector<48x32xf32> to vector<48x32xbf16>
    %c256_96 = arith.constant 256 : index
    %c0_97 = arith.constant 0 : index
    %210 = vector.load %arg9[%c256_96, %c0_97] : memref<288x32xbf16, #tpu.memory_space<vmem>>, vector<32x32xbf16>
    %cst_98 = arith.constant dense<0.000000e+00> : vector<48x32xf32>
    %211 = tpu.matmul %209, %210, %cst_98 {dimension_numbers = #tpu.dot_dimension_numbers<[1], [0], [0], [1], [0, 0, 1, 1], [], []>} : vector<48x32xbf16>, vector<32x32xbf16>, vector<48x32xf32> -> vector<48x32xf32>
    %212 = arith.addf %207, %211 : vector<48x32xf32>
    %c0_99 = arith.constant 0 : index
    %c0_100 = arith.constant 0 : index
    %213 = vector.load %arg10[%c0_99, %c0_100] : memref<1x32xf32, #tpu.memory_space<vmem>>, vector<1x32xf32>
    %214 = vector.broadcast %213 : vector<1x32xf32> to vector<48x32xf32>
    %215 = arith.addf %212, %214 : vector<48x32xf32>
    %cst_101 = arith.constant 0.000000e+00 : f32
    %216 = vector.broadcast %cst_101 : f32 to vector<48x32xf32>
    %217 = arith.maximumf %215, %216 : vector<48x32xf32>
    %c0_102 = arith.constant 0 : index
    %c0_103 = arith.constant 0 : index
    %c0_104 = arith.constant 0 : index
    %218 = vector.load %arg11[%c0_102, %c0_103, %c0_104] : memref<1x48x32xf32, #tpu.memory_space<vmem>>, vector<1x48x32xf32>
    %219 = vector.shape_cast %218 : vector<1x48x32xf32> to vector<48x32xf32>
    %220 = vector.shape_cast %217 : vector<48x32xf32> to vector<1x48x32xf32>
    tpu.vector_store %arg11[%c0_102, %c0_103, %c0_104], %220 {strides = array<i32>} : memref<1x48x32xf32, #tpu.memory_space<vmem>>, vector<1x48x32xf32>,
    return
  }
  func.func @transform_0(%arg0: i32) -> (i32, i32, i32) {
    %c0_i32 = arith.constant 0 : i32
    %c0_i32_0 = arith.constant 0 : i32
    %c0_i32_1 = arith.constant 0 : i32
    return %arg0, %c0_i32, %c0_i32_0 : i32, i32, i32
  }
  func.func @transform_1(%arg0: i32) -> (i32, i32) {
    %c0_i32 = arith.constant 0 : i32
    %c0_i32_0 = arith.constant 0 : i32
    %c0_i32_1 = arith.constant 0 : i32
    return %c0_i32, %c0_i32_0 : i32, i32
  }
  func.func @transform_2(%arg0: i32) -> (i32, i32) {
    %c0_i32 = arith.constant 0 : i32
    %c0_i32_0 = arith.constant 0 : i32
    %c0_i32_1 = arith.constant 0 : i32
    return %c0_i32, %c0_i32_0 : i32, i32
  }
  func.func @transform_3(%arg0: i32) -> (i32, i32) {
    %c0_i32 = arith.constant 0 : i32
    %c0_i32_0 = arith.constant 0 : i32
    %c0_i32_1 = arith.constant 0 : i32
    return %c0_i32, %c0_i32_0 : i32, i32
  }
  func.func @transform_4(%arg0: i32) -> (i32, i32) {
    %c0_i32 = arith.constant 0 : i32
    %c0_i32_0 = arith.constant 0 : i32
    %c0_i32_1 = arith.constant 0 : i32
    return %c0_i32, %c0_i32_0 : i32, i32
  }
  func.func @transform_5(%arg0: i32) -> (i32, i32) {
    %c0_i32 = arith.constant 0 : i32
    %c0_i32_0 = arith.constant 0 : i32
    %c0_i32_1 = arith.constant 0 : i32
    return %c0_i32, %c0_i32_0 : i32, i32
  }
  func.func @transform_6(%arg0: i32) -> (i32, i32) {
    %c0_i32 = arith.constant 0 : i32
    %c0_i32_0 = arith.constant 0 : i32
    %c0_i32_1 = arith.constant 0 : i32
    return %c0_i32, %c0_i32_0 : i32, i32
  }
  func.func @transform_7(%arg0: i32) -> (i32, i32) {
    %c0_i32 = arith.constant 0 : i32
    %c0_i32_0 = arith.constant 0 : i32
    %c0_i32_1 = arith.constant 0 : i32
    return %c0_i32, %c0_i32_0 : i32, i32
  }
  func.func @transform_8(%arg0: i32) -> (i32, i32) {
    %c0_i32 = arith.constant 0 : i32
    %c0_i32_0 = arith.constant 0 : i32
    %c0_i32_1 = arith.constant 0 : i32
    return %c0_i32, %c0_i32_0 : i32, i32
  }
  func.func @transform_9(%arg0: i32) -> (i32, i32) {
    %c0_i32 = arith.constant 0 : i32
    %c0_i32_0 = arith.constant 0 : i32
    %c0_i32_1 = arith.constant 0 : i32
    return %c0_i32, %c0_i32_0 : i32, i32
  }
  func.func @transform_10(%arg0: i32) -> (i32, i32, i32) {
    %c0_i32 = arith.constant 0 : i32
    %c0_i32_0 = arith.constant 0 : i32
    %c0_i32_1 = arith.constant 0 : i32
    return %arg0, %c0_i32, %c0_i32_0 : i32, i32, i32
  }
}

module attributes {stable_mosaic.version = 11 : i64} {
  func.func @fc_head_kernel(%arg0: i32, %arg1: memref<2x256xf32, #tpu.memory_space<vmem>>, %arg2: memref<256x1024xbf16, #tpu.memory_space<vmem>>, %arg3: memref<1x1024xf32, #tpu.memory_space<vmem>>, %arg4: memref<1024x512xbf16, #tpu.memory_space<vmem>>, %arg5: memref<1x512xf32, #tpu.memory_space<vmem>>, %arg6: memref<512x128xbf16, #tpu.memory_space<vmem>>, %arg7: memref<1x128xf32, #tpu.memory_space<vmem>>, %arg8: memref<2x128xf32, #tpu.memory_space<vmem>>, %arg9: memref<2x1xf32, #tpu.memory_space<vmem>>, %arg10: memref<2x1024xf32, #tpu.memory_space<vmem>>) attributes {dimension_semantics = [#tpu.dimension_semantics<arbitrary>], iteration_bounds = array<i64: 2>, scalar_prefetch = 0 : i64, scratch_operands = 1 : i64, tpu.core_type = #tpu.core_type<tc>, window_params = [{transform_indices = @transform_0, window_bounds = array<i64: 2, 256>}, {transform_indices = @transform_1, window_bounds = array<i64: 256, 1024>}, {pipeline_mode = #tpu.pipeline_mode<synchronous>, transform_indices = @transform_2, window_bounds = array<i64: 1, 1024>}, {pipeline_mode = #tpu.pipeline_mode<synchronous>, transform_indices = @transform_3, window_bounds = array<i64: 1024, 512>}, {pipeline_mode = #tpu.pipeline_mode<synchronous>, transform_indices = @transform_4, window_bounds = array<i64: 1, 512>}, {pipeline_mode = #tpu.pipeline_mode<synchronous>, transform_indices = @transform_5, window_bounds = array<i64: 512, 128>}, {pipeline_mode = #tpu.pipeline_mode<synchronous>, transform_indices = @transform_6, window_bounds = array<i64: 1, 128>}, {pipeline_mode = #tpu.pipeline_mode<synchronous>, transform_indices = @transform_7, window_bounds = array<i64: 2, 128>}, {pipeline_mode = #tpu.pipeline_mode<synchronous>, transform_indices = @transform_8, window_bounds = array<i64: 2, 1>}]} {
    %c0_i32 = arith.constant 0 : i32
    %0 = arith.cmpi eq, %arg0, %c0_i32 : i32
    %1 = arith.extui %0 : i1 to i32
    %c0_i32_0 = arith.constant 0 : i32
    %2 = arith.cmpi ne, %1, %c0_i32_0 : i32
    scf.if %2 {
      %cst_9 = arith.constant 0.000000e+00 : f32
      %13 = vector.broadcast %cst_9 : f32 to vector<2x1024xf32>
      %c0_10 = arith.constant 0 : index
      %c0_11 = arith.constant 0 : index
      %14 = vector.load %arg10[%c0_10, %c0_11] : memref<2x1024xf32, #tpu.memory_space<vmem>>, vector<2x1024xf32>
      tpu.vector_store %arg10[%c0_10, %c0_11], %13 {strides = array<i32>} : memref<2x1024xf32, #tpu.memory_space<vmem>>, vector<2x1024xf32>,
    } else {
    }
    %c0 = arith.constant 0 : index
    %c0_1 = arith.constant 0 : index
    %3 = vector.load %arg10[%c0, %c0_1] : memref<2x1024xf32, #tpu.memory_space<vmem>>, vector<2x1024xf32>
    %c0_2 = arith.constant 0 : index
    %c0_3 = arith.constant 0 : index
    %4 = vector.load %arg1[%c0_2, %c0_3] : memref<2x256xf32, #tpu.memory_space<vmem>>, vector<2x256xf32>
    %5 = arith.truncf %4 : vector<2x256xf32> to vector<2x256xbf16>
    %c0_4 = arith.constant 0 : index
    %c0_5 = arith.constant 0 : index
    %6 = vector.load %arg2[%c0_4, %c0_5] : memref<256x1024xbf16, #tpu.memory_space<vmem>>, vector<256x1024xbf16>
    %cst = arith.constant dense<0.000000e+00> : vector<2x1024xf32>
    %7 = tpu.matmul %5, %6, %cst {dimension_numbers = #tpu.dot_dimension_numbers<[1], [0], [0], [1], [0, 0, 1, 1], [], []>} : vector<2x256xbf16>, vector<256x1024xbf16>, vector<2x1024xf32> -> vector<2x1024xf32>
    %8 = arith.addf %3, %7 : vector<2x1024xf32>
    %c0_6 = arith.constant 0 : index
    %c0_7 = arith.constant 0 : index
    %9 = vector.load %arg10[%c0_6, %c0_7] : memref<2x1024xf32, #tpu.memory_space<vmem>>, vector<2x1024xf32>
    tpu.vector_store %arg10[%c0_6, %c0_7], %8 {strides = array<i32>} : memref<2x1024xf32, #tpu.memory_space<vmem>>, vector<2x1024xf32>,
    %c1_i32 = arith.constant 1 : i32
    %10 = arith.cmpi eq, %arg0, %c1_i32 : i32
    %11 = arith.extui %10 : i1 to i32
    %c0_i32_8 = arith.constant 0 : i32
    %12 = arith.cmpi ne, %11, %c0_i32_8 : i32
    scf.if %12 {
      %c0_9 = arith.constant 0 : index
      %c0_10 = arith.constant 0 : index
      %13 = vector.load %arg10[%c0_9, %c0_10] : memref<2x1024xf32, #tpu.memory_space<vmem>>, vector<2x1024xf32>
      %c0_11 = arith.constant 0 : index
      %c0_12 = arith.constant 0 : index
      %14 = vector.load %arg3[%c0_11, %c0_12] : memref<1x1024xf32, #tpu.memory_space<vmem>>, vector<1x1024xf32>
      %15 = vector.broadcast %14 : vector<1x1024xf32> to vector<2x1024xf32>
      %16 = arith.addf %13, %15 : vector<2x1024xf32>
      %cst_13 = arith.constant 0.000000e+00 : f32
      %17 = vector.broadcast %cst_13 : f32 to vector<2x1024xf32>
      %18 = arith.maximumf %16, %17 : vector<2x1024xf32>
      %19 = arith.truncf %18 : vector<2x1024xf32> to vector<2x1024xbf16>
      %c0_14 = arith.constant 0 : index
      %c0_15 = arith.constant 0 : index
      %20 = vector.load %arg4[%c0_14, %c0_15] : memref<1024x512xbf16, #tpu.memory_space<vmem>>, vector<1024x512xbf16>
      %cst_16 = arith.constant dense<0.000000e+00> : vector<2x512xf32>
      %21 = tpu.matmul %19, %20, %cst_16 {dimension_numbers = #tpu.dot_dimension_numbers<[1], [0], [0], [1], [0, 0, 1, 1], [], []>} : vector<2x1024xbf16>, vector<1024x512xbf16>, vector<2x512xf32> -> vector<2x512xf32>
      %c0_17 = arith.constant 0 : index
      %c0_18 = arith.constant 0 : index
      %22 = vector.load %arg5[%c0_17, %c0_18] : memref<1x512xf32, #tpu.memory_space<vmem>>, vector<1x512xf32>
      %23 = vector.broadcast %22 : vector<1x512xf32> to vector<2x512xf32>
      %24 = arith.addf %21, %23 : vector<2x512xf32>
      %cst_19 = arith.constant 0.000000e+00 : f32
      %25 = vector.broadcast %cst_19 : f32 to vector<2x512xf32>
      %26 = arith.maximumf %24, %25 : vector<2x512xf32>
      %27 = arith.truncf %26 : vector<2x512xf32> to vector<2x512xbf16>
      %c0_20 = arith.constant 0 : index
      %c0_21 = arith.constant 0 : index
      %28 = vector.load %arg6[%c0_20, %c0_21] : memref<512x128xbf16, #tpu.memory_space<vmem>>, vector<512x128xbf16>
      %cst_22 = arith.constant dense<0.000000e+00> : vector<2x128xf32>
      %29 = tpu.matmul %27, %28, %cst_22 {dimension_numbers = #tpu.dot_dimension_numbers<[1], [0], [0], [1], [0, 0, 1, 1], [], []>} : vector<2x512xbf16>, vector<512x128xbf16>, vector<2x128xf32> -> vector<2x128xf32>
      %c0_23 = arith.constant 0 : index
      %c0_24 = arith.constant 0 : index
      %30 = vector.load %arg7[%c0_23, %c0_24] : memref<1x128xf32, #tpu.memory_space<vmem>>, vector<1x128xf32>
      %31 = vector.broadcast %30 : vector<1x128xf32> to vector<2x128xf32>
      %32 = arith.addf %29, %31 : vector<2x128xf32>
      %33 = tpu.iota {dimensions = array<i32: 1>} : vector<2x128xi32>
      %c65_i32 = arith.constant 65 : i32
      %34 = vector.broadcast %c65_i32 : i32 to vector<2x128xi32>
      %35 = arith.cmpi slt, %33, %34 : vector<2x128xi32>
      %cst_25 = arith.constant -1.000000e+30 : f32
      %36 = vector.broadcast %cst_25 : f32 to vector<2x128xf32>
      %37 = arith.select %35, %32, %36 : vector<2x128xi1>, vector<2x128xf32>
      %cst_26 = arith.constant dense<0xFF800000> : vector<2xf32>
      %38 = vector.multi_reduction <maximumf>, %37, %cst_26 [1] : vector<2x128xf32> to vector<2xf32>
      %39 = vector.shape_cast %38 : vector<2xf32> to vector<2x1xf32>
      %40 = vector.broadcast %39 : vector<2x1xf32> to vector<2x128xf32>
      %41 = arith.subf %37, %40 : vector<2x128xf32>
      %42 = math.exp %41 : vector<2x128xf32>
      %cst_27 = arith.constant dense<0.000000e+00> : vector<2xf32>
      %43 = vector.multi_reduction <add>, %42, %cst_27 [1] : vector<2x128xf32> to vector<2xf32>
      %44 = vector.shape_cast %43 : vector<2xf32> to vector<2x1xf32>
      %45 = tpu.reciprocal %44 {approx = true} : vector<2x1xf32> -> vector<2x1xf32>
      %46 = vector.broadcast %45 : vector<2x1xf32> to vector<2x128xf32>
      %47 = arith.mulf %42, %46 : vector<2x128xf32>
      %c0_28 = arith.constant 0 : index
      %c0_29 = arith.constant 0 : index
      %48 = vector.load %arg8[%c0_28, %c0_29] : memref<2x128xf32, #tpu.memory_space<vmem>>, vector<2x128xf32>
      tpu.vector_store %arg8[%c0_28, %c0_29], %47 {strides = array<i32>} : memref<2x128xf32, #tpu.memory_space<vmem>>, vector<2x128xf32>,
      %c65_i32_30 = arith.constant 65 : i32
      %49 = vector.broadcast %c65_i32_30 : i32 to vector<2x128xi32>
      %50 = arith.cmpi eq, %33, %49 : vector<2x128xi32>
      %cst_31 = arith.constant 0.000000e+00 : f32
      %51 = vector.broadcast %cst_31 : f32 to vector<2x128xf32>
      %52 = arith.select %50, %32, %51 : vector<2x128xi1>, vector<2x128xf32>
      %cst_32 = arith.constant dense<0.000000e+00> : vector<2xf32>
      %53 = vector.multi_reduction <add>, %52, %cst_32 [1] : vector<2x128xf32> to vector<2xf32>
      %54 = vector.shape_cast %53 : vector<2xf32> to vector<2x1xf32>
      %55 = math.tanh %54 : vector<2x1xf32>
      %c0_33 = arith.constant 0 : index
      %c0_34 = arith.constant 0 : index
      %56 = vector.load %arg9[%c0_33, %c0_34] : memref<2x1xf32, #tpu.memory_space<vmem>>, vector<2x1xf32>
      tpu.vector_store %arg9[%c0_33, %c0_34], %55 {strides = array<i32>} : memref<2x1xf32, #tpu.memory_space<vmem>>, vector<2x1xf32>,
    } else {
    }
    return
  }
  func.func @transform_0(%arg0: i32) -> (i32, i32) {
    %c0_i32 = arith.constant 0 : i32
    %c0_i32_0 = arith.constant 0 : i32
    return %c0_i32, %arg0 : i32, i32
  }
  func.func @transform_1(%arg0: i32) -> (i32, i32) {
    %c0_i32 = arith.constant 0 : i32
    %c0_i32_0 = arith.constant 0 : i32
    return %arg0, %c0_i32 : i32, i32
  }
  func.func @transform_2(%arg0: i32) -> (i32, i32) {
    %c0_i32 = arith.constant 0 : i32
    %c0_i32_0 = arith.constant 0 : i32
    %c0_i32_1 = arith.constant 0 : i32
    return %c0_i32, %c0_i32_0 : i32, i32
  }
  func.func @transform_3(%arg0: i32) -> (i32, i32) {
    %c0_i32 = arith.constant 0 : i32
    %c0_i32_0 = arith.constant 0 : i32
    %c0_i32_1 = arith.constant 0 : i32
    return %c0_i32, %c0_i32_0 : i32, i32
  }
  func.func @transform_4(%arg0: i32) -> (i32, i32) {
    %c0_i32 = arith.constant 0 : i32
    %c0_i32_0 = arith.constant 0 : i32
    %c0_i32_1 = arith.constant 0 : i32
    return %c0_i32, %c0_i32_0 : i32, i32
  }
  func.func @transform_5(%arg0: i32) -> (i32, i32) {
    %c0_i32 = arith.constant 0 : i32
    %c0_i32_0 = arith.constant 0 : i32
    %c0_i32_1 = arith.constant 0 : i32
    return %c0_i32, %c0_i32_0 : i32, i32
  }
  func.func @transform_6(%arg0: i32) -> (i32, i32) {
    %c0_i32 = arith.constant 0 : i32
    %c0_i32_0 = arith.constant 0 : i32
    %c0_i32_1 = arith.constant 0 : i32
    return %c0_i32, %c0_i32_0 : i32, i32
  }
  func.func @transform_7(%arg0: i32) -> (i32, i32) {
    %c0_i32 = arith.constant 0 : i32
    %c0_i32_0 = arith.constant 0 : i32
    %c0_i32_1 = arith.constant 0 : i32
    return %c0_i32, %c0_i32_0 : i32, i32
  }
  func.func @transform_8(%arg0: i32) -> (i32, i32) {
    %c0_i32 = arith.constant 0 : i32
    %c0_i32_0 = arith.constant 0 : i32
    %c0_i32_1 = arith.constant 0 : i32
    return %c0_i32, %c0_i32_0 : i32, i32
  }
}

</mosaic_0001>

<bundles_post_ra>
// kernel: othello_forward.2
= control target key start
LH: loop header
LB: loop body
LE: loop exit
PB: predicated region body
PF: predicated region fallthrough
CT: control target
= control target key end

     0   :  { %s10071_s0 = inlined_call_operand.hbm [shape: f32[2,176,1], index: 0, kind: input, shape index: {}]   ;;  %s10072_s1 = inlined_call_operand.hbm [shape: f32[144,1], index: 1, kind: input, shape index: {}]   ;;  %s10073_s2 = inlined_call_operand.hbm [shape: f32[9,32], index: 2, kind: input, shape index: {}]   ;;  %s10074_s3 = inlined_call_operand.hbm [shape: f32[1,32], index: 3, kind: input, shape index: {}]   ;;  %s10075_s4 = inlined_call_operand.hbm [shape: bf16[288,32], index: 4, kind: input, shape index: {}]   ;;  %s10076_s5 = inlined_call_operand.hbm [shape: f32[1,32], index: 5, kind: input, shape index: {}]   ;;  %s10077_s6 = inlined_call_operand.hbm [shape: bf16[288,32], index: 6, kind: input, shape index: {}]   ;;  %s10078_s7 = inlined_call_operand.hbm [shape: f32[1,32], index: 7, kind: input, shape index: {}]   ;;  %s10079_s8 = inlined_call_operand.hbm [shape: bf16[288,32], index: 8, kind: input, shape index: {}]   ;;  %s10080_s9 = inlined_call_operand.hbm [shape: f32[1,32], index: 9, kind: input, shape index: {}]   ;;  %s10081_s10 = inlined_call_operand.hbm [shape: f32[2,48,32], index: 10, kind: output, shape index: {}]  }
   0x1   :  { %10111 = sst [smem:[#allocation32_spill]] %s10072_s1 }
   0x2   :  { %10112 = sst [smem:[#allocation33_spill]] %s10073_s2 }
   0x3   :  { %10113 = sst [smem:[#allocation34_spill]] %s10074_s3 }
   0x4   :  { %10114 = sst [smem:[#allocation35_spill]] %s10081_s10 }
   0x5   :  { %15 = vsyncpa [#allocation3], 0 }
   0x6   :  { %17 = vsyncpa [#allocation3 + $0x1], 0 }
   0x7   :  { %18 = vsyncpa [#allocation6], 0 }
   0x8   :  { %19 = vsyncpa [#allocation9], 0 }
   0x9   :  { %20 = vsyncpa [#allocation12], 0 }
   0xa   :  { %21 = vsyncpa [#allocation15], 0 }
   0xb   :  { %22 = vsyncpa [#allocation18], 0 }
   0xc   :  { %23 = vsyncpa [#allocation4], 0 }
   0xd   :  { %25 = vsyncpa [#allocation4 + $0x1], 0  ;;  %s7262_s13 = smov 0   ;;  %s7264_s14 = smov 0  }
   0xe   :  { %s7266_s15 = smov 0   ;;  %s7268_s16 = smov 0  }
   0xf LB: > { %s7187_s17 = smov [#allocation5]   ;;  %s7283_s19 = sadd.s32 4294967295, %s7185_s16   ;;  %s7185_s16 = sphi %s7268_s16, %s10184_s16   ;;  %s7181_s15 = sphi %s7266_s15, %s10183_s15   ;;  %s7177_s14 = sphi %s7264_s14, %s10182_s14   ;;  %s7173_s13 = sphi %s7262_s13, %s10181_s13  }
  0x10   : > { %s289_s18 = sshll.u32 %s7187_s17, 4  ;;  %p5536_p0 = scmp.ge.s32.totalorder %s7185_s16, 1  ;;  %s7288_s18 = int_to_ptr.vmem [resolvable:$true] %s289_s18 }
  0x11   : > { %p10086_p1 = scmp.eq.s32.totalorder %s7283_s19, 0  ;;  %p277_p2 = scmp.lt.s32.totalorder %s7185_s16, 3 }
  0x12   : > { %s7188_s21 = smov [#allocation8]   ;;  %s7189_s24 = smov [#allocation11]  }
  0x13   : > { %p7290_p3 = pnand %p5536_p0, %p277_p2  ;;  %s316_s22 = sshll.u32 %s7188_s21, 4  ;;  %s7303_s22 = int_to_ptr.vmem [resolvable:$true] %s316_s22 }
  0x14   : > { %s340_s25 = sshll.u32 %s7189_s24, 4  ;;  %s10118_s1 = sld [smem:[#allocation32_spill]]  ;;  %s7305_s25 = int_to_ptr.vmem [resolvable:$true] %s340_s25 }
  0x15   : > { %s10115_s20 = scalar_select %p7290_p3, 1, 0 }
  0x16   : > { %p6645_p5 = pneg %p7290_p3 }
  0x17   : > { %10116 = sst [smem:[#allocation27_spill]] %s10115_s20 }
  0x18   : > { %p7299_p6 = pnand %p6645_p5, %p10086_p1 }
  0x1a   : > { %s6817_s28 = scalar_lea.hbm %s10118_s1, 2304  ;;  %p7315_p8 = pneg %p7299_p6 }
  0x1b   : > { %p6818_p7 = scmp.ne.s32.totalorder %s10118_s1, %s6817_s28  ;;  %p6824_p11 = scmp.lt.u32.totalorder %s6817_s28, %s10118_s1 }
  0x1d   : > { %p6820_p9 = pnand %p7315_p8, %p6818_p7 }
  0x1f   : > { %p6821_p10 = pneg %p6820_p9 }
  0x21   : > { %p6826_p12 = pnand %p6824_p11, %p6821_p10 }
  0x23   : > { %6829 = shalt.err (!%p6826_p12)
}
  0x24   : > { %s6830_s21 = scalar_lea.vmem %s7288_s18, 2304  ;;  %p6838_p5 = scmp.lt.s32.totalorder %s7288_s18, %s7288_s18 }
  0x25   : > { %p6831_p13 = scmp.ne.s32.totalorder %s7288_s18, %s6830_s21  ;;  %p6839_p4 = scmp.lt.s32.totalorder %s6830_s21, %s6830_s21 }
  0x27   : > { %p6833_p0 = pnand %p6831_p13, %p7315_p8  ;;  %p6840_p7 = por %p6839_p4, %p6838_p5 }
  0x29   : > { %p6834_p2 = pneg %p6833_p0 }
  0x2b   : > { %p6841_p9 = pnand %p6840_p7, %p6834_p2 }
  0x2d   : > { %6844 = shalt.err (!%p6841_p9)
}
  0x2e   : > { %s10084_s24 = smov 128   ;;  %s10088_s26 = smov 8  }
  0x2f   : > { %6648 = dma.hbm_to_vmem [thread:$0]  (!%p7299_p6), %s10118_s1, 2304, %s7288_s18, [#allocation6], %s10084_s24, %s10084_s24, %s10088_s26  }
  0x30   : > { %s10120_s3 = sld [smem:[#allocation34_spill]] }
  0x36   : > { %s6845_s12 = scalar_lea.hbm %s10120_s3, 16 }
  0x37   : > { %p6846_p4 = scmp.ne.s32.totalorder %s10120_s3, %s6845_s12  ;;  %p6852_p12 = scmp.lt.u32.totalorder %s6845_s12, %s10120_s3 }
  0x39   : > { %p6848_p10 = pnand %p6846_p4, %p7315_p8 }
  0x3b   : > { %p6849_p11 = pneg %p6848_p10 }
  0x3d   : > { %p6854_p13 = pnand %p6852_p12, %p6849_p11 }
  0x3f   : > { %6857 = shalt.err (!%p6854_p13)
}
  0x40   : > { %s6858_s18 = scalar_lea.vmem %s7303_s22, 16  ;;  %s6865_s27 = scalar_lea.vmem %s7303_s22, 32 }
  0x41   : > { %p6859_p0 = scmp.ne.s32.totalorder %s7303_s22, %s6858_s18  ;;  %p6866_p7 = scmp.lt.s32.totalorder %s7303_s22, %s7303_s22 }
  0x42   : > { %p6867_p9 = scmp.lt.s32.totalorder %s6865_s27, %s6858_s18 }
  0x43   : > { %p6861_p2 = pnand %p6859_p0, %p7315_p8 }
  0x44   : > { %p6868_p4 = por %p6867_p9, %p6866_p7 }
  0x45   : > { %p6862_p5 = pneg %p6861_p2 }
  0x47   : > { %p6869_p10 = pnand %p6868_p4, %p6862_p5 }
  0x49   : > { %6872 = shalt.err (!%p6869_p10)
}
  0x4a   : > { %6654 = dma.hbm_to_vmem [thread:$0]  (!%p7299_p6), %s10120_s3, 16, %s7303_s22, [#allocation9]  }
  0x4b   : > { %s6873_s30 = scalar_lea.hbm %s10076_s5, 16 }
  0x4c   : > { %p6874_p11 = scmp.ne.s32.totalorder %s10076_s5, %s6873_s30  ;;  %p6880_p0 = scmp.lt.u32.totalorder %s6873_s30, %s10076_s5 }
  0x4e   : > { %p6876_p12 = pnand %p6874_p11, %p7315_p8 }
  0x50   : > { %p6877_p13 = pneg %p6876_p12 }
  0x52   : > { %p6882_p2 = pnand %p6880_p0, %p6877_p13 }
  0x54   : > { %6885 = shalt.err (!%p6882_p2)
}
  0x55   : > { %s6886_s22 = scalar_lea.vmem %s7305_s25, 16  ;;  %s6893_s27 = scalar_lea.vmem %s7305_s25, 32 }
  0x56   : > { %p6887_p5 = scmp.ne.s32.totalorder %s7305_s25, %s6886_s22  ;;  %p6894_p4 = scmp.lt.s32.totalorder %s7305_s25, %s7305_s25 }
  0x57   : > { %p6895_p10 = scmp.lt.s32.totalorder %s6893_s27, %s6886_s22 }
  0x58   : > { %p6889_p7 = pnand %p6887_p5, %p7315_p8 }
  0x59   : > { %p6896_p11 = por %p6895_p10, %p6894_p4 }
  0x5a   : > { %p6890_p9 = pneg %p6889_p7 }
  0x5c   : > { %p6897_p12 = pnand %p6896_p11, %p6890_p9 }
  0x5e   : > { %6900 = shalt.err (!%p6897_p12)
}
  0x5f   : > { %6660 = dma.hbm_to_vmem [thread:$0]  (!%p7299_p6), %s10076_s5, 16, %s7305_s25, [#allocation12]  }
  0x60   : > { %s7192_s28 = smov [#allocation14]   ;;  %s7193_s30 = smov [#allocation7]  }
  0x61   : > { %s364_s29 = sshll.u32 %s7192_s28, 4  ;;  %s302_s12 = sshll.u32 %s7193_s30, 4  ;;  %s365_s29 = int_to_ptr.vmem [resolvable:$true] %s364_s29  ;;  %s303_s12 = int_to_ptr.vmem [resolvable:$true] %s302_s12 }
  0x62   : > { %s6901_s18 = scalar_lea.hbm %s10078_s7, 16 }
  0x63   : > { %p6902_p13 = scmp.ne.s32.totalorder %s10078_s7, %s6901_s18  ;;  %p6908_p5 = scmp.lt.u32.totalorder %s6901_s18, %s10078_s7 }
  0x65   : > { %p6904_p0 = pnand %p6902_p13, %p7315_p8 }
  0x67   : > { %p6905_p2 = pneg %p6904_p0 }
  0x69   : > { %p6910_p7 = pnand %p6908_p5, %p6905_p2 }
  0x6b   : > { %6913 = shalt.err (!%p6910_p7)
}
  0x6c   : > { %s6914_s25 = scalar_lea.vmem %s365_s29, 16  ;;  %s6921_s20 = scalar_lea.vmem %s365_s29, 32 }
  0x6d   : > { %p6915_p9 = scmp.ne.s32.totalorder %s365_s29, %s6914_s25  ;;  %p6922_p11 = scmp.lt.s32.totalorder %s365_s29, %s365_s29 }
  0x6e   : > { %p6923_p12 = scmp.lt.s32.totalorder %s6921_s20, %s6914_s25 }
  0x6f   : > { %p6917_p4 = pnand %p6915_p9, %p7315_p8 }
  0x70   : > { %p6924_p1 = por %p6923_p12, %p6922_p11 }
  0x71   : > { %p6918_p10 = pneg %p6917_p4 }
  0x73   : > { %p6925_p3 = pnand %p6924_p1, %p6918_p10 }
  0x75   : > { %6928 = shalt.err (!%p6925_p3)
}
  0x76   : > { %6666 = dma.hbm_to_vmem [thread:$0]  (!%p7299_p6), %s10078_s7, 16, %s365_s29, [#allocation15]  }
  0x77   : > { %s10121_s2 = sld [smem:[#allocation33_spill]] }
  0x7d   : > { %s6929_s21 = scalar_lea.hbm %s10121_s2, 256 }
  0x7e   : > { %p6930_p13 = scmp.ne.s32.totalorder %s10121_s2, %s6929_s21  ;;  %p6936_p3 = scmp.lt.u32.totalorder %s6929_s21, %s10121_s2 }
  0x80   : > { %p6932_p0 = pnand %p6930_p13, %p7315_p8 }
  0x82   : > { %p6933_p1 = pneg %p6932_p0 }
  0x84   : > { %p6938_p2 = pnand %p6936_p3, %p6933_p1 }
  0x86   : > { %6941 = shalt.err (!%p6938_p2)
}
  0x87   : > { %s6942_s25 = scalar_lea.vmem %s303_s12, 256  ;;  %p6950_p4 = scmp.lt.s32.totalorder %s303_s12, %s303_s12 }
  0x88   : > { %p6943_p5 = scmp.ne.s32.totalorder %s303_s12, %s6942_s25  ;;  %p6951_p10 = scmp.lt.s32.totalorder %s6942_s25, %s6942_s25 }
  0x8a   : > { %p6945_p7 = pnand %p6943_p5, %p7315_p8  ;;  %p6952_p11 = por %p6951_p10, %p6950_p4 }
  0x8c   : > { %p6946_p9 = pneg %p6945_p7 }
  0x8e   : > { %p6953_p12 = pnand %p6952_p11, %p6946_p9 }
  0x90   : > { %6956 = shalt.err (!%p6953_p12)
}
  0x91   : > { %s10122_s29 = smov 128   ;;  %s7194_s30 = smov [#allocation10]  }
  0x92   : > { %6651 = dma.hbm_to_vmem [thread:$0]  (!%p7299_p6), %s10121_s2, 256, %s303_s12, [#allocation6], %s10122_s29, %s10122_s29, %s10088_s26  }
  0x93   : > { %s326_s24 = sshll.u32 %s7194_s30, 4  ;;  %s6957_s18 = scalar_lea.hbm %s10075_s4, 2304  ;;  %s327_s24 = int_to_ptr.vmem [resolvable:$true] %s326_s24 }
  0x94   : > { %p6958_p13 = scmp.ne.s32.totalorder %s10075_s4, %s6957_s18  ;;  %p6964_p3 = scmp.lt.u32.totalorder %s6957_s18, %s10075_s4 }
  0x96   : > { %p6960_p0 = pnand %p6958_p13, %p7315_p8 }
  0x98   : > { %p6961_p1 = pneg %p6960_p0 }
  0x9a   : > { %p6966_p2 = pnand %p6964_p3, %p6961_p1 }
  0x9c   : > { %6969 = shalt.err (!%p6966_p2)
}
  0x9d   : > { %s6970_s12 = scalar_lea.vmem %s327_s24, 2304  ;;  %p6978_p4 = scmp.lt.s32.totalorder %s327_s24, %s327_s24 }
  0x9e   : > { %p6971_p5 = scmp.ne.s32.totalorder %s327_s24, %s6970_s12  ;;  %p6979_p10 = scmp.lt.s32.totalorder %s6970_s12, %s6970_s12 }
  0xa0   : > { %p6973_p7 = pnand %p6971_p5, %p7315_p8  ;;  %p6980_p11 = por %p6979_p10, %p6978_p4 }
  0xa2   : > { %p6974_p9 = pneg %p6973_p7 }
  0xa4   : > { %p6981_p12 = pnand %p6980_p11, %p6974_p9 }
  0xa6   : > { %6984 = shalt.err (!%p6981_p12)
}
  0xa7   : > { %s7195_s20 = smov 64   ;;  %s7196_s28 = smov 4  }
  0xa8   : > { %6657 = dma.hbm_to_vmem [thread:$0]  (!%p7299_p6), %s10075_s4, 2304, %s327_s24, [#allocation9], %s7195_s20, %s7195_s20, %s7196_s28  }
  0xa9   : > { %s7197_s21 = smov [#allocation13]   ;;  %s7198_s22 = smov [#allocation16]  }
  0xaa   : > { %s350_s18 = sshll.u32 %s7197_s21, 4  ;;  %s374_s27 = sshll.u32 %s7198_s22, 4  ;;  %s351_s18 = int_to_ptr.vmem [resolvable:$true] %s350_s18  ;;  %s7447_s27 = int_to_ptr.vmem [resolvable:$true] %s374_s27 }
  0xab   : > { %s6985_s12 = scalar_lea.hbm %s10077_s6, 2304 }
  0xac   : > { %p6986_p13 = scmp.ne.s32.totalorder %s10077_s6, %s6985_s12  ;;  %p6992_p3 = scmp.lt.u32.totalorder %s6985_s12, %s10077_s6 }
  0xae   : > { %p6988_p0 = pnand %p6986_p13, %p7315_p8 }
  0xb0   : > { %p6989_p1 = pneg %p6988_p0 }
  0xb2   : > { %p6994_p2 = pnand %p6992_p3, %p6989_p1 }
  0xb4   : > { %6997 = shalt.err (!%p6994_p2)
}
  0xb5   : > { %s6998_s17 = scalar_lea.vmem %s351_s18, 2304  ;;  %p7006_p4 = scmp.lt.s32.totalorder %s351_s18, %s351_s18 }
  0xb6   : > { %p6999_p5 = scmp.ne.s32.totalorder %s351_s18, %s6998_s17  ;;  %p7007_p10 = scmp.lt.s32.totalorder %s6998_s17, %s6998_s17 }
  0xb8   : > { %p7001_p7 = pnand %p6999_p5, %p7315_p8  ;;  %p7008_p11 = por %p7007_p10, %p7006_p4 }
  0xba   : > { %p7002_p9 = pneg %p7001_p7 }
  0xbc   : > { %p7009_p12 = pnand %p7008_p11, %p7002_p9 }
  0xbe   : > { %7012 = shalt.err (!%p7009_p12)
}
  0xbf   : > { %6663 = dma.hbm_to_vmem [thread:$0]  (!%p7299_p6), %s10077_s6, 2304, %s351_s18, [#allocation12], %s7195_s20, %s7195_s20, %s7196_s28  }
  0xc0   : > { %s7013_s10 = scalar_lea.hbm %s10079_s8, 2304 }
  0xc1   : > { %p7014_p13 = scmp.ne.s32.totalorder %s10079_s8, %s7013_s10  ;;  %p7020_p3 = scmp.lt.u32.totalorder %s7013_s10, %s10079_s8 }
  0xc3   : > { %p7016_p0 = pnand %p7014_p13, %p7315_p8 }
  0xc5   : > { %p7017_p1 = pneg %p7016_p0 }
  0xc7   : > { %p7022_p2 = pnand %p7020_p3, %p7017_p1 }
  0xc9   : > { %7025 = shalt.err (!%p7022_p2)
}
  0xca   : > { %s7026_s18 = scalar_lea.vmem %s7447_s27, 2304  ;;  %p7034_p4 = scmp.lt.s32.totalorder %s7447_s27, %s7447_s27 }
  0xcb   : > { %p7027_p5 = scmp.ne.s32.totalorder %s7447_s27, %s7026_s18  ;;  %p7035_p10 = scmp.lt.s32.totalorder %s7026_s18, %s7026_s18 }
  0xcd   : > { %p7029_p7 = pnand %p7027_p5, %p7315_p8  ;;  %p7036_p11 = por %p7035_p10, %p7034_p4 }
  0xcf   : > { %p7030_p9 = pneg %p7029_p7 }
  0xd1   : > { %p7037_p12 = pnand %p7036_p11, %p7030_p9 }
  0xd3   : > { %7040 = shalt.err (!%p7037_p12)
}
  0xd4   : > { %6669 = dma.hbm_to_vmem [thread:$0]  (!%p7299_p6), %s10079_s8, 2304, %s7447_s27, [#allocation15], %s7195_s20, %s7195_s20, %s7196_s28  }
  0xd5   : > { %s7199_s26 = smov [#allocation17]   ;;  %s7041_s25 = scalar_lea.hbm %s10080_s9, 16 }
  0xd6   : > { %s388_s21 = sshll.u32 %s7199_s26, 4  ;;  %p7042_p13 = scmp.ne.s32.totalorder %s10080_s9, %s7041_s25  ;;  %s389_s21 = int_to_ptr.vmem [resolvable:$true] %s388_s21 }
  0xd7   : > { %p7048_p3 = scmp.lt.u32.totalorder %s7041_s25, %s10080_s9 }
  0xd8   : > { %p7044_p0 = pnand %p7042_p13, %p7315_p8 }
  0xda   : > { %p7045_p1 = pneg %p7044_p0 }
  0xdc   : > { %p7050_p2 = pnand %p7048_p3, %p7045_p1 }
  0xde   : > { %7053 = shalt.err (!%p7050_p2)
}
  0xdf   : > { %s7054_s20 = scalar_lea.vmem %s389_s21, 16  ;;  %s7061_s28 = scalar_lea.vmem %s389_s21, 32 }
  0xe0   : > { %p7055_p5 = scmp.ne.s32.totalorder %s389_s21, %s7054_s20  ;;  %p7062_p4 = scmp.lt.s32.totalorder %s389_s21, %s389_s21 }
  0xe1   : > { %p7063_p10 = scmp.lt.s32.totalorder %s7061_s28, %s7054_s20 }
  0xe2   : > { %p7057_p7 = pnand %p7055_p5, %p7315_p8 }
  0xe3   : > { %p7064_p11 = por %p7063_p10, %p7062_p4 }
  0xe4   : > { %p7058_p9 = pneg %p7057_p7 }
  0xe6   : > { %p7065_p12 = pnand %p7064_p11, %p7058_p9 }
  0xe8   : > { %7068 = shalt.err (!%p7065_p12)
}
  0xe9   : > { %6672 = dma.hbm_to_vmem [thread:$0]  (!%p7299_p6), %s10080_s9, 16, %s389_s21, [#allocation18]  }
  0xea   : > { %s5535_s11 = sadd.s32 4294967294, %s7185_s16   ;;  %s7516_s23 = sadd.s32 1, %s7185_s16  }
  0xeb   : > { %s38_s1 = sadd.s32 1, %s7181_s15  ;;  %s35_s26 = ssub.s32 %s7185_s16, %s7516_s23 }
  0xec   : > { %p45_p8 = scmp.ne.s32.totalorder %s7181_s15, %s7177_s14  ;;  %p36_p13 = scmp.eq.s32.totalorder %s35_s26, 0 }
  0xed   : > { %p46_p0 = scmp.eq.s32.totalorder %s7185_s16, 0  ;;  %p51_p1 = scmp.ne.s32.totalorder %s7177_s14, %s7173_s13 }
  0xee   : > { %p264_p3 = scmp.eq.s32.totalorder %s7283_s19, 1  ;;  %p10123_p5 = scmp.eq.s32.totalorder %s7283_s19, 0 }
  0xef   : > { %s7528_s22 = scalar_select %p36_p13, %s7181_s15, %s38_s1  }
  0xf0   : > { %p47_p2 = por %p46_p0, %p45_p8  ;;  %p7532_p7 = por %p10123_p5, %p51_p1 }
  0xf1   : > { %p7536_p6 = por %p264_p3, %p45_p8  ;;  %p270_p9 = scmp.eq.s32.totalorder %s5535_s11, 1 }
  0xf2   : > { %p6690_p4 = scmp.lt.s32.totalorder %s7185_s16, 2  ;;  %s399_s25 = sand.u32 1, %s7181_s15  }
  0xf3   : > { %s10125_s21 = scalar_select %p7536_p6, 1, 0 }
  0xf4   : > { %p7542_p10 = por %p270_p9, %p51_p1  ;;  %s6600_s30 = smul.u32 176, %s399_s25 }
  0xf5   : > { %p7546_p11 = pnand %p6690_p4, %p47_p2  ;;  %s6601_s18 = smul.u32 2816, %s7185_s16 }
  0xf6   : > { %s10126_s12 = scalar_select %p7542_p10, 1, 0 }
  0xf7   : > { %s7554_s27 = scalar_lea.hbm %s10071_s0, %s6601_s18  ;;  %s403_s17 = scalar_lea.vmem [#allocation2], %s6600_s30 }
  0xf8   : > { %s410_s11 = sshll.u32 %s403_s17, 4  ;;  %s7558_s1 = scalar_lea.sflag [#allocation3], %s399_s25  ;;  %s7556_s11 = int_to_ptr.vmem [resolvable:$true] %s410_s11 }
  0xf9   : > { %s7069_s26 = scalar_lea.hbm %s7554_s27, 2816  ;;  %p7071_p8 = pneg %p7546_p11 }
  0xfa   : > { %p7070_p12 = scmp.ne.s32.totalorder %s7554_s27, %s7069_s26  ;;  %s7074_s28 = scalar_lea.hbm %s10071_s0, 5632 }
  0xfb   : > { %p7075_p1 = scmp.lt.u32.totalorder %s7554_s27, %s10071_s0  ;;  %p7076_p3 = scmp.lt.u32.totalorder %s7074_s28, %s7069_s26 }
  0xfc   : > { %p7072_p13 = pnand %p7071_p8, %p7070_p12  ;;  %p7078_p5 = scmp.lt.u32.totalorder %s7069_s26, %s7554_s27 }
  0xfd   : > { %p7077_p2 = por %p7076_p3, %p7075_p1 }
  0xfe   : > { %p7073_p0 = pneg %p7072_p13 }
  0xff   : > { %p7079_p9 = por %p7078_p5, %p7077_p2 }
 0x101   : > { %p7080_p4 = pnand %p7079_p9, %p7073_p0 }
 0x103   : > { %7083 = shalt.err (!%p7080_p4)
}
 0x104   : > { %s7084_s25 = scalar_lea.vmem %s7556_s11, 2816  ;;  %s7200_s30 = smov [#allocation2]  }
 0x105   : > { %p7085_p12 = scmp.ne.s32.totalorder %s7556_s11, %s7084_s25  ;;  %s7089_s17 = sshll.u32 %s7200_s30, 4  ;;  %s7090_s17 = int_to_ptr.vmem [resolvable:$false] %s7089_s17 }
 0x106   : > { %s7091_s2 = scalar_lea.vmem %s7090_s17, 5632  ;;  %p7092_p6 = scmp.lt.s32.totalorder %s7556_s11, %s7090_s17 }
 0x107   : > { %p7087_p13 = pnand %p7085_p12, %p7071_p8  ;;  %p7093_p1 = scmp.lt.s32.totalorder %s7091_s2, %s7084_s25 }
 0x109   : > { %p7088_p10 = pneg %p7087_p13  ;;  %p7094_p3 = por %p7093_p1, %p7092_p6 }
 0x10b   : > { %p7095_p2 = pnand %p7094_p3, %p7088_p10 }
 0x10d   : > { %7098 = shalt.err (!%p7095_p2)
}
 0x10e   : > { %s10128_s3 = smov 8   ;;  %s10129_s26 = sld [smem:[#allocation27_spill]] }
 0x10f   : > { %6676 = dma.hbm_to_vmem [thread:$0]  (!%p7546_p11), %s7554_s27, 2816, %s7556_s11, %s7558_s1, %s10122_s29, %s10122_s29, %s10128_s3  }
 0x114   : > { %p10130_p8 = scmp.ne.s32.totalorder %s10129_s26, 0 }
 0x116   : > { %422 = sbr.rel (%p10130_p8) target bundleno = 1770 (0x6ea), region = 60 }
 0x11d   : > { %s7592_s18 = sand.u32 1, %s7177_s14  }
 0x11e   : > { %s6602_s20 = smul.u32 176, %s7592_s18  ;;  %s425_s28 = scalar_lea.sflag [#allocation3], %s7592_s18 }
 0x120   : > { %s7596_s25 = scalar_lea.vmem [#allocation2], %s6602_s20 }
 0x121   : > { %7144 = dma.done.wait (%p7532_p7), %s425_s28, 2816  }
 0x122   : > { %7146 = vsyncadd (%p7532_p7), %s425_s28, 4294964480  ;;  %p10131_p6 = scmp.eq.s32.totalorder %s7283_s19, 0 }
 0x124   : > { %7148 = dma.done.wait (%p10131_p6), [#allocation6], 2560   ;;  %p10132_p10 = pmov %p10131_p6 }
 0x125   : > { %p10133_p11 = pmov %p10131_p6 }
 0x126   : > { %7150 = vsyncadd (%p10132_p10), [#allocation6], 4294964736 }
 0x127   : > { %7152 = dma.done.wait (%p10133_p11), [#allocation9], 2320   ;;  %p10134_p0 = pmov %p10131_p6 }
 0x129   : > { %7154 = vsyncadd (%p10134_p0), [#allocation9], 4294964976  ;;  %p10135_p5 = pmov %p10134_p0 }
 0x12a   : > { %p10136_p9 = pmov %p10134_p0 }
 0x12b   : > { %7156 = dma.done.wait (%p10135_p5), [#allocation12], 2320  }
 0x12c   : > { %7158 = vsyncadd (%p10136_p9), [#allocation12], 4294964976  ;;  %p10137_p7 = pmov %p10134_p0 }
 0x12d   : > { %p10138_p4 = pmov %p10134_p0 }
 0x12e   : > { %7160 = dma.done.wait (%p10137_p7), [#allocation15], 2320  }
 0x12f   : > { %7162 = vsyncadd (%p10138_p4), [#allocation15], 4294964976  ;;  %p10139_p12 = pmov %p10134_p0 }
 0x130   : > { %p10140_p13 = pmov %p10134_p0 }
 0x131   : > { %7164 = dma.done.wait (%p10139_p12), [#allocation18], 16  }
 0x132   : > { %7166 = vsyncadd (%p10140_p13), [#allocation18], 4294967280  ;;  %v7201_v0 = vmov 0   ;;  %v504_v1 = vld [vmem:[%s7596_s25 + $0x10] sm:$0xff]  ;;  %v502_v2 = vld [vmem:[%s7596_s25] sm:$0xff]  ;;  %v10106_v26 = vmov 0.0  }
 0x133   : > { %6752 = vset.pattern.permute.xlu1 %v7201_v0  ;;  %6751 = vset.pattern.permute.xlu0 %v7201_v0  ;;  %v505_v3 = vld [vmem:[%s7596_s25 + $0x18] sm:$0xff]  ;;  %v503_v4 = vld [vmem:[%s7596_s25 + $0x8] sm:$0xff]  ;;  %v506_v6 = vld [vmem:[%s7596_s25 + $0x20] sm:$0xff]  ;;  %vm7203_vm0 = vmmov 0   ;;  %vm703_vm1 = vcmask 1046528   ;;  %vm820_vm2 = vcmask 1045504  }
 0x134   : > { %537 = vperm.xlu1 %6752, %v504_v1   ;;  %527 = vperm.xlu0 %6751, %v502_v2   ;;  %v507_v5 = vld [vmem:[%s7596_s25 + $0x28] sm:$0xff]  ;;  %v509_v7 = vld [vmem:[%s7596_s25 + $0x38] sm:$0xff]  ;;  %v508_v8 = vld [vmem:[%s7596_s25 + $0x30] sm:$0xff]  ;;  %vm942_vm3 = vcmask 1043456   ;;  %vm1059_vm4 = vcmask 1042432   ;;  %vm1176_vm5 = vcmask 1041408  }
 0x135   : > { %v511_v9 = vld [vmem:[%s7596_s25 + $0x48] sm:$0xff]  ;;  %v510_v10 = vld [vmem:[%s7596_s25 + $0x40] sm:$0xff]  ;;  %v512_v14 = vld [vmem:[%s7596_s25 + $0x50] sm:$0xff]  ;;  %5984 = vmatprep.subr.bf16.mxu1 %v10106_v26  ;;  %5952 = vmatprep.subr.bf16.mxu0 %v10106_v26  ;;  %vm1791_vm6 = vcmask 261120   ;;  %vm1718_vm7 = vsmask.f32 7424 }
 0x136   : > { %v1577_v11 = vld [vmem:[#allocation5 + $0x8] sm:$0xff]  ;;  %v1576_v12 = vld [vmem:[#allocation5] sm:$0xff]  ;;  %v1578_v13 = vld [vmem:[#allocation5 + $0x10] sm:$0xff]  ;;  %5988 = vmatprep.mubr.msk.bf16.mxu1 %vm7203_vm0, %v10106_v26  ;;  %5956 = vmatprep.mubr.msk.bf16.mxu0 %vm7203_vm0, %v10106_v26  ;;  %vm2569_vm8 = vcmask 1044480   ;;  %vm2357_vm9 = vsmask.f32 5376 }
 0x137   : > { %v513_v15 = vld [vmem:[%s7596_s25 + $0x58] sm:$0xff]  ;;  %v1580_v17 = vld [vmem:[#allocation5 + $0x20] sm:$0xff]  ;;  %v515_v19 = vld [vmem:[%s7596_s25 + $0x68] sm:$0xff]  ;;  %s6603_s29 = smul.u32 48, %s7592_s18  ;;  %s10177_s30 = sld [smem:[#allocation35_spill]] }
 0x138   : > { %542 = vperm.xlu1 %6752, %v505_v3   ;;  %532 = vperm.xlu0 %6751, %v503_v4   ;;  %v1579_v16 = vld [vmem:[#allocation5 + $0x18] sm:$0xff]  ;;  %v514_v18 = vld [vmem:[%s7596_s25 + $0x60] sm:$0xff]  ;;  %v1581_v20 = vld [vmem:[#allocation5 + $0x28] sm:$0xff]  ;;  %s6604_s27 = smul.u32 768, %s7283_s19  ;;  %s5363_s2 = scalar_lea.sflag [#allocation4], %s7592_s18 }
 0x139   : > { %v1582_v21 = vld [vmem:[#allocation5 + $0x30] sm:$0xff]  ;;  %v517_v23 = vld [vmem:[%s7596_s25 + $0x78] sm:$0xff]  ;;  %v1584_v28 = vld [vmem:[#allocation5 + $0x40] sm:$0xff]  ;;  %s10006_s10 = scalar_lea.vmem [#allocation19], %s6603_s29  ;;  %p10178_p3 = scmp.ne.s32.totalorder %s10125_s21, 0 }
 0x13a   : > { %v516_v22 = vld [vmem:[%s7596_s25 + $0x70] sm:$0xff]  ;;  %v1583_v24 = vld [vmem:[#allocation5 + $0x38] sm:$0xff]  ;;  %v1585_v27 = vld [vmem:[#allocation5 + $0x48] sm:$0xff]  ;;  %s5376_s24 = sshll.u32 %s10006_s10, 4  ;;  %s7204_s19 = smov [#allocation19]   ;;  %s10018_s24 = int_to_ptr.vmem [resolvable:$true] %s5376_s24 }
 0x13b   : > { %v6753_v25 = vld [vmem:[#allocation10] sm:$0xff]   ;;  %v6754_v31 = vld [vmem:[#allocation10 + $0x8] sm:$0xff]   ;;  %v1587_v32 = vld [vmem:[#allocation5 + $0x58] sm:$0xff]  ;;  %s7099_s3 = scalar_lea.vmem %s10018_s24, 768  ;;  %s7103_s26 = sshll.u32 %s7204_s19, 4  ;;  %s7104_s26 = int_to_ptr.vmem [resolvable:$false] %s7103_s26 }
 0x13c   : > { %552 = vperm.xlu1 %6752, %v507_v5   ;;  %547 = vperm.xlu0 %6751, %v506_v6   ;;  %v519_v29 = vld [vmem:[%s7596_s25 + $0x88] sm:$0xff]  ;;  %v518_v30 = vld [vmem:[%s7596_s25 + $0x80] sm:$0xff]  ;;  %v520_v35 = vld [vmem:[%s7596_s25 + $0x90] sm:$0xff]  ;;  %p7100_p1 = scmp.ne.s32.totalorder %s10018_s24, %s7099_s3  ;;  %s7105_s20 = scalar_lea.vmem %s7104_s26, 1536 }
 0x13d   : > { %5985 = vmatpush3.bf16.msra.mxu1 %v6753_v25  ;;  %v1586_v33 = vld [vmem:[#allocation5 + $0x50] sm:$0xff]  ;;  %v1588_v34 = vld [vmem:[#allocation5 + $0x60] sm:$0xff]  ;;  %v1589_v37 = vld [vmem:[#allocation5 + $0x68] sm:$0xff]  ;;  %s10025_s17 = scalar_lea.hbm %s10177_s30, %s6604_s27  ;;  %p7106_p6 = scmp.lt.s32.totalorder %s10018_s24, %s7104_s26 }
 0x13e   : > { %5986 = vmatprep.subr.bf16.mxu1 %v10106_v26  ;;  %v1590_v36 = vld [vmem:[#allocation5 + $0x70] sm:$0xff]  ;;  %v1591_v39 = vld [vmem:[#allocation5 + $0x78] sm:$0xff]  ;;  %v1592_v41 = vld [vmem:[#allocation5 + $0x80] sm:$0xff]  ;;  %p7101_p2 = pnand %p7100_p1, %p10178_p3  ;;  %p7107_p10 = scmp.lt.s32.totalorder %s7105_s20, %s7099_s3 }
 0x13f   : > { %v6755_v38 = vld [vmem:[#allocation10 + $0x10] sm:$0xff]   ;;  %v1593_v43 = vld [vmem:[#allocation5 + $0x88] sm:$0xff]  ;;  %v6756_v45 = vld [vmem:[#allocation10 + $0x18] sm:$0xff]  }
 0x140   : > { %562 = vperm.xlu1 %6752, %v509_v7   ;;  %557 = vperm.xlu0 %6751, %v508_v8   ;;  %v521_v40 = vld [vmem:[%s7596_s25 + $0x98] sm:$0xff]  ;;  %v522_v42 = vld [vmem:[%s7596_s25 + $0xa0] sm:$0xff]  ;;  %v523_v44 = vld [vmem:[%s7596_s25 + $0xa8] sm:$0xff]  ;;  %p7102_p8 = pneg %p7101_p2  ;;  %p7108_p11 = por %p7107_p10, %p7106_p6 }
 0x141   : > { %5987 = vmatpush3.bf16.msra.mxu1 %v6754_v31  ;;  %5953 = vmatpush3.bf16.msra.mxu0 %v6755_v38  ;;  %v7654_v46 = vld [vmem:[#allocation7 + $0x3] ss:$0 sm:$0xff]  ;;  %v7656_v47 = vld [vmem:[#allocation7 + $0x4] ss:$0 sm:$0xff]  ;;  %v7658_v48 = vld [vmem:[#allocation7 + $0x1] ss:$0 sm:$0xff] }
 0x142   : > { %6048 = vmatprep.subr.bf16.mxu1 %v10106_v26  ;;  %5954 = vmatprep.subr.bf16.mxu0 %v10106_v26  ;;  %v7660_v49 = vld [vmem:[#allocation7 + $0x2] ss:$0 sm:$0xff]  ;;  %v7662_v52 = vld [vmem:[#allocation7 + $0x5] ss:$0 sm:$0xff]  ;;  %v7670_v55 = vld [vmem:[#allocation7] ss:$0 sm:$0xff]  ;;  %p7109_p0 = pnand %p7108_p11, %p7102_p8 }
 0x143   : > { %v7731_v31 = vld [vmem:[#allocation7 + $0x8] ss:$0 sm:$0xff] }
 0x144   : > { %572 = vperm.xlu1 %6752, %v511_v9   ;;  %567 = vperm.xlu0 %6751, %v510_v10  }
 0x145   : > { %5955 = vmatpush3.bf16.msra.mxu0 %v6756_v45 }
 0x146   : > { %6016 = vmatprep.subr.bf16.mxu0 %v10106_v26 }
 0x148   : > { %1601 = vperm.xlu1 %6752, %v1577_v11   ;;  %1596 = vperm.xlu0 %6751, %v1576_v12  }
 0x14c   : > { %1606 = vperm.xlu1 %6752, %v1578_v13   ;;  %577 = vperm.xlu0 %6751, %v512_v14  }
 0x150   : > { %582 = vperm.xlu1 %6752, %v513_v15   ;;  %1611 = vperm.xlu0 %6751, %v1579_v16  }
 0x154   : > { %1616 = vperm.xlu1 %6752, %v1580_v17   ;;  %587 = vperm.xlu0 %6751, %v514_v18  }
 0x158   : > { %592 = vperm.xlu1 %6752, %v515_v19   ;;  %1621 = vperm.xlu0 %6751, %v1581_v20  }
 0x15c   : > { %1626 = vperm.xlu1 %6752, %v1582_v21   ;;  %597 = vperm.xlu0 %6751, %v516_v22  }
 0x160   : > { %602 = vperm.xlu1 %6752, %v517_v23   ;;  %1631 = vperm.xlu0 %6751, %v1583_v24  }
 0x164   : > { %1641 = vperm.xlu1 %6752, %v1585_v27   ;;  %1636 = vperm.xlu0 %6751, %v1584_v28  }
 0x168   : > { %612 = vperm.xlu1 %6752, %v519_v29   ;;  %607 = vperm.xlu0 %6751, %v518_v30   ;;  %v7729_v30 = vld [vmem:[#allocation7 + $0x7] ss:$0 sm:$0xff] }
 0x16c   : > { %1651 = vperm.xlu1 %6752, %v1587_v32   ;;  %1646 = vperm.xlu0 %6751, %v1586_v33  }
 0x170   : > { %1656 = vperm.xlu1 %6752, %v1588_v34   ;;  %658 = vperm.xlu0 %6751, %v520_v35  }
 0x174   : > { %1666 = vperm.xlu1 %6752, %v1590_v36   ;;  %1661 = vperm.xlu0 %6751, %v1589_v37  }
 0x178   : > { %1671 = vperm.xlu1 %6752, %v1591_v39   ;;  %897 = vperm.xlu0 %6751, %v521_v40  }
 0x17c   : > { %1676 = vperm.xlu1 %6752, %v1592_v41   ;;  %1253 = vperm.xlu0 %6751, %v522_v42  }
 0x180   : > { %1681 = vperm.xlu1 %6752, %v1593_v43   ;;  %1299 = vperm.xlu0 %6751, %v523_v44   ;;  %v7752_v43 = vld [vmem:[#allocation7 + $0x6] ss:$0 sm:$0xff] }
 0x1b3   : > { %v538_v50 = vpop.permute.xlu1 %537  ;;  %v528_v51 = vpop.permute.xlu0 %527 }
 0x1b4   : > { %v7665_v53 = vmul.f32 %v7658_v48, %v538_v50  ;;  %v7668_v54 = vmul.f32 %v7660_v49, %v538_v50  ;;  %v7673_v56 = vmul.f32 %v7654_v46, %v538_v50  ;;  %v7676_v57 = vmul.f32 %v7656_v47, %v538_v50 }
 0x1b5   : > { %v665_v58 = vmul.f32 %v7658_v48, %v528_v51  ;;  %v7680_v59 = vmul.f32 %v7670_v55, %v538_v50  ;;  %v7683_v60 = vmul.f32 %v7662_v52, %v538_v50  ;;  %v619_v1 = vmul.f32 %v7670_v55, %v528_v51 }
 0x1b6   : > { %v707_v63 = vrot.slane %v7665_v53, 1  ;;  %v824_v0 = vrot.slane %v7668_v54, 2  ;;  %v944_v3 = vrot.slane %v7673_v56, 4  ;;  %v1061_v4 = vrot.slane %v7676_v57, 5 }
 0x1b7   : > { %v7685_v61 = vpop.permute.xlu1 %542  ;;  %v533_v62 = vpop.permute.xlu0 %532  ;;  %v782_v5 = vmul.f32 %v7660_v49, %v528_v51  ;;  %v704_v7 = vrot.slane %v665_v58, 1  ;;  %v1178_v11 = vrot.slane %v7683_v60, 6 }
 0x1b8   : > { %v666_v2 = vmul.f32 %v7658_v48, %v533_v62  ;;  %v783_v6 = vmul.f32 %v7660_v49, %v533_v62  ;;  %v7697_v9 = vmul.f32 %v7654_v46, %v7685_v61  ;;  %v7701_v10 = vmul.f32 %v7656_v47, %v7685_v61 }
 0x1b9   : > { %v620_v12 = vmul.f32 %v7670_v55, %v533_v62  ;;  %v904_v14 = vmul.f32 %v7654_v46, %v533_v62  ;;  %v1021_v17 = vmul.f32 %v7656_v47, %v533_v62  ;;  %v7717_v20 = vmul.f32 %v7662_v52, %v7685_v61 }
 0x1ba   : > { %v705_v8 = vrot.slane %v666_v2, 1  ;;  %v822_v13 = vrot.slane %v783_v6, 2  ;;  %v821_v21 = vrot.slane %v782_v5, 2  ;;  %v7721_v22 = vmul.f32 %v7658_v48, %v7685_v61 }
 0x1bb   : > { %v7711_v18 = vpop.permute.xlu1 %552  ;;  %v7713_v19 = vpop.permute.xlu0 %547  ;;  %v1138_v24 = vmul.f32 %v7662_v52, %v533_v62  ;;  %v946_v28 = vrot.slane %v7697_v9, 4  ;;  %v1063_v29 = vrot.slane %v7701_v10, 5  ;;  %v943_v36 = vrot.slane %v904_v14, 4 }
 0x1bc   : > { %v706_v15 = vsel %vm703_vm1, %v704_v7, %v705_v8  ;;  %v708_v16 = vsel %vm703_vm1, %v705_v8, %v707_v63  ;;  %v825_v27 = vsel %vm820_vm2, %v822_v13, %v824_v0  ;;  %v7735_v33 = vmul.f32 %v7729_v30, %v7711_v18 }
 0x1bd   : > { %v760_v23 = vadd.f32 %v708_v16, %v620_v12  ;;  %v759_v25 = vadd.f32 %v706_v15, %v619_v1  ;;  %v7739_v34 = vmul.f32 %v7731_v31, %v7711_v18  ;;  %v1307_v35 = vmul.f32 %v7729_v30, %v7713_v19 }
 0x1be   : > { %v1060_v37 = vrot.slane %v1021_v17, 5  ;;  %v947_v38 = vsel %vm942_vm3, %v944_v3, %v946_v28  ;;  %v1180_v39 = vrot.slane %v7717_v20, 6  ;;  %v823_v40 = vsel %vm820_vm2, %v821_v21, %v822_v13 }
 0x1bf   : > { %v877_v32 = vadd.f32 %v825_v27, %v760_v23  ;;  %v1177_v41 = vrot.slane %v1138_v24, 6  ;;  %v7750_v42 = vmul.f32 %v7658_v48, %v7713_v19  ;;  %v1064_v45 = vsel %vm1059_vm4, %v1061_v4, %v1063_v29  ;;  %v7763_v1 = vpop.permute.xlu1 %562 }
 0x1c0   : > { %v1261_v50 = vmul.f32 %v7752_v43, %v7713_v19  ;;  %v1423_v51 = vmul.f32 %v7731_v31, %v7713_v19  ;;  %v876_v56 = vadd.f32 %v823_v40, %v759_v25  ;;  %v1347_v57 = vrot.slane %v7735_v33, 1 }
 0x1c1   : > { %v999_v44 = vadd.f32 %v947_v38, %v877_v32  ;;  %v1463_v58 = vrot.slane %v7739_v34, 2  ;;  %v1345_v62 = vrot.slane %v1307_v35, 1  ;;  %v1181_v2 = vsel %vm1176_vm5, %v1178_v11, %v1180_v39 }
 0x1c2   : > { %v1461_v5 = vrot.slane %v1423_v51, 2  ;;  %v945_v6 = vsel %vm942_vm3, %v943_v36, %v944_v3  ;;  %v1062_v7 = vsel %vm1059_vm4, %v1060_v37, %v1061_v4  ;;  %v1306_v13 = vmul.f32 %v7729_v30, %v7685_v61 }
 0x1c3   : > { %v1116_v60 = vadd.f32 %v1064_v45, %v999_v44  ;;  %v998_v12 = vadd.f32 %v945_v6, %v876_v56  ;;  %v1422_v14 = vmul.f32 %v7731_v31, %v7685_v61  ;;  %v1179_v15 = vsel %vm1176_vm5, %v1177_v41, %v1178_v11  ;;  %v7788_v11 = vpop.permute.xlu0 %557  ;;  %v7802_v40 = vpop.permute.xlu1 %572  ;;  %v7804_v41 = vld [vmem:[#allocation8] ss:$0 sm:$0xff] }
 0x1c4   : > { %v1260_v16 = vmul.f32 %v7752_v43, %v7685_v61  ;;  %v709_v17 = vrot.slane %v7721_v22, 1  ;;  %v7780_v3 = vmul.f32 %v7660_v49, %v7685_v61  ;;  %v1348_v21 = vsel %vm703_vm1, %v1345_v62, %v1347_v57 }
 0x1c5   : > { %v1233_v8 = vadd.f32 %v1181_v2, %v1116_v60  ;;  %v1464_v23 = vsel %vm820_vm2, %v1461_v5, %v1463_v58  ;;  %v1115_v24 = vadd.f32 %v1062_v7, %v998_v12  ;;  %v7796_v27 = vmul.f32 %v7654_v46, %v7713_v19 }
 0x1c6   : > { %v710_v22 = vsel %vm703_vm1, %v707_v63, %v709_v17  ;;  %v826_v25 = vrot.slane %v7780_v3, 2  ;;  %v7800_v32 = vmul.f32 %v7656_v47, %v7713_v19  ;;  %v1344_v37 = vrot.slane %v1306_v13, 1 }
 0x1c7   : > { %v1279_v4 = vadd.f32 %v1261_v50, %v1233_v8  ;;  %v1232_v36 = vadd.f32 %v1179_v15, %v1115_v24  ;;  %v1460_v38 = vrot.slane %v1422_v14, 2  ;;  %v761_v53 = vadd.f32 %v710_v22, %v7680_v59  ;;  %v7831_v13 = vpop.permute.xlu0 %567 }
 0x1c8   : > { %v827_v63 = vsel %vm820_vm2, %v824_v0, %v826_v25  ;;  %v948_v44 = vrot.slane %v7796_v27, 4  ;;  %v1065_v45 = vrot.slane %v7800_v32, 5  ;;  %v1141_v56 = vmul.f32 %v7662_v52, %v7713_v19 }
 0x1c9   : > { %v1400_v35 = vadd.f32 %v1348_v21, %v1279_v4  ;;  %v1278_v51 = vadd.f32 %v1260_v16, %v1232_v36  ;;  %v7816_v60 = vmul.f32 %v7729_v30, %v7788_v11  ;;  %v1346_v2 = vsel %vm703_vm1, %v1344_v37, %v1345_v62  ;;  %v1602_v21 = vpop.permute.xlu1 %1601 }
 0x1ca   : > { %v878_v59 = vadd.f32 %v827_v63, %v761_v53  ;;  %v949_v54 = vsel %vm942_vm3, %v946_v28, %v948_v44  ;;  %v7824_v0 = vmul.f32 %v7731_v31, %v7788_v11  ;;  %v7828_v6 = vmul.f32 %v7658_v48, %v7711_v18 }
 0x1cb   : > { %v1516_v50 = vadd.f32 %v1464_v23, %v1400_v35  ;;  %v1399_v8 = vadd.f32 %v1346_v2, %v1278_v51  ;;  %v1182_v12 = vrot.slane %v1141_v56, 6  ;;  %v1462_v62 = vsel %vm820_vm2, %v1460_v38, %v1461_v5  ;;  %v1597_v53 = vpop.permute.xlu0 %1596 }
 0x1cc   : > { %v1262_v9 = vmul.f32 %v7752_v43, %v7711_v18  ;;  %v1000_v28 = vadd.f32 %v949_v54, %v878_v59  ;;  %v1066_v14 = vsel %vm1059_vm4, %v1063_v29, %v1065_v45  ;;  %v1349_v3 = vrot.slane %v7816_v60, 1 }
 0x1cd   : > { %v1541_v7 = vadd.f32 %v7804_v41, %v1516_v50  ;;  %v1515_v16 = vadd.f32 %v1462_v62, %v1399_v8  ;;  %v1465_v4 = vrot.slane %v7824_v0, 2  ;;  %v1183_v5 = vsel %vm1176_vm5, %v1180_v39, %v1182_v12 }
 0x1ce   : > { %v1117_v23 = vadd.f32 %v1066_v14, %v1000_v28  ;;  %v622_v24 = vmul.f32 %v7670_v55, %v7685_v61  ;;  %v711_v22 = vrot.slane %v7750_v42, 1  ;;  %v786_v27 = vmul.f32 %v7660_v49, %v7713_v19 }
 0x1cf   : > { %v1559_v15 = vmax.f32 %v1541_v7, 0.0  ;;  %v1540_v29 = vadd.f32 %v7804_v41, %v1515_v16  ;;  %v908_v32 = vmul.f32 %v7654_v46, %v7711_v18  ;;  %v7855_v20 = vmul.f32 %v7656_v47, %v7711_v18 }
 0x1d0   : > { %v1234_v35 = vadd.f32 %v1183_v5, %v1117_v23  ;;  %v712_v36 = vsel %vm703_vm1, %v709_v17, %v711_v22  ;;  %v7859_v61 = vmul.f32 %v7662_v52, %v7711_v18  ;;  %v828_v37 = vrot.slane %v786_v27, 2 }
 0x1d1   : > { %v1685_v10 = vmul.f32 %v1602_v21, %v1559_v15  ;;  %v1558_v39 = vmax.f32 %v1540_v29, 0.0  ;;  %v762_v42 = vadd.f32 %v712_v36, %v622_v24  ;;  %v950_v38 = vrot.slane %v908_v32, 4  ;;  %v1607_v32 = vpop.permute.xlu1 %1606 }
 0x1d2   : > { %v1280_v63 = vadd.f32 %v1262_v9, %v1234_v35  ;;  %v1350_v17 = vsel %vm703_vm1, %v1347_v57, %v1349_v3  ;;  %v829_v51 = vsel %vm820_vm2, %v826_v25, %v828_v37  ;;  %v1067_v56 = vrot.slane %v7855_v20, 5 }
 0x1d3   : > { %v1684_v50 = vmul.f32 %v1597_v53, %v1558_v39  ;;  %v1184_v2 = vrot.slane %v7859_v61, 6  ;;  %v1466_v54 = vsel %vm820_vm2, %v1463_v58, %v1465_v4  ;;  %v879_v7 = vadd.f32 %v829_v51, %v762_v42 }
 0x1d4   : > { %v1401_v59 = vadd.f32 %v1350_v17, %v1280_v63  ;;  %v951_v33 = vsel %vm942_vm3, %v948_v44, %v950_v38  ;;  %v7879_v57 = vmul.f32 %v7729_v30, %v7763_v1  ;;  %v713_v25 = vrot.slane %v7828_v6, 1 }
 0x1d5   : > { %v7874_v8 = vpack.c.bf16 %v1685_v10, %v1684_v50  ;;  %v1001_v9 = vadd.f32 %v951_v33, %v879_v7  ;;  %v1263_v28 = vmul.f32 %v7752_v43, %v7788_v11  ;;  %v7886_v34 = vmul.f32 %v7660_v49, %v7711_v18 }
 0x1d6   : > { %v1517_v62 = vadd.f32 %v1466_v54, %v1401_v59  ;;  %v1068_v58 = vsel %vm1059_vm4, %v1065_v45, %v1067_v56  ;;  %v1185_v14 = vsel %vm1176_vm5, %v1182_v12, %v1184_v2  ;;  %v7892_v44 = vmul.f32 %v7731_v31, %v7763_v1 }
 0x1d7   : > { %v623_v6 = vmul.f32 %v7670_v55, %v7713_v19  ;;  %5989 = vmatmul.mubr.msk.bf16.vlgmr.msra.gmra.mrb[0].mxu1 %vm1791_vm6, %v7874_v8  ;;  %v1118_v16 = vadd.f32 %v1068_v58, %v1001_v9  ;;  %v830_v21 = vrot.slane %v7886_v34, 2  ;;  %v714_v23 = vsel %vm703_vm1, %v711_v22, %v713_v25 }
 0x1d8   : > { %v1542_v15 = vadd.f32 %v7804_v41, %v1517_v62  ;;  %5992 = vmatprep.mubr.msk.bf16.mxu1 %vm7203_vm0, %v10106_v26  ;;  %v1351_v45 = vrot.slane %v7879_v57, 1  ;;  %v7906_v5 = vmul.f32 %v7654_v46, %v7788_v11  ;;  %v7910_v19 = vmul.f32 %v7656_v47, %v7788_v11  ;;  %v7943_v57 = vpop.permute.xlu0 %577 }
 0x1d9   : > { %v763_v12 = vadd.f32 %v714_v23, %v623_v6  ;;  %v1235_v29 = vadd.f32 %v1185_v14, %v1118_v16  ;;  %v831_v27 = vsel %vm820_vm2, %v828_v37, %v830_v21  ;;  %v7915_v22 = vmul.f32 %v7662_v52, %v7788_v11 }
 0x1da   : > { %v1560_v24 = vmax.f32 %v1542_v15, 0.0  ;;  %v1467_v35 = vrot.slane %v7892_v44, 2  ;;  %v952_v20 = vrot.slane %v7906_v5, 4  ;;  %v1069_v42 = vrot.slane %v7910_v19, 5  ;;  %v6759_v15 = vld [vmem:[#allocation10 + $0x30] sm:$0xff]  }
 0x1db   : > { %v880_v36 = vadd.f32 %v831_v27, %v763_v12  ;;  %v1281_v39 = vadd.f32 %v1263_v28, %v1235_v29  ;;  %v7922_v53 = vmul.f32 %v7729_v30, %v7831_v13  ;;  %v7926_v37 = vmul.f32 %v7658_v48, %v7788_v11  ;;  %6049 = vmatpush3.bf16.msra.mxu1 %v6759_v15  ;;  %v7977_v29 = vpop.permute.xlu1 %582 }
 0x1dc   : > { %v1686_v61 = vmul.f32 %v1607_v32, %v1560_v24  ;;  %v1352_v63 = vsel %vm703_vm1, %v1349_v3, %v1351_v45  ;;  %v953_v17 = vsel %vm942_vm3, %v950_v38, %v952_v20  ;;  %v1186_v50 = vrot.slane %v7915_v22, 6  ;;  %v1612_v27 = vpop.permute.xlu0 %1611  ;;  %6050 = vmatprep.subr.bf16.mxu1 %v10106_v26 }
 0x1dd   : > { %v1402_v59 = vadd.f32 %v1352_v63, %v1281_v39  ;;  %v1002_v54 = vadd.f32 %v953_v17, %v880_v36  ;;  %v7937_v7 = vmul.f32 %v7731_v31, %v7831_v13  ;;  %v7941_v33 = vmul.f32 %v7658_v48, %v7763_v1 }
 0x1de   : > { %v7933_v51 = vpack.c.bf16 %v1686_v61, %v1685_v10  ;;  %v1468_v60 = vsel %vm820_vm2, %v1465_v4, %v1467_v35  ;;  %v1264_v3 = vmul.f32 %v7752_v43, %v7763_v1  ;;  %v1070_v10 = vsel %vm1059_vm4, %v1067_v56, %v1069_v42 }
 0x1df   : > { %v1353_v38 = vrot.slane %v7922_v53, 1  ;;  %v1518_v62 = vadd.f32 %v1468_v60, %v1402_v59  ;;  %v1119_v9 = vadd.f32 %v1070_v10, %v1002_v54  ;;  %v1187_v28 = vsel %vm1176_vm5, %v1184_v2, %v1186_v50 }
 0x1e0   : > { %v715_v34 = vrot.slane %v7926_v37, 1  ;;  %v1469_v58 = vrot.slane %v7937_v7, 2  ;;  %v624_v0 = vmul.f32 %v7670_v55, %v7711_v18  ;;  %v788_v4 = vmul.f32 %v7660_v49, %v7788_v11 }
 0x1e1   : > { %v7961_v14 = vmul.f32 %v7654_v46, %v7763_v1  ;;  %v1543_v56 = vadd.f32 %v7804_v41, %v1518_v62  ;;  %v1236_v44 = vadd.f32 %v1187_v28, %v1119_v9  ;;  %v7967_v2 = vmul.f32 %v7656_v47, %v7763_v1 }
 0x1e2   : > { %v716_v6 = vsel %vm703_vm1, %v713_v25, %v715_v34  ;;  %v832_v23 = vrot.slane %v788_v4, 2  ;;  %v7972_v12 = vmul.f32 %v7662_v52, %v7763_v1  ;;  %v1354_v24 = vsel %vm703_vm1, %v1351_v45, %v1353_v38  ;;  %v6760_v25 = vld [vmem:[#allocation10 + $0x38] sm:$0xff]  }
 0x1e3   : > { %v764_v16 = vadd.f32 %v716_v6, %v624_v0  ;;  %v954_v18 = vrot.slane %v7961_v14, 4  ;;  %v1561_v5 = vmax.f32 %v1543_v56, 0.0  ;;  %v1282_v19 = vadd.f32 %v1264_v3, %v1236_v44  ;;  %6051 = vmatpush3.bf16.msra.mxu1 %v6760_v25 }
 0x1e4   : > { %v833_v22 = vsel %vm820_vm2, %v830_v21, %v832_v23  ;;  %v1071_v32 = vrot.slane %v7967_v2, 5  ;;  %v1188_v36 = vrot.slane %v7972_v12, 6  ;;  %v1312_v39 = vmul.f32 %v7729_v30, %v7802_v40  ;;  %6112 = vmatprep.subr.bf16.mxu1 %v10106_v26 }
 0x1e5   : > { %v1687_v37 = vmul.f32 %v1612_v27, %v1561_v5  ;;  %v1403_v63 = vadd.f32 %v1354_v24, %v1282_v19  ;;  %v881_v17 = vadd.f32 %v833_v22, %v764_v16  ;;  %v1470_v45 = vsel %vm820_vm2, %v1467_v35, %v1469_v58 }
 0x1e6   : > { %v955_v59 = vsel %vm942_vm3, %v952_v20, %v954_v18  ;;  %v7991_v21 = vmul.f32 %v7731_v31, %v7802_v40  ;;  %v717_v54 = vrot.slane %v7941_v33, 1  ;;  %v7998_v62 = vmul.f32 %v7660_v49, %v7763_v1 }
 0x1e7   : > { %v7994_v60 = vpack.c.bf16 %v1687_v37, %v1686_v61  ;;  %v1519_v3 = vadd.f32 %v1470_v45, %v1403_v63  ;;  %v1003_v10 = vadd.f32 %v955_v59, %v881_v17  ;;  %v1072_v9 = vsel %vm1059_vm4, %v1069_v42, %v1071_v32  ;;  %v1617_v42 = vpop.permute.xlu1 %1616 }
 0x1e8   : > { %v1189_v35 = vsel %vm1176_vm5, %v1186_v50, %v1188_v36  ;;  %v1265_v20 = vmul.f32 %v7752_v43, %v7831_v13  ;;  %v1355_v28 = vrot.slane %v1312_v39, 1  ;;  %v834_v4 = vrot.slane %v7998_v62, 2 }
 0x1e9   : > { %v1544_v61 = vadd.f32 %v7804_v41, %v1519_v3  ;;  %v1120_v0 = vadd.f32 %v1072_v9, %v1003_v10  ;;  %v625_v14 = vmul.f32 %v7670_v55, %v7788_v11  ;;  %5993 = vmatmul.mubr.msk.bf16.gmra.mrb[4].mxu1 %vm1791_vm6, %v7994_v60  ;;  %v1471_v50 = vrot.slane %v7991_v21, 2  ;;  %v6758_v21 = vld [vmem:[#allocation10 + $0x28] sm:$0xff]  }
 0x1ea   : > { %v718_v56 = vsel %vm703_vm1, %v715_v34, %v717_v54  ;;  %v8017_v44 = vmul.f32 %v7654_v46, %v7831_v13  ;;  %v8021_v6 = vmul.f32 %v7656_v47, %v7831_v13  ;;  %5996 = vmatprep.mubr.msk.bf16.mxu1 %vm7203_vm0, %v10106_v26  ;;  %v835_v16 = vsel %vm820_vm2, %v832_v23, %v834_v4  ;;  %v8042_v23 = vpop.permute.xlu0 %587 }
 0x1eb   : > { %v1562_v11 = vmax.f32 %v1544_v61, 0.0  ;;  %v1237_v2 = vadd.f32 %v1189_v35, %v1120_v0  ;;  %v765_v15 = vadd.f32 %v718_v56, %v625_v14  ;;  %v8032_v5 = vmul.f32 %v7662_v52, %v7831_v13 }
 0x1ec   : > { %v956_v34 = vrot.slane %v8017_v44, 4  ;;  %v1073_v12 = vrot.slane %v8021_v6, 5  ;;  %v8036_v19 = vmul.f32 %v7729_v30, %v7943_v57  ;;  %v8040_v22 = vmul.f32 %v7731_v31, %v7943_v57 }
 0x1ed   : > { %v1688_v24 = vmul.f32 %v1617_v42, %v1562_v11  ;;  %v1283_v25 = vadd.f32 %v1265_v20, %v1237_v2  ;;  %v882_v27 = vadd.f32 %v835_v16, %v765_v15  ;;  %v1356_v39 = vsel %vm703_vm1, %v1353_v38, %v1355_v28 }
 0x1ee   : > { %v957_v63 = vsel %vm942_vm3, %v954_v18, %v956_v34  ;;  %v1190_v17 = vrot.slane %v8032_v5, 6  ;;  %v1357_v45 = vrot.slane %v8036_v19, 1  ;;  %v8054_v59 = vmul.f32 %v7658_v48, %v7831_v13 }
 0x1ef   : > { %v8056_v3 = vpack.c.bf16 %v1688_v24, %v1687_v37  ;;  %v1404_v10 = vadd.f32 %v1356_v39, %v1283_v25  ;;  %v1004_v9 = vadd.f32 %v957_v63, %v882_v27  ;;  %v1472_v53 = vsel %vm820_vm2, %v1469_v58, %v1471_v50  ;;  %v6757_v63 = vld [vmem:[#allocation10 + $0x20] sm:$0xff]  }
 0x1f0   : > { %v1266_v38 = vmul.f32 %v7752_v43, %v7802_v40  ;;  %v1074_v18 = vsel %vm1059_vm4, %v1071_v32, %v1073_v12  ;;  %v1473_v35 = vrot.slane %v8040_v22, 2  ;;  %v1191_v61 = vsel %vm1176_vm5, %v1188_v36, %v1190_v17  ;;  %v1622_v36 = vpop.permute.xlu0 %1621 }
 0x1f1   : > { %v1520_v20 = vadd.f32 %v1472_v53, %v1404_v10  ;;  %v1121_v37 = vadd.f32 %v1074_v18, %v1004_v9  ;;  %v1722_v0 = vshll.u32 %v7874_v8, 16  ;;  %v1358_v7 = vsel %vm703_vm1, %v1355_v28, %v1357_v45  ;;  %v8101_v9 = vpop.permute.xlu1 %592 }
 0x1f2   : > { %v1720_v58 = vshrl.u32 %v7874_v8, 16  ;;  %v1727_v14 = vshll.u32 %v7994_v60, 16  ;;  %v626_v32 = vmul.f32 %v7670_v55, %v7763_v1  ;;  %v719_v2 = vrot.slane %v8054_v59, 1 }
 0x1f3   : > { %v1545_v42 = vadd.f32 %v7804_v41, %v1520_v20  ;;  %v1238_v56 = vadd.f32 %v1191_v61, %v1121_v37  ;;  %v1724_v11 = vrot.slane %v1722_v0, 1  ;;  %v8086_v16 = vmul.f32 %v7660_v49, %v7831_v13 }
 0x1f4   : > { %v8082_v15 = vrot.slane %v1727_v14, 1  ;;  %v8090_v28 = vmul.f32 %v7654_v46, %v7802_v40  ;;  %v8094_v1 = vmul.f32 %v7656_v47, %v7802_v40  ;;  %v720_v10 = vsel %vm703_vm1, %v717_v54, %v719_v2 }
 0x1f5   : > { %v1563_v25 = vmax.f32 %v1545_v42, 0.0  ;;  %v1284_v27 = vadd.f32 %v1266_v38, %v1238_v56  ;;  %v1725_v39 = vor.u32 %v1724_v11, %v1720_v58  ;;  %v766_v53 = vadd.f32 %v720_v10, %v626_v32 }
 0x1f6   : > { %v836_v18 = vrot.slane %v8086_v16, 2  ;;  %v958_v20 = vrot.slane %v8090_v28, 4  ;;  %v8109_v0 = vmul.f32 %v7662_v52, %v7802_v40  ;;  %v8113_v33 = vmul.f32 %v7658_v48, %v7802_v40 }
 0x1f7   : > { %v1689_v37 = vmul.f32 %v1622_v36, %v1563_v25  ;;  %v1405_v61 = vadd.f32 %v1358_v7, %v1284_v27  ;;  %v1730_v38 = vsel %vm1718_vm7, %v1725_v39, %v8082_v15  ;;  %v1474_v54 = vsel %vm820_vm2, %v1471_v50, %v1473_v35 }
 0x1f8   : > { %5957 = vmatmul.mubr.msk.bf16.vlgmr.msra.gmra.mrb[0].mxu0 %vm1791_vm6, %v1730_v38  ;;  %v837_v7 = vsel %vm820_vm2, %v834_v4, %v836_v18  ;;  %v1075_v58 = vrot.slane %v8094_v1, 5  ;;  %v959_v50 = vsel %vm942_vm3, %v956_v34, %v958_v20  ;;  %v1192_v62 = vrot.slane %v8109_v0, 6  ;;  %v1627_v34 = vpop.permute.xlu1 %1626 }
 0x1f9   : > { %v8127_v14 = vpack.c.bf16 %v1689_v37, %v1688_v24  ;;  %v1521_v32 = vadd.f32 %v1474_v54, %v1405_v61  ;;  %6017 = vmatpush3.bf16.msra.mxu0 %v6757_v63  ;;  %v883_v42 = vadd.f32 %v837_v7, %v766_v53  ;;  %5960 = vmatprep.mubr.msk.bf16.mxu0 %vm7203_vm0, %v10106_v26  ;;  %v721_v38 = vrot.slane %v8113_v33, 1 }
 0x1fa   : > { %v8139_v4 = vmul.f32 %v7729_v30, %v7977_v29  ;;  %v8143_v24 = vmul.f32 %v7731_v31, %v7977_v29  ;;  %6018 = vmatprep.subr.bf16.mxu0 %v10106_v26  ;;  %v8151_v44 = vmul.f32 %v7658_v48, %v7943_v57  ;;  %v1076_v36 = vsel %vm1059_vm4, %v1073_v12, %v1075_v58 }
 0x1fb   : > { %10141 = vst [vmem:[#allocation28_spill] sm:$0xff] %v8127_v14  ;;  %v1546_v56 = vadd.f32 %v7804_v41, %v1521_v32  ;;  %v1005_v11 = vadd.f32 %v959_v50, %v883_v42  ;;  %5997 = vmatmul.mubr.msk.bf16.gmra.mrb[8].mxu1 %vm1791_vm6, %v8127_v14  ;;  %v8161_v27 = vmul.f32 %v7654_v46, %v7977_v29 }
 0x1fc   : > { %v10094_v25 = vrot.slane %v8139_v4, 1  ;;  %6000 = vmatprep.mubr.msk.bf16.mxu1 %vm7203_vm0, %v10106_v26  ;;  %v1267_v10 = vmul.f32 %v7752_v43, %v7943_v57  ;;  %v791_v53 = vmul.f32 %v7660_v49, %v7802_v40  ;;  %v1193_v6 = vsel %vm1176_vm5, %v1190_v17, %v1192_v62 }
 0x1fd   : > { %v1564_v39 = vmax.f32 %v1546_v56, 0.0  ;;  %v1122_v63 = vadd.f32 %v1076_v36, %v1005_v11  ;;  %6019 = vmatpush3.bf16.msra.mxu0 %v6758_v21  ;;  %v10093_v12 = vrot.slane %v8143_v24, 2  ;;  %v628_v61 = vmul.f32 %v7670_v55, %v7802_v40  ;;  %v8202_v56 = vpop.permute.xlu0 %597 }
 0x1fe   : > { %6080 = vmatprep.subr.bf16.mxu0 %v10106_v26  ;;  %v1360_v32 = vsel %vm703_vm1, %v1357_v45, %v10094_v25  ;;  %v8186_v5 = vmul.f32 %v7656_v47, %v7977_v29  ;;  %v10092_v17 = vrot.slane %v8161_v27, 4  ;;  %v10090_v40 = vrot.slane %v8151_v44, 1 }
 0x1ff   : > { %v1690_v54 = vmul.f32 %v1627_v34, %v1564_v39  ;;  %v1239_v7 = vadd.f32 %v1193_v6, %v1122_v63  ;;  %v8192_v33 = vmul.f32 %v7660_v49, %v7943_v57  ;;  %v913_v42 = vmul.f32 %v7654_v46, %v7943_v57 }
 0x200   : > { %v838_v50 = vrot.slane %v791_v53, 2  ;;  %v8200_v45 = vmul.f32 %v7662_v52, %v7977_v29  ;;  %v724_v11 = vsel %vm703_vm1, %v721_v38, %v10090_v40  ;;  %v1030_v39 = vmul.f32 %v7656_v47, %v7943_v57 }
 0x201   : > { %v8196_v21 = vpack.c.bf16 %v1690_v54, %v1689_v37  ;;  %v1285_v19 = vadd.f32 %v1267_v10, %v1239_v7  ;;  %v10091_v34 = vrot.slane %v8192_v33, 2  ;;  %v960_v36 = vrot.slane %v913_v42, 4 }
 0x202   : > { %v1476_v63 = vsel %vm820_vm2, %v1473_v35, %v10093_v12  ;;  %v1079_v10 = vrot.slane %v8186_v5, 5  ;;  %v768_v53 = vadd.f32 %v724_v11, %v628_v61  ;;  %v8218_v6 = vmul.f32 %v7729_v30, %v8101_v9 }
 0x203   : > { %v1406_v37 = vadd.f32 %v1360_v32, %v1285_v19  ;;  %v841_v7 = vsel %vm820_vm2, %v838_v50, %v10091_v34  ;;  %v963_v32 = vsel %vm942_vm3, %v960_v36, %v10092_v17  ;;  %v1147_v22 = vmul.f32 %v7662_v52, %v7943_v57 }
 0x204   : > { %v10097_v35 = vrot.slane %v8200_v45, 6  ;;  %v885_v19 = vadd.f32 %v841_v7, %v768_v53  ;;  %v1077_v61 = vrot.slane %v1030_v39, 5  ;;  %v1315_v11 = vmul.f32 %v7729_v30, %v8042_v23 }
 0x205   : > { %v1522_v42 = vadd.f32 %v1476_v63, %v1406_v37  ;;  %v627_v40 = vmul.f32 %v7670_v55, %v7831_v13  ;;  %v722_v34 = vsel %vm703_vm1, %v719_v2, %v721_v38  ;;  %v8239_v12 = vmul.f32 %v7731_v31, %v8101_v9  ;;  %v1632_v63 = vpop.permute.xlu0 %1631 }
 0x206   : > { %v1007_v37 = vadd.f32 %v963_v32, %v885_v19  ;;  %v10096_v39 = vrot.slane %v8218_v6, 1  ;;  %v1080_v53 = vsel %vm1059_vm4, %v1077_v61, %v1079_v10  ;;  %v1194_v7 = vrot.slane %v1147_v22, 6 }
 0x207   : > { %v1547_v17 = vadd.f32 %v7804_v41, %v1522_v42  ;;  %v767_v13 = vadd.f32 %v722_v34, %v627_v40  ;;  %v839_v2 = vsel %vm820_vm2, %v836_v18, %v838_v50  ;;  %v961_v38 = vsel %vm942_vm3, %v958_v20, %v960_v36 }
 0x208   : > { %v1124_v59 = vadd.f32 %v1080_v53, %v1007_v37  ;;  %v1197_v32 = vsel %vm1176_vm5, %v1194_v7, %v10097_v35  ;;  %v1361_v42 = vrot.slane %v1315_v11, 1  ;;  %v1431_v19 = vmul.f32 %v7731_v31, %v8042_v23 }
 0x209   : > { %v1565_v25 = vmax.f32 %v1547_v17, 0.0  ;;  %v884_v22 = vadd.f32 %v839_v2, %v767_v13  ;;  %v10095_v17 = vrot.slane %v8239_v12, 2  ;;  %v1269_v18 = vmul.f32 %v7752_v43, %v8042_v23 }
 0x20a   : > { %v1241_v16 = vadd.f32 %v1197_v32, %v1124_v59  ;;  %v1364_v28 = vsel %vm703_vm1, %v1361_v42, %v10096_v39  ;;  %v1731_v50 = vshrl.u32 %v7994_v60, 16  ;;  %v1735_v34 = vshll.u32 %v8127_v14, 16 }
 0x20b   : > { %v8256_v40 = vmul.f32 %v1632_v63, %v1565_v25  ;;  %v1006_v20 = vadd.f32 %v961_v38, %v884_v22  ;;  %v1078_v11 = vsel %vm1059_vm4, %v1075_v58, %v1077_v61  ;;  %v1477_v37 = vrot.slane %v1431_v19, 2 }
 0x20c   : > { %v1287_v25 = vadd.f32 %v1269_v18, %v1241_v16  ;;  %v1733_v53 = vor.u32 %v1731_v50, %v8082_v15  ;;  %v8273_v13 = vrot.slane %v1735_v34, 1  ;;  %v676_v59 = vmul.f32 %v7658_v48, %v7977_v29 }
 0x20d   : > { %v8267_v36 = vpack.c.bf16 %v8256_v40, %v1690_v54  ;;  %v1123_v63 = vadd.f32 %v1078_v11, %v1006_v20  ;;  %v1195_v54 = vsel %vm1176_vm5, %v1192_v62, %v1194_v7  ;;  %v1480_v1 = vsel %vm820_vm2, %v1477_v37, %v10095_v17  ;;  %v8295_v62 = vpop.permute.xlu1 %602 }
 0x20e   : > { %v1408_v2 = vadd.f32 %v1364_v28, %v1287_v25  ;;  %v1268_v15 = vmul.f32 %v7752_v43, %v7977_v29  ;;  %v1738_v61 = vsel %vm1718_vm7, %v1733_v53, %v8273_v13  ;;  %v8293_v0 = vmul.f32 %v7658_v48, %v8042_v23 }
 0x20f   : > { %6001 = vmatmul.mubr.msk.bf16.gmra.mrb[12].mxu1 %vm1791_vm6, %v8267_v36  ;;  %v1240_v58 = vadd.f32 %v1195_v54, %v1123_v63  ;;  %v10142_v38 = vrot.slane %v8139_v4, 1  ;;  %5961 = vmatmul.mubr.msk.bf16.gmra.mrb[4].mxu0 %vm1791_vm6, %v1738_v61  ;;  %v793_v19 = vmul.f32 %v7660_v49, %v7977_v29  ;;  %v8305_v16 = vmul.f32 %v7654_v46, %v8101_v9 }
 0x210   : > { %6004 = vmatprep.mubr.msk.bf16.mxu1 %vm7203_vm0, %v10106_v26  ;;  %v1524_v7 = vadd.f32 %v1480_v1, %v1408_v2  ;;  %5964 = vmatprep.mubr.msk.bf16.mxu0 %vm7203_vm0, %v10106_v26  ;;  %v8311_v18 = vmul.f32 %v7658_v48, %v8101_v9  ;;  %v630_v20 = vmul.f32 %v7670_v55, %v7977_v29  ;;  %v725_v34 = vrot.slane %v676_v59, 1 }
 0x211   : > { %v1362_v32 = vsel %vm703_vm1, %v10142_v38, %v1361_v42  ;;  %v1286_v22 = vadd.f32 %v1268_v15, %v1240_v58  ;;  %v10143_v42 = vrot.slane %v8143_v24, 2  ;;  %v8321_v25 = vmul.f32 %v7656_v47, %v8101_v9  ;;  %v1642_v54 = vpop.permute.xlu1 %1641 }
 0x212   : > { %v1549_v4 = vadd.f32 %v7804_v41, %v1524_v7  ;;  %v8325_v11 = vmul.f32 %v7662_v52, %v8101_v9  ;;  %v842_v48 = vrot.slane %v793_v19, 2  ;;  %v10098_v63 = vrot.slane %v8305_v16, 4  ;;  %v1637_v19 = vpop.permute.xlu0 %1636 }
 0x213   : > { %v1478_v28 = vsel %vm820_vm2, %v10143_v42, %v1477_v37  ;;  %v1407_v50 = vadd.f32 %v1362_v32, %v1286_v22  ;;  %v8330_v24 = vmul.f32 %v7729_v30, %v8295_v62  ;;  %v727_v37 = vrot.slane %v8293_v0, 1 }
 0x214   : > { %v1567_v29 = vmax.f32 %v1549_v4, 0.0  ;;  %v8335_v59 = vmul.f32 %v7660_v49, %v8042_v23  ;;  %v915_v2 = vmul.f32 %v7654_v46, %v8042_v23  ;;  %v8341_v1 = vmul.f32 %v7731_v31, %v8295_v62 }
 0x215   : > { %v1523_v53 = vadd.f32 %v1478_v28, %v1407_v50  ;;  %v728_v58 = vsel %vm703_vm1, %v725_v34, %v727_v37  ;;  %v1032_v15 = vmul.f32 %v7656_v47, %v8042_v23  ;;  %v1149_v61 = vmul.f32 %v7662_v52, %v8042_v23 }
 0x216   : > { %v770_v7 = vadd.f32 %v728_v58, %v630_v20  ;;  %v844_v38 = vrot.slane %v8335_v59, 2  ;;  %v964_v32 = vrot.slane %v915_v2, 4  ;;  %v1083_v22 = vrot.slane %v8321_v25, 5 }
 0x217   : > { %v1548_v0 = vadd.f32 %v7804_v41, %v1523_v53  ;;  %v1200_v4 = vrot.slane %v8325_v11, 6  ;;  %v1367_v42 = vrot.slane %v8330_v24, 1  ;;  %v1317_v28 = vmul.f32 %v7729_v30, %v8202_v56 }
 0x218   : > { %v8355_v47 = vmul.f32 %v1642_v54, %v1567_v29  ;;  %v845_v52 = vsel %vm820_vm2, %v842_v48, %v844_v38  ;;  %v967_v20 = vsel %vm942_vm3, %v964_v32, %v10098_v63  ;;  %v1081_v2 = vrot.slane %v1032_v15, 5 }
 0x219   : > { %v1566_v50 = vmax.f32 %v1548_v0, 0.0  ;;  %v887_v59 = vadd.f32 %v845_v52, %v770_v7  ;;  %v629_v58 = vmul.f32 %v7670_v55, %v7943_v57  ;;  %v1198_v39 = vrot.slane %v1149_v61, 6 }
 0x21a   : > { %10144 = vst [vmem:[#allocation29_spill] sm:$0xff] %v8355_v47  ;;  %v1433_v29 = vmul.f32 %v7731_v31, %v8202_v56  ;;  %v10145_v54 = vrot.slane %v8151_v44, 1  ;;  %v1084_v63 = vsel %vm1059_vm4, %v1081_v2, %v1083_v22  ;;  %v1365_v53 = vrot.slane %v1317_v28, 1 }
 0x21b   : > { %v1692_v17 = vmul.f32 %v1637_v19, %v1566_v50  ;;  %v1009_v35 = vadd.f32 %v967_v20, %v887_v59  ;;  %v10146_v61 = vrot.slane %v8192_v33, 2  ;;  %v10147_v44 = vrot.slane %v8161_v27, 4 }
 0x21c   : > { %v726_v0 = vsel %vm703_vm1, %v10145_v54, %v725_v34  ;;  %v1201_v28 = vsel %vm1176_vm5, %v1198_v39, %v1200_v4  ;;  %v1271_v52 = vmul.f32 %v7752_v43, %v8202_v56  ;;  %v1481_v33 = vrot.slane %v1433_v29, 2 }
 0x21d   : > { %v769_v7 = vadd.f32 %v726_v0, %v629_v58  ;;  %v8373_v15 = vpack.c.bf16 %v8355_v47, %v1692_v17  ;;  %v8376_v57 = vpack.c.bf16 %v1692_v17, %v8256_v40  ;;  %v843_v19 = vsel %vm820_vm2, %v10146_v61, %v842_v48 }
 0x21e   : > { %v965_v34 = vsel %vm942_vm3, %v10147_v44, %v964_v32  ;;  %v1126_v50 = vadd.f32 %v1084_v63, %v1009_v35  ;;  %v1368_v40 = vsel %vm703_vm1, %v1365_v53, %v1367_v42  ;;  %v1739_v17 = vshrl.u32 %v8127_v14, 16  ;;  %v8585_v14 = vld [vmem:[#allocation7 + $0x7] ss:$0 sm:$0xff] }
 0x21f   : > { %v886_v20 = vadd.f32 %v843_v19, %v769_v7  ;;  %v1743_v27 = vshll.u32 %v8267_v36, 16  ;;  %6005 = vmatmul.mubr.msk.bf16.gmra.mrb[16].mxu1 %vm1791_vm6, %v8373_v15  ;;  %v10103_v63 = vrot.slane %v8311_v18, 1  ;;  %v8399_v32 = vmul.f32 %v7660_v49, %v8101_v9 }
 0x220   : > { %v1243_v35 = vadd.f32 %v1201_v28, %v1126_v50  ;;  %6008 = vmatprep.mubr.msk.bf16.mxu1 %vm7203_vm0, %v10106_v26  ;;  %v1082_v59 = vsel %vm1059_vm4, %v1079_v10, %v1081_v2  ;;  %v1741_v58 = vor.u32 %v1739_v17, %v8273_v13  ;;  %v631_v54 = vmul.f32 %v7670_v55, %v8042_v23  ;;  %v8447_v17 = vpop.permute.xlu0 %607 }
 0x221   : > { %v1008_v48 = vadd.f32 %v965_v34, %v886_v20  ;;  %v8407_v29 = vrot.slane %v1743_v27, 1  ;;  %v10102_v61 = vrot.slane %v8399_v32, 2  ;;  %v730_v49 = vsel %vm703_vm1, %v727_v37, %v10103_v63  ;;  %v8454_v27 = vld [vmem:[#allocation7 + $0x3] ss:$0 sm:$0xff] }
 0x222   : > { %v1289_v0 = vadd.f32 %v1271_v52, %v1243_v35  ;;  %v10148_v19 = vrot.slane %v8200_v45, 6  ;;  %v771_v13 = vadd.f32 %v730_v49, %v631_v54  ;;  %v8422_v2 = vmul.f32 %v7654_v46, %v8202_v56  ;;  %v8430_v45 = vpop.permute.xlu1 %612  ;;  %v8439_v52 = vld [vmem:[#allocation7 + $0x4] ss:$0 sm:$0xff]  ;;  %v8465_v54 = vld [vmem:[#allocation7 + $0x1] ss:$0 sm:$0xff] }
 0x223   : > { %v1125_v7 = vadd.f32 %v1082_v59, %v1008_v48  ;;  %v1746_v10 = vsel %vm1718_vm7, %v1741_v58, %v8407_v29  ;;  %v10149_v23 = vrot.slane %v8341_v1, 2  ;;  %v1270_v37 = vmul.f32 %v7752_v43, %v8101_v9 }
 0x224   : > { %v1199_v5 = vsel %vm1176_vm5, %v10148_v19, %v1198_v39  ;;  %v1410_v55 = vadd.f32 %v1368_v40, %v1289_v0  ;;  %5965 = vmatmul.mubr.msk.bf16.gmra.mrb[8].mxu0 %vm1791_vm6, %v1746_v10  ;;  %v10150_v39 = vrot.slane %v8218_v6, 1  ;;  %v847_v46 = vsel %vm820_vm2, %v844_v38, %v10102_v61  ;;  %v8475_v19 = vld [vmem:[#allocation7 + $0x5] ss:$0 sm:$0xff] }
 0x225   : > { %v1484_v44 = vsel %vm820_vm2, %v1481_v33, %v10149_v23  ;;  %v1242_v34 = vadd.f32 %v1199_v5, %v1125_v7  ;;  %v10101_v28 = vrot.slane %v8422_v2, 4  ;;  %v8443_v20 = vmul.f32 %v8439_v52, %v8202_v56  ;;  %5968 = vmatprep.mubr.msk.bf16.mxu0 %vm7203_vm0, %v10106_v26 }
 0x226   : > { %v1366_v50 = vsel %vm703_vm1, %v10150_v39, %v1365_v53  ;;  %v1526_v43 = vadd.f32 %v1484_v44, %v1410_v55  ;;  %v888_v6 = vadd.f32 %v847_v46, %v771_v13  ;;  %v10151_v38 = vrot.slane %v8305_v16, 4  ;;  %v8483_v44 = vld [vmem:[#allocation7] ss:$0 sm:$0xff] }
 0x227   : > { %v1288_v40 = vadd.f32 %v1270_v37, %v1242_v34  ;;  %v8458_v35 = vmul.f32 %v8454_v27, %v8430_v45  ;;  %v8462_v48 = vmul.f32 %v8439_v52, %v8430_v45  ;;  %v8469_v16 = vmul.f32 %v8465_v54, %v8295_v62  ;;  %v1652_v34 = vpop.permute.xlu1 %1651 }
 0x228   : > { %v969_v53 = vsel %vm942_vm3, %v10151_v38, %v10101_v28  ;;  %v1551_v59 = vadd.f32 %v7804_v41, %v1526_v43  ;;  %v10152_v0 = vrot.slane %v8239_v12, 2  ;;  %v10100_v49 = vrot.slane %v8443_v20, 5  ;;  %v1647_v43 = vpop.permute.xlu0 %1646 }
 0x229   : > { %v1409_v58 = vadd.f32 %v1366_v50, %v1288_v40  ;;  %v8479_v5 = vmul.f32 %v8475_v19, %v8202_v56  ;;  %v1010_v55 = vadd.f32 %v969_v53, %v888_v6  ;;  %v679_v23 = vmul.f32 %v8465_v54, %v8202_v56  ;;  %v8507_v53 = vld [vmem:[#allocation7 + $0x2] ss:$0 sm:$0xff] }
 0x22a   : > { %v1482_v7 = vsel %vm820_vm2, %v10152_v0, %v1481_v33  ;;  %v1569_v10 = vmax.f32 %v1551_v59, 0.0  ;;  %v8487_v12 = vmul.f32 %v8483_v44, %v8295_v62  ;;  %v8491_v33 = vmul.f32 %v8475_v19, %v8430_v45 }
 0x22b   : > { %v1525_v13 = vadd.f32 %v1482_v7, %v1409_v58  ;;  %v8498_v46 = vmul.f32 %v7729_v30, %v8447_v17  ;;  %v1086_v40 = vsel %vm1059_vm4, %v1083_v22, %v10100_v49  ;;  %v10099_v6 = vrot.slane %v8479_v5, 6 }
 0x22c   : > { %v733_v38 = vrot.slane %v8469_v16, 1  ;;  %v8515_v30 = vmul.f32 %v8465_v54, %v8447_v17  ;;  %v8517_v59 = vmul.f32 %v1652_v34, %v1569_v10  ;;  %v1127_v25 = vadd.f32 %v1086_v40, %v1010_v55  ;;  %v8560_v28 = vpop.permute.xlu0 %658 }
 0x22d   : > { %v1550_v50 = vadd.f32 %v7804_v41, %v1525_v13  ;;  %v8511_v41 = vmul.f32 %v8507_v53, %v8295_v62  ;;  %v8521_v22 = vmul.f32 %v8507_v53, %v8447_v17  ;;  %v8525_v16 = vmul.f32 %v7731_v31, %v8447_v17 }
 0x22e   : > { %10153 = vst [vmem:[#allocation30_spill] sm:$0xff] %v8517_v59  ;;  %v918_v0 = vmul.f32 %v8454_v27, %v8295_v62  ;;  %v731_v7 = vrot.slane %v679_v23, 1  ;;  %v10109_v39 = vrot.slane %v8498_v46, 1  ;;  %v633_v10 = vmul.f32 %v8483_v44, %v8202_v56 }
 0x22f   : > { %v1568_v58 = vmax.f32 %v1550_v50, 0.0  ;;  %v796_v55 = vmul.f32 %v8507_v53, %v8202_v56  ;;  %v1203_v31 = vsel %vm1176_vm5, %v1200_v4, %v10099_v6  ;;  %v850_v34 = vrot.slane %v8511_v41, 2 }
 0x230   : > { %v734_v23 = vsel %vm703_vm1, %v731_v7, %v733_v38  ;;  %v8545_v50 = vmul.f32 %v8454_v27, %v8447_v17  ;;  %v1244_v40 = vadd.f32 %v1203_v31, %v1127_v25  ;;  %v1035_v56 = vmul.f32 %v8439_v52, %v8295_v62 }
 0x231   : > { %v8529_v13 = vmul.f32 %v1647_v43, %v1568_v58  ;;  %v773_v58 = vadd.f32 %v734_v23, %v633_v10  ;;  %v970_v11 = vrot.slane %v918_v0, 4  ;;  %v848_v37 = vrot.slane %v796_v55, 2  ;;  %v8570_v0 = vld [vmem:[#allocation7 + $0x6] ss:$0 sm:$0xff] }
 0x232   : > { %v972_v4 = vrot.slane %v8545_v50, 4  ;;  %v8556_v41 = vmul.f32 %v8439_v52, %v8447_v17  ;;  %v1152_v25 = vmul.f32 %v8475_v19, %v8295_v62  ;;  %v8566_v10 = vmul.f32 %v8475_v19, %v8447_v17 }
 0x233   : > { %10154 = vst [vmem:[#allocation31_spill] sm:$0xff] %v8529_v13  ;;  %v8549_v43 = vpack.c.bf16 %v8517_v59, %v8529_v13  ;;  %v1272_v55 = vmul.f32 %v8570_v0, %v8295_v62  ;;  %v851_v31 = vsel %vm820_vm2, %v848_v37, %v850_v34  ;;  %v1370_v6 = vsel %vm703_vm1, %v1367_v42, %v10109_v39 }
 0x234   : > { %v973_v23 = vsel %vm942_vm3, %v970_v11, %v972_v4  ;;  %v1089_v50 = vrot.slane %v8556_v41, 5  ;;  %v1087_v49 = vrot.slane %v1035_v56, 5  ;;  %v890_v63 = vadd.f32 %v851_v31, %v773_v58 }
 0x235   : > { %6009 = vmatmul.mubr.msk.bf16.gmra.mrb[20].mxu1 %vm1791_vm6, %v8549_v43  ;;  %v1290_v62 = vadd.f32 %v1272_v55, %v1244_v40  ;;  %v1320_v59 = vmul.f32 %v8585_v14, %v8430_v45  ;;  %v632_v41 = vmul.f32 %v8483_v44, %v8101_v9  ;;  %v10156_v13 = vrot.slane %v8525_v16, 2 }
 0x236   : > { %6012 = vmatprep.mubr.msk.bf16.mxu1 %vm7203_vm0, %v10106_v26  ;;  %v10155_v26 = vrot.slane %v8311_v18, 1  ;;  %v10157_v24 = vrot.slane %v8341_v1, 2  ;;  %v1204_v56 = vrot.slane %v1152_v25, 6  ;;  %v1012_v40 = vadd.f32 %v973_v23, %v890_v63 }
 0x237   : > { %v1206_v58 = vrot.slane %v8566_v10, 6  ;;  %v1411_v55 = vadd.f32 %v1370_v6, %v1290_v62  ;;  %v10158_v31 = vrot.slane %v8515_v30, 1  ;;  %v1090_v9 = vsel %vm1059_vm4, %v1087_v49, %v1089_v50 }
 0x238   : > { %v732_v61 = vsel %vm703_vm1, %v10155_v26, %v731_v7  ;;  %v1486_v42 = vsel %vm820_vm2, %v10157_v24, %v10156_v13  ;;  %v1129_v47 = vadd.f32 %v1090_v9, %v1012_v40  ;;  %v8606_v26 = vmul.f32 %v8585_v14, %v8560_v28  ;;  %v8614_v13 = vpop.permute.xlu0 %1661 }
 0x239   : > { %v736_v39 = vsel %vm703_vm1, %v733_v38, %v10158_v31  ;;  %v772_v18 = vadd.f32 %v732_v61, %v632_v41  ;;  %v10159_v1 = vrot.slane %v8399_v32, 2  ;;  %v10160_v63 = vrot.slane %v8422_v2, 4  ;;  %v8618_v61 = vld [vmem:[#allocation7 + $0x8] ss:$0 sm:$0xff] }
 0x23a   : > { %v1274_v38 = vmul.f32 %v8570_v0, %v8430_v45  ;;  %v1371_v25 = vrot.slane %v1320_v59, 1  ;;  %v1436_v10 = vmul.f32 %v8618_v61, %v8430_v45  ;;  %v10161_v32 = vrot.slane %v8521_v22, 2 }
 0x23b   : > { %v849_v7 = vsel %vm820_vm2, %v10159_v1, %v848_v37  ;;  %v971_v6 = vsel %vm942_vm3, %v10160_v63, %v970_v11  ;;  %v1207_v2 = vsel %vm1176_vm5, %v1204_v56, %v1206_v58  ;;  %v1747_v11 = vshrl.u32 %v8267_v36, 16 }
 0x23c   : > { %v889_v23 = vadd.f32 %v849_v7, %v772_v18  ;;  %v853_v37 = vsel %vm820_vm2, %v850_v34, %v10161_v32  ;;  %v1751_v62 = vshll.u32 %v8373_v15, 16  ;;  %v1527_v41 = vadd.f32 %v1486_v42, %v1411_v55 }
 0x23d   : > { %v1246_v24 = vadd.f32 %v1207_v2, %v1129_v47  ;;  %v774_v59 = vadd.f32 %v736_v39, %v8487_v12  ;;  %v1373_v31 = vrot.slane %v8606_v26, 1  ;;  %v10162_v9 = vrot.slane %v8443_v20, 5  ;;  %v8651_v26 = vpop.permute.xlu0 %897 }
 0x23e   : > { %v1011_v40 = vadd.f32 %v971_v6, %v889_v23  ;;  %v1749_v1 = vor.u32 %v1747_v11, %v8407_v29  ;;  %v8634_v34 = vrot.slane %v1751_v62, 1  ;;  %v8638_v7 = vmul.f32 %v8618_v61, %v8560_v28  ;;  %v8653_v6 = vld [vmem:[#allocation8] ss:$0 sm:$0xff] }
 0x23f   : > { %v1088_v18 = vsel %vm1059_vm4, %v10162_v9, %v1087_v49  ;;  %v1273_v47 = vmul.f32 %v8570_v0, %v8447_v17  ;;  %v891_v42 = vadd.f32 %v853_v37, %v774_v59  ;;  %v1208_v12 = vrot.slane %v8491_v33, 6 }
 0x240   : > { %v1128_v63 = vadd.f32 %v1088_v18, %v1011_v40  ;;  %v10163_v39 = vrot.slane %v8458_v35, 4  ;;  %v10164_v49 = vrot.slane %v8479_v5, 6  ;;  %v1754_v55 = vsel %vm1718_vm7, %v1749_v1, %v8634_v34 }
 0x241   : > { %v1552_v23 = vadd.f32 %v8653_v6, %v1527_v41  ;;  %v1292_v32 = vadd.f32 %v1274_v38, %v1246_v24  ;;  %5969 = vmatmul.mubr.msk.bf16.gmra.mrb[12].mxu0 %vm1791_vm6, %v1754_v55  ;;  %v1487_v11 = vrot.slane %v1436_v10, 2  ;;  %v10165_v5 = vrot.slane %v8498_v46, 1 }
 0x242   : > { %v975_v20 = vsel %vm942_vm3, %v972_v4, %v10163_v39  ;;  %v1205_v29 = vsel %vm1176_vm5, %v10164_v49, %v1204_v56  ;;  %v1374_v4 = vsel %vm703_vm1, %v1371_v25, %v1373_v31  ;;  %v8663_v62 = vmul.f32 %v8465_v54, %v8430_v45 }
 0x243   : > { %v1245_v37 = vadd.f32 %v1205_v29, %v1128_v63  ;;  %v1013_v2 = vadd.f32 %v975_v20, %v891_v42  ;;  %v1372_v56 = vsel %vm703_vm1, %v10165_v5, %v1371_v25  ;;  %v10166_v40 = vmov 0.0  }
 0x244   : > { %5972 = vmatprep.mubr.msk.bf16.mxu0 %vm7203_vm0, %v10166_v40  ;;  %v10167_v38 = vrot.slane %v8462_v48, 5  ;;  %v1489_v24 = vrot.slane %v8638_v7, 2  ;;  %v8673_v59 = vmul.f32 %v8585_v14, %v8651_v26  ;;  %v737_v25 = vrot.slane %v8663_v62, 1 }
 0x245   : > { %v1291_v10 = vadd.f32 %v1273_v47, %v1245_v37  ;;  %v8678_v9 = vmul.f32 %v8507_v53, %v8430_v45  ;;  %v1570_v18 = vmax.f32 %v1552_v23, 0.0  ;;  %v1413_v1 = vadd.f32 %v1374_v4, %v1292_v32 }
 0x246   : > { %v1092_v41 = vsel %vm1059_vm4, %v1089_v50, %v10167_v38  ;;  %v635_v50 = vmul.f32 %v8483_v44, %v8447_v17  ;;  %v1209_v7 = vsel %vm1176_vm5, %v1206_v58, %v1208_v12  ;;  %v10168_v47 = vrot.slane %v8525_v16, 2 }
 0x247   : > { %v1130_v46 = vadd.f32 %v1092_v41, %v1013_v2  ;;  %v1412_v63 = vadd.f32 %v1372_v56, %v1291_v10  ;;  %v10169_v39 = vrot.slane %v8515_v30, 1  ;;  %v854_v49 = vrot.slane %v8678_v9, 2  ;;  %v1657_v56 = vpop.permute.xlu1 %1656 }
 0x248   : > { %v1488_v42 = vsel %vm820_vm2, %v10168_v47, %v1487_v11  ;;  %v1490_v29 = vsel %vm820_vm2, %v1487_v11, %v1489_v24  ;;  %v1375_v17 = vrot.slane %v8673_v59, 1  ;;  %v1438_v16 = vmul.f32 %v8618_v61, %v8651_v26 }
 0x249   : > { %v738_v20 = vsel %vm703_vm1, %v10169_v39, %v737_v25  ;;  %v1528_v55 = vadd.f32 %v1488_v42, %v1412_v63  ;;  %v1247_v32 = vadd.f32 %v1209_v7, %v1130_v46  ;;  %v10170_v58 = vrot.slane %v8521_v22, 2 }
 0x24a   : > { %v775_v23 = vadd.f32 %v738_v20, %v635_v50  ;;  %v8705_v37 = vmul.f32 %v8454_v27, %v8560_v28  ;;  %v1529_v2 = vadd.f32 %v1490_v29, %v1413_v1  ;;  %v8710_v5 = vmul.f32 %v8439_v52, %v8560_v28 }
 0x24b   : > { %v855_v30 = vsel %vm820_vm2, %v10170_v58, %v854_v49  ;;  %v1553_v11 = vadd.f32 %v8653_v6, %v1528_v55  ;;  %v1275_v38 = vmul.f32 %v8570_v0, %v8560_v28  ;;  %v8717_v41 = vmul.f32 %v8475_v19, %v8560_v28  ;;  %v1667_v58 = vpop.permute.xlu1 %1666 }
 0x24c   : > { %v892_v4 = vadd.f32 %v855_v30, %v775_v23  ;;  %v976_v22 = vrot.slane %v8705_v37, 4  ;;  %v8719_v10 = vmul.f32 %v1657_v56, %v1570_v18  ;;  %v1376_v46 = vsel %vm703_vm1, %v1373_v31, %v1375_v17  ;;  %v8738_v23 = vpop.permute.xlu0 %1253 }
 0x24d   : > { %v1571_v59 = vmax.f32 %v1553_v11, 0.0  ;;  %v1093_v1 = vrot.slane %v8710_v5, 5  ;;  %v1293_v63 = vadd.f32 %v1275_v38, %v1247_v32  ;;  %v1491_v50 = vrot.slane %v1438_v16, 2 }
 0x24e   : > { %v10171_v7 = vrot.slane %v8458_v35, 4  ;;  %v1554_v42 = vadd.f32 %v8653_v6, %v1529_v2  ;;  %v10172_v31 = vrot.slane %v8462_v48, 5  ;;  %v1210_v55 = vrot.slane %v8717_v41, 6 }
 0x24f   : > { %v8730_v39 = vmul.f32 %v8614_v13, %v1571_v59  ;;  %v1414_v20 = vadd.f32 %v1376_v46, %v1293_v63  ;;  %v1276_v13 = vmul.f32 %v8570_v0, %v8651_v26  ;;  %v1492_v16 = vsel %vm820_vm2, %v1489_v24, %v1491_v50 }
 0x250   : > { %v977_v47 = vsel %vm942_vm3, %v10171_v7, %v976_v22  ;;  %v1094_v29 = vsel %vm1059_vm4, %v10172_v31, %v1093_v1  ;;  %v1211_v48 = vsel %vm1176_vm5, %v1208_v12, %v1210_v55  ;;  %v1572_v30 = vmax.f32 %v1554_v42, 0.0 }
 0x251   : > { %v1014_v18 = vadd.f32 %v977_v47, %v892_v4  ;;  %v8742_v35 = vpack.c.bf16 %v8730_v39, %v8719_v10  ;;  %v8754_v11 = vmul.f32 %v8585_v14, %v8738_v23  ;;  %v8758_v4 = vmul.f32 %v8618_v61, %v8738_v23 }
 0x252   : > { %v1530_v24 = vadd.f32 %v1492_v16, %v1414_v20  ;;  %v1755_v56 = vshrl.u32 %v8373_v15, 16  ;;  %v1759_v33 = vshll.u32 %v8549_v43, 16  ;;  %v2031_v7 = vrot.slane %v7994_v60, 1 }
 0x253   : > { %v1131_v32 = vadd.f32 %v1094_v29, %v1014_v18  ;;  %6013 = vmatmul.mubr.msk.bf16.gmra.mrb[24].mxu1 %vm1791_vm6, %v8742_v35  ;;  %v1377_v12 = vrot.slane %v8754_v11, 1  ;;  %v1493_v38 = vrot.slane %v8758_v4, 2  ;;  %v8770_v47 = vmul.f32 %v1667_v58, %v1572_v30 }
 0x254   : > { %6052 = vmatprep.mubr.msk.bf16.mxu1 %vm7203_vm0, %v10166_v40  ;;  %v1757_v46 = vor.u32 %v1755_v56, %v8634_v34  ;;  %v1761_v63 = vrot.slane %v1759_v33, 1  ;;  %v1555_v18 = vadd.f32 %v8653_v6, %v1530_v24  ;;  %v1767_v29 = vshll.u32 %v8742_v35, 16 }
 0x255   : > { %v1248_v2 = vadd.f32 %v1211_v48, %v1131_v32  ;;  %v1378_v42 = vsel %vm703_vm1, %v1375_v17, %v1377_v12  ;;  %v2030_v32 = vrot.slane %v7874_v8, 1  ;;  %v2202_v34 = vrot.slane %v7933_v51, 2  ;;  %v6763_v48 = vld [vmem:[#allocation10 + $0x50] sm:$0xff]  }
 0x256   : > { %v1762_v31 = vsel %vm1718_vm7, %v1757_v46, %v1761_v63  ;;  %v1494_v16 = vsel %vm820_vm2, %v1491_v50, %v1493_v38  ;;  %v2203_v17 = vrot.slane %v8056_v3, 2  ;;  %v1713_v30 = vpack.c.bf16 %v8770_v47, %v8770_v47 }
 0x257   : > { %v1294_v59 = vadd.f32 %v1276_v13, %v1248_v2  ;;  %v1672_v13 = vpop.permute.xlu1 %1671  ;;  %5973 = vmatmul.mubr.msk.bf16.gmra.mrb[16].mxu0 %vm1791_vm6, %v1762_v31  ;;  %v2032_v2 = vsel %vm703_vm1, %v2030_v32, %v2031_v7  ;;  %v1573_v24 = vmax.f32 %v1555_v18, 0.0  ;;  %v1763_v56 = vshrl.u32 %v8549_v43, 16 }
 0x258   : > { %5976 = vmatprep.mubr.msk.bf16.mxu0 %vm7203_vm0, %v10166_v40  ;;  %v2204_v8 = vsel %vm820_vm2, %v2202_v34, %v2203_v17  ;;  %v1769_v33 = vrot.slane %v1767_v29, 1  ;;  %v2205_v18 = vrot.slane %v8196_v21, 2  ;;  %v1775_v32 = vshll.u32 %v1713_v30, 16 }
 0x259   : > { %v1415_v20 = vadd.f32 %v1378_v42, %v1294_v59  ;;  %v6764_v59 = vld [vmem:[#allocation10 + $0x58] sm:$0xff]   ;;  %v1765_v42 = vor.u32 %v1763_v56, %v1761_v63  ;;  %v1699_v34 = vmul.f32 %v1672_v13, %v1573_v24  ;;  %v1156_v37 = vmul.f32 %v8475_v19, %v8651_v26 }
 0x25a   : > { %v2206_v13 = vsel %vm820_vm2, %v2203_v17, %v2205_v18 }
 0x25b   : > { %v1531_v58 = vadd.f32 %v1494_v16, %v1415_v20  ;;  %6053 = vmatmul.mubr.msk.bf16.vlgmr.msra.gmra.mrb[28].mxu1 %vm1791_vm6, %v2204_v8  ;;  %v2043_v20 = vrot.slane %v1713_v30, 1  ;;  %v1677_v31 = vpop.permute.xlu1 %1676  ;;  %v1770_v29 = vsel %vm1718_vm7, %v1765_v42, %v1769_v33  ;;  %v2041_v8 = vrot.slane %v8742_v35, 1  ;;  %v10174_v42 = vld [vmem:[#allocation31_spill] sm:$0xff] }
 0x25c   : > { %6056 = vmatprep.mubr.msk.bf16.mxu1 %vm7203_vm0, %v10166_v40  ;;  %6113 = vmatpush3.bf16.msra.mxu1 %v6763_v48  ;;  %v2039_v48 = vrot.slane %v8549_v43, 1  ;;  %v1777_v43 = vrot.slane %v1775_v32, 1  ;;  %v6762_v32 = vld [vmem:[#allocation10 + $0x48] sm:$0xff]  }
 0x25d   : > { %v1556_v50 = vadd.f32 %v8653_v6, %v1531_v58  ;;  %6114 = vmatprep.subr.bf16.mxu1 %v10166_v40  ;;  %v2037_v58 = vrot.slane %v8373_v15, 1  ;;  %v8816_v15 = vsel %vm703_vm1, %v2041_v8, %v2043_v20 }
 0x25e   : > { %v8813_v24 = vsel %vm703_vm1, %v2039_v48, %v2041_v8 }
 0x25f   : > { %v1574_v46 = vmax.f32 %v1556_v50, 0.0  ;;  %5977 = vmatmul.mubr.msk.bf16.gmra.mrb[20].mxu0 %vm1791_vm6, %v1770_v29  ;;  %v2040_v30 = vsel %vm703_vm1, %v2037_v58, %v2039_v48  ;;  %v1771_v50 = vshrl.u32 %v8742_v35, 16  ;;  %v10176_v48 = vld [vmem:[#allocation28_spill] sm:$0xff] }
 0x260   : > { %6115 = vmatpush3.bf16.msra.mxu1 %v6764_v59  ;;  %5980 = vmatprep.mubr.msk.bf16.mxu0 %vm7203_vm0, %v10166_v40  ;;  %v2207_v59 = vrot.slane %v8376_v57, 2  ;;  %v2033_v8 = vrot.slane %v10176_v48, 1 }
 0x261   : > { %v1700_v16 = vmul.f32 %v1677_v31, %v1574_v46  ;;  %6176 = vmatprep.subr.bf16.mxu1 %v10166_v40  ;;  %v1773_v56 = vor.u32 %v1771_v50, %v1769_v33  ;;  %v10173_v46 = vld [vmem:[#allocation29_spill] sm:$0xff]  ;;  %v2035_v50 = vrot.slane %v8267_v36, 1 }
 0x262   : > { %v8829_v20 = vpack.c.bf16 %v10174_v42, %v10173_v46  ;;  %v2208_v35 = vsel %vm820_vm2, %v2205_v18, %v2207_v59  ;;  %v6761_v33 = vld [vmem:[#allocation10 + $0x40] sm:$0xff]   ;;  %v6768_v42 = vld [vmem:[#allocation10 + $0x78] sm:$0xff]  }
 0x263   : > { %v8805_v63 = vpack.c.bf16 %v1700_v16, %v1699_v34  ;;  %6057 = vmatmul.mubr.msk.bf16.gmra.mrb[32].mxu1 %vm1791_vm6, %v2206_v13  ;;  %v1778_v17 = vsel %vm1718_vm7, %v1773_v56, %v1777_v43  ;;  %v10175_v16 = vld [vmem:[#allocation30_spill] sm:$0xff]  ;;  %v8859_v13 = vpack.c.bf16 %v8770_v47, %v8730_v39  ;;  %v8872_v47 = vpack.c.bf16 %v1699_v34, %v1699_v34 }
 0x264   : > { %6060 = vmatprep.mubr.msk.bf16.mxu1 %vm7203_vm0, %v10166_v40  ;;  %v2209_v31 = vrot.slane %v8829_v20, 2  ;;  %v8841_v29 = vpack.c.bf16 %v8719_v10, %v10175_v16  ;;  %v2034_v10 = vsel %vm703_vm1, %v2031_v7, %v2033_v8  ;;  %v2036_v7 = vsel %vm703_vm1, %v2033_v8, %v2035_v50 }
 0x265   : > { %v2213_v60 = vrot.slane %v8859_v13, 2  ;;  %v2215_v36 = vrot.slane %v8872_v47, 2  ;;  %v2038_v56 = vsel %vm703_vm1, %v2035_v50, %v2037_v58  ;;  %v2571_v34 = vrot.slane %v8056_v3, 3  ;;  %v6767_v58 = vld [vmem:[#allocation10 + $0x70] sm:$0xff]  }
 0x266   : > { %v2210_v18 = vsel %vm820_vm2, %v2207_v59, %v2209_v31  ;;  %v2575_v16 = vrot.slane %v8376_v57, 3  ;;  %v2379_v50 = vshll.u32 %v8196_v21, 16 }
 0x267   : > { %5981 = vmatmul.mubr.msk.bf16.gmra.mrb[24].mxu0 %vm1791_vm6, %v1778_v17  ;;  %v2216_v59 = vsel %vm820_vm2, %v2213_v60, %v2215_v36  ;;  %v2570_v17 = vrot.slane %v7933_v51, 3 }
 0x268   : > { %6020 = vmatprep.mubr.msk.bf16.mxu0 %vm7203_vm0, %v10166_v40 }
 0x269   : > { %v2572_v46 = vsel %vm2569_vm8, %v2570_v17, %v2571_v34 }
 0x26b   : > { %6061 = vmatmul.mubr.msk.bf16.gmra.mrb[36].mxu1 %vm1791_vm6, %v2208_v35  ;;  %v2573_v35 = vrot.slane %v8196_v21, 3 }
 0x26c   : > { %6064 = vmatprep.mubr.msk.bf16.mxu1 %vm7203_vm0, %v10166_v40 }
 0x26f   : > { %6021 = vmatmul.mubr.msk.bf16.vlgmr.msra.gmra.mrb[28].mxu0 %vm1791_vm6, %v2032_v2  ;;  %v2211_v2 = vrot.slane %v8841_v29, 2 }
 0x270   : > { %6081 = vmatpush3.bf16.msra.mxu0 %v6761_v33  ;;  %6024 = vmatprep.mubr.msk.bf16.mxu0 %vm7203_vm0, %v10166_v40  ;;  %v2367_v33 = vshrl.u32 %v8056_v3, 16 }
 0x271   : > { %6082 = vmatprep.subr.bf16.mxu0 %v10166_v40  ;;  %v2212_v43 = vsel %vm820_vm2, %v2209_v31, %v2211_v2  ;;  %v2214_v39 = vsel %vm820_vm2, %v2211_v2, %v2213_v60  ;;  %v2370_v31 = vshll.u32 %v8056_v3, 16 }
 0x273   : > { %6065 = vmatmul.mubr.msk.bf16.gmra.mrb[40].mxu1 %vm1791_vm6, %v2210_v18  ;;  %v2369_v18 = vrot.slane %v2367_v33, 2  ;;  %v2372_v48 = vrot.slane %v2370_v31, 3 }
 0x274   : > { %6068 = vmatprep.mubr.msk.bf16.mxu1 %vm7203_vm0, %v10166_v40  ;;  %6083 = vmatpush3.bf16.msra.mxu0 %v6762_v32  ;;  %v2359_v32 = vshrl.u32 %v7933_v51, 16 }
 0x275   : > { %6144 = vmatprep.subr.bf16.mxu0 %v10166_v40 }
 0x276   : > { %v2361_v8 = vrot.slane %v2359_v32, 2 }
 0x277   : > { %6025 = vmatmul.mubr.msk.bf16.gmra.mrb[32].mxu0 %vm1791_vm6, %v2034_v10  ;;  %v2576_v10 = vsel %vm2569_vm8, %v2573_v35, %v2575_v16 }
 0x278   : > { %6028 = vmatprep.mubr.msk.bf16.mxu0 %vm7203_vm0, %v10166_v40 }
 0x27b   : > { %6069 = vmatmul.mubr.msk.bf16.gmra.mrb[44].mxu1 %vm1791_vm6, %v2212_v43  ;;  %v2373_v43 = vor.u32 %v2372_v48, %v2369_v18 }
 0x27c   : > { %6072 = vmatprep.mubr.msk.bf16.mxu1 %vm7203_vm0, %v10166_v40 }
 0x27f   : > { %6029 = vmatmul.mubr.msk.bf16.gmra.mrb[36].mxu0 %vm1791_vm6, %v2036_v7  ;;  %v2577_v7 = vrot.slane %v8829_v20, 3 }
 0x280   : > { %6032 = vmatprep.mubr.msk.bf16.mxu0 %vm7203_vm0, %v10166_v40 }
 0x283   : > { %6073 = vmatmul.mubr.msk.bf16.gmra.mrb[48].mxu1 %vm1791_vm6, %v2214_v39 }
 0x284   : > { %6076 = vmatprep.mubr.msk.bf16.mxu1 %vm7203_vm0, %v10166_v40 }
 0x287   : > { %6033 = vmatmul.mubr.msk.bf16.gmra.mrb[40].mxu0 %vm1791_vm6, %v2038_v56  ;;  %v2381_v56 = vrot.slane %v2379_v50, 3 }
 0x288   : > { %6036 = vmatprep.mubr.msk.bf16.mxu0 %vm7203_vm0, %v10166_v40 }
 0x28b   : > { %6077 = vmatmul.mubr.msk.bf16.gmra.mrb[52].mxu1 %vm1791_vm6, %v2216_v59 }
 0x28c   : > { %6116 = vmatprep.mubr.msk.bf16.mxu1 %vm7203_vm0, %v10166_v40 }
 0x28f   : > { %6037 = vmatmul.mubr.msk.bf16.gmra.mrb[44].mxu0 %vm1791_vm6, %v2040_v30  ;;  %v2574_v30 = vsel %vm2569_vm8, %v2571_v34, %v2573_v35  ;;  %v6766_v34 = vld [vmem:[#allocation10 + $0x68] sm:$0xff]   ;;  %v2385_v35 = vshrl.u32 %v8376_v57, 16 }
 0x290   : > { %6040 = vmatprep.mubr.msk.bf16.mxu0 %vm7203_vm0, %v10166_v40 }
 0x291   : > { %v2387_v18 = vrot.slane %v2385_v35, 2 }
 0x293   : > { %6117 = vmatmul.mubr.msk.bf16.vlgmr.msra.gmra.mrb[56].mxu1 %vm1791_vm6, %v2572_v46 }
 0x294   : > { %6120 = vmatprep.mubr.msk.bf16.mxu1 %vm7203_vm0, %v10166_v40  ;;  %6177 = vmatpush3.bf16.msra.mxu1 %v6767_v58  ;;  %v2578_v58 = vsel %vm2569_vm8, %v2575_v16, %v2577_v7 }
 0x295   : > { %6178 = vmatprep.subr.bf16.mxu1 %v10166_v40 }
 0x297   : > { %6041 = vmatmul.mubr.msk.bf16.gmra.mrb[48].mxu0 %vm1791_vm6, %v8813_v24  ;;  %v2362_v24 = vshll.u32 %v7933_v51, 16  ;;  %v2376_v51 = vshrl.u32 %v8196_v21, 16 }
 0x298   : > { %6179 = vmatpush3.bf16.msra.mxu1 %v6768_v42  ;;  %6044 = vmatprep.mubr.msk.bf16.mxu0 %vm7203_vm0, %v10166_v40 }
 0x299   : > { %6240 = vmatprep.subr.bf16.mxu1 %v10166_v40  ;;  %v2364_v2 = vrot.slane %v2362_v24, 3  ;;  %v2378_v36 = vrot.slane %v2376_v51, 2  ;;  %v2579_v24 = vrot.slane %v8841_v29, 3 }
 0x29b   : > { %6121 = vmatmul.mubr.msk.bf16.gmra.mrb[60].mxu1 %vm1791_vm6, %v2574_v30  ;;  %v2365_v60 = vor.u32 %v2364_v2, %v2361_v8  ;;  %v2382_v42 = vor.u32 %v2381_v56, %v2378_v36  ;;  %v2388_v30 = vshll.u32 %v8376_v57, 16  ;;  %v2580_v8 = vsel %vm2569_vm8, %v2577_v7, %v2579_v24 }
 0x29c   : > { %6124 = vmatprep.mubr.msk.bf16.mxu1 %vm7203_vm0, %v10166_v40  ;;  %v683_v36 = vmul.f32 %v8465_v54, %v8560_v28  ;;  %v800_v54 = vmul.f32 %v8507_v53, %v8560_v28 }
 0x29d   : > { %v2374_v39 = vsel %vm2357_vm9, %v2365_v60, %v2373_v43  ;;  %v2383_v16 = vsel %vm2357_vm9, %v2373_v43, %v2382_v42  ;;  %v2390_v48 = vrot.slane %v2388_v30, 3  ;;  %v2397_v43 = vshll.u32 %v8829_v20, 16 }
 0x29e   : > { %v2581_v60 = vrot.slane %v8859_v13, 3  ;;  %v856_v53 = vrot.slane %v800_v54, 2 }
 0x29f   : > { %6045 = vmatmul.mubr.msk.bf16.gmra.mrb[52].mxu0 %vm1791_vm6, %v8816_v15  ;;  %v6765_v15 = vld [vmem:[#allocation10 + $0x60] sm:$0xff]   ;;  %v2391_v2 = vor.u32 %v2390_v48, %v2387_v18  ;;  %v2399_v7 = vrot.slane %v2397_v43, 3  ;;  %v2583_v18 = vrot.slane %v8872_v47, 3  ;;  %v922_v48 = vmul.f32 %v8454_v27, %v8651_v26 }
 0x2a0   : > { %6084 = vmatprep.mubr.msk.bf16.mxu0 %vm7203_vm0, %v10166_v40  ;;  %v2582_v56 = vsel %vm2569_vm8, %v2579_v24, %v2581_v60  ;;  %v636_v27 = vmul.f32 %v8483_v44, %v8430_v45  ;;  %v1039_v45 = vmul.f32 %v8439_v52, %v8651_v26  ;;  %v857_v44 = vsel %vm820_vm2, %v854_v49, %v856_v53 }
 0x2a1   : > { %v1212_v26 = vrot.slane %v1156_v37, 6  ;;  %v6770_v37 = vld [vmem:[#allocation10 + $0x88] sm:$0xff]  }
 0x2a2   : > { %v1095_v49 = vrot.slane %v1039_v45, 5 }
 0x2a3   : > { %6125 = vmatmul.mubr.msk.bf16.gmra.mrb[64].mxu1 %vm1791_vm6, %v2576_v10  ;;  %v2394_v10 = vshrl.u32 %v8829_v20, 16 }
 0x2a4   : > { %6128 = vmatprep.mubr.msk.bf16.mxu1 %vm7203_vm0, %v10166_v40 }
 0x2a7   : > { %6085 = vmatmul.mubr.msk.bf16.vlgmr.msra.gmra.mrb[56].mxu0 %vm1791_vm6, %v2374_v39  ;;  %v2396_v39 = vrot.slane %v2394_v10, 2 }
 0x2a8   : > { %6145 = vmatpush3.bf16.msra.mxu0 %v6765_v15  ;;  %6088 = vmatprep.mubr.msk.bf16.mxu0 %vm7203_vm0, %v10166_v40  ;;  %v2392_v15 = vsel %vm2357_vm9, %v2382_v42, %v2391_v2 }
 0x2a9   : > { %6146 = vmatprep.subr.bf16.mxu0 %v10166_v40 }
 0x2aa   : > { %v8932_v59 = vpop.f32.mrb[0].mxu1 }
 0x2ab   : > { %v5990_v17 = vpop.f32.mrb[1].mxu1  ;;  %6129 = vmatmul.mubr.msk.bf16.gmra.mrb[68].mxu1 %vm1791_vm6, %v2578_v58  ;;  %v2406_v58 = vshll.u32 %v8841_v29, 16 }
 0x2ac   : > { %v8938_v46 = vpop.f32.mrb[2].mxu1  ;;  %6132 = vmatprep.mubr.msk.bf16.mxu1 %vm7203_vm0, %v10166_v40  ;;  %6147 = vmatpush3.bf16.msra.mxu0 %v6766_v34  ;;  %v2400_v34 = vor.u32 %v2399_v7, %v2396_v39  ;;  %v2403_v17 = vshrl.u32 %v8841_v29, 16 }
 0x2ad   : > { %v5991_v32 = vpop.f32.mrb[3].mxu1  ;;  %6208 = vmatprep.subr.bf16.mxu0 %v10166_v40  ;;  %v2408_v39 = vrot.slane %v2406_v58, 3 }
 0x2ae   : > { %v739_v32 = vrot.slane %v683_v36, 1  ;;  %v978_v36 = vrot.slane %v922_v48, 4  ;;  %v2421_v48 = vshrl.u32 %v8872_v47, 16 }
 0x2af   : > { %6089 = vmatmul.mubr.msk.bf16.gmra.mrb[60].mxu0 %vm1791_vm6, %v2383_v16 }
 0x2b0   : > { %6092 = vmatprep.mubr.msk.bf16.mxu0 %vm7203_vm0, %v10166_v40  ;;  %v740_v28 = vsel %vm703_vm1, %v737_v25, %v739_v32  ;;  %v2861_v25 = vrot.slane %v2370_v31, 1  ;;  %v979_v32 = vsel %vm942_vm3, %v976_v22, %v978_v36  ;;  %v2423_v45 = vrot.slane %v2421_v48, 2 }
 0x2b1   : > { %v776_v62 = vadd.f32 %v740_v28, %v636_v27  ;;  %v1096_v28 = vsel %vm1059_vm4, %v1093_v1, %v1095_v49 }
 0x2b2   : > { %v2862_v9 = vor.u32 %v2861_v25, %v2367_v33 }
 0x2b3   : > { %6133 = vmatmul.mubr.msk.bf16.gmra.mrb[72].mxu1 %vm1791_vm6, %v2580_v8  ;;  %v2401_v8 = vsel %vm2357_vm9, %v2391_v2, %v2400_v34  ;;  %v2584_v2 = vsel %vm2569_vm8, %v2581_v60, %v2583_v18  ;;  %v2863_v60 = vrot.slane %v2379_v50, 1  ;;  %v893_v52 = vadd.f32 %v857_v44, %v776_v62 }
 0x2b4   : > { %6136 = vmatprep.mubr.msk.bf16.mxu1 %vm7203_vm0, %v10166_v40 }
 0x2b5   : > { %v1015_v22 = vadd.f32 %v979_v32, %v893_v52  ;;  %v2864_v50 = vsel %vm1718_vm7, %v2862_v9, %v2863_v60  ;;  %v2865_v1 = vor.u32 %v2863_v60, %v2376_v51  ;;  %v1277_v51 = vmul.f32 %v8570_v0, %v8738_v23 }
 0x2b6   : > { %v2869_v60 = vrot.slane %v2397_v43, 1 }
 0x2b7   : > { %6093 = vmatmul.mubr.msk.bf16.gmra.mrb[64].mxu0 %vm1791_vm6, %v2392_v15  ;;  %v2405_v15 = vrot.slane %v2403_v17, 2  ;;  %v1132_v53 = vadd.f32 %v1096_v28, %v1015_v22 }
 0x2b8   : > { %6096 = vmatprep.mubr.msk.bf16.mxu0 %vm7203_vm0, %v10166_v40  ;;  %v2871_v49 = vor.u32 %v2869_v60, %v2394_v10 }
 0x2bb   : > { %6137 = vmatmul.mubr.msk.bf16.gmra.mrb[76].mxu1 %vm1791_vm6, %v2582_v56  ;;  %v2409_v56 = vor.u32 %v2408_v39, %v2405_v15  ;;  %v2424_v15 = vshll.u32 %v8872_v47, 16 }
 0x2bc   : > { %6140 = vmatprep.mubr.msk.bf16.mxu1 %vm7203_vm0, %v10166_v40  ;;  %v8978_v42 = vpop.f32.mrb[4].mxu1 }
 0x2bd   : > { %v5994_v16 = vpop.f32.mrb[5].mxu1  ;;  %v2410_v54 = vsel %vm2357_vm9, %v2400_v34, %v2409_v56  ;;  %v2426_v44 = vrot.slane %v2424_v15, 3 }
 0x2be   : > { %v8983_v24 = vpop.f32.mrb[6].mxu1  ;;  %v2412_v16 = vshrl.u32 %v8859_v13, 16 }
 0x2bf   : > { %v5995_v7 = vpop.f32.mrb[7].mxu1  ;;  %6097 = vmatmul.mubr.msk.bf16.gmra.mrb[68].mxu0 %vm1791_vm6, %v2401_v8  ;;  %v2415_v8 = vshll.u32 %v8859_v13, 16 }
 0x2c0   : > { %6100 = vmatprep.mubr.msk.bf16.mxu0 %vm7203_vm0, %v10166_v40  ;;  %v2414_v18 = vrot.slane %v2412_v16, 2  ;;  %v1300_v7 = vpop.permute.xlu0 %1299 }
 0x2c1   : > { %v2417_v31 = vrot.slane %v2415_v8, 3  ;;  %v1324_v25 = vmul.f32 %v8585_v14, %v1300_v7  ;;  %v1440_v41 = vmul.f32 %v8618_v61, %v1300_v7 }
 0x2c3   : > { %6141 = vmatmul.mubr.msk.bf16.gmra.mrb[80].mxu1 %vm1791_vm6, %v2584_v2  ;;  %v2418_v34 = vor.u32 %v2417_v31, %v2414_v18  ;;  %v2866_v2 = vrot.slane %v2388_v30, 1  ;;  %v1213_v30 = vsel %vm1176_vm5, %v1210_v55, %v1212_v26  ;;  %v2427_v18 = vor.u32 %v2426_v44, %v2423_v45 }
 0x2c4   : > { %6180 = vmatprep.mubr.msk.bf16.mxu1 %vm7203_vm0, %v10166_v40  ;;  %v1495_v23 = vrot.slane %v1440_v41, 2 }
 0x2c5   : > { %v2428_v52 = vsel %vm2357_vm9, %v2418_v34, %v2427_v18  ;;  %v2868_v0 = vor.u32 %v2866_v2, %v2385_v35  ;;  %v2872_v35 = vrot.slane %v2406_v58, 1 }
 0x2c6   : > { %v1496_v11 = vsel %vm820_vm2, %v1493_v38, %v1495_v23 }
 0x2c7   : > { %6101 = vmatmul.mubr.msk.bf16.gmra.mrb[72].mxu0 %vm1791_vm6, %v2410_v54  ;;  %v1379_v54 = vrot.slane %v1324_v25, 1  ;;  %v2870_v9 = vsel %vm1718_vm7, %v2868_v0, %v2869_v60  ;;  %v2873_v38 = vsel %vm1718_vm7, %v2871_v49, %v2872_v35  ;;  %v2874_v28 = vor.u32 %v2872_v35, %v2403_v17 }
 0x2c8   : > { %6104 = vmatprep.mubr.msk.bf16.mxu0 %vm7203_vm0, %v10166_v40  ;;  %v3037_v35 = vrot.slane %v8829_v20, 1 }
 0x2c9   : > { %v1380_v31 = vsel %vm703_vm1, %v1377_v12, %v1379_v54  ;;  %v6769_v12 = vld [vmem:[#allocation10 + $0x80] sm:$0xff]  }
 0x2cb   : > { %6181 = vmatmul.mubr.msk.bf16.vlgmr.msra.gmra.mrb[84].mxu1 %vm1791_vm6, %v2864_v50  ;;  %v1847_v39 = vpop.f32.mrb[0].mxu0 }
 0x2cc   : > { %6184 = vmatprep.mubr.msk.bf16.mxu1 %vm7203_vm0, %v10166_v40  ;;  %v5958_v33 = vpop.f32.mrb[1].mxu0  ;;  %v9037_v19 = vadd.f32 %v8932_v59, %v1847_v39  ;;  %v2419_v59 = vsel %vm2357_vm9, %v2409_v56, %v2418_v34  ;;  %v2867_v56 = vsel %vm1718_vm7, %v2865_v1, %v2866_v2  ;;  %v2875_v39 = vrot.slane %v2415_v8, 1 }
 0x2cd   : > { %v1850_v27 = vpop.f32.mrb[2].mxu0  ;;  %v2878_v8 = vshll.u32 %v8805_v63, 16 }
 0x2ce   : > { %v5959_v47 = vpop.f32.mrb[3].mxu0  ;;  %v9044_v36 = vpop.f32.mrb[8].mxu1  ;;  %v9047_v62 = vadd.f32 %v8938_v46, %v1850_v27  ;;  %v1249_v46 = vadd.f32 %v1213_v30, %v1132_v53  ;;  %v2877_v17 = vor.u32 %v2875_v39, %v2412_v16 }
 0x2cf   : > { %v5998_v5 = vpop.f32.mrb[9].mxu1  ;;  %6105 = vmatmul.mubr.msk.bf16.gmra.mrb[76].mxu0 %vm1791_vm6, %v2419_v59  ;;  %v1682_v27 = vpop.permute.xlu1 %1681 }
 0x2d0   : > { %v9054_v32 = vpop.f32.mrb[10].mxu1  ;;  %6108 = vmatprep.mubr.msk.bf16.mxu0 %vm7203_vm0, %v10166_v40  ;;  %v1295_v55 = vadd.f32 %v1277_v51, %v1249_v46  ;;  %v2882_v5 = vshrl.u32 %v8805_v63, 16 }
 0x2d1   : > { %v5999_v14 = vpop.f32.mrb[11].mxu1 }
 0x2d2   : > { %v1416_v61 = vadd.f32 %v1380_v31, %v1295_v55  ;;  %v3033_v31 = vrot.slane %v8196_v21, 1 }
 0x2d3   : > { %6185 = vmatmul.mubr.msk.bf16.gmra.mrb[88].mxu1 %vm1791_vm6, %v2867_v56 }
 0x2d4   : > { %6188 = vmatprep.mubr.msk.bf16.mxu1 %vm7203_vm0, %v10166_v40  ;;  %v1532_v43 = vadd.f32 %v1496_v11, %v1416_v61 }
 0x2d6   : > { %v1557_v4 = vadd.f32 %v8653_v6, %v1532_v43 }
 0x2d7   : > { %6109 = vmatmul.mubr.msk.bf16.gmra.mrb[80].mxu0 %vm1791_vm6, %v2428_v52  ;;  %v3032_v52 = vrot.slane %v8056_v3, 1 }
 0x2d8   : > { %6148 = vmatprep.mubr.msk.bf16.mxu0 %vm7203_vm0, %v10166_v40  ;;  %v1575_v15 = vmax.f32 %v1557_v4, 0.0 }
 0x2da   : > { %v1701_v53 = vmul.f32 %v1682_v27, %v1575_v15 }
 0x2db   : > { %6189 = vmatmul.mubr.msk.bf16.gmra.mrb[92].mxu1 %vm1791_vm6, %v2870_v9  ;;  %v3034_v9 = vsel %vm703_vm1, %v3032_v52, %v3033_v31 }
 0x2dc   : > { %6192 = vmatprep.mubr.msk.bf16.mxu1 %vm7203_vm0, %v10166_v40  ;;  %v9124_v2 = vpack.c.bf16 %v1701_v53, %v1701_v53 }
 0x2de   : > { %v2886_v25 = vshll.u32 %v9124_v2, 16 }
 0x2df   : > { %6149 = vmatmul.mubr.msk.bf16.vlgmr.msra.gmra.mrb[84].mxu0 %vm1791_vm6, %v8056_v3 }
 0x2e0   : > { %6209 = vmatpush3.bf16.msra.mxu0 %v6769_v12  ;;  %6152 = vmatprep.mubr.msk.bf16.mxu0 %vm7203_vm0, %v10166_v40  ;;  %v2888_v1 = vrot.slane %v2886_v25, 1 }
 0x2e1   : > { %6210 = vmatprep.subr.bf16.mxu0 %v10166_v40 }
 0x2e2   : > { %v9097_v22 = vpop.f32.mrb[12].mxu1  ;;  %v1855_v10 = vpop.f32.mrb[4].mxu0 }
 0x2e3   : > { %6193 = vmatmul.mubr.msk.bf16.gmra.mrb[96].mxu1 %vm1791_vm6, %v2873_v38  ;;  %v6002_v58 = vpop.f32.mrb[13].mxu1  ;;  %v5962_v34 = vpop.f32.mrb[5].mxu0  ;;  %v9105_v6 = vadd.f32 %v8978_v42, %v1855_v10  ;;  %v2876_v42 = vsel %vm1718_vm7, %v2874_v28, %v2875_v39 }
 0x2e4   : > { %6196 = vmatprep.mubr.msk.bf16.mxu1 %vm7203_vm0, %v10166_v40  ;;  %v9102_v50 = vpop.f32.mrb[14].mxu1  ;;  %6211 = vmatpush3.bf16.msra.mxu0 %v6770_v37  ;;  %v1858_v7 = vpop.f32.mrb[6].mxu0  ;;  %v3039_v58 = vrot.slane %v8841_v29, 1 }
 0x2e5   : > { %v6003_v48 = vpop.f32.mrb[15].mxu1  ;;  %6288 = vmatprep.subr.bf16.mxu0 %v10166_v40  ;;  %v5963_v33 = vpop.f32.mrb[7].mxu0  ;;  %v9111_v26 = vadd.f32 %v8983_v24, %v1858_v7  ;;  %v2880_v24 = vrot.slane %v2878_v8, 1 }
 0x2e6   : > { %v3040_v39 = vsel %vm703_vm1, %v3037_v35, %v3039_v58 }
 0x2e7   : > { %6153 = vmatmul.mubr.msk.bf16.gmra.mrb[88].mxu0 %vm1791_vm6, %v8196_v21  ;;  %v2881_v47 = vsel %vm1718_vm7, %v2877_v17, %v2880_v24  ;;  %v2884_v16 = vor.u32 %v2882_v5, %v2880_v24  ;;  %v3035_v21 = vrot.slane %v8376_v57, 1 }
 0x2e8   : > { %6156 = vmatprep.mubr.msk.bf16.mxu0 %vm7203_vm0, %v10166_v40 }
 0x2e9   : > { %v2889_v54 = vsel %vm1718_vm7, %v2884_v16, %v2888_v1  ;;  %v3036_v3 = vsel %vm703_vm1, %v3033_v31, %v3035_v21  ;;  %v3038_v4 = vsel %vm703_vm1, %v3035_v21, %v3037_v35 }
 0x2eb   : > { %6197 = vmatmul.mubr.msk.bf16.gmra.mrb[100].mxu1 %vm1791_vm6, %v2876_v42 }
 0x2ec   : > { %6200 = vmatprep.mubr.msk.bf16.mxu1 %vm7203_vm0, %v10166_v40 }
 0x2ef   : > { %6157 = vmatmul.mubr.msk.bf16.gmra.mrb[92].mxu0 %vm1791_vm6, %v8376_v57 }
 0x2f0   : > { %6160 = vmatprep.mubr.msk.bf16.mxu0 %vm7203_vm0, %v10166_v40 }
 0x2f2   : > { %v1994_v59 = vpop.f32.mrb[16].mxu1 }
 0x2f3   : > { %6201 = vmatmul.mubr.msk.bf16.gmra.mrb[104].mxu1 %vm1791_vm6, %v2881_v47  ;;  %v6006_v45 = vpop.f32.mrb[17].mxu1 }
 0x2f4   : > { %6204 = vmatprep.mubr.msk.bf16.mxu1 %vm7203_vm0, %v10166_v40  ;;  %v1997_v44 = vpop.f32.mrb[18].mxu1 }
 0x2f5   : > { %v6007_v30 = vpop.f32.mrb[19].mxu1 }
 0x2f7   : > { %6161 = vmatmul.mubr.msk.bf16.gmra.mrb[96].mxu0 %vm1791_vm6, %v8829_v20  ;;  %v1863_v14 = vpop.f32.mrb[8].mxu0 }
 0x2f8   : > { %6164 = vmatprep.mubr.msk.bf16.mxu0 %vm7203_vm0, %v10166_v40  ;;  %v5966_v46 = vpop.f32.mrb[9].mxu0  ;;  %v9143_v56 = vadd.f32 %v9044_v36, %v1863_v14 }
 0x2f9   : > { %v1866_v18 = vpop.f32.mrb[10].mxu0 }
 0x2fa   : > { %v5967_v51 = vpop.f32.mrb[11].mxu0  ;;  %v9148_v41 = vadd.f32 %v9054_v32, %v1866_v18 }
 0x2fb   : > { %6205 = vmatmul.mubr.msk.bf16.gmra.mrb[108].mxu1 %vm1791_vm6, %v2889_v54 }
 0x2fc   : > { %6244 = vmatprep.mubr.msk.bf16.mxu1 %vm7203_vm0, %v10166_v40 }
 0x2ff   : > { %6165 = vmatmul.mubr.msk.bf16.gmra.mrb[100].mxu0 %vm1791_vm6, %v8841_v29  ;;  %v3041_v29 = vrot.slane %v8859_v13, 1 }
 0x300   : > { %6168 = vmatprep.mubr.msk.bf16.mxu0 %vm7203_vm0, %v10166_v40 }
 0x301   : > { %v3042_v25 = vsel %vm703_vm1, %v3039_v58, %v3041_v29 }
 0x307   : > { %6169 = vmatmul.mubr.msk.bf16.gmra.mrb[104].mxu0 %vm1791_vm6, %v8859_v13  ;;  %v3043_v13 = vrot.slane %v8805_v63, 1 }
 0x308   : > { %v2002_v36 = vpop.f32.mrb[20].mxu1  ;;  %6172 = vmatprep.mubr.msk.bf16.mxu0 %vm7203_vm0, %v10166_v40 }
 0x309   : > { %v6010_v55 = vpop.f32.mrb[21].mxu1  ;;  %v3044_v18 = vsel %vm703_vm1, %v3041_v29, %v3043_v13 }
 0x30a   : > { %v2005_v60 = vpop.f32.mrb[22].mxu1 }
 0x30b   : > { %v6011_v32 = vpop.f32.mrb[23].mxu1 }
 0x30f   : > { %6173 = vmatmul.mubr.msk.bf16.gmra.mrb[108].mxu0 %vm1791_vm6, %v8805_v63  ;;  %v3045_v63 = vrot.slane %v9124_v2, 1 }
 0x310   : > { %6212 = vmatprep.mubr.msk.bf16.mxu0 %vm7203_vm0, %v10166_v40 }
 0x314   : > { %v1871_v0 = vpop.f32.mrb[12].mxu0 }
 0x315   : > { %v9167_v23 = vadd.f32 %v9097_v22, %v1871_v0  ;;  %v5970_v61 = vpop.f32.mrb[13].mxu0 }
 0x316   : > { %v1874_v11 = vpop.f32.mrb[14].mxu0 }
 0x317   : > { %6213 = vmatmul.mubr.msk.bf16.vlgmr.msra.gmra.mrb[112].mxu0 %vm1791_vm6, %v3034_v9  ;;  %v9172_v12 = vadd.f32 %v9102_v50, %v1874_v11  ;;  %v5971_v43 = vpop.f32.mrb[15].mxu0 }
 0x318   : > { %6216 = vmatprep.mubr.msk.bf16.mxu0 %vm7203_vm0, %v10166_v40  ;;  %v3046_v43 = vsel %vm703_vm1, %v3043_v13, %v3045_v63 }
 0x31f   : > { %6217 = vmatmul.mubr.msk.bf16.gmra.mrb[116].mxu0 %vm1791_vm6, %v3036_v3 }
 0x320   : > { %6220 = vmatprep.mubr.msk.bf16.mxu0 %vm7203_vm0, %v10166_v40 }
 0x326   : > { %v2010_v49 = vpop.f32.mrb[24].mxu1 }
 0x327   : > { %v6014_v37 = vpop.f32.mrb[25].mxu1  ;;  %6221 = vmatmul.mubr.msk.bf16.gmra.mrb[120].mxu0 %vm1791_vm6, %v3038_v4 }
 0x328   : > { %v2013_v38 = vpop.f32.mrb[26].mxu1  ;;  %6224 = vmatprep.mubr.msk.bf16.mxu0 %vm7203_vm0, %v10166_v40  ;;  %v6771_v37 = vld [vmem:[#allocation13 + $0x10] sm:$0xff]  }
 0x329   : > { %v6015_v22 = vpop.f32.mrb[27].mxu1  ;;  %6241 = vmatpush3.bf16.msra.mxu1 %v6771_v37 }
 0x32a   : > { %v1879_v57 = vpop.f32.mrb[16].mxu0  ;;  %6242 = vmatprep.subr.bf16.mxu1 %v10166_v40 }
 0x32b   : > { %v9187_v10 = vadd.f32 %v1994_v59, %v1879_v57  ;;  %v5974_v50 = vpop.f32.mrb[17].mxu0 }
 0x32c   : > { %v1882_v34 = vpop.f32.mrb[18].mxu0 }
 0x32d   : > { %v9189_v48 = vadd.f32 %v1997_v44, %v1882_v34  ;;  %v5975_v20 = vpop.f32.mrb[19].mxu0 }
 0x32e   : > { %v2284_v15 = vpop.f32.mrb[28].mxu1 }
 0x32f   : > { %v6054_v7 = vpop.f32.mrb[29].mxu1  ;;  %6225 = vmatmul.mubr.msk.bf16.gmra.mrb[124].mxu0 %vm1791_vm6, %v3040_v39 }
 0x330   : > { %v2287_v33 = vpop.f32.mrb[30].mxu1  ;;  %6228 = vmatprep.mubr.msk.bf16.mxu0 %vm7203_vm0, %v10166_v40 }
 0x331   : > { %v6055_v28 = vpop.f32.mrb[31].mxu1 }
 0x332   : > { %v1887_v27 = vpop.f32.mrb[20].mxu0 }
 0x333   : > { %v9196_v42 = vadd.f32 %v2002_v36, %v1887_v27  ;;  %v5978_v8 = vpop.f32.mrb[21].mxu0 }
 0x334   : > { %v1890_v53 = vpop.f32.mrb[22].mxu0 }
 0x335   : > { %v9198_v24 = vadd.f32 %v2005_v60, %v1890_v53  ;;  %v5979_v17 = vpop.f32.mrb[23].mxu0 }
 0x336   : > { %v2292_v47 = vpop.f32.mrb[32].mxu1 }
 0x337   : > { %v6058_v59 = vpop.f32.mrb[33].mxu1  ;;  %6229 = vmatmul.mubr.msk.bf16.gmra.mrb[128].mxu0 %vm1791_vm6, %v3042_v25 }
 0x338   : > { %v2295_v45 = vpop.f32.mrb[34].mxu1  ;;  %6232 = vmatprep.mubr.msk.bf16.mxu0 %vm7203_vm0, %v10166_v40 }
 0x339   : > { %v6059_v44 = vpop.f32.mrb[35].mxu1 }
 0x33a   : > { %v1895_v5 = vpop.f32.mrb[24].mxu0 }
 0x33b   : > { %v9205_v1 = vadd.f32 %v2010_v49, %v1895_v5  ;;  %v5982_v30 = vpop.f32.mrb[25].mxu0 }
 0x33c   : > { %v1898_v16 = vpop.f32.mrb[26].mxu0 }
 0x33d   : > { %v9207_v14 = vadd.f32 %v2013_v38, %v1898_v16  ;;  %v5983_v46 = vpop.f32.mrb[27].mxu0 }
 0x33e   : > { %v2300_v54 = vpop.f32.mrb[36].mxu1 }
 0x33f   : > { %v6062_v51 = vpop.f32.mrb[37].mxu1  ;;  %6233 = vmatmul.mubr.msk.bf16.gmra.mrb[132].mxu0 %vm1791_vm6, %v3044_v18 }
 0x340   : > { %v2303_v36 = vpop.f32.mrb[38].mxu1  ;;  %6236 = vmatprep.mubr.msk.bf16.mxu0 %vm7203_vm0, %v10166_v40 }
 0x341   : > { %v6063_v55 = vpop.f32.mrb[39].mxu1 }
 0x342   : > { %v2112_v60 = vpop.f32.mrb[28].mxu0 }
 0x343   : > { %v2167_v32 = vadd.f32 %v2112_v60, %v9037_v19  ;;  %v6022_v31 = vpop.f32.mrb[29].mxu0 }
 0x344   : > { %v2115_v52 = vpop.f32.mrb[30].mxu0 }
 0x345   : > { %v2168_v0 = vadd.f32 %v2115_v52, %v9047_v62  ;;  %v6023_v61 = vpop.f32.mrb[31].mxu0  ;;  %v9216_v11 = vadd.f32 %v2284_v15, %v2167_v32 }
 0x346   : > { %v2308_v9 = vpop.f32.mrb[40].mxu1 }
 0x347   : > { %v6066_v21 = vpop.f32.mrb[41].mxu1  ;;  %6237 = vmatmul.mubr.msk.bf16.gmra.mrb[136].mxu0 %vm1791_vm6, %v3046_v43  ;;  %v9220_v35 = vadd.f32 %v2287_v33, %v2168_v0 }
 0x348   : > { %v2311_v3 = vpop.f32.mrb[42].mxu1  ;;  %6292 = vmatprep.mubr.msk.bf16.mxu0 %vm7203_vm0, %v10166_v40 }
 0x349   : > { %v6067_v49 = vpop.f32.mrb[43].mxu1 }
 0x34a   : > { %v2120_v19 = vpop.f32.mrb[32].mxu0 }
 0x34b   : > { %v2169_v2 = vadd.f32 %v2120_v19, %v9105_v6  ;;  %v6026_v62 = vpop.f32.mrb[33].mxu0 }
 0x34c   : > { %v2123_v4 = vpop.f32.mrb[34].mxu0 }
 0x34d   : > { %v2170_v38 = vadd.f32 %v2123_v4, %v9111_v26  ;;  %v6027_v22 = vpop.f32.mrb[35].mxu0  ;;  %v9226_v58 = vadd.f32 %v2292_v47, %v2169_v2 }
 0x34e   : > { %v2316_v57 = vpop.f32.mrb[44].mxu1 }
 0x34f   : > { %v6070_v50 = vpop.f32.mrb[45].mxu1  ;;  %v9229_v20 = vadd.f32 %v2295_v45, %v2170_v38 }
 0x350   : > { %v2319_v34 = vpop.f32.mrb[46].mxu1 }
 0x351   : > { %v6071_v15 = vpop.f32.mrb[47].mxu1 }
 0x352   : > { %v2128_v39 = vpop.f32.mrb[36].mxu0 }
 0x353   : > { %v2171_v6 = vadd.f32 %v2128_v39, %v9143_v56  ;;  %v6030_v7 = vpop.f32.mrb[37].mxu0 }
 0x354   : > { %v2131_v33 = vpop.f32.mrb[38].mxu0 }
 0x355   : > { %v2172_v28 = vadd.f32 %v2131_v33, %v9148_v41  ;;  %v6031_v26 = vpop.f32.mrb[39].mxu0  ;;  %v9233_v29 = vadd.f32 %v2300_v54, %v2171_v6 }
 0x356   : > { %v2324_v27 = vpop.f32.mrb[48].mxu1 }
 0x357   : > { %v6074_v8 = vpop.f32.mrb[49].mxu1  ;;  %v9235_v17 = vadd.f32 %v2303_v36, %v2172_v28 }
 0x358   : > { %v2327_v53 = vpop.f32.mrb[50].mxu1 }
 0x359   : > { %v6075_v47 = vpop.f32.mrb[51].mxu1 }
 0x35a   : > { %v2136_v25 = vpop.f32.mrb[40].mxu0 }
 0x35b   : > { %v2173_v59 = vadd.f32 %v2136_v25, %v9167_v23  ;;  %v6034_v45 = vpop.f32.mrb[41].mxu0 }
 0x35c   : > { %v2139_v44 = vpop.f32.mrb[42].mxu0 }
 0x35d   : > { %v2174_v56 = vadd.f32 %v2139_v44, %v9172_v12  ;;  %v6035_v5 = vpop.f32.mrb[43].mxu0  ;;  %v9239_v30 = vadd.f32 %v2308_v9, %v2173_v59  ;;  %v6772_v12 = vld [vmem:[#allocation13 + $0x18] sm:$0xff]  }
 0x35e   : > { %v2332_v13 = vpop.f32.mrb[52].mxu1  ;;  %6243 = vmatpush3.bf16.msra.mxu1 %v6772_v12 }
 0x35f   : > { %v6078_v41 = vpop.f32.mrb[53].mxu1  ;;  %v9241_v46 = vadd.f32 %v2311_v3, %v2174_v56  ;;  %6264 = vmatprep.subr.bf16.mxu1 %v10166_v40 }
 0x360   : > { %v2335_v16 = vpop.f32.mrb[54].mxu1 }
 0x361   : > { %v6079_v54 = vpop.f32.mrb[55].mxu1 }
 0x362   : > { %v2144_v18 = vpop.f32.mrb[44].mxu0 }
 0x363   : > { %v2175_v51 = vadd.f32 %v2144_v18, %v9187_v10  ;;  %v6038_v36 = vpop.f32.mrb[45].mxu0 }
 0x364   : > { %v2147_v55 = vpop.f32.mrb[46].mxu0 }
 0x365   : > { %v2176_v23 = vadd.f32 %v2147_v55, %v9189_v48  ;;  %v6039_v60 = vpop.f32.mrb[47].mxu0  ;;  %v9245_v32 = vadd.f32 %v2316_v57, %v2175_v51 }
 0x366   : > { %v2652_v63 = vpop.f32.mrb[56].mxu1 }
 0x367   : > { %v6118_v31 = vpop.f32.mrb[57].mxu1  ;;  %v9247_v0 = vadd.f32 %v2319_v34, %v2176_v23 }
 0x368   : > { %v2655_v52 = vpop.f32.mrb[58].mxu1 }
 0x369   : > { %v6119_v61 = vpop.f32.mrb[59].mxu1 }
 0x36a   : > { %v2152_v9 = vpop.f32.mrb[48].mxu0 }
 0x36b   : > { %v2177_v10 = vadd.f32 %v2152_v9, %v9196_v42  ;;  %v6042_v43 = vpop.f32.mrb[49].mxu0 }
 0x36c   : > { %v2155_v21 = vpop.f32.mrb[50].mxu0 }
 0x36d   : > { %v2178_v48 = vadd.f32 %v2155_v21, %v9198_v24  ;;  %v6043_v3 = vpop.f32.mrb[51].mxu0  ;;  %v9252_v19 = vadd.f32 %v2324_v27, %v2177_v10 }
 0x36e   : > { %v2660_v49 = vpop.f32.mrb[60].mxu1 }
 0x36f   : > { %v6122_v2 = vpop.f32.mrb[61].mxu1  ;;  %v9254_v37 = vadd.f32 %v2327_v53, %v2178_v48 }
 0x370   : > { %v2663_v62 = vpop.f32.mrb[62].mxu1 }
 0x371   : > { %v6123_v4 = vpop.f32.mrb[63].mxu1 }
 0x372   : > { %v2160_v38 = vpop.f32.mrb[52].mxu0 }
 0x373   : > { %v2179_v22 = vadd.f32 %v2160_v38, %v9205_v1  ;;  %v6046_v57 = vpop.f32.mrb[53].mxu0 }
 0x374   : > { %v2163_v50 = vpop.f32.mrb[54].mxu0 }
 0x375   : > { %v2180_v42 = vadd.f32 %v2163_v50, %v9207_v14  ;;  %v6047_v34 = vpop.f32.mrb[55].mxu0  ;;  %v9258_v39 = vadd.f32 %v2332_v13, %v2179_v22  ;;  %v6773_v14 = vld [vmem:[#allocation13 + $0x20] sm:$0xff]  }
 0x376   : > { %v2668_v15 = vpop.f32.mrb[64].mxu1  ;;  %6289 = vmatpush3.bf16.msra.mxu0 %v6773_v14 }
 0x377   : > { %v6126_v24 = vpop.f32.mrb[65].mxu1  ;;  %v9260_v7 = vadd.f32 %v2335_v16, %v2180_v42  ;;  %6290 = vmatprep.subr.bf16.mxu0 %v10166_v40  ;;  %v6774_v16 = vld [vmem:[#allocation13 + $0x28] sm:$0xff]  }
 0x378   : > { %v2671_v6 = vpop.f32.mrb[66].mxu1 }
 0x379   : > { %v6127_v33 = vpop.f32.mrb[67].mxu1 }
 0x37a   : > { %v2496_v28 = vpop.f32.mrb[56].mxu0  ;;  %6291 = vmatpush3.bf16.msra.mxu0 %v6774_v16 }
 0x37b   : > { %v2551_v26 = vadd.f32 %v2496_v28, %v9216_v11  ;;  %v6086_v27 = vpop.f32.mrb[57].mxu0  ;;  %6336 = vmatprep.subr.bf16.mxu0 %v10166_v40 }
 0x37c   : > { %v2499_v8 = vpop.f32.mrb[58].mxu0 }
 0x37d   : > { %v2552_v1 = vadd.f32 %v2499_v8, %v9220_v35  ;;  %v6087_v53 = vpop.f32.mrb[59].mxu0  ;;  %v9264_v25 = vadd.f32 %v2652_v63, %v2551_v26 }
 0x37e   : > { %v2676_v47 = vpop.f32.mrb[68].mxu1 }
 0x37f   : > { %v6130_v59 = vpop.f32.mrb[69].mxu1  ;;  %v9266_v44 = vadd.f32 %v2655_v52, %v2552_v1 }
 0x380   : > { %v2679_v45 = vpop.f32.mrb[70].mxu1 }
 0x381   : > { %v6131_v56 = vpop.f32.mrb[71].mxu1 }
 0x382   : > { %v2504_v5 = vpop.f32.mrb[60].mxu0 }
 0x383   : > { %v2553_v11 = vadd.f32 %v2504_v5, %v9226_v58  ;;  %v6090_v13 = vpop.f32.mrb[61].mxu0 }
 0x384   : > { %v2507_v41 = vpop.f32.mrb[62].mxu0 }
 0x385   : > { %v2554_v35 = vadd.f32 %v2507_v41, %v9229_v20  ;;  %v6091_v54 = vpop.f32.mrb[63].mxu0  ;;  %v9271_v51 = vadd.f32 %v2660_v49, %v2553_v11 }
 0x386   : > { %v2684_v18 = vpop.f32.mrb[72].mxu1 }
 0x387   : > { %v6134_v36 = vpop.f32.mrb[73].mxu1  ;;  %v9273_v23 = vadd.f32 %v2663_v62, %v2554_v35 }
 0x388   : > { %v2687_v55 = vpop.f32.mrb[74].mxu1 }
 0x389   : > { %v6135_v60 = vpop.f32.mrb[75].mxu1 }
 0x38a   : > { %v2512_v63 = vpop.f32.mrb[64].mxu0 }
 0x38b   : > { %v2555_v58 = vadd.f32 %v2512_v63, %v9233_v29  ;;  %v6094_v12 = vpop.f32.mrb[65].mxu0 }
 0x38c   : > { %v2515_v31 = vpop.f32.mrb[66].mxu0 }
 0x38d   : > { %v2556_v52 = vadd.f32 %v2515_v31, %v9235_v17  ;;  %v6095_v20 = vpop.f32.mrb[67].mxu0  ;;  %v9278_v9 = vadd.f32 %v2668_v15, %v2555_v58 }
 0x38e   : > { %v2692_v61 = vpop.f32.mrb[76].mxu1 }
 0x38f   : > { %v6138_v10 = vpop.f32.mrb[77].mxu1  ;;  %v9280_v21 = vadd.f32 %v2671_v6, %v2556_v52 }
 0x390   : > { %v2695_v43 = vpop.f32.mrb[78].mxu1 }
 0x391   : > { %v6139_v48 = vpop.f32.mrb[79].mxu1 }
 0x392   : > { %v2520_v3 = vpop.f32.mrb[68].mxu0 }
 0x393   : > { %v2557_v49 = vadd.f32 %v2520_v3, %v9239_v30  ;;  %v6098_v2 = vpop.f32.mrb[69].mxu0 }
 0x394   : > { %v2523_v62 = vpop.f32.mrb[70].mxu0 }
 0x395   : > { %v2558_v29 = vadd.f32 %v2523_v62, %v9241_v46  ;;  %v6099_v4 = vpop.f32.mrb[71].mxu0  ;;  %v9284_v22 = vadd.f32 %v2676_v47, %v2557_v49 }
 0x396   : > { %v2700_v38 = vpop.f32.mrb[80].mxu1 }
 0x397   : > { %v6142_v17 = vpop.f32.mrb[81].mxu1  ;;  %v9286_v50 = vadd.f32 %v2679_v45, %v2558_v29 }
 0x398   : > { %v2703_v57 = vpop.f32.mrb[82].mxu1 }
 0x399   : > { %v6143_v42 = vpop.f32.mrb[83].mxu1 }
 0x39a   : > { %v2528_v34 = vpop.f32.mrb[72].mxu0 }
 0x39b   : > { %v2559_v15 = vadd.f32 %v2528_v34, %v9245_v32  ;;  %v6102_v24 = vpop.f32.mrb[73].mxu0 }
 0x39c   : > { %v2531_v6 = vpop.f32.mrb[74].mxu0 }
 0x39d   : > { %v2560_v30 = vadd.f32 %v2531_v6, %v9247_v0  ;;  %v6103_v33 = vpop.f32.mrb[75].mxu0  ;;  %v9290_v26 = vadd.f32 %v2684_v18, %v2559_v15 }
 0x39e   : > { %v2957_v28 = vpop.f32.mrb[84].mxu1 }
 0x39f   : > { %v6182_v46 = vpop.f32.mrb[85].mxu1  ;;  %v9292_v8 = vadd.f32 %v2687_v55, %v2560_v30 }
 0x3a0   : > { %v2960_v27 = vpop.f32.mrb[86].mxu1 }
 0x3a1   : > { %v6183_v1 = vpop.f32.mrb[87].mxu1 }
 0x3a2   : > { %v2536_v53 = vpop.f32.mrb[76].mxu0 }
 0x3a3   : > { %v2561_v47 = vadd.f32 %v2536_v53, %v9252_v19  ;;  %v6106_v14 = vpop.f32.mrb[77].mxu0 }
 0x3a4   : > { %v2539_v59 = vpop.f32.mrb[78].mxu0 }
 0x3a5   : > { %v2562_v32 = vadd.f32 %v2539_v59, %v9254_v37  ;;  %v6107_v45 = vpop.f32.mrb[79].mxu0  ;;  %v9296_v5 = vadd.f32 %v2692_v61, %v2561_v47 }
 0x3a6   : > { %v2965_v56 = vpop.f32.mrb[88].mxu1 }
 0x3a7   : > { %v6186_v0 = vpop.f32.mrb[89].mxu1  ;;  %v9298_v13 = vadd.f32 %v2695_v43, %v2562_v32 }
 0x3a8   : > { %v2968_v11 = vpop.f32.mrb[90].mxu1 }
 0x3a9   : > { %v6187_v41 = vpop.f32.mrb[91].mxu1 }
 0x3aa   : > { %v2544_v16 = vpop.f32.mrb[80].mxu0 }
 0x3ab   : > { %v2563_v35 = vadd.f32 %v2544_v16, %v9258_v39  ;;  %v6110_v54 = vpop.f32.mrb[81].mxu0 }
 0x3ac   : > { %v2547_v18 = vpop.f32.mrb[82].mxu0 }
 0x3ad   : > { %v2564_v19 = vadd.f32 %v2547_v18, %v9260_v7  ;;  %v6111_v36 = vpop.f32.mrb[83].mxu0  ;;  %v9302_v60 = vadd.f32 %v2700_v38, %v2563_v35 }
 0x3ae   : > { %v2973_v55 = vpop.f32.mrb[92].mxu1 }
 0x3af   : > { %v6190_v37 = vpop.f32.mrb[93].mxu1  ;;  %v9304_v58 = vadd.f32 %v2703_v57, %v2564_v19 }
 0x3b0   : > { %v2976_v63 = vpop.f32.mrb[94].mxu1 }
 0x3b1   : > { %v6191_v12 = vpop.f32.mrb[95].mxu1 }
 0x3b2   : > { %v2787_v31 = vpop.f32.mrb[84].mxu0 }
 0x3b3   : > { %v2842_v52 = vadd.f32 %v2787_v31, %v9264_v25  ;;  %v6150_v20 = vpop.f32.mrb[85].mxu0 }
 0x3b4   : > { %v2790_v61 = vpop.f32.mrb[86].mxu0 }
 0x3b5   : > { %v2843_v39 = vadd.f32 %v2790_v61, %v9266_v44  ;;  %v6151_v10 = vpop.f32.mrb[87].mxu0  ;;  %v9308_v48 = vadd.f32 %v2957_v28, %v2842_v52 }
 0x3b6   : > { %v2981_v43 = vpop.f32.mrb[96].mxu1 }
 0x3b7   : > { %v6194_v7 = vpop.f32.mrb[97].mxu1  ;;  %v9310_v49 = vadd.f32 %v2960_v27, %v2843_v39 }
 0x3b8   : > { %v2984_v3 = vpop.f32.mrb[98].mxu1 }
 0x3b9   : > { %v6195_v2 = vpop.f32.mrb[99].mxu1 }
 0x3ba   : > { %v2795_v62 = vpop.f32.mrb[88].mxu0 }
 0x3bb   : > { %v2844_v29 = vadd.f32 %v2795_v62, %v9271_v51  ;;  %v6154_v4 = vpop.f32.mrb[89].mxu0 }
 0x3bc   : > { %v2798_v38 = vpop.f32.mrb[90].mxu0 }
 0x3bd   : > { %v2845_v25 = vadd.f32 %v2798_v38, %v9273_v23  ;;  %v6155_v17 = vpop.f32.mrb[91].mxu0  ;;  %v9314_v42 = vadd.f32 %v2965_v56, %v2844_v29  ;;  %v9348_v38 = vld [vmem:[#allocation11] ss:$0 sm:$0xff] }
 0x3be   : > { %v2989_v57 = vpop.f32.mrb[100].mxu1 }
 0x3bf   : > { %v6198_v44 = vpop.f32.mrb[101].mxu1  ;;  %v9316_v15 = vadd.f32 %v2968_v11, %v2845_v25 }
 0x3c0   : > { %v2992_v34 = vpop.f32.mrb[102].mxu1 }
 0x3c1   : > { %v6199_v24 = vpop.f32.mrb[103].mxu1 }
 0x3c2   : > { %v2803_v6 = vpop.f32.mrb[92].mxu0 }
 0x3c3   : > { %v2846_v30 = vadd.f32 %v2803_v6, %v9278_v9  ;;  %v6158_v33 = vpop.f32.mrb[93].mxu0 }
 0x3c4   : > { %v2806_v28 = vpop.f32.mrb[94].mxu0 }
 0x3c5   : > { %v2847_v51 = vadd.f32 %v2806_v28, %v9280_v21  ;;  %v6159_v46 = vpop.f32.mrb[95].mxu0  ;;  %v9320_v1 = vadd.f32 %v2973_v55, %v2846_v30 }
 0x3c6   : > { %v2997_v27 = vpop.f32.mrb[104].mxu1 }
 0x3c7   : > { %v6202_v23 = vpop.f32.mrb[105].mxu1  ;;  %v9322_v47 = vadd.f32 %v2976_v63, %v2847_v51 }
 0x3c8   : > { %v3000_v53 = vpop.f32.mrb[106].mxu1 }
 0x3c9   : > { %v6203_v14 = vpop.f32.mrb[107].mxu1 }
 0x3ca   : > { %v2811_v59 = vpop.f32.mrb[96].mxu0 }
 0x3cb   : > { %v2848_v32 = vadd.f32 %v2811_v59, %v9284_v22  ;;  %v6162_v45 = vpop.f32.mrb[97].mxu0 }
 0x3cc   : > { %v2814_v56 = vpop.f32.mrb[98].mxu0 }
 0x3cd   : > { %v2849_v9 = vadd.f32 %v2814_v56, %v9286_v50  ;;  %v6163_v0 = vpop.f32.mrb[99].mxu0  ;;  %v9326_v41 = vadd.f32 %v2981_v43, %v2848_v32 }
 0x3ce   : > { %v3005_v11 = vpop.f32.mrb[108].mxu1 }
 0x3cf   : > { %v6206_v21 = vpop.f32.mrb[109].mxu1  ;;  %v9328_v35 = vadd.f32 %v2984_v3, %v2849_v9 }
 0x3d0   : > { %v3008_v16 = vpop.f32.mrb[110].mxu1 }
 0x3d1   : > { %v6207_v54 = vpop.f32.mrb[111].mxu1 }
 0x3d2   : > { %v2819_v18 = vpop.f32.mrb[100].mxu0 }
 0x3d3   : > { %v2850_v19 = vadd.f32 %v2819_v18, %v9290_v26  ;;  %v6166_v36 = vpop.f32.mrb[101].mxu0 }
 0x3d4   : > { %v2822_v55 = vpop.f32.mrb[102].mxu0 }
 0x3d5   : > { %v2851_v22 = vadd.f32 %v2822_v55, %v9292_v8  ;;  %v6167_v37 = vpop.f32.mrb[103].mxu0  ;;  %v9332_v63 = vadd.f32 %v2989_v57, %v2850_v19 }
 0x3d6   : > { %v6775_v37 = vld [vmem:[#allocation13] sm:$0xff]  }
 0x3d7   : > { %v9334_v50 = vadd.f32 %v2992_v34, %v2851_v22 }
 0x3da   : > { %v2827_v12 = vpop.f32.mrb[104].mxu0 }
 0x3db   : > { %v2852_v31 = vadd.f32 %v2827_v12, %v9296_v5  ;;  %v6170_v52 = vpop.f32.mrb[105].mxu0 }
 0x3dc   : > { %v2830_v20 = vpop.f32.mrb[106].mxu0 }
 0x3dd   : > { %v2853_v61 = vadd.f32 %v2830_v20, %v9298_v13  ;;  %v6171_v39 = vpop.f32.mrb[107].mxu0  ;;  %v9338_v10 = vadd.f32 %v2997_v27, %v2852_v31  ;;  %v6777_v31 = vld [vmem:[#allocation13 + $0x40] sm:$0xff]  }
 0x3df   : > { %v9340_v26 = vadd.f32 %v3000_v53, %v2853_v61 }
 0x3e2   : > { %v2835_v43 = vpop.f32.mrb[108].mxu0 }
 0x3e3   : > { %v2854_v8 = vadd.f32 %v2835_v43, %v9302_v60  ;;  %v6174_v7 = vpop.f32.mrb[109].mxu0 }
 0x3e4   : > { %v2838_v3 = vpop.f32.mrb[110].mxu0 }
 0x3e5   : > { %v2855_v2 = vadd.f32 %v2838_v3, %v9304_v58  ;;  %v6175_v62 = vpop.f32.mrb[111].mxu0  ;;  %v9344_v29 = vadd.f32 %v3005_v11, %v2854_v8  ;;  %v6776_v8 = vld [vmem:[#allocation13 + $0x8] sm:$0xff]  }
 0x3e7   : > { %v9346_v5 = vadd.f32 %v3008_v16, %v2855_v2  ;;  %v6778_v2 = vld [vmem:[#allocation13 + $0x48] sm:$0xff]  }
 0x3ea   : > { %v3114_v4 = vpop.f32.mrb[112].mxu0 }
 0x3eb   : > { %v3169_v13 = vadd.f32 %v3114_v4, %v9308_v48  ;;  %v6214_v25 = vpop.f32.mrb[113].mxu0 }
 0x3ec   : > { %v3117_v17 = vpop.f32.mrb[114].mxu0 }
 0x3ed   : > { %v3190_v57 = vadd.f32 %v9348_v38, %v3169_v13  ;;  %v3170_v60 = vadd.f32 %v3117_v17, %v9310_v49  ;;  %v6215_v44 = vpop.f32.mrb[115].mxu0 }
 0x3ef   : > { %v3191_v34 = vadd.f32 %v9348_v38, %v3170_v60  ;;  %v3204_v58 = vmax.f32 %v3190_v57, 0.0 }
 0x3f1   : > { %v3205_v24 = vmax.f32 %v3191_v34, 0.0 }
 0x3f2   : > { %v3122_v6 = vpop.f32.mrb[116].mxu0 }
 0x3f3   : > { %v9354_v30 = vpack.c.bf16 %v3205_v24, %v3204_v58  ;;  %v3171_v33 = vadd.f32 %v3122_v6, %v9314_v42  ;;  %v6218_v28 = vpop.f32.mrb[117].mxu0 }
 0x3f4   : > { %v3125_v51 = vpop.f32.mrb[118].mxu0 }
 0x3f5   : > { %v3192_v48 = vadd.f32 %v9348_v38, %v3171_v33  ;;  %v3172_v46 = vadd.f32 %v3125_v51, %v9316_v15  ;;  %v6219_v27 = vpop.f32.mrb[119].mxu0  ;;  %v3235_v23 = vshll.u32 %v9354_v30, 16  ;;  %v3233_v11 = vshrl.u32 %v9354_v30, 16 }
 0x3f6   : > { %v3481_v18 = vrot.slane %v9354_v30, 1 }
 0x3f7   : > { %v3206_v49 = vmax.f32 %v3192_v48, 0.0  ;;  %v3193_v53 = vadd.f32 %v9348_v38, %v3172_v46  ;;  %v3237_v45 = vrot.slane %v3235_v23, 1 }
 0x3f9   : > { %v9361_v14 = vpack.c.bf16 %v3206_v49, %v3205_v24  ;;  %v3207_v59 = vmax.f32 %v3193_v53, 0.0  ;;  %v3238_v55 = vor.u32 %v3237_v45, %v3233_v11 }
 0x3fa   : > { %v3130_v32 = vpop.f32.mrb[120].mxu0 }
 0x3fb   : > { %v9363_v56 = vpack.c.bf16 %v3207_v59, %v3206_v49  ;;  %v3173_v42 = vadd.f32 %v3130_v32, %v9320_v1  ;;  %v6222_v9 = vpop.f32.mrb[121].mxu0 }
 0x3fc   : > { %v3133_v0 = vpop.f32.mrb[122].mxu0 }
 0x3fd   : > { %v3240_v15 = vshll.u32 %v9363_v56, 16  ;;  %v3194_v21 = vadd.f32 %v9348_v38, %v3173_v42  ;;  %v6223_v16 = vpop.f32.mrb[123].mxu0  ;;  %v3174_v54 = vadd.f32 %v3133_v0, %v9322_v47  ;;  %v3482_v19 = vrot.slane %v9363_v56, 1 }
 0x3fe   : > { %v3244_v25 = vshrl.u32 %v9363_v56, 16 }
 0x3ff   : > { %v3208_v36 = vmax.f32 %v3194_v21, 0.0  ;;  %v3242_v22 = vrot.slane %v3240_v15, 1  ;;  %v3195_v1 = vadd.f32 %v9348_v38, %v3174_v54  ;;  %v3483_v12 = vsel %vm703_vm1, %v3481_v18, %v3482_v19 }
 0x400   : > { %6293 = vmatmul.mubr.msk.bf16.vlgmr.msra.gmra.mrb[140].mxu0 %vm1791_vm6, %v3483_v12 }
 0x401   : > { %v9374_v52 = vpack.c.bf16 %v3208_v36, %v3207_v59  ;;  %v3243_v20 = vsel %vm1718_vm7, %v3238_v55, %v3242_v22  ;;  %v3209_v47 = vmax.f32 %v3195_v1, 0.0  ;;  %6296 = vmatprep.mubr.msk.bf16.mxu0 %vm7203_vm0, %v10166_v40  ;;  %6337 = vmatpush3.bf16.msra.mxu0 %v6777_v31  ;;  %v3246_v34 = vor.u32 %v3244_v25, %v3242_v22 }
 0x402   : > { %v3138_v61 = vpop.f32.mrb[124].mxu0  ;;  %6245 = vmatmul.mubr.msk.bf16.vlgmr.msra.gmra.mrb[112].mxu1 %vm1791_vm6, %v3243_v20  ;;  %6338 = vmatprep.subr.bf16.mxu0 %v10166_v40 }
 0x403   : > { %v3175_v39 = vadd.f32 %v3138_v61, %v9326_v41  ;;  %6265 = vmatpush3.bf16.msra.mxu1 %v6775_v37  ;;  %v6226_v43 = vpop.f32.mrb[125].mxu0  ;;  %6248 = vmatprep.mubr.msk.bf16.mxu1 %vm7203_vm0, %v10166_v40  ;;  %v9384_v7 = vpack.c.bf16 %v3209_v47, %v3208_v36  ;;  %v3755_v62 = vshll.u32 %v9374_v52, 16 }
 0x404   : > { %v3141_v3 = vpop.f32.mrb[126].mxu0  ;;  %6266 = vmatprep.subr.bf16.mxu1 %v10166_v40 }
 0x405   : > { %v3196_v4 = vadd.f32 %v9348_v38, %v3175_v39  ;;  %v3176_v13 = vadd.f32 %v3141_v3, %v9328_v35  ;;  %v6227_v41 = vpop.f32.mrb[127].mxu0  ;;  %v3484_v17 = vrot.slane %v9384_v7, 1  ;;  %v3248_v57 = vshll.u32 %v9384_v7, 16  ;;  %6339 = vmatpush3.bf16.msra.mxu0 %v6778_v2 }
 0x406   : > { %v3752_v35 = vshrl.u32 %v9374_v52, 16  ;;  %v4147_v6 = vrot.slane %v3755_v62, 1  ;;  %6384 = vmatprep.subr.bf16.mxu0 %v10166_v40  ;;  %v3252_v59 = vshrl.u32 %v9384_v7, 16 }
 0x407   : > { %v3210_v60 = vmax.f32 %v3196_v4, 0.0  ;;  %v3197_v44 = vadd.f32 %v9348_v38, %v3176_v13  ;;  %6267 = vmatpush3.bf16.msra.mxu1 %v6776_v8  ;;  %v3485_v58 = vsel %vm703_vm1, %v3482_v19, %v3484_v17  ;;  %v3250_v24 = vrot.slane %v3248_v57, 1 }
 0x408   : > { %6312 = vmatprep.subr.bf16.mxu1 %v10166_v40  ;;  %6297 = vmatmul.mubr.msk.bf16.gmra.mrb[144].mxu0 %vm1791_vm6, %v3485_v58  ;;  %v4148_v46 = vor.u32 %v4147_v6, %v3752_v35 }
 0x409   : > { %v9400_v33 = vpack.c.bf16 %v3210_v60, %v3209_v47  ;;  %v3211_v28 = vmax.f32 %v3197_v44, 0.0  ;;  %v3251_v48 = vsel %vm1718_vm7, %v3246_v34, %v3250_v24  ;;  %6300 = vmatprep.mubr.msk.bf16.mxu0 %vm7203_vm0, %v10166_v40  ;;  %v3254_v11 = vor.u32 %v3252_v59, %v3250_v24 }
 0x40a   : > { %v3146_v51 = vpop.f32.mrb[128].mxu0  ;;  %6249 = vmatmul.mubr.msk.bf16.gmra.mrb[116].mxu1 %vm1791_vm6, %v3251_v48 }
 0x40b   : > { %v9409_v27 = vpack.c.bf16 %v3211_v28, %v3210_v60  ;;  %v3177_v23 = vadd.f32 %v3146_v51, %v9332_v63  ;;  %v6230_v49 = vpop.f32.mrb[129].mxu0  ;;  %6252 = vmatprep.mubr.msk.bf16.mxu1 %vm7203_vm0, %v10166_v40  ;;  %v3764_v32 = vshll.u32 %v9400_v33, 16  ;;  %v3761_v18 = vshrl.u32 %v9400_v33, 16 }
 0x40c   : > { %v3149_v53 = vpop.f32.mrb[130].mxu0 }
 0x40d   : > { %v3198_v45 = vadd.f32 %v9348_v38, %v3177_v23  ;;  %v3178_v42 = vadd.f32 %v3149_v53, %v9334_v50  ;;  %v6231_v9 = vpop.f32.mrb[131].mxu0  ;;  %v3486_v0 = vrot.slane %v9409_v27, 1  ;;  %v3256_v63 = vshll.u32 %v9409_v27, 16 }
 0x40e   : > { %v4149_v19 = vrot.slane %v3764_v32, 1  ;;  %v3260_v61 = vshrl.u32 %v9409_v27, 16 }
 0x40f   : > { %v3212_v15 = vmax.f32 %v3198_v45, 0.0  ;;  %v3199_v21 = vadd.f32 %v9348_v38, %v3178_v42  ;;  %v3487_v16 = vsel %vm703_vm1, %v3484_v17, %v3486_v0  ;;  %v3258_v54 = vrot.slane %v3256_v63, 1 }
 0x410   : > { %6301 = vmatmul.mubr.msk.bf16.gmra.mrb[148].mxu0 %vm1791_vm6, %v3487_v16  ;;  %v9433_v37 = vsel %vm1718_vm7, %v4148_v46, %v4149_v19  ;;  %v4151_v1 = vor.u32 %v4149_v19, %v3761_v18  ;;  %v3744_v63 = vshrl.u32 %v9361_v14, 16  ;;  %v3754_v19 = vrot.slane %v3752_v35, 2 }
 0x411   : > { %v9426_v36 = vpack.c.bf16 %v3212_v15, %v3211_v28  ;;  %v3213_v50 = vmax.f32 %v3199_v21, 0.0  ;;  %v3259_v55 = vsel %vm1718_vm7, %v3254_v11, %v3258_v54  ;;  %6304 = vmatprep.mubr.msk.bf16.mxu0 %vm7203_vm0, %v10166_v40  ;;  %v3262_v4 = vor.u32 %v3260_v61, %v3258_v54 }
 0x412   : > { %v3154_v22 = vpop.f32.mrb[132].mxu0  ;;  %6253 = vmatmul.mubr.msk.bf16.gmra.mrb[120].mxu1 %vm1791_vm6, %v3259_v55  ;;  %v3746_v55 = vrot.slane %v3744_v63, 2 }
 0x413   : > { %v9437_v12 = vpack.c.bf16 %v3213_v50, %v3212_v15  ;;  %v3179_v31 = vadd.f32 %v3154_v22, %v9338_v10  ;;  %v6234_v20 = vpop.f32.mrb[133].mxu0  ;;  %6256 = vmatprep.mubr.msk.bf16.mxu1 %vm7203_vm0, %v10166_v40  ;;  %v3773_v39 = vshll.u32 %v9426_v36, 16  ;;  %v3770_v57 = vshrl.u32 %v9426_v36, 16 }
 0x414   : > { %v3157_v47 = vpop.f32.mrb[134].mxu0  ;;  %v6781_v20 = vld [vmem:[#allocation13 + $0x60] sm:$0xff]  }
 0x415   : > { %v3200_v43 = vadd.f32 %v9348_v38, %v3179_v31  ;;  %v3180_v8 = vadd.f32 %v3157_v47, %v9340_v26  ;;  %v6235_v3 = vpop.f32.mrb[135].mxu0  ;;  %v3488_v2 = vrot.slane %v9437_v12, 1  ;;  %v3264_v10 = vshll.u32 %v9437_v12, 16 }
 0x416   : > { %v4152_v60 = vrot.slane %v3773_v39, 1  ;;  %v3268_v24 = vshrl.u32 %v9437_v12, 16  ;;  %v3766_v3 = vrot.slane %v3764_v32, 3 }
 0x417   : > { %v3214_v13 = vmax.f32 %v3200_v43, 0.0  ;;  %v3201_v41 = vadd.f32 %v9348_v38, %v3180_v8  ;;  %v3489_v25 = vsel %vm703_vm1, %v3486_v0, %v3488_v2  ;;  %v3266_v17 = vrot.slane %v3264_v10, 1  ;;  %v6779_v43 = vld [vmem:[#allocation13 + $0x30] sm:$0xff]  }
 0x418   : > { %6305 = vmatmul.mubr.msk.bf16.gmra.mrb[152].mxu0 %vm1791_vm6, %v3489_v25  ;;  %v9462_v6 = vsel %vm1718_vm7, %v4151_v1, %v4152_v60  ;;  %v4154_v28 = vor.u32 %v4152_v60, %v3770_v57  ;;  %v3763_v8 = vrot.slane %v3761_v18, 2  ;;  %v6780_v18 = vld [vmem:[#allocation13 + $0x38] sm:$0xff]  }
 0x419   : > { %v3227_v44 = vpack.c.bf16 %v3214_v13, %v3214_v13  ;;  %v9454_v34 = vpack.c.bf16 %v3214_v13, %v3213_v50  ;;  %v3267_v26 = vsel %vm1718_vm7, %v3262_v4, %v3266_v17  ;;  %6308 = vmatprep.mubr.msk.bf16.mxu0 %vm7203_vm0, %v10166_v40  ;;  %v3270_v53 = vor.u32 %v3268_v24, %v3266_v17 }
 0x41a   : > { %v3162_v58 = vpop.f32.mrb[136].mxu0  ;;  %6257 = vmatmul.mubr.msk.bf16.gmra.mrb[124].mxu1 %vm1791_vm6, %v3267_v26  ;;  %v3215_v11 = vmax.f32 %v3201_v41, 0.0  ;;  %v3767_v10 = vor.u32 %v3766_v3, %v3763_v8  ;;  %v3772_v4 = vrot.slane %v3770_v57, 2 }
 0x41b   : > { %v3272_v51 = vshll.u32 %v3227_v44, 16  ;;  %v3490_v48 = vrot.slane %v3227_v44, 1  ;;  %v3181_v46 = vadd.f32 %v3162_v58, %v9344_v29  ;;  %v6238_v23 = vpop.f32.mrb[137].mxu0  ;;  %6260 = vmatprep.mubr.msk.bf16.mxu1 %vm7203_vm0, %v10166_v40  ;;  %v3747_v29 = vshll.u32 %v9361_v14, 16 }
 0x41c   : > { %v3165_v49 = vpop.f32.mrb[138].mxu0  ;;  %v3782_v54 = vshll.u32 %v9454_v34, 16  ;;  %v3779_v35 = vshrl.u32 %v9454_v34, 16  ;;  %v9526_v41 = vpack.c.bf16 %v3215_v11, %v3215_v11  ;;  %v6786_v23 = vld [vmem:[#allocation13 + $0x88] sm:$0xff]  }
 0x41d   : > { %v3274_v59 = vrot.slane %v3272_v51, 1  ;;  %v3202_v45 = vadd.f32 %v9348_v38, %v3181_v46  ;;  %v3182_v42 = vadd.f32 %v3165_v49, %v9346_v5  ;;  %v6239_v9 = vpop.f32.mrb[139].mxu0  ;;  %v3491_v0 = vsel %vm703_vm1, %v3488_v2, %v3490_v48  ;;  %v6782_v2 = vld [vmem:[#allocation13 + $0x68] sm:$0xff]   ;;  %v6783_v48 = vld [vmem:[#allocation13 + $0x50] sm:$0xff]  }
 0x41e   : > { %v3757_v5 = vrot.slane %v3755_v62, 3  ;;  %v3749_v22 = vrot.slane %v3747_v29, 3  ;;  %v3784_v17 = vrot.slane %v3782_v54, 3  ;;  %v3791_v60 = vshll.u32 %v9526_v41, 16 }
 0x41f   : > { %v3216_v15 = vmax.f32 %v3202_v45, 0.0  ;;  %v9476_v21 = vadd.f32 %v9348_v38, %v3182_v42  ;;  %v3275_v16 = vsel %vm1718_vm7, %v3270_v53, %v3274_v59  ;;  %v4155_v38 = vrot.slane %v3782_v54, 1 }
 0x420   : > { %6309 = vmatmul.mubr.msk.bf16.gmra.mrb[156].mxu0 %vm1791_vm6, %v3491_v0  ;;  %v3758_v1 = vor.u32 %v3757_v5, %v3754_v19  ;;  %v3750_v31 = vor.u32 %v3749_v22, %v3746_v55  ;;  %v3793_v58 = vrot.slane %v3791_v60, 3  ;;  %v3618_v51 = vrot.slane %v9361_v14, 2  ;;  %v6787_v19 = vld [vmem:[#allocation13 + $0x70] sm:$0xff]  }
 0x421   : > { %v9484_v50 = vpack.c.bf16 %v3216_v15, %v3215_v11  ;;  %6340 = vmatprep.mubr.msk.bf16.mxu0 %vm7203_vm0, %v10166_v40  ;;  %v9494_v62 = vsel %vm1718_vm7, %v4154_v28, %v4155_v38  ;;  %v9496_v47 = vor.u32 %v4155_v38, %v3779_v35  ;;  %v3619_v28 = vrot.slane %v9374_v52, 2 }
 0x422   : > { %6261 = vmatmul.mubr.msk.bf16.gmra.mrb[128].mxu1 %vm1791_vm6, %v3275_v16  ;;  %v3759_v61 = vsel %vm2357_vm9, %v3750_v31, %v3758_v1  ;;  %v3768_v32 = vsel %vm2357_vm9, %v3758_v1, %v3767_v10  ;;  %v3621_v49 = vrot.slane %v9400_v33, 2  ;;  %v3623_v59 = vrot.slane %v9426_v36, 2 }
 0x423   : > { %6268 = vmatprep.mubr.msk.bf16.mxu1 %vm7203_vm0, %v10166_v40  ;;  %v3620_v46 = vsel %vm820_vm2, %v3618_v51, %v3619_v28  ;;  %v3625_v42 = vrot.slane %v9454_v34, 2  ;;  %v3627_v0 = vrot.slane %v9526_v41, 2  ;;  %v4287_v29 = vrot.slane %v9400_v33, 1 }
 0x424   : > { %v3622_v53 = vsel %vm820_vm2, %v3619_v28, %v3621_v49  ;;  %v3624_v45 = vsel %vm820_vm2, %v3621_v49, %v3623_v59  ;;  %v4286_v11 = vrot.slane %v9374_v52, 1  ;;  %v3911_v15 = vrot.slane %v9374_v52, 3 }
 0x425   : > { %v3626_v9 = vsel %vm820_vm2, %v3623_v59, %v3625_v42  ;;  %v3628_v63 = vsel %vm820_vm2, %v3625_v42, %v3627_v0  ;;  %v3910_v54 = vrot.slane %v9361_v14, 3  ;;  %v4289_v55 = vrot.slane %v9426_v36, 1 }
 0x426   : > { %v4288_v16 = vsel %vm703_vm1, %v4286_v11, %v4287_v29  ;;  %v3913_v14 = vrot.slane %v9400_v33, 3  ;;  %v4291_v1 = vrot.slane %v9454_v34, 1 }
 0x427   : > { %v3912_v5 = vsel %vm2569_vm8, %v3910_v54, %v3911_v15  ;;  %v4290_v22 = vsel %vm703_vm1, %v4287_v29, %v4289_v55 }
 0x428   : > { %6341 = vmatmul.mubr.msk.bf16.vlgmr.msra.gmra.mrb[160].mxu0 %vm1791_vm6, %v3759_v61  ;;  %v3914_v38 = vsel %vm2569_vm8, %v3911_v15, %v3913_v14  ;;  %v4293_v61 = vrot.slane %v9484_v50, 1 }
 0x429   : > { %6344 = vmatprep.mubr.msk.bf16.mxu0 %vm7203_vm0, %v10166_v40  ;;  %6385 = vmatpush3.bf16.msra.mxu0 %v6781_v20  ;;  %v3217_v20 = vmax.f32 %v9476_v21, 0.0 }
 0x42a   : > { %6269 = vmatmul.mubr.msk.bf16.vlgmr.msra.gmra.mrb[132].mxu1 %vm1791_vm6, %v9354_v30  ;;  %6386 = vmatprep.subr.bf16.mxu0 %v10166_v40  ;;  %v3775_v30 = vrot.slane %v3773_v39, 3  ;;  %v3781_v39 = vrot.slane %v3779_v35, 2  ;;  %v4292_v35 = vsel %vm703_vm1, %v4289_v55, %v4291_v1  ;;  %v4294_v8 = vsel %vm703_vm1, %v4291_v1, %v4293_v61 }
 0x42b   : > { %6313 = vmatpush3.bf16.msra.mxu1 %v6779_v43  ;;  %6272 = vmatprep.mubr.msk.bf16.mxu1 %vm7203_vm0, %v10166_v40  ;;  %v4142_v43 = vpack.c.bf16 %v3217_v20, %v3217_v20 }
 0x42c   : > { %6314 = vmatprep.subr.bf16.mxu1 %v10166_v40  ;;  %v3776_v13 = vor.u32 %v3775_v30, %v3772_v4  ;;  %v3785_v57 = vor.u32 %v3784_v17, %v3781_v39 }
 0x42d   : > { %6387 = vmatpush3.bf16.msra.mxu0 %v6782_v2  ;;  %v4295_v21 = vrot.slane %v4142_v43, 1  ;;  %v3919_v2 = vrot.slane %v9526_v41, 3  ;;  %v4166_v4 = vshll.u32 %v4142_v43, 16 }
 0x42e   : > { %6432 = vmatprep.subr.bf16.mxu0 %v10166_v40  ;;  %v3777_v25 = vsel %vm2357_vm9, %v3767_v10, %v3776_v13  ;;  %v3786_v44 = vsel %vm2357_vm9, %v3776_v13, %v3785_v57 }
 0x42f   : > { %6315 = vmatpush3.bf16.msra.mxu1 %v6780_v18  ;;  %v4158_v18 = vshll.u32 %v9484_v50, 16  ;;  %v4168_v30 = vrot.slane %v4166_v4, 1 }
 0x430   : > { %6345 = vmatmul.mubr.msk.bf16.gmra.mrb[164].mxu0 %vm1791_vm6, %v3768_v32  ;;  %6360 = vmatprep.subr.bf16.mxu1 %v10166_v40 }
 0x431   : > { %6348 = vmatprep.mubr.msk.bf16.mxu0 %vm7203_vm0, %v10166_v40  ;;  %v4160_v32 = vrot.slane %v4158_v18, 1 }
 0x432   : > { %6273 = vmatmul.mubr.msk.bf16.gmra.mrb[136].mxu1 %vm1791_vm6, %v9363_v56  ;;  %v3788_v56 = vshrl.u32 %v9526_v41, 16 }
 0x433   : > { %6276 = vmatprep.mubr.msk.bf16.mxu1 %vm7203_vm0, %v10166_v40 }
 0x434   : > { %v3790_v26 = vrot.slane %v3788_v56, 2 }
 0x438   : > { %6349 = vmatmul.mubr.msk.bf16.gmra.mrb[168].mxu0 %vm1791_vm6, %v3777_v25 }
 0x439   : > { %6352 = vmatprep.mubr.msk.bf16.mxu0 %vm7203_vm0, %v10166_v40 }
 0x43a   : > { %6277 = vmatmul.mubr.msk.bf16.gmra.mrb[140].mxu1 %vm1791_vm6, %v9384_v7  ;;  %v3794_v7 = vor.u32 %v3793_v58, %v3790_v26 }
 0x43b   : > { %6280 = vmatprep.mubr.msk.bf16.mxu1 %vm7203_vm0, %v10166_v40 }
 0x43c   : > { %v3795_v24 = vsel %vm2357_vm9, %v3785_v57, %v3794_v7 }
 0x440   : > { %6353 = vmatmul.mubr.msk.bf16.gmra.mrb[172].mxu0 %vm1791_vm6, %v3786_v44 }
 0x441   : > { %6356 = vmatprep.mubr.msk.bf16.mxu0 %vm7203_vm0, %v10166_v40 }
 0x442   : > { %6281 = vmatmul.mubr.msk.bf16.gmra.mrb[144].mxu1 %vm1791_vm6, %v9409_v27  ;;  %v6785_v27 = vld [vmem:[#allocation13 + $0x80] sm:$0xff]  }
 0x443   : > { %6284 = vmatprep.mubr.msk.bf16.mxu1 %vm7203_vm0, %v10166_v40 }
 0x448   : > { %6357 = vmatmul.mubr.msk.bf16.gmra.mrb[176].mxu0 %vm1791_vm6, %v3795_v24 }
 0x449   : > { %6388 = vmatprep.mubr.msk.bf16.mxu0 %vm7203_vm0, %v10166_v40 }
 0x44a   : > { %6285 = vmatmul.mubr.msk.bf16.gmra.mrb[148].mxu1 %vm1791_vm6, %v9437_v12  ;;  %v6784_v12 = vld [vmem:[#allocation13 + $0x58] sm:$0xff]  }
 0x44b   : > { %6316 = vmatprep.mubr.msk.bf16.mxu1 %vm7203_vm0, %v10166_v40 }
 0x450   : > { %6389 = vmatmul.mubr.msk.bf16.vlgmr.msra.gmra.mrb[180].mxu0 %vm1791_vm6, %v9374_v52  ;;  %v6788_v52 = vld [vmem:[#allocation13 + $0x78] sm:$0xff]  }
 0x451   : > { %6392 = vmatprep.mubr.msk.bf16.mxu0 %vm7203_vm0, %v10166_v40  ;;  %6433 = vmatpush3.bf16.msra.mxu0 %v6785_v27 }
 0x452   : > { %6317 = vmatmul.mubr.msk.bf16.vlgmr.msra.gmra.mrb[152].mxu1 %vm1791_vm6, %v3620_v46  ;;  %6434 = vmatprep.subr.bf16.mxu0 %v10166_v40 }
 0x453   : > { %6361 = vmatpush3.bf16.msra.mxu1 %v6783_v48  ;;  %6320 = vmatprep.mubr.msk.bf16.mxu1 %vm7203_vm0, %v10166_v40 }
 0x454   : > { %6362 = vmatprep.subr.bf16.mxu1 %v10166_v40 }
 0x455   : > { %6435 = vmatpush3.bf16.msra.mxu0 %v6786_v23 }
 0x456   : > { %6472 = vmatprep.subr.bf16.mxu0 %v10166_v40 }
 0x457   : > { %6363 = vmatpush3.bf16.msra.mxu1 %v6784_v12 }
 0x458   : > { %6393 = vmatmul.mubr.msk.bf16.gmra.mrb[184].mxu0 %vm1791_vm6, %v9400_v33  ;;  %6408 = vmatprep.subr.bf16.mxu1 %v10166_v40  ;;  %v3915_v33 = vrot.slane %v9426_v36, 3 }
 0x459   : > { %6396 = vmatprep.mubr.msk.bf16.mxu0 %vm7203_vm0, %v10166_v40 }
 0x45a   : > { %6321 = vmatmul.mubr.msk.bf16.gmra.mrb[156].mxu1 %vm1791_vm6, %v3622_v53  ;;  %v3916_v31 = vsel %vm2569_vm8, %v3913_v14, %v3915_v33 }
 0x45b   : > { %6324 = vmatprep.mubr.msk.bf16.mxu1 %vm7203_vm0, %v10166_v40 }
 0x460   : > { %6397 = vmatmul.mubr.msk.bf16.gmra.mrb[188].mxu0 %vm1791_vm6, %v9426_v36  ;;  %v3917_v36 = vrot.slane %v9454_v34, 3 }
 0x461   : > { %6400 = vmatprep.mubr.msk.bf16.mxu0 %vm7203_vm0, %v10166_v40 }
 0x462   : > { %6325 = vmatmul.mubr.msk.bf16.gmra.mrb[160].mxu1 %vm1791_vm6, %v3624_v45  ;;  %v3918_v3 = vsel %vm2569_vm8, %v3915_v33, %v3917_v36  ;;  %v3920_v10 = vsel %vm2569_vm8, %v3917_v36, %v3919_v2  ;;  %v6789_v45 = vld [vmem:[#allocation16 + $0x10] sm:$0xff]  }
 0x463   : > { %6328 = vmatprep.mubr.msk.bf16.mxu1 %vm7203_vm0, %v10166_v40 }
 0x468   : > { %6401 = vmatmul.mubr.msk.bf16.gmra.mrb[192].mxu0 %vm1791_vm6, %v9454_v34  ;;  %v4296_v34 = vsel %vm703_vm1, %v4293_v61, %v4295_v21 }
 0x469   : > { %6404 = vmatprep.mubr.msk.bf16.mxu0 %vm7203_vm0, %v10166_v40 }
 0x46a   : > { %6329 = vmatmul.mubr.msk.bf16.gmra.mrb[164].mxu1 %vm1791_vm6, %v3626_v9 }
 0x46b   : > { %6332 = vmatprep.mubr.msk.bf16.mxu1 %vm7203_vm0, %v10166_v40 }
 0x470   : > { %6405 = vmatmul.mubr.msk.bf16.gmra.mrb[196].mxu0 %vm1791_vm6, %v9484_v50 }
 0x471   : > { %6436 = vmatprep.mubr.msk.bf16.mxu0 %vm7203_vm0, %v10166_v40 }
 0x472   : > { %6333 = vmatmul.mubr.msk.bf16.gmra.mrb[168].mxu1 %vm1791_vm6, %v3628_v63 }
 0x473   : > { %6364 = vmatprep.mubr.msk.bf16.mxu1 %vm7203_vm0, %v10166_v40 }
 0x478   : > { %6437 = vmatmul.mubr.msk.bf16.vlgmr.msra.gmra.mrb[200].mxu0 %vm1791_vm6, %v4288_v16 }
 0x479   : > { %6440 = vmatprep.mubr.msk.bf16.mxu0 %vm7203_vm0, %v10166_v40 }
 0x47a   : > { %6365 = vmatmul.mubr.msk.bf16.vlgmr.msra.gmra.mrb[172].mxu1 %vm1791_vm6, %v3912_v5 }
 0x47b   : > { %6409 = vmatpush3.bf16.msra.mxu1 %v6787_v19  ;;  %6368 = vmatprep.mubr.msk.bf16.mxu1 %vm7203_vm0, %v10166_v40 }
 0x47c   : > { %6410 = vmatprep.subr.bf16.mxu1 %v10166_v40 }
 0x47f   : > { %6411 = vmatpush3.bf16.msra.mxu1 %v6788_v52 }
 0x480   : > { %6441 = vmatmul.mubr.msk.bf16.gmra.mrb[204].mxu0 %vm1791_vm6, %v4290_v22  ;;  %6456 = vmatprep.subr.bf16.mxu1 %v10166_v40 }
 0x481   : > { %6444 = vmatprep.mubr.msk.bf16.mxu0 %vm7203_vm0, %v10166_v40 }
 0x482   : > { %6369 = vmatmul.mubr.msk.bf16.gmra.mrb[176].mxu1 %vm1791_vm6, %v3914_v38 }
 0x483   : > { %6372 = vmatprep.mubr.msk.bf16.mxu1 %vm7203_vm0, %v10166_v40 }
 0x488   : > { %6445 = vmatmul.mubr.msk.bf16.gmra.mrb[208].mxu0 %vm1791_vm6, %v4292_v35 }
 0x489   : > { %6448 = vmatprep.mubr.msk.bf16.mxu0 %vm7203_vm0, %v10166_v40 }
 0x48a   : > { %6373 = vmatmul.mubr.msk.bf16.gmra.mrb[180].mxu1 %vm1791_vm6, %v3916_v31 }
 0x48b   : > { %6376 = vmatprep.mubr.msk.bf16.mxu1 %vm7203_vm0, %v10166_v40 }
 0x490   : > { %6449 = vmatmul.mubr.msk.bf16.gmra.mrb[212].mxu0 %vm1791_vm6, %v4294_v8 }
 0x491   : > { %6452 = vmatprep.mubr.msk.bf16.mxu0 %vm7203_vm0, %v10166_v40 }
 0x492   : > { %6377 = vmatmul.mubr.msk.bf16.gmra.mrb[184].mxu1 %vm1791_vm6, %v3918_v3 }
 0x493   : > { %6380 = vmatprep.mubr.msk.bf16.mxu1 %vm7203_vm0, %v10166_v40 }
 0x498   : > { %6453 = vmatmul.mubr.msk.bf16.gmra.mrb[216].mxu0 %vm1791_vm6, %v4296_v34  ;;  %v6790_v34 = vld [vmem:[#allocation16 + $0x18] sm:$0xff]  }
 0x499   : > { %6476 = vmatprep.mubr.msk.bf16.mxu0 %vm7203_vm0, %v10166_v40 }
 0x49a   : > { %6381 = vmatmul.mubr.msk.bf16.gmra.mrb[188].mxu1 %vm1791_vm6, %v3920_v10  ;;  %v6791_v10 = vld [vmem:[#allocation16] sm:$0xff]  }
 0x49b   : > { %6412 = vmatprep.mubr.msk.bf16.mxu1 %vm7203_vm0, %v10166_v40  ;;  %6473 = vmatpush3.bf16.msra.mxu0 %v6791_v10 }
 0x49c   : > { %6474 = vmatprep.subr.bf16.mxu0 %v10166_v40 }
 0x4a2   : > { %6413 = vmatmul.mubr.msk.bf16.vlgmr.msra.gmra.mrb[192].mxu1 %vm1791_vm6, %v9433_v37  ;;  %v4161_v37 = vsel %vm1718_vm7, %v9496_v47, %v4160_v32 }
 0x4a3   : > { %6416 = vmatprep.mubr.msk.bf16.mxu1 %vm7203_vm0, %v10166_v40  ;;  %6457 = vmatpush3.bf16.msra.mxu1 %v6789_v45 }
 0x4a4   : > { %6458 = vmatprep.subr.bf16.mxu1 %v10166_v40 }
 0x4a7   : > { %6459 = vmatpush3.bf16.msra.mxu1 %v6790_v34 }
 0x4a8   : > { %6488 = vmatprep.subr.bf16.mxu1 %v10166_v40 }
 0x4aa   : > { %6417 = vmatmul.mubr.msk.bf16.gmra.mrb[196].mxu1 %vm1791_vm6, %v9462_v6  ;;  %v4162_v6 = vshrl.u32 %v9484_v50, 16 }
 0x4ab   : > { %6420 = vmatprep.mubr.msk.bf16.mxu1 %vm7203_vm0, %v10166_v40 }
 0x4ac   : > { %v4164_v13 = vor.u32 %v4162_v6, %v4160_v32 }
 0x4ae   : > { %v4169_v41 = vsel %vm1718_vm7, %v4164_v13, %v4168_v30 }
 0x4b2   : > { %6421 = vmatmul.mubr.msk.bf16.gmra.mrb[200].mxu1 %vm1791_vm6, %v9494_v62 }
 0x4b3   : > { %6424 = vmatprep.mubr.msk.bf16.mxu1 %vm7203_vm0, %v10166_v40 }
 0x4ba   : > { %6425 = vmatmul.mubr.msk.bf16.gmra.mrb[204].mxu1 %vm1791_vm6, %v4161_v37 }
 0x4bb   : > { %6428 = vmatprep.mubr.msk.bf16.mxu1 %vm7203_vm0, %v10166_v40 }
 0x4c2   : > { %6429 = vmatmul.mubr.msk.bf16.gmra.mrb[208].mxu1 %vm1791_vm6, %v4169_v41 }
 0x4c3   : > { %6460 = vmatprep.mubr.msk.bf16.mxu1 %vm7203_vm0, %v10166_v40 }
 0x4d3   : > { %v3553_v62 = vpop.f32.mrb[140].mxu0 }
 0x4d4   : > { %v6294_v25 = vpop.f32.mrb[141].mxu0 }
 0x4d5   : > { %v3337_v39 = vpop.f32.mrb[112].mxu1  ;;  %v3556_v47 = vpop.f32.mrb[142].mxu0 }
 0x4d6   : > { %v6246_v17 = vpop.f32.mrb[113].mxu1  ;;  %v6295_v57 = vpop.f32.mrb[143].mxu0 }
 0x4d7   : > { %v3340_v56 = vpop.f32.mrb[114].mxu1 }
 0x4d8   : > { %v6247_v60 = vpop.f32.mrb[115].mxu1 }
 0x4db   : > { %v9681_v44 = vpop.f32.mrb[144].mxu0 }
 0x4dc   : > { %v6298_v50 = vpop.f32.mrb[145].mxu0 }
 0x4dd   : > { %v3345_v26 = vpop.f32.mrb[116].mxu1  ;;  %v3564_v58 = vpop.f32.mrb[146].mxu0 }
 0x4de   : > { %v6250_v7 = vpop.f32.mrb[117].mxu1  ;;  %v6299_v24 = vpop.f32.mrb[147].mxu0 }
 0x4df   : > { %v3348_v28 = vpop.f32.mrb[118].mxu1 }
 0x4e0   : > { %v6251_v27 = vpop.f32.mrb[119].mxu1 }
 0x4e3   : > { %v9683_v51 = vpop.f32.mrb[148].mxu0 }
 0x4e4   : > { %v6302_v48 = vpop.f32.mrb[149].mxu0 }
 0x4e5   : > { %v3353_v46 = vpop.f32.mrb[120].mxu1  ;;  %v9685_v23 = vpop.f32.mrb[150].mxu0 }
 0x4e6   : > { %v6254_v12 = vpop.f32.mrb[121].mxu1  ;;  %v6303_v49 = vpop.f32.mrb[151].mxu0 }
 0x4e7   : > { %v3356_v53 = vpop.f32.mrb[122].mxu1 }
 0x4e8   : > { %v6255_v59 = vpop.f32.mrb[123].mxu1 }
 0x4eb   : > { %v9687_v42 = vpop.f32.mrb[152].mxu0 }
 0x4ec   : > { %v6306_v9 = vpop.f32.mrb[153].mxu0 }
 0x4ed   : > { %v9690_v0 = vpop.f32.mrb[124].mxu1  ;;  %v9692_v63 = vpop.f32.mrb[154].mxu0 }
 0x4ee   : > { %v6258_v29 = vpop.f32.mrb[125].mxu1  ;;  %v6307_v11 = vpop.f32.mrb[155].mxu0 }
 0x4ef   : > { %v9694_v15 = vpop.f32.mrb[126].mxu1 }
 0x4f0   : > { %v6259_v16 = vpop.f32.mrb[127].mxu1 }
 0x4f3   : > { %v9696_v54 = vpop.f32.mrb[156].mxu0 }
 0x4f4   : > { %v6310_v19 = vpop.f32.mrb[157].mxu0 }
 0x4f5   : > { %v9698_v5 = vpop.f32.mrb[128].mxu1  ;;  %v9700_v55 = vpop.f32.mrb[158].mxu0 }
 0x4f6   : > { %v6262_v52 = vpop.f32.mrb[129].mxu1  ;;  %v6311_v14 = vpop.f32.mrb[159].mxu0 }
 0x4f7   : > { %v9702_v22 = vpop.f32.mrb[130].mxu1 }
 0x4f8   : > { %v6263_v38 = vpop.f32.mrb[131].mxu1 }
 0x4fb   : > { %v9704_v1 = vpop.f32.mrb[160].mxu0 }
 0x4fc   : > { %v6342_v33 = vpop.f32.mrb[161].mxu0 }
 0x4fd   : > { %v3432_v35 = vpop.f32.mrb[132].mxu1  ;;  %v9706_v31 = vpop.f32.mrb[162].mxu0 }
 0x4fe   : > { %v3433_v20 = vadd.f32 %v3432_v35, %v3337_v39  ;;  %v6270_v61 = vpop.f32.mrb[133].mxu1  ;;  %v6343_v36 = vpop.f32.mrb[163].mxu0 }
 0x4ff   : > { %v3435_v43 = vpop.f32.mrb[134].mxu1 }
 0x500   : > { %v3436_v8 = vadd.f32 %v3435_v43, %v3340_v56  ;;  %v6271_v3 = vpop.f32.mrb[135].mxu1  ;;  %v9708_v21 = vadd.f32 %v3553_v62, %v3433_v20 }
 0x502   : > { %v9710_v2 = vadd.f32 %v3556_v47, %v3436_v8  ;;  %v6792_v47 = vld [vmem:[#allocation16 + $0x8] sm:$0xff]  }
 0x503   : > { %v9712_v18 = vpop.f32.mrb[164].mxu0  ;;  %6475 = vmatpush3.bf16.msra.mxu0 %v6792_v47 }
 0x504   : > { %v6346_v32 = vpop.f32.mrb[165].mxu0  ;;  %6504 = vmatprep.subr.bf16.mxu0 %v10166_v40 }
 0x505   : > { %v3440_v4 = vpop.f32.mrb[136].mxu1  ;;  %v9714_v37 = vpop.f32.mrb[166].mxu0 }
 0x506   : > { %v3441_v6 = vadd.f32 %v3440_v4, %v3345_v26  ;;  %v6274_v30 = vpop.f32.mrb[137].mxu1  ;;  %v6347_v13 = vpop.f32.mrb[167].mxu0 }
 0x507   : > { %v3443_v41 = vpop.f32.mrb[138].mxu1 }
 0x508   : > { %v3444_v62 = vadd.f32 %v3443_v41, %v3348_v28  ;;  %v6275_v25 = vpop.f32.mrb[139].mxu1  ;;  %v3594_v39 = vadd.f32 %v9681_v44, %v3441_v6 }
 0x50a   : > { %v3595_v17 = vadd.f32 %v3564_v58, %v3444_v62 }
 0x50b   : > { %v9719_v57 = vpop.f32.mrb[168].mxu0 }
 0x50c   : > { %v6350_v56 = vpop.f32.mrb[169].mxu0 }
 0x50d   : > { %v3448_v60 = vpop.f32.mrb[140].mxu1  ;;  %v9722_v50 = vpop.f32.mrb[170].mxu0 }
 0x50e   : > { %v3449_v7 = vadd.f32 %v3448_v60, %v3353_v46  ;;  %v6278_v26 = vpop.f32.mrb[141].mxu1  ;;  %v6351_v24 = vpop.f32.mrb[171].mxu0 }
 0x50f   : > { %v3451_v27 = vpop.f32.mrb[142].mxu1 }
 0x510   : > { %v3452_v48 = vadd.f32 %v3451_v27, %v3356_v53  ;;  %v6279_v28 = vpop.f32.mrb[143].mxu1  ;;  %v3596_v12 = vadd.f32 %v9683_v51, %v3449_v7 }
 0x512   : > { %v3597_v44 = vadd.f32 %v9685_v23, %v3452_v48 }
 0x513   : > { %v9726_v58 = vpop.f32.mrb[172].mxu0 }
 0x514   : > { %v6354_v49 = vpop.f32.mrb[173].mxu0 }
 0x515   : > { %v3456_v59 = vpop.f32.mrb[144].mxu1  ;;  %v9728_v45 = vpop.f32.mrb[174].mxu0 }
 0x516   : > { %v3457_v9 = vadd.f32 %v3456_v59, %v9690_v0  ;;  %v6282_v29 = vpop.f32.mrb[145].mxu1  ;;  %v6355_v11 = vpop.f32.mrb[175].mxu0 }
 0x517   : > { %v3459_v46 = vpop.f32.mrb[146].mxu1 }
 0x518   : > { %v3460_v16 = vadd.f32 %v3459_v46, %v9694_v15  ;;  %v6283_v19 = vpop.f32.mrb[147].mxu1  ;;  %v3598_v53 = vadd.f32 %v9687_v42, %v3457_v9 }
 0x51a   : > { %v3599_v51 = vadd.f32 %v9692_v63, %v3460_v16 }
 0x51b   : > { %v9734_v52 = vpop.f32.mrb[176].mxu0 }
 0x51c   : > { %v6358_v23 = vpop.f32.mrb[177].mxu0 }
 0x51d   : > { %v3464_v14 = vpop.f32.mrb[148].mxu1  ;;  %v9736_v38 = vpop.f32.mrb[178].mxu0 }
 0x51e   : > { %v3465_v33 = vadd.f32 %v3464_v14, %v9698_v5  ;;  %v6286_v35 = vpop.f32.mrb[149].mxu1  ;;  %v6359_v0 = vpop.f32.mrb[179].mxu0 }
 0x51f   : > { %v3467_v20 = vpop.f32.mrb[150].mxu1 }
 0x520   : > { %v3468_v61 = vadd.f32 %v3467_v20, %v9702_v22  ;;  %v6287_v36 = vpop.f32.mrb[151].mxu1  ;;  %v3600_v15 = vadd.f32 %v9696_v54, %v3465_v33 }
 0x522   : > { %v3601_v42 = vadd.f32 %v9700_v55, %v3468_v61 }
 0x523   : > { %v9742_v43 = vpop.f32.mrb[180].mxu0 }
 0x524   : > { %v6390_v63 = vpop.f32.mrb[181].mxu0 }
 0x525   : > { %v3690_v8 = vpop.f32.mrb[152].mxu1  ;;  %v9744_v3 = vpop.f32.mrb[182].mxu0 }
 0x526   : > { %v3729_v34 = vadd.f32 %v3690_v8, %v9708_v21  ;;  %v6318_v10 = vpop.f32.mrb[153].mxu1  ;;  %v6391_v5 = vpop.f32.mrb[183].mxu0 }
 0x527   : > { %v3693_v32 = vpop.f32.mrb[154].mxu1 }
 0x528   : > { %v3730_v4 = vadd.f32 %v3693_v32, %v9710_v2  ;;  %v6319_v6 = vpop.f32.mrb[155].mxu1  ;;  %v3896_v22 = vadd.f32 %v9704_v1, %v3729_v34 }
 0x52a   : > { %v3897_v54 = vadd.f32 %v9706_v31, %v3730_v4 }
 0x52b   : > { %v9750_v30 = vpop.f32.mrb[184].mxu0 }
 0x52c   : > { %v6394_v55 = vpop.f32.mrb[185].mxu0 }
 0x52d   : > { %v3698_v13 = vpop.f32.mrb[156].mxu1  ;;  %v9752_v41 = vpop.f32.mrb[186].mxu0 }
 0x52e   : > { %v3731_v62 = vadd.f32 %v3698_v13, %v3594_v39  ;;  %v6322_v25 = vpop.f32.mrb[157].mxu1  ;;  %v6395_v47 = vpop.f32.mrb[187].mxu0 }
 0x52f   : > { %v3701_v21 = vpop.f32.mrb[158].mxu1 }
 0x530   : > { %v3732_v56 = vadd.f32 %v3701_v21, %v3595_v17  ;;  %v6323_v60 = vpop.f32.mrb[159].mxu1  ;;  %v3898_v7 = vadd.f32 %v9712_v18, %v3731_v62 }
 0x532   : > { %v3899_v2 = vadd.f32 %v9714_v37, %v3732_v56 }
 0x533   : > { %v9756_v26 = vpop.f32.mrb[188].mxu0 }
 0x534   : > { %v6398_v1 = vpop.f32.mrb[189].mxu0 }
 0x535   : > { %v3706_v31 = vpop.f32.mrb[160].mxu1  ;;  %v9758_v24 = vpop.f32.mrb[190].mxu0 }
 0x536   : > { %v3733_v27 = vadd.f32 %v3706_v31, %v3596_v12  ;;  %v6326_v48 = vpop.f32.mrb[161].mxu1  ;;  %v6399_v28 = vpop.f32.mrb[191].mxu0 }
 0x537   : > { %v3709_v49 = vpop.f32.mrb[162].mxu1 }
 0x538   : > { %v3734_v39 = vadd.f32 %v3709_v49, %v3597_v44  ;;  %v6327_v59 = vpop.f32.mrb[163].mxu1  ;;  %v3900_v9 = vadd.f32 %v9719_v57, %v3733_v27 }
 0x53a   : > { %v3901_v17 = vadd.f32 %v9722_v50, %v3734_v39 }
 0x53b   : > { %v9762_v29 = vpop.f32.mrb[192].mxu0 }
 0x53c   : > { %v6402_v18 = vpop.f32.mrb[193].mxu0 }
 0x53d   : > { %v3714_v37 = vpop.f32.mrb[164].mxu1  ;;  %v9764_v11 = vpop.f32.mrb[194].mxu0 }
 0x53e   : > { %v3735_v46 = vadd.f32 %v3714_v37, %v3598_v53  ;;  %v6330_v16 = vpop.f32.mrb[165].mxu1  ;;  %v6403_v19 = vpop.f32.mrb[195].mxu0 }
 0x53f   : > { %v3717_v23 = vpop.f32.mrb[166].mxu1 }
 0x540   : > { %v3736_v12 = vadd.f32 %v3717_v23, %v3599_v51  ;;  %v6331_v14 = vpop.f32.mrb[167].mxu1  ;;  %v3902_v33 = vadd.f32 %v9726_v58, %v3735_v46 }
 0x542   : > { %v3903_v44 = vadd.f32 %v9728_v45, %v3736_v12 }
 0x543   : > { %v9768_v35 = vpop.f32.mrb[196].mxu0 }
 0x544   : > { %v6406_v57 = vpop.f32.mrb[197].mxu0 }
 0x545   : > { %v3722_v50 = vpop.f32.mrb[168].mxu1  ;;  %v9770_v0 = vpop.f32.mrb[198].mxu0 }
 0x546   : > { %v3737_v20 = vadd.f32 %v3722_v50, %v3600_v15  ;;  %v6334_v61 = vpop.f32.mrb[169].mxu1  ;;  %v6407_v36 = vpop.f32.mrb[199].mxu0 }
 0x547   : > { %v3725_v63 = vpop.f32.mrb[170].mxu1 }
 0x548   : > { %v3738_v53 = vadd.f32 %v3725_v63, %v3601_v42  ;;  %v6335_v8 = vpop.f32.mrb[171].mxu1  ;;  %v3904_v34 = vadd.f32 %v9734_v52, %v3737_v20 }
 0x54a   : > { %v3905_v51 = vadd.f32 %v9736_v38, %v3738_v53 }
 0x54b   : > { %v9774_v10 = vpop.f32.mrb[200].mxu0 }
 0x54c   : > { %v6438_v58 = vpop.f32.mrb[201].mxu0 }
 0x54d   : > { %v3982_v45 = vpop.f32.mrb[172].mxu1  ;;  %v9776_v5 = vpop.f32.mrb[202].mxu0 }
 0x54e   : > { %v4021_v32 = vadd.f32 %v3982_v45, %v3896_v22  ;;  %v6366_v4 = vpop.f32.mrb[173].mxu1  ;;  %v6439_v6 = vpop.f32.mrb[203].mxu0 }
 0x54f   : > { %v3985_v55 = vpop.f32.mrb[174].mxu1  ;;  %v9814_v6 = vld [vmem:[#allocation14] ss:$0 sm:$0xff] }
 0x550   : > { %v4022_v15 = vadd.f32 %v3985_v55, %v3897_v54  ;;  %v6367_v13 = vpop.f32.mrb[175].mxu1  ;;  %v4132_v62 = vadd.f32 %v9742_v43, %v4021_v32 }
 0x552   : > { %v4133_v42 = vadd.f32 %v9744_v3, %v4022_v15 }
 0x553   : > { %v9780_v25 = vpop.f32.mrb[204].mxu0 }
 0x554   : > { %v6442_v52 = vpop.f32.mrb[205].mxu0 }
 0x555   : > { %v3990_v38 = vpop.f32.mrb[176].mxu1  ;;  %v9782_v47 = vpop.f32.mrb[206].mxu0 }
 0x556   : > { %v4023_v21 = vadd.f32 %v3990_v38, %v3898_v7  ;;  %v6370_v56 = vpop.f32.mrb[177].mxu1  ;;  %v6443_v60 = vpop.f32.mrb[207].mxu0 }
 0x557   : > { %v3993_v1 = vpop.f32.mrb[178].mxu1 }
 0x558   : > { %v4024_v22 = vadd.f32 %v3993_v1, %v3899_v2  ;;  %v6371_v31 = vpop.f32.mrb[179].mxu1  ;;  %v4134_v27 = vadd.f32 %v9750_v30, %v4023_v21  ;;  %v6794_v1 = vld [vmem:[#allocation16 + $0x30] sm:$0xff]  }
 0x55a   : > { %v4135_v54 = vadd.f32 %v9752_v41, %v4024_v22 }
 0x55b   : > { %v9786_v48 = vpop.f32.mrb[208].mxu0 }
 0x55c   : > { %v6446_v43 = vpop.f32.mrb[209].mxu0 }
 0x55d   : > { %v3998_v3 = vpop.f32.mrb[180].mxu1  ;;  %v9788_v28 = vpop.f32.mrb[210].mxu0 }
 0x55e   : > { %v4025_v49 = vadd.f32 %v3998_v3, %v3900_v9  ;;  %v6374_v39 = vpop.f32.mrb[181].mxu1  ;;  %v6447_v59 = vpop.f32.mrb[211].mxu0 }
 0x55f   : > { %v4001_v18 = vpop.f32.mrb[182].mxu1 }
 0x560   : > { %v4026_v7 = vadd.f32 %v4001_v18, %v3901_v17  ;;  %v6375_v37 = vpop.f32.mrb[183].mxu1  ;;  %v4136_v46 = vadd.f32 %v9756_v26, %v4025_v49 }
 0x562   : > { %v9792_v2 = vadd.f32 %v9758_v24, %v4026_v7 }
 0x563   : > { %v9794_v30 = vpop.f32.mrb[212].mxu0 }
 0x564   : > { %v6450_v41 = vpop.f32.mrb[213].mxu0 }
 0x565   : > { %v4006_v16 = vpop.f32.mrb[184].mxu1  ;;  %v9796_v19 = vpop.f32.mrb[214].mxu0 }
 0x566   : > { %v4027_v23 = vadd.f32 %v4006_v16, %v3902_v33  ;;  %v6378_v12 = vpop.f32.mrb[185].mxu1  ;;  %v6451_v14 = vpop.f32.mrb[215].mxu0 }
 0x567   : > { %v4009_v9 = vpop.f32.mrb[186].mxu1 }
 0x568   : > { %v4028_v57 = vadd.f32 %v4009_v9, %v3903_v44  ;;  %v6379_v50 = vpop.f32.mrb[187].mxu1  ;;  %v9799_v17 = vadd.f32 %v9762_v29, %v4027_v23 }
 0x56a   : > { %v9802_v26 = vadd.f32 %v9764_v11, %v4028_v57 }
 0x56b   : > { %v9804_v24 = vpop.f32.mrb[216].mxu0 }
 0x56c   : > { %v6454_v20 = vpop.f32.mrb[217].mxu0 }
 0x56d   : > { %v4014_v61 = vpop.f32.mrb[188].mxu1  ;;  %v9806_v36 = vpop.f32.mrb[218].mxu0 }
 0x56e   : > { %v4029_v63 = vadd.f32 %v4014_v61, %v3904_v34  ;;  %v6382_v53 = vpop.f32.mrb[189].mxu1  ;;  %v6455_v33 = vpop.f32.mrb[219].mxu0 }
 0x56f   : > { %v4017_v8 = vpop.f32.mrb[190].mxu1  ;;  %v6793_v53 = vld [vmem:[#allocation16 + $0x20] sm:$0xff]  }
 0x570   : > { %v4030_v58 = vadd.f32 %v4017_v8, %v3905_v51  ;;  %v6383_v45 = vpop.f32.mrb[191].mxu1  ;;  %v9809_v44 = vadd.f32 %v9768_v35, %v4029_v63 }
 0x572   : > { %v9812_v29 = vadd.f32 %v9770_v0, %v4030_v58 }
 0x575   : > { %v4231_v11 = vpop.f32.mrb[192].mxu1 }
 0x576   : > { %v4270_v32 = vadd.f32 %v4231_v11, %v4132_v62  ;;  %v6414_v4 = vpop.f32.mrb[193].mxu1 }
 0x577   : > { %v4234_v55 = vpop.f32.mrb[194].mxu1 }
 0x578   : > { %v4397_v15 = vadd.f32 %v9774_v10, %v4270_v32  ;;  %v4271_v34 = vadd.f32 %v4234_v55, %v4133_v42  ;;  %v6415_v13 = vpop.f32.mrb[195].mxu1 }
 0x579   : > { %v6796_v13 = vld [vmem:[#allocation16 + $0x28] sm:$0xff]  }
 0x57a   : > { %v4414_v52 = vadd.f32 %v9814_v6, %v4397_v15  ;;  %v4398_v51 = vadd.f32 %v9776_v5, %v4271_v34  ;;  %v6795_v5 = vld [vmem:[#allocation16 + $0x38] sm:$0xff]  }
 0x57c   : > { %v4415_v35 = vadd.f32 %v9814_v6, %v4398_v51  ;;  %v4424_v21 = vmax.f32 %v4414_v52, 0.0 }
 0x57d   : > { %v4239_v38 = vpop.f32.mrb[196].mxu1 }
 0x57e   : > { %v4425_v0 = vmax.f32 %v4415_v35, 0.0  ;;  %v4272_v56 = vadd.f32 %v4239_v38, %v4134_v27  ;;  %v6418_v60 = vpop.f32.mrb[197].mxu1 }
 0x57f   : > { %v4242_v62 = vpop.f32.mrb[198].mxu1 }
 0x580   : > { %v4434_v22 = vpack.c.bf16 %v4425_v0, %v4424_v21  ;;  %v4399_v31 = vadd.f32 %v9780_v25, %v4272_v56  ;;  %v4273_v43 = vadd.f32 %v4242_v62, %v4135_v54  ;;  %v6419_v10 = vpop.f32.mrb[199].mxu1 }
 0x582   : > { %v4416_v42 = vadd.f32 %v9814_v6, %v4399_v31  ;;  %v4400_v3 = vadd.f32 %v9782_v47, %v4273_v43  ;;  %6477 = vmatmul.mubr.msk.bf16.vlgmr.msra.gmra.mrb[220].mxu0 %vm1791_vm6, %v4434_v22  ;;  %v4449_v27 = vshll.u32 %v4434_v22, 16  ;;  %v4447_v14 = vshrl.u32 %v4434_v22, 16 }
 0x583   : > { %6480 = vmatprep.mubr.msk.bf16.mxu0 %vm7203_vm0, %v10166_v40  ;;  %6505 = vmatpush3.bf16.msra.mxu0 %v6794_v1  ;;  %v4635_v50 = vrot.slane %v4434_v22, 1 }
 0x584   : > { %v4426_v49 = vmax.f32 %v4416_v42, 0.0  ;;  %v4417_v39 = vadd.f32 %v9814_v6, %v4400_v3  ;;  %6506 = vmatprep.subr.bf16.mxu0 %v10166_v40  ;;  %v4451_v23 = vrot.slane %v4449_v27, 1 }
 0x585   : > { %v4247_v25 = vpop.f32.mrb[200].mxu1 }
 0x586   : > { %v9828_v54 = vpack.c.bf16 %v4426_v49, %v4425_v0  ;;  %v4427_v59 = vmax.f32 %v4417_v39, 0.0  ;;  %v4274_v18 = vadd.f32 %v4247_v25, %v4136_v46  ;;  %v6422_v7 = vpop.f32.mrb[201].mxu1  ;;  %v4452_v61 = vor.u32 %v4451_v23, %v4447_v14  ;;  %v6798_v39 = vld [vmem:[#allocation16 + $0x50] sm:$0xff]  }
 0x587   : > { %v4250_v47 = vpop.f32.mrb[202].mxu1  ;;  %6507 = vmatpush3.bf16.msra.mxu0 %v6795_v5 }
 0x588   : > { %v4435_v37 = vpack.c.bf16 %v4427_v59, %v4426_v49  ;;  %v4401_v41 = vadd.f32 %v9786_v48, %v4274_v18  ;;  %v6423_v16 = vpop.f32.mrb[203].mxu1  ;;  %6536 = vmatprep.subr.bf16.mxu0 %v10166_v40  ;;  %v4275_v12 = vadd.f32 %v4250_v47, %v9792_v2  ;;  %v4738_v49 = vrot.slane %v9828_v54, 2 }
 0x58a   : > { %v4418_v9 = vadd.f32 %v9814_v6, %v4401_v41  ;;  %6481 = vmatmul.mubr.msk.bf16.gmra.mrb[224].mxu0 %vm1791_vm6, %v4435_v37  ;;  %v4454_v57 = vshll.u32 %v4435_v37, 16  ;;  %v4636_v46 = vrot.slane %v4435_v37, 1  ;;  %v4402_v20 = vadd.f32 %v9788_v28, %v4275_v12  ;;  %v6799_v12 = vld [vmem:[#allocation16 + $0x58] sm:$0xff]  }
 0x58b   : > { %6484 = vmatprep.mubr.msk.bf16.mxu0 %vm7203_vm0, %v10166_v40  ;;  %v4458_v35 = vshrl.u32 %v4435_v37, 16 }
 0x58c   : > { %v4428_v48 = vmax.f32 %v4418_v9, 0.0  ;;  %v4456_v63 = vrot.slane %v4454_v57, 1  ;;  %v9839_v33 = vsel %vm703_vm1, %v4635_v50, %v4636_v46  ;;  %v4419_v2 = vadd.f32 %v9814_v6, %v4402_v20 }
 0x58d   : > { %v4255_v8 = vpop.f32.mrb[204].mxu1 }
 0x58e   : > { %v9842_v58 = vpack.c.bf16 %v4428_v48, %v4427_v59  ;;  %v4276_v45 = vadd.f32 %v4255_v8, %v9799_v17  ;;  %v6426_v11 = vpop.f32.mrb[205].mxu1  ;;  %v4457_v28 = vsel %vm1718_vm7, %v4452_v61, %v4456_v63  ;;  %v4429_v32 = vmax.f32 %v4419_v2, 0.0 }
 0x58f   : > { %v4258_v4 = vpop.f32.mrb[206].mxu1  ;;  %6461 = vmatmul.mubr.msk.bf16.vlgmr.msra.gmra.mrb[212].mxu1 %vm1791_vm6, %v4457_v28  ;;  %v4460_v0 = vor.u32 %v4458_v35, %v4456_v63  ;;  %v6797_v28 = vld [vmem:[#allocation16 + $0x40] sm:$0xff]   ;;  %v6803_v35 = vld [vmem:[#allocation16 + $0x78] sm:$0xff]  }
 0x590   : > { %v4403_v55 = vadd.f32 %v9794_v30, %v4276_v45  ;;  %v4277_v15 = vadd.f32 %v4258_v4, %v9802_v26  ;;  %6489 = vmatpush3.bf16.msra.mxu1 %v6793_v53  ;;  %v6427_v34 = vpop.f32.mrb[207].mxu1  ;;  %6464 = vmatprep.mubr.msk.bf16.mxu1 %vm7203_vm0, %v10166_v40  ;;  %v4436_v52 = vpack.c.bf16 %v4429_v32, %v4428_v48  ;;  %v4739_v31 = vrot.slane %v9842_v58, 2 }
 0x591   : > { %6490 = vmatprep.subr.bf16.mxu1 %v10166_v40  ;;  %v4957_v34 = vrot.slane %v9842_v58, 3 }
 0x592   : > { %v4420_v17 = vadd.f32 %v9814_v6, %v4403_v55  ;;  %v4404_v51 = vadd.f32 %v9796_v19, %v4277_v15  ;;  %6485 = vmatmul.mubr.msk.bf16.gmra.mrb[228].mxu0 %vm1791_vm6, %v4436_v52  ;;  %v4462_v38 = vshll.u32 %v4436_v52, 16  ;;  %v4638_v30 = vrot.slane %v4436_v52, 1  ;;  %v6800_v55 = vld [vmem:[#allocation16 + $0x48] sm:$0xff]  }
 0x593   : > { %6508 = vmatprep.mubr.msk.bf16.mxu0 %vm7203_vm0, %v10166_v40 }
 0x594   : > { %v4430_v21 = vmax.f32 %v4420_v17, 0.0  ;;  %6491 = vmatpush3.bf16.msra.mxu1 %v6796_v13  ;;  %v4464_v56 = vrot.slane %v4462_v38, 1  ;;  %v9859_v60 = vsel %vm703_vm1, %v4636_v46, %v4638_v30  ;;  %v4421_v42 = vadd.f32 %v9814_v6, %v4404_v51  ;;  %v6802_v13 = vld [vmem:[#allocation16 + $0x70] sm:$0xff]  }
 0x595   : > { %v4263_v26 = vpop.f32.mrb[208].mxu1  ;;  %6520 = vmatprep.subr.bf16.mxu1 %v10166_v40  ;;  %v4842_v17 = vshrl.u32 %v9842_v58, 16  ;;  %v4845_v51 = vshll.u32 %v9842_v58, 16  ;;  %v4834_v38 = vshrl.u32 %v9828_v54, 16 }
 0x596   : > { %v4441_v62 = vpack.c.bf16 %v4430_v21, %v4430_v21  ;;  %v9861_v19 = vpack.c.bf16 %v4430_v21, %v4429_v32  ;;  %v4278_v1 = vadd.f32 %v4263_v26, %v9809_v44  ;;  %v6430_v22 = vpop.f32.mrb[209].mxu1  ;;  %v4465_v10 = vsel %vm1718_vm7, %v4460_v0, %v4464_v56 }
 0x597   : > { %v4266_v43 = vpop.f32.mrb[210].mxu1  ;;  %6465 = vmatmul.mubr.msk.bf16.gmra.mrb[216].mxu1 %vm1791_vm6, %v4465_v10  ;;  %v4466_v44 = vshrl.u32 %v4436_v52, 16  ;;  %v4431_v41 = vmax.f32 %v4421_v42, 0.0  ;;  %v4844_v26 = vrot.slane %v4842_v17, 2  ;;  %v4847_v0 = vrot.slane %v4845_v51, 3 }
 0x598   : > { %v4405_v3 = vadd.f32 %v9804_v24, %v4278_v1  ;;  %v4279_v5 = vadd.f32 %v4266_v43, %v9812_v29  ;;  %v6431_v27 = vpop.f32.mrb[211].mxu1  ;;  %6468 = vmatprep.mubr.msk.bf16.mxu1 %vm7203_vm0, %v10166_v40  ;;  %v4470_v25 = vshll.u32 %v4441_v62, 16  ;;  %v4640_v59 = vrot.slane %v4441_v62, 1  ;;  %v6801_v43 = vld [vmem:[#allocation16 + $0x60] sm:$0xff]  }
 0x599   : > { %v4740_v24 = vsel %vm820_vm2, %v4738_v49, %v4739_v31  ;;  %v4468_v29 = vor.u32 %v4466_v44, %v4464_v56  ;;  %v4959_v21 = vrot.slane %v9861_v19, 3  ;;  %v4836_v56 = vrot.slane %v4834_v38, 2  ;;  %v6804_v27 = vld [vmem:[#allocation16 + $0x68] sm:$0xff]  }
 0x59a   : > { %v4422_v18 = vadd.f32 %v9814_v6, %v4405_v3  ;;  %v4406_v7 = vadd.f32 %v9806_v36, %v4279_v5  ;;  %6509 = vmatmul.mubr.msk.bf16.vlgmr.msra.gmra.mrb[232].mxu0 %vm1791_vm6, %v4740_v24  ;;  %v4472_v47 = vrot.slane %v4470_v25, 1  ;;  %v4641_v37 = vsel %vm703_vm1, %v4638_v30, %v4640_v59 }
 0x59b   : > { %6512 = vmatprep.mubr.msk.bf16.mxu0 %vm7203_vm0, %v10166_v40  ;;  %6537 = vmatpush3.bf16.msra.mxu0 %v6798_v39  ;;  %v4741_v36 = vrot.slane %v9861_v19, 2  ;;  %v4837_v30 = vshll.u32 %v9828_v54, 16  ;;  %v4960_v62 = vsel %vm2569_vm8, %v4957_v34, %v4959_v21  ;;  %v4848_v1 = vor.u32 %v4847_v0, %v4844_v26 }
 0x59c   : > { %v4432_v16 = vmax.f32 %v4422_v18, 0.0  ;;  %v4423_v23 = vadd.f32 %v9814_v6, %v4406_v7  ;;  %v4473_v14 = vsel %vm1718_vm7, %v4468_v29, %v4472_v47  ;;  %6538 = vmatprep.subr.bf16.mxu0 %v10166_v40  ;;  %v9888_v6 = vpack.c.bf16 %v4431_v41, %v4431_v41 }
 0x59d   : > { %v4742_v48 = vsel %vm820_vm2, %v4739_v31, %v4741_v36  ;;  %v4854_v22 = vshll.u32 %v9861_v19, 16  ;;  %v5139_v59 = vrot.slane %v4845_v51, 1 }
 0x59e   : > { %v9884_v9 = vpack.c.bf16 %v4432_v16, %v4431_v41  ;;  %v4433_v57 = vmax.f32 %v4423_v23, 0.0  ;;  %v4743_v4 = vrot.slane %v9888_v6, 2  ;;  %v4961_v10 = vrot.slane %v9888_v6, 3 }
 0x59f   : > { %6469 = vmatmul.mubr.msk.bf16.gmra.mrb[220].mxu1 %vm1791_vm6, %v4473_v14  ;;  %6539 = vmatpush3.bf16.msra.mxu0 %v6799_v12  ;;  %v4856_v5 = vrot.slane %v4854_v22, 3  ;;  %v4860_v44 = vshrl.u32 %v9888_v6, 16  ;;  %v4863_v25 = vshll.u32 %v9888_v6, 16  ;;  %v5141_v18 = vrot.slane %v4854_v22, 1  ;;  %v6805_v14 = vld [vmem:[#allocation16 + $0x80] sm:$0xff]  }
 0x5a0   : > { %v5144_v50 = vshll.u32 %v9884_v9, 16  ;;  %v5134_v46 = vpack.c.bf16 %v4433_v57, %v4433_v57  ;;  %v5148_v20 = vshrl.u32 %v9884_v9, 16  ;;  %6492 = vmatprep.mubr.msk.bf16.mxu1 %vm7203_vm0, %v10166_v40  ;;  %6568 = vmatprep.subr.bf16.mxu0 %v10166_v40  ;;  %v5249_v63 = vrot.slane %v9884_v9, 1 }
 0x5a1   : > { %v4744_v15 = vsel %vm820_vm2, %v4741_v36, %v4743_v4  ;;  %v4962_v49 = vsel %vm2569_vm8, %v4959_v21, %v4961_v10  ;;  %v4862_v24 = vrot.slane %v4860_v44, 2  ;;  %v4865_v29 = vrot.slane %v4863_v25, 3  ;;  %v6806_v36 = vld [vmem:[#allocation16 + $0x88] sm:$0xff]  }
 0x5a2   : > { %v9895_v61 = vrot.slane %v5144_v50, 1  ;;  %v5152_v53 = vshll.u32 %v5134_v46, 16  ;;  %v5251_v2 = vrot.slane %v5134_v46, 1  ;;  %6513 = vmatmul.mubr.msk.bf16.gmra.mrb[236].mxu0 %vm1791_vm6, %v4742_v48  ;;  %v5140_v47 = vor.u32 %v5139_v59, %v4842_v17 }
 0x5a3   : > { %6516 = vmatprep.mubr.msk.bf16.mxu0 %vm7203_vm0, %v10166_v40  ;;  %v4866_v41 = vor.u32 %v4865_v29, %v4862_v24  ;;  %v5247_v57 = vrot.slane %v9861_v19, 1  ;;  %v5246_v50 = vrot.slane %v9842_v58, 1 }
 0x5a4   : > { %v5150_v8 = vor.u32 %v5148_v20, %v9895_v61  ;;  %v5154_v45 = vrot.slane %v5152_v53, 1  ;;  %v9903_v11 = vsel %vm703_vm1, %v5249_v63, %v5251_v2 }
 0x5a5   : > { %v5248_v46 = vsel %vm703_vm1, %v5246_v50, %v5247_v57  ;;  %v5250_v6 = vsel %vm703_vm1, %v5247_v57, %v5249_v63 }
 0x5a6   : > { %v9908_v32 = vsel %vm1718_vm7, %v5150_v8, %v5154_v45 }
 0x5a7   : > { %6493 = vmatmul.mubr.msk.bf16.vlgmr.msra.gmra.mrb[224].mxu1 %vm1791_vm6, %v9839_v33  ;;  %v4956_v33 = vrot.slane %v9828_v54, 3  ;;  %v4851_v54 = vshrl.u32 %v9861_v19, 16 }
 0x5a8   : > { %6521 = vmatpush3.bf16.msra.mxu1 %v6797_v28  ;;  %6496 = vmatprep.mubr.msk.bf16.mxu1 %vm7203_vm0, %v10166_v40 }
 0x5a9   : > { %6522 = vmatprep.subr.bf16.mxu1 %v10166_v40  ;;  %v4958_v52 = vsel %vm2569_vm8, %v4956_v33, %v4957_v34  ;;  %v4853_v3 = vrot.slane %v4851_v54, 2  ;;  %v5143_v23 = vor.u32 %v5141_v18, %v4851_v54 }
 0x5aa   : > { %6517 = vmatmul.mubr.msk.bf16.gmra.mrb[240].mxu0 %vm1791_vm6, %v4744_v15 }
 0x5ab   : > { %6540 = vmatprep.mubr.msk.bf16.mxu0 %vm7203_vm0, %v10166_v40  ;;  %v4857_v39 = vor.u32 %v4856_v5, %v4853_v3  ;;  %v5147_v12 = vsel %vm1718_vm7, %v5143_v23, %v9895_v61 }
 0x5ac   : > { %6523 = vmatpush3.bf16.msra.mxu1 %v6800_v55 }
 0x5ad   : > { %6552 = vmatprep.subr.bf16.mxu1 %v10166_v40  ;;  %v4858_v7 = vsel %vm2357_vm9, %v4848_v1, %v4857_v39  ;;  %v4867_v16 = vsel %vm2357_vm9, %v4857_v39, %v4866_v41 }
 0x5af   : > { %6497 = vmatmul.mubr.msk.bf16.gmra.mrb[228].mxu1 %vm1791_vm6, %v9859_v60  ;;  %v4839_v60 = vrot.slane %v4837_v30, 3 }
 0x5b0   : > { %6500 = vmatprep.mubr.msk.bf16.mxu1 %vm7203_vm0, %v10166_v40 }
 0x5b1   : > { %v4840_v31 = vor.u32 %v4839_v60, %v4836_v56 }
 0x5b2   : > { %6541 = vmatmul.mubr.msk.bf16.vlgmr.msra.gmra.mrb[244].mxu0 %vm1791_vm6, %v4958_v52 }
 0x5b3   : > { %6544 = vmatprep.mubr.msk.bf16.mxu0 %vm7203_vm0, %v10166_v40  ;;  %6569 = vmatpush3.bf16.msra.mxu0 %v6802_v13  ;;  %v4849_v42 = vsel %vm2357_vm9, %v4840_v31, %v4848_v1 }
 0x5b4   : > { %6570 = vmatprep.subr.bf16.mxu0 %v10166_v40 }
 0x5b7   : > { %6501 = vmatmul.mubr.msk.bf16.gmra.mrb[232].mxu1 %vm1791_vm6, %v4641_v37  ;;  %6571 = vmatpush3.bf16.msra.mxu0 %v6803_v35  ;;  %v5142_v37 = vsel %vm1718_vm7, %v5140_v47, %v5141_v18 }
 0x5b8   : > { %6524 = vmatprep.mubr.msk.bf16.mxu1 %vm7203_vm0, %v10166_v40 }
 0x5ba   : > { %6545 = vmatmul.mubr.msk.bf16.gmra.mrb[248].mxu0 %vm1791_vm6, %v4960_v62 }
 0x5bb   : > { %6548 = vmatprep.mubr.msk.bf16.mxu0 %vm7203_vm0, %v10166_v40 }
 0x5bf   : > { %6525 = vmatmul.mubr.msk.bf16.vlgmr.msra.gmra.mrb[236].mxu1 %vm1791_vm6, %v4849_v42 }
 0x5c0   : > { %6553 = vmatpush3.bf16.msra.mxu1 %v6801_v43  ;;  %6528 = vmatprep.mubr.msk.bf16.mxu1 %vm7203_vm0, %v10166_v40 }
 0x5c1   : > { %6554 = vmatprep.subr.bf16.mxu1 %v10166_v40 }
 0x5c2   : > { %6549 = vmatmul.mubr.msk.bf16.gmra.mrb[252].mxu0 %vm1791_vm6, %v4962_v49 }
 0x5c3   : > { %6572 = vmatprep.mubr.msk.bf16.mxu0 %vm7203_vm0, %v10166_v40 }
 0x5c4   : > { %6555 = vmatpush3.bf16.msra.mxu1 %v6804_v27 }
 0x5c5   : > { %6584 = vmatprep.subr.bf16.mxu1 %v10166_v40 }
 0x5c7   : > { %6529 = vmatmul.mubr.msk.bf16.gmra.mrb[240].mxu1 %vm1791_vm6, %v4858_v7 }
 0x5c8   : > { %6532 = vmatprep.mubr.msk.bf16.mxu1 %vm7203_vm0, %v10166_v40 }
 0x5ca   : > { %6573 = vmatmul.mubr.msk.bf16.vlgmr.msra.gmra.mrb[0].mxu0 %vm1791_vm6, %v5142_v37 }
 0x5cb   : > { %6576 = vmatprep.mubr.msk.bf16.mxu0 %vm7203_vm0, %v10166_v40 }
 0x5cf   : > { %6533 = vmatmul.mubr.msk.bf16.gmra.mrb[244].mxu1 %vm1791_vm6, %v4867_v16 }
 0x5d0   : > { %6556 = vmatprep.mubr.msk.bf16.mxu1 %vm7203_vm0, %v10166_v40 }
 0x5d2   : > { %6577 = vmatmul.mubr.msk.bf16.gmra.mrb[4].mxu0 %vm1791_vm6, %v5147_v12 }
 0x5d3   : > { %6580 = vmatprep.mubr.msk.bf16.mxu0 %vm7203_vm0, %v10166_v40 }
 0x5d7   : > { %6557 = vmatmul.mubr.msk.bf16.vlgmr.msra.gmra.mrb[248].mxu1 %vm1791_vm6, %v9842_v58 }
 0x5d8   : > { %6585 = vmatpush3.bf16.msra.mxu1 %v6805_v14  ;;  %6560 = vmatprep.mubr.msk.bf16.mxu1 %vm7203_vm0, %v10166_v40 }
 0x5d9   : > { %6586 = vmatprep.subr.bf16.mxu1 %v10166_v40 }
 0x5da   : > { %6581 = vmatmul.mubr.msk.bf16.gmra.mrb[8].mxu0 %vm1791_vm6, %v9908_v32 }
 0x5dc   : > { %6587 = vmatpush3.bf16.msra.mxu1 %v6806_v36 }
 0x5df   : > { %6561 = vmatmul.mubr.msk.bf16.gmra.mrb[252].mxu1 %vm1791_vm6, %v9861_v19 }
 0x5e0   : > { %6564 = vmatprep.mubr.msk.bf16.mxu1 %vm7203_vm0, %v10166_v40 }
 0x5e7   : > { %6565 = vmatmul.mubr.msk.bf16.gmra.mrb[0].mxu1 %vm1791_vm6, %v9884_v9 }
 0x5e8   : > { %6588 = vmatprep.mubr.msk.bf16.mxu1 %vm7203_vm0, %v10166_v40 }
 0x5ef   : > { %6589 = vmatmul.mubr.msk.bf16.vlgmr.msra.gmra.mrb[4].mxu1 %vm1791_vm6, %v5248_v46 }
 0x5f0   : > { %6592 = vmatprep.mubr.msk.bf16.mxu1 %vm7203_vm0, %v10166_v40 }
 0x5f7   : > { %6593 = vmatmul.mubr.msk.bf16.gmra.mrb[8].mxu1 %vm1791_vm6, %v5250_v6 }
 0x5f8   : > { %6596 = vmatprep.mubr.msk.bf16.mxu1 %vm7203_vm0, %v10166_v40 }
 0x5ff   : > { %6597 = vmatmul.mubr.msk.bf16.gmra.mrb[12].mxu1 %vm1791_vm6, %v9903_v11 }
 0x655   : > { %v4604_v58 = vpop.f32.mrb[220].mxu0 }
 0x656   : > { %v6478_v19 = vpop.f32.mrb[221].mxu0 }
 0x657   : > { %v4607_v20 = vpop.f32.mrb[222].mxu0 }
 0x658   : > { %v6479_v48 = vpop.f32.mrb[223].mxu0 }
 0x65d   : > { %v4612_v61 = vpop.f32.mrb[224].mxu0 }
 0x65e   : > { %v6482_v53 = vpop.f32.mrb[225].mxu0 }
 0x65f   : > { %v4615_v2 = vpop.f32.mrb[226].mxu0 }
 0x660   : > { %v6483_v8 = vpop.f32.mrb[227].mxu0 }
 0x662   : > { %v4529_v45 = vpop.f32.mrb[212].mxu1 }
 0x663   : > { %v4605_v9 = vadd.f32 %v4604_v58, %v4529_v45  ;;  %v6462_v28 = vpop.f32.mrb[213].mxu1 }
 0x664   : > { %v4532_v63 = vpop.f32.mrb[214].mxu1 }
 0x665   : > { %v4608_v32 = vadd.f32 %v4607_v20, %v4532_v63  ;;  %v6463_v4 = vpop.f32.mrb[215].mxu1  ;;  %v4620_v55 = vpop.f32.mrb[228].mxu0 }
 0x666   : > { %v6486_v15 = vpop.f32.mrb[229].mxu0 }
 0x667   : > { %v4623_v40 = vpop.f32.mrb[230].mxu0 }
 0x668   : > { %v6487_v34 = vpop.f32.mrb[231].mxu0 }
 0x66a   : > { %v4537_v33 = vpop.f32.mrb[216].mxu1 }
 0x66b   : > { %v4613_v11 = vadd.f32 %v4612_v61, %v4537_v33  ;;  %v6466_v13 = vpop.f32.mrb[217].mxu1 }
 0x66c   : > { %v4540_v52 = vpop.f32.mrb[218].mxu1 }
 0x66d   : > { %v4616_v17 = vadd.f32 %v4615_v2, %v4540_v52  ;;  %v6467_v51 = vpop.f32.mrb[219].mxu1  ;;  %v4800_v35 = vpop.f32.mrb[232].mxu0 }
 0x66e   : > { %v6510_v38 = vpop.f32.mrb[233].mxu0 }
 0x66f   : > { %v4803_v30 = vpop.f32.mrb[234].mxu0 }
 0x670   : > { %v6511_v21 = vpop.f32.mrb[235].mxu0 }
 0x672   : > { %v4545_v26 = vpop.f32.mrb[220].mxu1 }
 0x673   : > { %v4621_v0 = vadd.f32 %v4620_v55, %v4545_v26  ;;  %v6470_v56 = vpop.f32.mrb[221].mxu1 }
 0x674   : > { %v4548_v60 = vpop.f32.mrb[222].mxu1 }
 0x675   : > { %v4624_v62 = vadd.f32 %v4623_v40, %v4548_v60  ;;  %v6471_v1 = vpop.f32.mrb[223].mxu1  ;;  %v4808_v54 = vpop.f32.mrb[236].mxu0 }
 0x676   : > { %v6514_v22 = vpop.f32.mrb[237].mxu0 }
 0x677   : > { %v4811_v31 = vpop.f32.mrb[238].mxu0 }
 0x678   : > { %v6515_v43 = vpop.f32.mrb[239].mxu0 }
 0x67a   : > { %v4697_v10 = vpop.f32.mrb[224].mxu1 }
 0x67b   : > { %v4720_v42 = vadd.f32 %v4697_v10, %v4605_v9  ;;  %v6494_v3 = vpop.f32.mrb[225].mxu1 }
 0x67c   : > { %v4700_v5 = vpop.f32.mrb[226].mxu1 }
 0x67d   : > { %v4721_v27 = vadd.f32 %v4700_v5, %v4608_v32  ;;  %v6495_v49 = vpop.f32.mrb[227].mxu1  ;;  %v4816_v39 = vpop.f32.mrb[240].mxu0  ;;  %v4823_v44 = vadd.f32 %v4800_v35, %v4720_v42 }
 0x67e   : > { %v6518_v25 = vpop.f32.mrb[241].mxu0 }
 0x67f   : > { %v4819_v59 = vpop.f32.mrb[242].mxu0  ;;  %v4824_v18 = vadd.f32 %v4803_v30, %v4721_v27 }
 0x680   : > { %v6519_v7 = vpop.f32.mrb[243].mxu0 }
 0x682   : > { %v4705_v24 = vpop.f32.mrb[228].mxu1 }
 0x683   : > { %v4722_v29 = vadd.f32 %v4705_v24, %v4613_v11  ;;  %v6498_v47 = vpop.f32.mrb[229].mxu1 }
 0x684   : > { %v4708_v37 = vpop.f32.mrb[230].mxu1 }
 0x685   : > { %v4723_v41 = vadd.f32 %v4708_v37, %v4616_v17  ;;  %v6499_v16 = vpop.f32.mrb[231].mxu1  ;;  %v5018_v23 = vpop.f32.mrb[244].mxu0  ;;  %v4825_v12 = vadd.f32 %v4808_v54, %v4722_v29 }
 0x686   : > { %v6542_v14 = vpop.f32.mrb[245].mxu0 }
 0x687   : > { %v5021_v36 = vpop.f32.mrb[246].mxu0  ;;  %v4826_v57 = vadd.f32 %v4811_v31, %v4723_v41 }
 0x688   : > { %v6543_v50 = vpop.f32.mrb[247].mxu0 }
 0x68a   : > { %v4713_v46 = vpop.f32.mrb[232].mxu1 }
 0x68b   : > { %v4724_v6 = vadd.f32 %v4713_v46, %v4621_v0  ;;  %v6502_v58 = vpop.f32.mrb[233].mxu1 }
 0x68c   : > { %v4716_v19 = vpop.f32.mrb[234].mxu1 }
 0x68d   : > { %v4725_v20 = vadd.f32 %v4716_v19, %v4624_v62  ;;  %v6503_v48 = vpop.f32.mrb[235].mxu1  ;;  %v5026_v61 = vpop.f32.mrb[248].mxu0  ;;  %v4827_v53 = vadd.f32 %v4816_v39, %v4724_v6 }
 0x68e   : > { %v6546_v2 = vpop.f32.mrb[249].mxu0 }
 0x68f   : > { %v5029_v8 = vpop.f32.mrb[250].mxu0  ;;  %v4828_v45 = vadd.f32 %v4819_v59, %v4725_v20 }
 0x690   : > { %v6547_v9 = vpop.f32.mrb[251].mxu0 }
 0x692   : > { %v4923_v28 = vpop.f32.mrb[236].mxu1 }
 0x693   : > { %v4946_v63 = vadd.f32 %v4923_v28, %v4823_v44  ;;  %v6526_v32 = vpop.f32.mrb[237].mxu1 }
 0x694   : > { %v4926_v4 = vpop.f32.mrb[238].mxu1 }
 0x695   : > { %v4947_v55 = vadd.f32 %v4926_v4, %v4824_v18  ;;  %v6527_v15 = vpop.f32.mrb[239].mxu1  ;;  %v5034_v40 = vpop.f32.mrb[252].mxu0  ;;  %v5041_v34 = vadd.f32 %v5018_v23, %v4946_v63  ;;  %v5759_v63 = vld [vmem:[#allocation17] ss:$0 sm:$0xff] }
 0x696   : > { %v6550_v33 = vpop.f32.mrb[253].mxu0 }
 0x697   : > { %v5037_v11 = vpop.f32.mrb[254].mxu0  ;;  %v5042_v13 = vadd.f32 %v5021_v36, %v4947_v55 }
 0x698   : > { %v6551_v52 = vpop.f32.mrb[255].mxu0 }
 0x69a   : > { %v4931_v17 = vpop.f32.mrb[240].mxu1 }
 0x69b   : > { %v4948_v51 = vadd.f32 %v4931_v17, %v4825_v12  ;;  %v6530_v35 = vpop.f32.mrb[241].mxu1 }
 0x69c   : > { %v4934_v38 = vpop.f32.mrb[242].mxu1 }
 0x69d   : > { %v4949_v30 = vadd.f32 %v4934_v38, %v4826_v57  ;;  %v6531_v21 = vpop.f32.mrb[243].mxu1  ;;  %v5211_v26 = vpop.f32.mrb[0].mxu0  ;;  %v5043_v0 = vadd.f32 %v5026_v61, %v4948_v51 }
 0x69e   : > { %v6574_v56 = vpop.f32.mrb[1].mxu0 }
 0x69f   : > { %v5214_v60 = vpop.f32.mrb[2].mxu0  ;;  %v5044_v62 = vadd.f32 %v5029_v8, %v4949_v30 }
 0x6a0   : > { %v6575_v1 = vpop.f32.mrb[3].mxu0 }
 0x6a2   : > { %v4939_v54 = vpop.f32.mrb[244].mxu1 }
 0x6a3   : > { %v4950_v22 = vadd.f32 %v4939_v54, %v4827_v53  ;;  %v6534_v31 = vpop.f32.mrb[245].mxu1 }
 0x6a4   : > { %v4942_v43 = vpop.f32.mrb[246].mxu1 }
 0x6a5   : > { %v4951_v10 = vadd.f32 %v4942_v43, %v4828_v45  ;;  %v6535_v42 = vpop.f32.mrb[247].mxu1  ;;  %v5219_v3 = vpop.f32.mrb[4].mxu0  ;;  %v5045_v5 = vadd.f32 %v5034_v40, %v4950_v22 }
 0x6a6   : > { %v6578_v27 = vpop.f32.mrb[5].mxu0 }
 0x6a7   : > { %v5222_v49 = vpop.f32.mrb[6].mxu0  ;;  %v5046_v39 = vadd.f32 %v5037_v11, %v4951_v10 }
 0x6a8   : > { %v6579_v44 = vpop.f32.mrb[7].mxu0 }
 0x6aa   : > { %v5105_v25 = vpop.f32.mrb[248].mxu1 }
 0x6ab   : > { %v5128_v59 = vadd.f32 %v5105_v25, %v5041_v34  ;;  %v6558_v18 = vpop.f32.mrb[249].mxu1 }
 0x6ac   : > { %v5108_v7 = vpop.f32.mrb[250].mxu1 }
 0x6ad   : > { %v5129_v24 = vadd.f32 %v5108_v7, %v5042_v13  ;;  %v6559_v29 = vpop.f32.mrb[251].mxu1  ;;  %v5227_v47 = vpop.f32.mrb[8].mxu0  ;;  %v5234_v37 = vadd.f32 %v5211_v26, %v5128_v59 }
 0x6ae   : > { %v6582_v41 = vpop.f32.mrb[9].mxu0 }
 0x6af   : > { %v5230_v16 = vpop.f32.mrb[10].mxu0  ;;  %v5235_v23 = vadd.f32 %v5214_v60, %v5129_v24 }
 0x6b0   : > { %v6583_v12 = vpop.f32.mrb[11].mxu0 }
 0x6b2   : > { %v5113_v14 = vpop.f32.mrb[252].mxu1 }
 0x6b3   : > { %v5130_v36 = vadd.f32 %v5113_v14, %v5043_v0  ;;  %v6562_v57 = vpop.f32.mrb[253].mxu1 }
 0x6b4   : > { %v5116_v50 = vpop.f32.mrb[254].mxu1 }
 0x6b5   : > { %v5131_v46 = vadd.f32 %v5116_v50, %v5044_v62  ;;  %v6563_v6 = vpop.f32.mrb[255].mxu1  ;;  %v5236_v58 = vadd.f32 %v5219_v3, %v5130_v36 }
 0x6b7   : > { %v5237_v19 = vadd.f32 %v5222_v49, %v5131_v46 }
 0x6ba   : > { %v5121_v20 = vpop.f32.mrb[0].mxu1 }
 0x6bb   : > { %v5132_v48 = vadd.f32 %v5121_v20, %v5045_v5  ;;  %v6566_v61 = vpop.f32.mrb[1].mxu1 }
 0x6bc   : > { %v5124_v53 = vpop.f32.mrb[2].mxu1 }
 0x6bd   : > { %v5133_v2 = vadd.f32 %v5124_v53, %v5046_v39  ;;  %v6567_v8 = vpop.f32.mrb[3].mxu1  ;;  %v5238_v45 = vadd.f32 %v5227_v47, %v5132_v48 }
 0x6bf   : > { %v5239_v9 = vadd.f32 %v5230_v16, %v5133_v2 }
 0x6c2   : > { %v5308_v28 = vpop.f32.mrb[4].mxu1 }
 0x6c3   : > { %v5331_v32 = vadd.f32 %v5308_v28, %v5234_v37  ;;  %v6590_v4 = vpop.f32.mrb[5].mxu1 }
 0x6c4   : > { %v5311_v55 = vpop.f32.mrb[6].mxu1 }
 0x6c5   : > { %v5344_v15 = vadd.f32 %v5759_v63, %v5331_v32  ;;  %v5332_v40 = vadd.f32 %v5311_v55, %v5235_v23  ;;  %v6591_v34 = vpop.f32.mrb[7].mxu1 }
 0x6c7   : > { %v5350_v33 = vmax.f32 %v5344_v15, 0.0  ;;  %v5345_v11 = vadd.f32 %v5759_v63, %v5332_v40 }
 0x6c9   : > { %5356 = vst.msk [vmem:[%s10006_s10] sm:$0xff] %vm1791_vm6, %v5350_v33  ;;  %v5351_v13 = vmax.f32 %v5345_v11, 0.0 }
 0x6ca   : > { %v5316_v52 = vpop.f32.mrb[8].mxu1 }
 0x6cb   : > { %5357 = vst.msk [vmem:[%s10006_s10 + $0x8] sm:$0xff] %vm1791_vm6, %v5351_v13  ;;  %v5333_v17 = vadd.f32 %v5316_v52, %v5236_v58  ;;  %v6594_v51 = vpop.f32.mrb[9].mxu1 }
 0x6cc   : > { %v5319_v35 = vpop.f32.mrb[10].mxu1 }
 0x6cd   : > { %v5346_v38 = vadd.f32 %v5759_v63, %v5333_v17  ;;  %v5334_v30 = vadd.f32 %v5319_v35, %v5237_v19  ;;  %v6595_v21 = vpop.f32.mrb[11].mxu1 }
 0x6cf   : > { %v5352_v26 = vmax.f32 %v5346_v38, 0.0  ;;  %v5347_v0 = vadd.f32 %v5759_v63, %v5334_v30 }
 0x6d1   : > { %5358 = vst.msk [vmem:[%s10006_s10 + $0x10] sm:$0xff] %vm1791_vm6, %v5352_v26  ;;  %v5353_v56 = vmax.f32 %v5347_v0, 0.0 }
 0x6d2   : > { %v5324_v60 = vpop.f32.mrb[12].mxu1 }
 0x6d3   : > { %5359 = vst.msk [vmem:[%s10006_s10 + $0x18] sm:$0xff] %vm1791_vm6, %v5353_v56  ;;  %v5335_v62 = vadd.f32 %v5324_v60, %v5238_v45  ;;  %v6598_v1 = vpop.f32.mrb[13].mxu1 }
 0x6d4   : > { %v5327_v54 = vpop.f32.mrb[14].mxu1 }
 0x6d5   : > { %v5348_v22 = vadd.f32 %v5759_v63, %v5335_v62  ;;  %v5336_v31 = vadd.f32 %v5327_v54, %v5239_v9  ;;  %v6599_v43 = vpop.f32.mrb[15].mxu1 }
 0x6d7   : > { %v5354_v10 = vmax.f32 %v5348_v22, 0.0  ;;  %v5349_v42 = vadd.f32 %v5759_v63, %v5336_v31 }
 0x6d9   : > { %5360 = vst.msk [vmem:[%s10006_s10 + $0x20] sm:$0xff] %vm1791_vm6, %v5354_v10  ;;  %v5355_v3 = vmax.f32 %v5349_v42, 0.0 }
 0x6db   : > { %5361 = vst.msk [vmem:[%s10006_s10 + $0x28] sm:$0xff] %vm1791_vm6, %v5355_v3 }
 0x6dc   : > { %7112 = shalt.err (!%p7109_p0)
}
 0x6dd   : > { %s7113_s28 = scalar_lea.hbm %s10025_s17, 768  ;;  %s7117_s10 = scalar_lea.hbm %s10177_s30, 1536 }
 0x6de   : > { %p7114_p5 = scmp.ne.s32.totalorder %s10025_s17, %s7113_s28  ;;  %p7118_p4 = scmp.lt.u32.totalorder %s10025_s17, %s10177_s30 }
 0x6df   : > { %p7119_p12 = scmp.lt.u32.totalorder %s7117_s10, %s7113_s28  ;;  %p7121_p1 = scmp.lt.u32.totalorder %s7113_s28, %s10025_s17 }
 0x6e0   : > { %p7115_p9 = pnand %p7114_p5, %p10178_p3 }
 0x6e1   : > { %p7120_p13 = por %p7119_p12, %p7118_p4 }
 0x6e2   : > { %p7116_p7 = pneg %p7115_p9 }
 0x6e3   : > { %p7122_p2 = por %p7121_p1, %p7120_p13 }
 0x6e5   : > { %p7123_p8 = pnand %p7122_p2, %p7116_p7 }
 0x6e7   : > { %7126 = shalt.err (!%p7123_p8)
}
 0x6e8   : > { %s7205_s1 = smov 128   ;;  %s7206_s3 = smov 8  }
 0x6e9   : > { %6643 = dma.vmem_to_hbm [thread:$0]  (%p10178_p3), %s10018_s24, 768, %s10025_s17, %s5363_s2, %s7205_s1, %s7205_s1, %s7206_s3  }
 0x6ea PF: > { %s5391_s19 = sand.u32 1, %s7173_s13   ;;  %p10179_p6 = scmp.ne.s32.totalorder %s10126_s12, 0 }
 0x6eb   : > { %p10180_p10 = scmp.ge.s32.totalorder %s7185_s16, 2  ;;  %s5392_s26 = scalar_lea.sflag [#allocation4], %s5391_s19 }
 0x6ed   : > { %p6678_p11 = pnand %p10180_p10, %p10179_p6 }
 0x6ef   : > { %7168 = dma.done.wait (!%p6678_p11), %s5392_s26, 768  }
 0x6f0   : > { %7170 = vsyncadd (!%p6678_p11), %s5392_s26, 4294966528  ;;  %p28_p0 = scmp.ge.s32.totalorder %s7516_s23, 4   ;;  %s10181_s13 = smov %s7177_s14 }
 0x6f1   : > { %s10182_s14 = smov %s7181_s15  ;;  %s10183_s15 = smov %s7528_s22 }
 0x6f2   : > { %s10184_s16 = smov %s7516_s23  ;;  %30 = sbr.rel (!%p28_p0) target bundleno = 15 (0xf), region = 141 }
 0x6f9   :  { %5397 = vsyncpa [#allocation3], 1 }
 0x6fa   :  { %5399 = vsyncpa [#allocation3 + $0x1], 1 }
 0x6fb   :  { %5400 = vsyncpa [#allocation6], 1 }
 0x6fc   :  { %5401 = vsyncpa [#allocation9], 1 }
 0x6fd   :  { %5402 = vsyncpa [#allocation12], 1 }
 0x6fe   :  { %5403 = vsyncpa [#allocation15], 1 }
 0x6ff   :  { %5404 = vsyncpa [#allocation18], 1 }
 0x700   :  { %5405 = vsyncpa [#allocation4], 1 }
 0x701   :  { %5407 = vsyncpa [#allocation4 + $0x1], 1 }

// kernel: othello_forward.3
= control target key start
LH: loop header
LB: loop body
LE: loop exit
PB: predicated region body
PF: predicated region fallthrough
CT: control target
= control target key end

     0   :  { %s5968_s0 = inlined_call_operand.hbm [shape: f32[2,512], index: 0, kind: input, shape index: {}]   ;;  %s5969_s1 = inlined_call_operand.hbm [shape: bf16[512,1024], index: 1, kind: input, shape index: {}]   ;;  %s5970_s2 = inlined_call_operand.hbm [shape: f32[1,1024], index: 2, kind: input, shape index: {}]   ;;  %s5971_s3 = inlined_call_operand.hbm [shape: bf16[1024,512], index: 3, kind: input, shape index: {}]   ;;  %s5972_s4 = inlined_call_operand.hbm [shape: f32[1,512], index: 4, kind: input, shape index: {}]   ;;  %s5973_s5 = inlined_call_operand.hbm [shape: bf16[512,128], index: 5, kind: input, shape index: {}]   ;;  %s5974_s6 = inlined_call_operand.hbm [shape: f32[1,128], index: 6, kind: input, shape index: {}]   ;;  %s5975_s7 = inlined_call_operand.hbm [shape: f32[2,128], index: 7, kind: output, shape index: {0}]   ;;  %s5976_s8 = inlined_call_operand.hbm [shape: f32[2,1], index: 8, kind: output, shape index: {1}]  }
   0x1   :  { %5979 = sst [smem:[#allocation25_spill]] %s5970_s2 }
   0x2   :  { %5980 = sst [smem:[#allocation26_spill]] %s5971_s3 }
   0x3   :  { %14 = vsyncpa [#allocation4], 0 }
   0x4   :  { %16 = vsyncpa [#allocation4 + $0x1], 0 }
   0x5   :  { %17 = vsyncpa [#allocation7], 0 }
   0x6   :  { %19 = vsyncpa [#allocation7 + $0x1], 0 }
   0x7   :  { %20 = vsyncpa [#allocation10], 0 }
   0x8   :  { %21 = vsyncpa [#allocation13], 0 }
   0x9   :  { %22 = vsyncpa [#allocation5], 0 }
   0xa   :  { %23 = vsyncpa [#allocation17], 0  ;;  %s5401_s27 = smov 0   ;;  %s5403_s28 = smov 0  }
   0xb   :  { %s5405_s29 = smov 0   ;;  %s5407_s30 = smov 0  }
   0xc LB: > { %s5339_s9 = smov [#allocation8]   ;;  %s5422_s11 = sadd.s32 4294967295, %s5337_s30   ;;  %s5337_s30 = sphi %s5407_s30, %s6000_s30   ;;  %s5333_s29 = sphi %s5405_s29, %s5999_s29   ;;  %s5329_s28 = sphi %s5403_s28, %s5998_s28   ;;  %s5325_s27 = sphi %s5401_s27, %s5997_s27  }
   0xd   : > { %s246_s10 = sshll.u32 %s5339_s9, 4  ;;  %p3965_p0 = scmp.ge.s32.totalorder %s5337_s30, 1  ;;  %s247_s10 = int_to_ptr.vmem [resolvable:$true] %s246_s10 }
   0xe   : > { %p5977_p1 = scmp.eq.s32.totalorder %s5422_s11, 0  ;;  %p233_p2 = scmp.lt.s32.totalorder %s5337_s30, 3 }
   0xf   : > { %s5340_s13 = smov [#allocation9]   ;;  %s5341_s16 = smov [#allocation12]  }
  0x10   : > { %p5428_p4 = pnand %p3965_p0, %p233_p2  ;;  %s256_s14 = sshll.u32 %s5340_s13, 4  ;;  %s5434_s14 = int_to_ptr.vmem [resolvable:$true] %s256_s14 }
  0x11   : > { %s280_s17 = sshll.u32 %s5341_s16, 4  ;;  %s5983_s2 = sld [smem:[#allocation25_spill]]  ;;  %s5442_s17 = int_to_ptr.vmem [resolvable:$true] %s280_s17 }
  0x12   : > { %s5981_s12 = scalar_select %p5428_p4, 1, 0 }
  0x13   : > { %p4520_p5 = pneg %p5428_p4 }
  0x15   : > { %p5438_p6 = pnand %p4520_p5, %p5977_p1 }
  0x17   : > { %s5027_s20 = scalar_lea.hbm %s5983_s2, 128  ;;  %p5452_p8 = pneg %p5438_p6 }
  0x18   : > { %p5028_p7 = scmp.ne.s32.totalorder %s5983_s2, %s5027_s20  ;;  %p5034_p11 = scmp.lt.u32.totalorder %s5027_s20, %s5983_s2 }
  0x1a   : > { %p5030_p9 = pnand %p5452_p8, %p5028_p7 }
  0x1c   : > { %p5031_p10 = pneg %p5030_p9 }
  0x1e   : > { %p5036_p12 = pnand %p5034_p11, %p5031_p10 }
  0x20   : > { %5039 = shalt.err (!%p5036_p12)
}
  0x21   : > { %s5040_s26 = scalar_lea.vmem %s247_s10, 128  ;;  %p5048_p5 = scmp.lt.s32.totalorder %s247_s10, %s247_s10 }
  0x22   : > { %p5041_p13 = scmp.ne.s32.totalorder %s247_s10, %s5040_s26  ;;  %p5049_p3 = scmp.lt.s32.totalorder %s5040_s26, %s5040_s26 }
  0x24   : > { %p5043_p0 = pnand %p5041_p13, %p5452_p8  ;;  %p5050_p1 = por %p5049_p3, %p5048_p5 }
  0x26   : > { %p5044_p2 = pneg %p5043_p0 }
  0x28   : > { %p5051_p4 = pnand %p5050_p1, %p5044_p2 }
  0x2a   : > { %5054 = shalt.err (!%p5051_p4)
}
  0x2b   : > { %4523 = dma.hbm_to_vmem [thread:$0]  (!%p5438_p6), %s5983_s2, 128, %s247_s10, [#allocation7]  }
  0x2c   : > { %s5985_s3 = sld [smem:[#allocation26_spill]] }
  0x32   : > { %s5055_s19 = scalar_lea.hbm %s5985_s3, 32768 }
  0x33   : > { %p5056_p7 = scmp.ne.s32.totalorder %s5985_s3, %s5055_s19  ;;  %p5062_p1 = scmp.lt.u32.totalorder %s5055_s19, %s5985_s3 }
  0x35   : > { %p5058_p9 = pnand %p5056_p7, %p5452_p8 }
  0x37   : > { %p5059_p3 = pneg %p5058_p9 }
  0x39   : > { %p5064_p4 = pnand %p5062_p1, %p5059_p3 }
  0x3b   : > { %5067 = shalt.err (!%p5064_p4)
}
  0x3c   : > { %s5068_s10 = scalar_lea.vmem %s5434_s14, 32768  ;;  %p5076_p13 = scmp.lt.s32.totalorder %s5434_s14, %s5434_s14 }
  0x3d   : > { %p5069_p10 = scmp.ne.s32.totalorder %s5434_s14, %s5068_s10  ;;  %p5077_p0 = scmp.lt.s32.totalorder %s5068_s10, %s5068_s10 }
  0x3f   : > { %p5071_p11 = pnand %p5069_p10, %p5452_p8  ;;  %p5078_p2 = por %p5077_p0, %p5076_p13 }
  0x41   : > { %p5072_p12 = pneg %p5071_p11 }
  0x43   : > { %p5079_p5 = pnand %p5078_p2, %p5072_p12 }
  0x45   : > { %5082 = shalt.err (!%p5079_p5)
}
  0x46   : > { %s5342_s25 = smov 256   ;;  %s5343_s26 = smov 16  }
  0x47   : > { %4526 = dma.hbm_to_vmem [thread:$0]  (!%p5438_p6), %s5985_s3, 32768, %s5434_s14, [#allocation10], %s5342_s25, %s5342_s25, %s5343_s26  }
  0x48   : > { %s5083_s19 = scalar_lea.hbm %s5973_s5, 4096 }
  0x49   : > { %p5084_p7 = scmp.ne.s32.totalorder %s5973_s5, %s5083_s19  ;;  %p5090_p1 = scmp.lt.u32.totalorder %s5083_s19, %s5973_s5 }
  0x4b   : > { %p5086_p9 = pnand %p5084_p7, %p5452_p8 }
  0x4d   : > { %p5087_p3 = pneg %p5086_p9 }
  0x4f   : > { %p5092_p4 = pnand %p5090_p1, %p5087_p3 }
  0x51   : > { %5095 = shalt.err (!%p5092_p4)
}
  0x52   : > { %s5096_s14 = scalar_lea.vmem %s5442_s17, 4096  ;;  %p5104_p13 = scmp.lt.s32.totalorder %s5442_s17, %s5442_s17 }
  0x53   : > { %p5097_p10 = scmp.ne.s32.totalorder %s5442_s17, %s5096_s14  ;;  %p5105_p0 = scmp.lt.s32.totalorder %s5096_s14, %s5096_s14 }
  0x55   : > { %p5099_p11 = pnand %p5097_p10, %p5452_p8  ;;  %p5106_p2 = por %p5105_p0, %p5104_p13 }
  0x57   : > { %p5100_p12 = pneg %p5099_p11 }
  0x59   : > { %p5107_p5 = pnand %p5106_p2, %p5100_p12 }
  0x5b   : > { %5110 = shalt.err (!%p5107_p5)
}
  0x5c   : > { %s5344_s10 = smov 64   ;;  %s5345_s25 = smov 4  }
  0x5d   : > { %4532 = dma.hbm_to_vmem [thread:$0]  (!%p5438_p6), %s5973_s5, 4096, %s5442_s17, [#allocation13], %s5344_s10, %s5344_s10, %s5345_s25  }
  0x5e   : > { %s5346_s13 = smov [#allocation11]   ;;  %s5347_s18 = smov [#allocation14]  }
  0x5f   : > { %s270_s16 = sshll.u32 %s5346_s13, 4  ;;  %s294_s19 = sshll.u32 %s5347_s18, 4  ;;  %s271_s16 = int_to_ptr.vmem [resolvable:$true] %s270_s16  ;;  %s295_s19 = int_to_ptr.vmem [resolvable:$true] %s294_s19 }
  0x60   : > { %s5111_s22 = scalar_lea.hbm %s5972_s4, 64 }
  0x61   : > { %p5112_p7 = scmp.ne.s32.totalorder %s5972_s4, %s5111_s22  ;;  %p5118_p1 = scmp.lt.u32.totalorder %s5111_s22, %s5972_s4 }
  0x63   : > { %p5114_p9 = pnand %p5112_p7, %p5452_p8 }
  0x65   : > { %p5115_p3 = pneg %p5114_p9 }
  0x67   : > { %p5120_p4 = pnand %p5118_p1, %p5115_p3 }
  0x69   : > { %5123 = shalt.err (!%p5120_p4)
}
  0x6a   : > { %s5124_s17 = scalar_lea.vmem %s271_s16, 64  ;;  %p5132_p13 = scmp.lt.s32.totalorder %s271_s16, %s271_s16 }
  0x6b   : > { %p5125_p10 = scmp.ne.s32.totalorder %s271_s16, %s5124_s17  ;;  %p5133_p0 = scmp.lt.s32.totalorder %s5124_s17, %s5124_s17 }
  0x6d   : > { %p5127_p11 = pnand %p5125_p10, %p5452_p8  ;;  %p5134_p2 = por %p5133_p0, %p5132_p13 }
  0x6f   : > { %p5128_p12 = pneg %p5127_p11 }
  0x71   : > { %p5135_p5 = pnand %p5134_p2, %p5128_p12 }
  0x73   : > { %5138 = shalt.err (!%p5135_p5)
}
  0x74   : > { %4529 = dma.hbm_to_vmem [thread:$0]  (!%p5438_p6), %s5972_s4, 64, %s271_s16, [#allocation10]  }
  0x75   : > { %s5139_s26 = scalar_lea.hbm %s5974_s6, 16 }
  0x76   : > { %p5140_p7 = scmp.ne.s32.totalorder %s5974_s6, %s5139_s26  ;;  %p5146_p1 = scmp.lt.u32.totalorder %s5139_s26, %s5974_s6 }
  0x78   : > { %p5142_p9 = pnand %p5140_p7, %p5452_p8 }
  0x7a   : > { %p5143_p3 = pneg %p5142_p9 }
  0x7c   : > { %p5148_p4 = pnand %p5146_p1, %p5143_p3 }
  0x7e   : > { %5151 = shalt.err (!%p5148_p4)
}
  0x7f   : > { %s5152_s21 = scalar_lea.vmem %s295_s19, 16  ;;  %s5159_s16 = scalar_lea.vmem %s295_s19, 32 }
  0x80   : > { %p5153_p10 = scmp.ne.s32.totalorder %s295_s19, %s5152_s21  ;;  %p5160_p13 = scmp.lt.s32.totalorder %s295_s19, %s295_s19 }
  0x81   : > { %p5161_p0 = scmp.lt.s32.totalorder %s5159_s16, %s5152_s21 }
  0x82   : > { %p5155_p11 = pnand %p5153_p10, %p5452_p8 }
  0x83   : > { %p5162_p2 = por %p5161_p0, %p5160_p13 }
  0x84   : > { %p5156_p12 = pneg %p5155_p11 }
  0x86   : > { %p5163_p5 = pnand %p5162_p2, %p5156_p12 }
  0x88   : > { %5166 = shalt.err (!%p5163_p5)
}
  0x89   : > { %4535 = dma.hbm_to_vmem [thread:$0]  (!%p5438_p6), %s5974_s6, 16, %s295_s19, [#allocation13]  }
  0x8a   : > { %s5551_s23 = sadd.s32 1, %s5337_s30   ;;  %s36_s14 = sadd.s32 1, %s5333_s29 }
  0x8b   : > { %s33_s15 = ssub.s32 %s5337_s30, %s5551_s23  ;;  %p43_p7 = scmp.ne.s32.totalorder %s5333_s29, %s5329_s28 }
  0x8c   : > { %p34_p8 = scmp.eq.s32.totalorder %s33_s15, 0  ;;  %p44_p9 = scmp.eq.s32.totalorder %s5337_s30, 0 }
  0x8d   : > { %p49_p3 = scmp.ne.s32.totalorder %s5329_s28, %s5325_s27  ;;  %p5986_p4 = scmp.eq.s32.totalorder %s5422_s11, 0 }
  0x8e   : > { %s5562_s17 = scalar_select %p34_p8, %s5333_s29, %s36_s14  }
  0x8f   : > { %p45_p1 = por %p44_p9, %p43_p7  ;;  %p5566_p10 = por %p5986_p4, %p49_p3 }
  0x90   : > { %p4548_p11 = scmp.lt.s32.totalorder %s5337_s30, 2  ;;  %s5572_s19 = sand.u32 1, %s5333_s29  }
  0x91   : > { %s3972_s25 = sshll.u32 %s5572_s19, 2  ;;  %s4413_s2 = sshll.u32 %s5337_s30, 6 }
  0x92   : > { %s5579_s27 = scalar_lea.hbm %s5968_s0, %s4413_s2  ;;  %s309_s9 = scalar_lea.vmem [#allocation3], %s3972_s25 }
  0x93   : > { %s317_s13 = sshll.u32 %s309_s9, 4  ;;  %p5583_p6 = pnand %p4548_p11, %p45_p1  ;;  %s5581_s13 = int_to_ptr.vmem [resolvable:$true] %s317_s13 }
  0x94   : > { %s3975_s20 = sshll.u32 %s5572_s19, 10  ;;  %s324_s21 = sand.u32 1, %s5337_s30  }
  0x95   : > { %s306_s16 = scalar_lea.sflag [#allocation4], %s5572_s19  ;;  %s5167_s22 = scalar_lea.hbm %s5579_s27, 64 }
  0x96   : > { %p5168_p12 = scmp.ne.s32.totalorder %s5579_s27, %s5167_s22  ;;  %p5169_p13 = pneg %p5583_p6 }
  0x97   : > { %s5172_s14 = scalar_lea.hbm %s5968_s0, 128  ;;  %p5173_p5 = scmp.lt.u32.totalorder %s5579_s27, %s5968_s0 }
  0x98   : > { %p5170_p0 = pnand %p5169_p13, %p5168_p12  ;;  %p5174_p8 = scmp.lt.u32.totalorder %s5172_s14, %s5167_s22 }
  0x99   : > { %p5176_p9 = scmp.lt.u32.totalorder %s5167_s22, %s5579_s27 }
  0x9a   : > { %p5171_p2 = pneg %p5170_p0  ;;  %p5175_p7 = por %p5174_p8, %p5173_p5 }
  0x9c   : > { %p5177_p3 = por %p5176_p9, %p5175_p7 }
  0x9e   : > { %p5178_p1 = pnand %p5177_p3, %p5171_p2 }
  0xa0   : > { %5181 = shalt.err (!%p5178_p1)
}
  0xa1   : > { %s5182_s3 = scalar_lea.vmem %s5581_s13, 64  ;;  %s5348_s26 = smov [#allocation3]  }
  0xa2   : > { %p5183_p4 = scmp.ne.s32.totalorder %s5581_s13, %s5182_s3  ;;  %s5187_s9 = sshll.u32 %s5348_s26, 4  ;;  %s5188_s9 = int_to_ptr.vmem [resolvable:$false] %s5187_s9 }
  0xa3   : > { %s5189_s24 = scalar_lea.vmem %s5188_s9, 128  ;;  %p5190_p0 = scmp.lt.s32.totalorder %s5581_s13, %s5188_s9 }
  0xa4   : > { %p5185_p11 = pnand %p5183_p4, %p5169_p13  ;;  %p5191_p5 = scmp.lt.s32.totalorder %s5189_s24, %s5182_s3 }
  0xa6   : > { %p5186_p12 = pneg %p5185_p11  ;;  %p5192_p8 = por %p5191_p5, %p5190_p0 }
  0xa8   : > { %p5193_p7 = pnand %p5192_p8, %p5186_p12 }
  0xaa   : > { %5196 = shalt.err (!%p5193_p7)
}
  0xab   : > { %4539 = dma.hbm_to_vmem [thread:$0]  (!%p5583_p6), %s5579_s27, 64, %s5581_s13, %s306_s16  }
  0xac   : > { %s328_s22 = scalar_lea.vmem [#allocation6], %s3975_s20  ;;  %s4415_s14 = sshll.u32 %s5337_s30, 14 }
  0xad   : > { %s336_s15 = sshll.u32 %s328_s22, 4  ;;  %s5623_s3 = scalar_lea.hbm %s5969_s1, %s4415_s14  ;;  %s5617_s15 = int_to_ptr.vmem [resolvable:$true] %s336_s15 }
  0xae   : > { %s5627_s26 = scalar_lea.sflag [#allocation7], %s324_s21  ;;  %s5197_s9 = scalar_lea.hbm %s5623_s3, 16384 }
  0xaf   : > { %p5198_p2 = scmp.ne.s32.totalorder %s5623_s3, %s5197_s9  ;;  %s5202_s13 = scalar_lea.hbm %s5969_s1, 32768 }
  0xb0   : > { %p5203_p1 = scmp.lt.u32.totalorder %s5623_s3, %s5969_s1  ;;  %p5204_p4 = scmp.lt.u32.totalorder %s5202_s13, %s5197_s9 }
  0xb1   : > { %p5200_p9 = pnand %p5198_p2, %p5169_p13  ;;  %p5206_p12 = scmp.lt.u32.totalorder %s5197_s9, %s5623_s3 }
  0xb2   : > { %p5205_p11 = por %p5204_p4, %p5203_p1 }
  0xb3   : > { %p5201_p3 = pneg %p5200_p9 }
  0xb4   : > { %p5207_p0 = por %p5206_p12, %p5205_p11 }
  0xb6   : > { %p5208_p5 = pnand %p5207_p0, %p5201_p3 }
  0xb8   : > { %5211 = shalt.err (!%p5208_p5)
}
  0xb9   : > { %s5212_s30 = scalar_lea.vmem %s5617_s15, 16384  ;;  %s5349_s21 = smov [#allocation6]  }
  0xba   : > { %p5213_p8 = scmp.ne.s32.totalorder %s5617_s15, %s5212_s30  ;;  %s5217_s24 = sshll.u32 %s5349_s21, 4  ;;  %s5218_s24 = int_to_ptr.vmem [resolvable:$false] %s5217_s24 }
  0xbb   : > { %s5219_s22 = scalar_lea.vmem %s5218_s24, 32768  ;;  %p5220_p9 = scmp.lt.s32.totalorder %s5617_s15, %s5218_s24 }
  0xbc   : > { %p5215_p7 = pnand %p5213_p8, %p5169_p13  ;;  %p5221_p1 = scmp.lt.s32.totalorder %s5219_s22, %s5212_s30 }
  0xbe   : > { %p5216_p2 = pneg %p5215_p7  ;;  %p5222_p4 = por %p5221_p1, %p5220_p9 }
  0xc0   : > { %p5223_p11 = pnand %p5222_p4, %p5216_p2 }
  0xc2   : > { %5226 = shalt.err (!%p5223_p11)
}
  0xc3   : > { %s5350_s14 = smov 512   ;;  %s5351_s25 = smov 32  }
  0xc4   : > { %4542 = dma.hbm_to_vmem [thread:$0]  (!%p5583_p6), %s5623_s3, 16384, %s5617_s15, %s5627_s26, %s5350_s14, %s5350_s14, %s5351_s25  }
  0xc5   : > { %p5989_p13 = scmp.ne.s32.totalorder %s5981_s12, 0 }
  0xc6   : > { %s350_s2 = sand.u32 (!%p5989_p13), 1, %s5329_s28  }
  0xc7   : > { %348 = sbr.rel (%p5989_p13) target bundleno = 1594 (0x63a), region = 48  ;;  %s3980_s9 = sshll.u32 (!%p5989_p13), %s350_s2, 2 }
  0xc8   : > { %s351_s19 = scalar_lea.sflag (!%p5989_p13), [#allocation4], %s350_s2  ;;  %s5656_s27 = scalar_lea.vmem (!%p5989_p13), [#allocation3], %s3980_s9 }
  0xce   : > { %5296 = dma.done.wait (%p5566_p10), %s351_s19, 64  }
  0xcf   : > { %5298 = vsyncadd (%p5566_p10), %s351_s19, 4294967232  ;;  %s359_s13 = sand.u32 1, %s5422_s11   ;;  %s3981_s18 = sshll.u32 %s350_s2, 10 }
  0xd0   : > { %s360_s15 = scalar_lea.sflag [#allocation7], %s359_s13  ;;  %s5663_s3 = scalar_lea.vmem [#allocation6], %s3981_s18 }
  0xd1   : > { %5300 = dma.done.wait (%p5566_p10), %s360_s15, 16384  }
  0xd2   : > { %5302 = vsyncadd (%p5566_p10), %s360_s15, 4294950912  ;;  %p5990_p6 = scmp.eq.s32.totalorder %s5422_s11, 0 }
  0xd4   : > { %5304 = dma.done.wait (%p5990_p6), [#allocation7], 128   ;;  %p5991_p3 = pmov %p5990_p6 }
  0xd6   : > { %5306 = vsyncadd (%p5991_p3), [#allocation7], 4294967168  ;;  %p5992_p12 = pmov %p5991_p3 }
  0xd7   : > { %p5993_p0 = pmov %p5991_p3 }
  0xd8   : > { %5308 = dma.done.wait (%p5992_p12), [#allocation10], 32832  }
  0xd9   : > { %5310 = vsyncadd (%p5993_p0), [#allocation10], 4294934464  ;;  %p5994_p5 = pmov %p5993_p0 }
  0xda   : > { %p5995_p8 = pmov %p5993_p0 }
  0xdb   : > { %5312 = dma.done.wait (%p5994_p5), [#allocation13], 4112  }
  0xdc   : > { %5314 = vsyncadd (%p5995_p8), [#allocation13], 4294963184  ;;  %p5996_p10 = scmp.ne.s32.totalorder %s5422_s11, 0 }
  0xdd   : > { %v5352_v0 = vmov (!%p5996_p10), 0.0  }
  0xde   : > { %422 = sbr.rel (%p5996_p10) target bundleno = 229 (0xe5), region = 80  ;;  %423 = vst [vmem:[#allocation2] sm:$0xff] (!%p5996_p10), %v5352_v0  ;;  %424 = vst [vmem:[#allocation2 + $0x8] sm:$0xff] (!%p5996_p10), %v5352_v0 }
  0xe5 PF: > { %v441_v1 = vld [vmem:[%s5663_s3] sm:$0xff]  ;;  %v442_v3 = vld [vmem:[%s5663_s3 + $0x8] sm:$0xff]  ;;  %v5712_v54 = vld.sshfl [vmem:[%s5656_s27] sm:$0x33 pattern:$0x76325410] }
  0xe6   : > { %v445_v2 = vld [vmem:[%s5663_s3 + $0x20] sm:$0xff]  ;;  %v446_v5 = vld [vmem:[%s5663_s3 + $0x28] sm:$0xff]  ;;  %v436_v58 = vcombine.high %v5712_v54, %v5712_v54  ;;  %p4117_p7 = scmp.ne.s32.totalorder %s5422_s11, 1 }
  0xe7   : > { %v3990_v4 = vcombine.high %v441_v1, %v445_v2  ;;  %v3989_v6 = vcombine.low %v441_v1, %v445_v2  ;;  %v449_v7 = vld [vmem:[%s5663_s3 + $0x40] sm:$0xff]  ;;  %v3992_v9 = vcombine.high %v442_v3, %v446_v5  ;;  %v3991_v10 = vcombine.low %v442_v3, %v446_v5  ;;  %v450_v12 = vld [vmem:[%s5663_s3 + $0x48] sm:$0xff] }
  0xe8   : > { %v453_v8 = vld [vmem:[%s5663_s3 + $0x60] sm:$0xff]  ;;  %v454_v13 = vld [vmem:[%s5663_s3 + $0x68] sm:$0xff]  ;;  %v5720_v62 = vpack.c.bf16 %v436_v58, %v436_v58  ;;  %vm3794_vm2 = vcmask (!%p4117_p7), 1041408   ;;  %vm3813_vm3 = vcmask (!%p4117_p7), 1024  }
  0xe9   : > { %v3998_v11 = vcombine.high %v449_v7, %v453_v8  ;;  %v457_v14 = vld [vmem:[%s5663_s3 + $0x80] sm:$0xff]  ;;  %1209 = vmatprep.subr.bf16.mxu0 %v3990_v4  ;;  %v4000_v15 = vcombine.high %v450_v12, %v454_v13  ;;  %v458_v17 = vld [vmem:[%s5663_s3 + $0x88] sm:$0xff]  ;;  %1250 = vmatprep.subr.bf16.mxu1 %v3992_v9  ;;  %v3997_v19 = vcombine.low %v449_v7, %v453_v8 }
  0xea   : > { %v461_v16 = vld [vmem:[%s5663_s3 + $0xa0] sm:$0xff]  ;;  %v462_v18 = vld [vmem:[%s5663_s3 + $0xa8] sm:$0xff]  ;;  %1210 = vmatpush1.bf16.msra.mxu0 %v3989_v6  ;;  %1251 = vmatpush1.bf16.msra.mxu1 %v3991_v10  ;;  %v3999_v20 = vcombine.low %v450_v12, %v454_v13 }
  0xeb   : > { %1211 = vmatprep.subr.bf16.mxu0 %v3998_v11  ;;  %v4006_v21 = vcombine.high %v457_v14, %v461_v16  ;;  %1252 = vmatprep.subr.bf16.mxu1 %v4000_v15  ;;  %v4008_v22 = vcombine.high %v458_v17, %v462_v18  ;;  %v465_v23 = vld [vmem:[%s5663_s3 + $0xc0] sm:$0xff]  ;;  %v466_v25 = vld [vmem:[%s5663_s3 + $0xc8] sm:$0xff]  ;;  %v4005_v27 = vcombine.low %v457_v14, %v461_v16 }
  0xec   : > { %v469_v24 = vld [vmem:[%s5663_s3 + $0xe0] sm:$0xff]  ;;  %v470_v26 = vld [vmem:[%s5663_s3 + $0xe8] sm:$0xff]  ;;  %v4007_v28 = vcombine.low %v458_v17, %v462_v18  ;;  %1241 = vmatprep.mubr.bf16.mxu0 %v5720_v62  ;;  %1282 = vmatprep.mubr.bf16.mxu1 %v5720_v62 }
  0xed   : > { %v4014_v29 = vcombine.high %v465_v23, %v469_v24  ;;  %v4016_v30 = vcombine.high %v466_v25, %v470_v26  ;;  %v473_v31 = vld [vmem:[%s5663_s3 + $0x100] sm:$0xff]  ;;  %v474_v33 = vld [vmem:[%s5663_s3 + $0x108] sm:$0xff]  ;;  %v4013_v35 = vcombine.low %v465_v23, %v469_v24  ;;  %v4015_v36 = vcombine.low %v466_v25, %v470_v26 }
  0xee   : > { %1212 = vmatpush1.bf16.msra.mxu0 %v3997_v19  ;;  %1253 = vmatpush1.bf16.msra.mxu1 %v3999_v20  ;;  %v477_v32 = vld [vmem:[%s5663_s3 + $0x120] sm:$0xff]  ;;  %v478_v34 = vld [vmem:[%s5663_s3 + $0x128] sm:$0xff] }
  0xef   : > { %1213 = vmatprep.subr.bf16.mxu0 %v4006_v21  ;;  %1254 = vmatprep.subr.bf16.mxu1 %v4008_v22  ;;  %v4022_v37 = vcombine.high %v473_v31, %v477_v32  ;;  %v4024_v38 = vcombine.high %v474_v33, %v478_v34  ;;  %v481_v39 = vld [vmem:[%s5663_s3 + $0x140] sm:$0xff]  ;;  %v482_v41 = vld [vmem:[%s5663_s3 + $0x148] sm:$0xff]  ;;  %v4021_v43 = vcombine.low %v473_v31, %v477_v32 }
  0xf0   : > { %v485_v40 = vld [vmem:[%s5663_s3 + $0x160] sm:$0xff]  ;;  %v486_v42 = vld [vmem:[%s5663_s3 + $0x168] sm:$0xff]  ;;  %v4023_v44 = vcombine.low %v474_v33, %v478_v34 }
  0xf1   : > { %v4030_v45 = vcombine.high %v481_v39, %v485_v40  ;;  %v4032_v46 = vcombine.high %v482_v41, %v486_v42  ;;  %v489_v47 = vld [vmem:[%s5663_s3 + $0x180] sm:$0xff]  ;;  %v490_v49 = vld [vmem:[%s5663_s3 + $0x188] sm:$0xff]  ;;  %v4029_v51 = vcombine.low %v481_v39, %v485_v40  ;;  %v4031_v52 = vcombine.low %v482_v41, %v486_v42 }
  0xf2   : > { %1214 = vmatpush1.bf16.msra.mxu0 %v4005_v27  ;;  %1255 = vmatpush1.bf16.msra.mxu1 %v4007_v28  ;;  %v493_v48 = vld [vmem:[%s5663_s3 + $0x1a0] sm:$0xff]  ;;  %v494_v50 = vld [vmem:[%s5663_s3 + $0x1a8] sm:$0xff] }
  0xf3   : > { %1215 = vmatprep.subr.bf16.mxu0 %v4014_v29  ;;  %1256 = vmatprep.subr.bf16.mxu1 %v4016_v30  ;;  %v4038_v53 = vcombine.high %v489_v47, %v493_v48  ;;  %v4040_v55 = vcombine.high %v490_v49, %v494_v50  ;;  %v497_v56 = vld [vmem:[%s5663_s3 + $0x1c0] sm:$0xff]  ;;  %v498_v59 = vld [vmem:[%s5663_s3 + $0x1c8] sm:$0xff]  ;;  %v4037_v61 = vcombine.low %v489_v47, %v493_v48 }
  0xf4   : > { %v501_v57 = vld [vmem:[%s5663_s3 + $0x1e0] sm:$0xff]  ;;  %v502_v60 = vld [vmem:[%s5663_s3 + $0x1e8] sm:$0xff]  ;;  %v4039_v63 = vcombine.low %v490_v49, %v494_v50 }
  0xf5   : > { %v4046_v0 = vcombine.high %v497_v56, %v501_v57  ;;  %v4048_v1 = vcombine.high %v498_v59, %v502_v60  ;;  %v505_v2 = vld [vmem:[%s5663_s3 + $0x200] sm:$0xff]  ;;  %v506_v4 = vld [vmem:[%s5663_s3 + $0x208] sm:$0xff]  ;;  %v4045_v6 = vcombine.low %v497_v56, %v501_v57  ;;  %v4047_v7 = vcombine.low %v498_v59, %v502_v60 }
  0xf6   : > { %1216 = vmatpush1.bf16.msra.mxu0 %v4013_v35  ;;  %1257 = vmatpush1.bf16.msra.mxu1 %v4015_v36  ;;  %v509_v3 = vld [vmem:[%s5663_s3 + $0x220] sm:$0xff]  ;;  %v510_v5 = vld [vmem:[%s5663_s3 + $0x228] sm:$0xff] }
  0xf7   : > { %1217 = vmatprep.subr.bf16.mxu0 %v4022_v37  ;;  %1258 = vmatprep.subr.bf16.mxu1 %v4024_v38  ;;  %v4054_v8 = vcombine.high %v505_v2, %v509_v3  ;;  %v4056_v9 = vcombine.high %v506_v4, %v510_v5  ;;  %v513_v10 = vld [vmem:[%s5663_s3 + $0x240] sm:$0xff]  ;;  %v514_v12 = vld [vmem:[%s5663_s3 + $0x248] sm:$0xff]  ;;  %v4053_v14 = vcombine.low %v505_v2, %v509_v3 }
  0xf8   : > { %v517_v11 = vld [vmem:[%s5663_s3 + $0x260] sm:$0xff]  ;;  %v518_v13 = vld [vmem:[%s5663_s3 + $0x268] sm:$0xff]  ;;  %v4055_v15 = vcombine.low %v506_v4, %v510_v5  ;;  %v443_v4 = vld [vmem:[%s5663_s3 + $0x10] sm:$0xff] }
  0xf9   : > { %v4062_v16 = vcombine.high %v513_v10, %v517_v11  ;;  %v4064_v17 = vcombine.high %v514_v12, %v518_v13  ;;  %v521_v18 = vld [vmem:[%s5663_s3 + $0x280] sm:$0xff]  ;;  %v522_v20 = vld [vmem:[%s5663_s3 + $0x288] sm:$0xff]  ;;  %v4061_v22 = vcombine.low %v513_v10, %v517_v11  ;;  %v4063_v23 = vcombine.low %v514_v12, %v518_v13  ;;  %v447_v5 = vld [vmem:[%s5663_s3 + $0x30] sm:$0xff] }
  0xfa   : > { %1218 = vmatpush1.bf16.msra.mxu0 %v4021_v43  ;;  %1259 = vmatpush1.bf16.msra.mxu1 %v4023_v44  ;;  %v525_v19 = vld [vmem:[%s5663_s3 + $0x2a0] sm:$0xff]  ;;  %v526_v21 = vld [vmem:[%s5663_s3 + $0x2a8] sm:$0xff]  ;;  %v3994_v10 = vcombine.high %v443_v4, %v447_v5  ;;  %v451_v12 = vld [vmem:[%s5663_s3 + $0x50] sm:$0xff] }
  0xfb   : > { %1219 = vmatprep.subr.bf16.mxu0 %v4030_v45  ;;  %1260 = vmatprep.subr.bf16.mxu1 %v4032_v46  ;;  %v4070_v24 = vcombine.high %v521_v18, %v525_v19  ;;  %v4072_v25 = vcombine.high %v522_v20, %v526_v21  ;;  %v529_v26 = vld [vmem:[%s5663_s3 + $0x2c0] sm:$0xff]  ;;  %v530_v28 = vld [vmem:[%s5663_s3 + $0x2c8] sm:$0xff]  ;;  %v4069_v30 = vcombine.low %v521_v18, %v525_v19  ;;  %v455_v13 = vld [vmem:[%s5663_s3 + $0x70] sm:$0xff] }
  0xfc   : > { %v533_v27 = vld [vmem:[%s5663_s3 + $0x2e0] sm:$0xff]  ;;  %v534_v29 = vld [vmem:[%s5663_s3 + $0x2e8] sm:$0xff]  ;;  %v4071_v31 = vcombine.low %v522_v20, %v526_v21  ;;  %v4002_v19 = vcombine.high %v451_v12, %v455_v13  ;;  %v459_v21 = vld [vmem:[%s5663_s3 + $0x90] sm:$0xff] }
  0xfd   : > { %v4078_v32 = vcombine.high %v529_v26, %v533_v27  ;;  %v4080_v33 = vcombine.high %v530_v28, %v534_v29  ;;  %v537_v34 = vld [vmem:[%s5663_s3 + $0x300] sm:$0xff]  ;;  %v538_v36 = vld [vmem:[%s5663_s3 + $0x308] sm:$0xff]  ;;  %v4077_v38 = vcombine.low %v529_v26, %v533_v27  ;;  %v4079_v39 = vcombine.low %v530_v28, %v534_v29  ;;  %v467_v28 = vld [vmem:[%s5663_s3 + $0xd0] sm:$0xff] }
  0xfe   : > { %1220 = vmatpush1.bf16.msra.mxu0 %v4029_v51  ;;  %1261 = vmatpush1.bf16.msra.mxu1 %v4031_v52  ;;  %v541_v35 = vld [vmem:[%s5663_s3 + $0x320] sm:$0xff]  ;;  %v542_v37 = vld [vmem:[%s5663_s3 + $0x328] sm:$0xff]  ;;  %v471_v29 = vld [vmem:[%s5663_s3 + $0xf0] sm:$0xff] }
  0xff   : > { %1221 = vmatprep.subr.bf16.mxu0 %v4038_v53  ;;  %1262 = vmatprep.subr.bf16.mxu1 %v4040_v55  ;;  %v4086_v40 = vcombine.high %v537_v34, %v541_v35  ;;  %v4088_v41 = vcombine.high %v538_v36, %v542_v37  ;;  %v545_v42 = vld [vmem:[%s5663_s3 + $0x340] sm:$0xff]  ;;  %v546_v44 = vld [vmem:[%s5663_s3 + $0x348] sm:$0xff]  ;;  %v4085_v46 = vcombine.low %v537_v34, %v541_v35 }
 0x100   : > { %v549_v43 = vld [vmem:[%s5663_s3 + $0x360] sm:$0xff]  ;;  %v550_v45 = vld [vmem:[%s5663_s3 + $0x368] sm:$0xff]  ;;  %v4087_v47 = vcombine.low %v538_v36, %v542_v37  ;;  %v4018_v34 = vcombine.high %v467_v28, %v471_v29  ;;  %v475_v36 = vld [vmem:[%s5663_s3 + $0x110] sm:$0xff] }
 0x101   : > { %v4094_v48 = vcombine.high %v545_v42, %v549_v43  ;;  %v4096_v49 = vcombine.high %v546_v44, %v550_v45  ;;  %v553_v50 = vld [vmem:[%s5663_s3 + $0x380] sm:$0xff]  ;;  %v554_v52 = vld [vmem:[%s5663_s3 + $0x388] sm:$0xff]  ;;  %v4093_v55 = vcombine.low %v545_v42, %v549_v43  ;;  %v4095_v56 = vcombine.low %v546_v44, %v550_v45  ;;  %v479_v37 = vld [vmem:[%s5663_s3 + $0x130] sm:$0xff] }
 0x102   : > { %1222 = vmatpush1.bf16.msra.mxu0 %v4037_v61  ;;  %1263 = vmatpush1.bf16.msra.mxu1 %v4039_v63  ;;  %v557_v51 = vld [vmem:[%s5663_s3 + $0x3a0] sm:$0xff]  ;;  %v558_v53 = vld [vmem:[%s5663_s3 + $0x3a8] sm:$0xff]  ;;  %v483_v43 = vld [vmem:[%s5663_s3 + $0x150] sm:$0xff] }
 0x103   : > { %1223 = vmatprep.subr.bf16.mxu0 %v4046_v0  ;;  %1264 = vmatprep.subr.bf16.mxu1 %v4048_v1  ;;  %v4102_v57 = vcombine.high %v553_v50, %v557_v51  ;;  %v4104_v58 = vcombine.high %v554_v52, %v558_v53  ;;  %v561_v59 = vld [vmem:[%s5663_s3 + $0x3c0] sm:$0xff]  ;;  %v562_v61 = vld [vmem:[%s5663_s3 + $0x3c8] sm:$0xff]  ;;  %v4101_v0 = vcombine.low %v553_v50, %v557_v51  ;;  %v487_v44 = vld [vmem:[%s5663_s3 + $0x170] sm:$0xff] }
 0x104   : > { %v565_v60 = vld [vmem:[%s5663_s3 + $0x3e0] sm:$0xff]  ;;  %v566_v63 = vld [vmem:[%s5663_s3 + $0x3e8] sm:$0xff]  ;;  %v4103_v1 = vcombine.low %v554_v52, %v558_v53  ;;  %v484_v45 = vld [vmem:[%s5663_s3 + $0x158] sm:$0xff] }
 0x105   : > { %v4110_v2 = vcombine.high %v561_v59, %v565_v60  ;;  %v4112_v3 = vcombine.high %v562_v61, %v566_v63  ;;  %v491_v51 = vld [vmem:[%s5663_s3 + $0x190] sm:$0xff]  ;;  %v492_v53 = vld [vmem:[%s5663_s3 + $0x198] sm:$0xff] }
 0x106   : > { %1224 = vmatpush1.bf16.msra.mxu0 %v4045_v6  ;;  %1265 = vmatpush1.bf16.msra.mxu1 %v4047_v7  ;;  %v444_v6 = vld [vmem:[%s5663_s3 + $0x18] sm:$0xff]  ;;  %v495_v52 = vld [vmem:[%s5663_s3 + $0x1b0] sm:$0xff] }
 0x107   : > { %1225 = vmatprep.subr.bf16.mxu0 %v4054_v8  ;;  %1266 = vmatprep.subr.bf16.mxu1 %v4056_v9  ;;  %v448_v7 = vld [vmem:[%s5663_s3 + $0x38] sm:$0xff]  ;;  %v4109_v8 = vcombine.low %v561_v59, %v565_v60  ;;  %v4111_v9 = vcombine.low %v562_v61, %v566_v63  ;;  %v499_v60 = vld [vmem:[%s5663_s3 + $0x1d0] sm:$0xff] }
 0x108   : > { %v3996_v11 = vcombine.high %v444_v6, %v448_v7  ;;  %v3995_v18 = vcombine.low %v444_v6, %v448_v7  ;;  %v503_v61 = vld [vmem:[%s5663_s3 + $0x1f0] sm:$0xff]  ;;  %v500_v63 = vld [vmem:[%s5663_s3 + $0x1d8] sm:$0xff] }
 0x109   : > { %v511_v6 = vld [vmem:[%s5663_s3 + $0x230] sm:$0xff]  ;;  %v508_v7 = vld [vmem:[%s5663_s3 + $0x218] sm:$0xff] }
 0x10a   : > { %1226 = vmatpush1.bf16.msra.mxu0 %v4053_v14  ;;  %1267 = vmatpush1.bf16.msra.mxu1 %v4055_v15  ;;  %v5764_v14 = vpack.c.bf16 %v5712_v54, %v5712_v54  ;;  %v452_v15 = vld [vmem:[%s5663_s3 + $0x58] sm:$0xff] }
 0x10b   : > { %1227 = vmatprep.subr.bf16.mxu0 %v4062_v16  ;;  %1268 = vmatprep.subr.bf16.mxu1 %v4064_v17  ;;  %v456_v16 = vld [vmem:[%s5663_s3 + $0x78] sm:$0xff]  ;;  %v3993_v17 = vcombine.low %v443_v4, %v447_v5  ;;  %v507_v5 = vld [vmem:[%s5663_s3 + $0x210] sm:$0xff] }
 0x10c   : > { %v4004_v20 = vcombine.high %v452_v15, %v456_v16  ;;  %v460_v54 = vld [vmem:[%s5663_s3 + $0x98] sm:$0xff] }
 0x10e   : > { %1228 = vmatpush1.bf16.msra.mxu0 %v4061_v22  ;;  %1269 = vmatpush1.bf16.msra.mxu1 %v4063_v23  ;;  %v463_v22 = vld [vmem:[%s5663_s3 + $0xb0] sm:$0xff]  ;;  %v464_v23 = vld [vmem:[%s5663_s3 + $0xb8] sm:$0xff] }
 0x10f   : > { %1229 = vmatprep.subr.bf16.mxu0 %v4070_v24  ;;  %1270 = vmatprep.subr.bf16.mxu1 %v4072_v25  ;;  %v4001_v24 = vcombine.low %v451_v12, %v455_v13  ;;  %v4003_v25 = vcombine.low %v452_v15, %v456_v16  ;;  %v4010_v26 = vcombine.high %v459_v21, %v463_v22  ;;  %v515_v13 = vld [vmem:[%s5663_s3 + $0x250] sm:$0xff]  ;;  %v516_v16 = vld [vmem:[%s5663_s3 + $0x258] sm:$0xff] }
 0x110   : > { %v4012_v27 = vcombine.high %v460_v54, %v464_v23  ;;  %v519_v15 = vld [vmem:[%s5663_s3 + $0x270] sm:$0xff] }
 0x112   : > { %1230 = vmatpush1.bf16.msra.mxu0 %v4069_v30  ;;  %1271 = vmatpush1.bf16.msra.mxu1 %v4071_v31  ;;  %v468_v30 = vld [vmem:[%s5663_s3 + $0xd8] sm:$0xff] }
 0x113   : > { %1231 = vmatprep.subr.bf16.mxu0 %v4078_v32  ;;  %1272 = vmatprep.subr.bf16.mxu1 %v4080_v33  ;;  %v472_v31 = vld [vmem:[%s5663_s3 + $0xf8] sm:$0xff]  ;;  %v4009_v32 = vcombine.low %v459_v21, %v463_v22  ;;  %v4011_v33 = vcombine.low %v460_v54, %v464_v23  ;;  %v523_v22 = vld [vmem:[%s5663_s3 + $0x290] sm:$0xff] }
 0x114   : > { %v4020_v35 = vcombine.high %v468_v30, %v472_v31  ;;  %v527_v54 = vld [vmem:[%s5663_s3 + $0x2b0] sm:$0xff]  ;;  %v524_v23 = vld [vmem:[%s5663_s3 + $0x298] sm:$0xff] }
 0x116   : > { %1232 = vmatpush1.bf16.msra.mxu0 %v4077_v38  ;;  %1273 = vmatpush1.bf16.msra.mxu1 %v4079_v39  ;;  %v476_v38 = vld [vmem:[%s5663_s3 + $0x118] sm:$0xff] }
 0x117   : > { %1233 = vmatprep.subr.bf16.mxu0 %v4086_v40  ;;  %1274 = vmatprep.subr.bf16.mxu1 %v4088_v41  ;;  %v480_v39 = vld [vmem:[%s5663_s3 + $0x138] sm:$0xff]  ;;  %v4017_v40 = vcombine.low %v467_v28, %v471_v29  ;;  %v4026_v41 = vcombine.high %v475_v36, %v479_v37  ;;  %v531_v29 = vld [vmem:[%s5663_s3 + $0x2d0] sm:$0xff] }
 0x118   : > { %v4028_v42 = vcombine.high %v476_v38, %v480_v39 }
 0x11a   : > { %1234 = vmatpush1.bf16.msra.mxu0 %v4085_v46  ;;  %1275 = vmatpush1.bf16.msra.mxu1 %v4087_v47  ;;  %v488_v46 = vld [vmem:[%s5663_s3 + $0x178] sm:$0xff]  ;;  %v4025_v47 = vcombine.low %v475_v36, %v479_v37  ;;  %v539_v37 = vld [vmem:[%s5663_s3 + $0x310] sm:$0xff] }
 0x11b   : > { %1235 = vmatprep.subr.bf16.mxu0 %v4094_v48  ;;  %1276 = vmatprep.subr.bf16.mxu1 %v4096_v49  ;;  %v4027_v48 = vcombine.low %v476_v38, %v480_v39  ;;  %v4034_v49 = vcombine.high %v483_v43, %v487_v44  ;;  %v4036_v50 = vcombine.high %v484_v45, %v488_v46  ;;  %v543_v38 = vld [vmem:[%s5663_s3 + $0x330] sm:$0xff]  ;;  %v540_v39 = vld [vmem:[%s5663_s3 + $0x318] sm:$0xff] }
 0x11e   : > { %1236 = vmatpush1.bf16.msra.mxu0 %v4093_v55  ;;  %1277 = vmatpush1.bf16.msra.mxu1 %v4095_v56  ;;  %v496_v55 = vld [vmem:[%s5663_s3 + $0x1b8] sm:$0xff]  ;;  %v4033_v56 = vcombine.low %v483_v43, %v487_v44  ;;  %v547_v44 = vld [vmem:[%s5663_s3 + $0x350] sm:$0xff] }
 0x11f   : > { %1237 = vmatprep.subr.bf16.mxu0 %v4102_v57  ;;  %1278 = vmatprep.subr.bf16.mxu1 %v4104_v58  ;;  %v4035_v57 = vcombine.low %v484_v45, %v488_v46  ;;  %v4042_v58 = vcombine.high %v491_v51, %v495_v52  ;;  %v4044_v59 = vcombine.high %v492_v53, %v496_v55  ;;  %v551_v45 = vld [vmem:[%s5663_s3 + $0x370] sm:$0xff]  ;;  %v548_v46 = vld [vmem:[%s5663_s3 + $0x358] sm:$0xff] }
 0x122   : > { %1238 = vmatpush1.bf16.msra.mxu0 %v4101_v0  ;;  %1279 = vmatpush1.bf16.msra.mxu1 %v4103_v1  ;;  %v504_v0 = vld [vmem:[%s5663_s3 + $0x1f8] sm:$0xff]  ;;  %v4041_v1 = vcombine.low %v491_v51, %v495_v52  ;;  %v555_v52 = vld [vmem:[%s5663_s3 + $0x390] sm:$0xff] }
 0x123   : > { %1239 = vmatprep.subr.bf16.mxu0 %v4110_v2  ;;  %1280 = vmatprep.subr.bf16.mxu1 %v4112_v3  ;;  %v4043_v2 = vcombine.low %v492_v53, %v496_v55  ;;  %v4050_v3 = vcombine.high %v499_v60, %v503_v61  ;;  %v4052_v4 = vcombine.high %v500_v63, %v504_v0  ;;  %v559_v53 = vld [vmem:[%s5663_s3 + $0x3b0] sm:$0xff]  ;;  %v556_v55 = vld [vmem:[%s5663_s3 + $0x398] sm:$0xff] }
 0x126   : > { %1240 = vmatpush1.bf16.msra.mxu0 %v4109_v8  ;;  %1281 = vmatpush1.bf16.msra.mxu1 %v4111_v9  ;;  %v512_v8 = vld [vmem:[%s5663_s3 + $0x238] sm:$0xff]  ;;  %v4049_v9 = vcombine.low %v499_v60, %v503_v61  ;;  %v563_v61 = vld [vmem:[%s5663_s3 + $0x3d0] sm:$0xff] }
 0x127   : > { %1291 = vmatprep.subr.bf16.mxu0 %v3994_v10  ;;  %1332 = vmatprep.subr.bf16.mxu1 %v3996_v11  ;;  %v4051_v10 = vcombine.low %v500_v63, %v504_v0  ;;  %v4058_v11 = vcombine.high %v507_v5, %v511_v6  ;;  %v4060_v12 = vcombine.high %v508_v7, %v512_v8  ;;  %v567_v63 = vld [vmem:[%s5663_s3 + $0x3f0] sm:$0xff]  ;;  %v564_v0 = vld [vmem:[%s5663_s3 + $0x3d8] sm:$0xff] }
 0x129   : > { %1242 = vmatmul.mubr.bf16.vlgmr.msra.gmra.mrb[0].mxu0 %v5764_v14  ;;  %1283 = vmatmul.mubr.bf16.vlgmr.msra.gmra.mrb[0].mxu1 %v5764_v14 }
 0x12a   : > { %1292 = vmatpush1.bf16.msra.mxu0 %v3993_v17  ;;  %1333 = vmatpush1.bf16.msra.mxu1 %v3995_v18  ;;  %v520_v17 = vld [vmem:[%s5663_s3 + $0x278] sm:$0xff]  ;;  %v4057_v18 = vcombine.low %v507_v5, %v511_v6  ;;  %v4113_v6 = vcombine.low %v563_v61, %v567_v63 }
 0x12b   : > { %1293 = vmatprep.subr.bf16.mxu0 %v4002_v19  ;;  %1334 = vmatprep.subr.bf16.mxu1 %v4004_v20  ;;  %v4059_v19 = vcombine.low %v508_v7, %v512_v8  ;;  %v4066_v20 = vcombine.high %v515_v13, %v519_v15  ;;  %v4068_v21 = vcombine.high %v516_v16, %v520_v17  ;;  %v5353_v8 = vmov 1983009808  }
 0x12c   : > { %1323 = vmatprep.mubr.bf16.mxu0 %v5720_v62  ;;  %1364 = vmatprep.mubr.bf16.mxu1 %v5720_v62  ;;  %v4019_v62 = vcombine.low %v468_v30, %v472_v31  ;;  %v535_v30 = vld [vmem:[%s5663_s3 + $0x2f0] sm:$0xff]  ;;  %v532_v31 = vld [vmem:[%s5663_s3 + $0x2d8] sm:$0xff] }
 0x12e   : > { %1294 = vmatpush1.bf16.msra.mxu0 %v4001_v24  ;;  %1335 = vmatpush1.bf16.msra.mxu1 %v4003_v25  ;;  %v528_v24 = vld [vmem:[%s5663_s3 + $0x2b8] sm:$0xff]  ;;  %v4065_v25 = vcombine.low %v515_v13, %v519_v15 }
 0x12f   : > { %1295 = vmatprep.subr.bf16.mxu0 %v4010_v26  ;;  %1336 = vmatprep.subr.bf16.mxu1 %v4012_v27  ;;  %v4067_v26 = vcombine.low %v516_v16, %v520_v17  ;;  %v4074_v27 = vcombine.high %v523_v22, %v527_v54  ;;  %v4076_v28 = vcombine.high %v524_v23, %v528_v24 }
 0x132   : > { %1296 = vmatpush1.bf16.msra.mxu0 %v4009_v32  ;;  %1337 = vmatpush1.bf16.msra.mxu1 %v4011_v33  ;;  %v536_v32 = vld [vmem:[%s5663_s3 + $0x2f8] sm:$0xff]  ;;  %v4073_v33 = vcombine.low %v523_v22, %v527_v54 }
 0x133   : > { %1297 = vmatprep.subr.bf16.mxu0 %v4018_v34  ;;  %1338 = vmatprep.subr.bf16.mxu1 %v4020_v35  ;;  %v4075_v34 = vcombine.low %v524_v23, %v528_v24  ;;  %v4082_v35 = vcombine.high %v531_v29, %v535_v30  ;;  %v4084_v36 = vcombine.high %v532_v31, %v536_v32 }
 0x136   : > { %1298 = vmatpush1.bf16.msra.mxu0 %v4017_v40  ;;  %1339 = vmatpush1.bf16.msra.mxu1 %v4019_v62  ;;  %v544_v40 = vld [vmem:[%s5663_s3 + $0x338] sm:$0xff]  ;;  %v4081_v62 = vcombine.low %v531_v29, %v535_v30 }
 0x137   : > { %1299 = vmatprep.subr.bf16.mxu0 %v4026_v41  ;;  %1340 = vmatprep.subr.bf16.mxu1 %v4028_v42  ;;  %v4083_v41 = vcombine.low %v532_v31, %v536_v32  ;;  %v4090_v42 = vcombine.high %v539_v37, %v543_v38  ;;  %v4092_v43 = vcombine.high %v540_v39, %v544_v40 }
 0x13a   : > { %1300 = vmatpush1.bf16.msra.mxu0 %v4025_v47  ;;  %1341 = vmatpush1.bf16.msra.mxu1 %v4027_v48  ;;  %v552_v47 = vld [vmem:[%s5663_s3 + $0x378] sm:$0xff]  ;;  %v4089_v48 = vcombine.low %v539_v37, %v543_v38 }
 0x13b   : > { %1301 = vmatprep.subr.bf16.mxu0 %v4034_v49  ;;  %1342 = vmatprep.subr.bf16.mxu1 %v4036_v50  ;;  %v4091_v49 = vcombine.low %v540_v39, %v544_v40  ;;  %v4098_v50 = vcombine.high %v547_v44, %v551_v45  ;;  %v4100_v51 = vcombine.high %v548_v46, %v552_v47  ;;  %v426_v40 = vld [vmem:[#allocation2 + $0x8] sm:$0xff] }
 0x13e   : > { %1302 = vmatpush1.bf16.msra.mxu0 %v4033_v56  ;;  %1343 = vmatpush1.bf16.msra.mxu1 %v4035_v57  ;;  %v560_v56 = vld [vmem:[%s5663_s3 + $0x3b8] sm:$0xff]  ;;  %v4097_v57 = vcombine.low %v547_v44, %v551_v45  ;;  %v4610_v45 = vld [vmem:[#allocation9 + $0x8] ss:$16 sps:$4 sm:$0xff] (!%p4117_p7)  }
 0x13f   : > { %1303 = vmatprep.subr.bf16.mxu0 %v4042_v58  ;;  %1344 = vmatprep.subr.bf16.mxu1 %v4044_v59  ;;  %v4099_v58 = vcombine.low %v548_v46, %v552_v47  ;;  %v4106_v59 = vcombine.high %v555_v52, %v559_v53  ;;  %v4108_v60 = vcombine.high %v556_v55, %v560_v56  ;;  %v4609_v44 = vld [vmem:[#allocation9] ss:$16 sps:$4 sm:$0xff] (!%p4117_p7)   ;;  %v4611_v46 = vld [vmem:[#allocation9 + $0x24] ss:$16 sps:$4 sm:$0xff] (!%p4117_p7)   ;;  %v4613_v47 = vld [vmem:[#allocation9 + $0x2c] ss:$16 sps:$4 sm:$0xff] (!%p4117_p7)  }
 0x142   : > { %1304 = vmatpush1.bf16.msra.mxu0 %v4041_v1  ;;  %1345 = vmatpush1.bf16.msra.mxu1 %v4043_v2  ;;  %v568_v1 = vld [vmem:[%s5663_s3 + $0x3f8] sm:$0xff]  ;;  %v4105_v2 = vcombine.low %v555_v52, %v559_v53  ;;  %v4622_v53 = vld [vmem:[#allocation9 + $0x48] ss:$16 sps:$4 sm:$0xff] (!%p4117_p7)  }
 0x143   : > { %1305 = vmatprep.subr.bf16.mxu0 %v4050_v3  ;;  %1346 = vmatprep.subr.bf16.mxu1 %v4052_v4  ;;  %v4107_v3 = vcombine.low %v556_v55, %v560_v56  ;;  %v4114_v4 = vcombine.high %v563_v61, %v567_v63  ;;  %v4116_v5 = vcombine.high %v564_v0, %v568_v1  ;;  %v4621_v52 = vld [vmem:[#allocation9 + $0x40] ss:$16 sps:$4 sm:$0xff] (!%p4117_p7)   ;;  %v4623_v55 = vld [vmem:[#allocation9 + $0x64] ss:$16 sps:$4 sm:$0xff] (!%p4117_p7)   ;;  %v4625_v56 = vld [vmem:[#allocation9 + $0x6c] ss:$16 sps:$4 sm:$0xff] (!%p4117_p7)  }
 0x144   : > { %v4115_v7 = vcombine.low %v564_v0, %v568_v1  ;;  %v4633_v61 = vld [vmem:[#allocation9 + $0x80] ss:$16 sps:$4 sm:$0xff] (!%p4117_p7)   ;;  %v4634_v63 = vld [vmem:[#allocation9 + $0x88] ss:$16 sps:$4 sm:$0xff] (!%p4117_p7)   ;;  %v4635_v0 = vld [vmem:[#allocation9 + $0xa4] ss:$16 sps:$4 sm:$0xff] (!%p4117_p7)  }
 0x145   : > { %v4637_v1 = vld [vmem:[#allocation9 + $0xac] ss:$16 sps:$4 sm:$0xff] (!%p4117_p7)  }
 0x146   : > { %1306 = vmatpush1.bf16.msra.mxu0 %v4049_v9  ;;  %1347 = vmatpush1.bf16.msra.mxu1 %v4051_v10  ;;  %v1384_v9 = vunpack.c.l.s4 %v5353_v8  ;;  %v1386_v10 = vlaneseq  ;;  %v4647_v8 = vld [vmem:[#allocation9 + $0xe4] ss:$16 sps:$4 sm:$0xff] (!%p4117_p7)  }
 0x147   : > { %1307 = vmatprep.subr.bf16.mxu0 %v4058_v11  ;;  %1348 = vmatprep.subr.bf16.mxu1 %v4060_v12 }
 0x148   : > { %v1385_v11 = vunpack.c.0.s8 %v1384_v9  ;;  %v5831_v12 = vshrl.u32 %v1386_v10, 7  ;;  %v4649_v9 = vld [vmem:[#allocation9 + $0xec] ss:$16 sps:$4 sm:$0xff] (!%p4117_p7)  }
 0x14a   : > { %1308 = vmatpush1.bf16.msra.mxu0 %v4057_v18  ;;  %1349 = vmatpush1.bf16.msra.mxu1 %v4059_v19  ;;  %v5834_v15 = vsub.s32 %v1385_v11, %v5831_v12  ;;  %v4651_v11 = vld [vmem:[#allocation9 + $0xe0] ss:$16 sps:$4 sm:$0xff] (!%p4117_p7)  }
 0x14b   : > { %1309 = vmatprep.subr.bf16.mxu0 %v4066_v20  ;;  %1350 = vmatprep.subr.bf16.mxu1 %v4068_v21 }
 0x14e   : > { %1310 = vmatpush1.bf16.msra.mxu0 %v4065_v25  ;;  %1351 = vmatpush1.bf16.msra.mxu1 %v4067_v26  ;;  %v425_v25 = vld [vmem:[#allocation2] sm:$0xff] }
 0x14f   : > { %1311 = vmatprep.subr.bf16.mxu0 %v4074_v27  ;;  %1352 = vmatprep.subr.bf16.mxu1 %v4076_v28 }
 0x152   : > { %1312 = vmatpush1.bf16.msra.mxu0 %v4073_v33  ;;  %1353 = vmatpush1.bf16.msra.mxu1 %v4075_v34 }
 0x153   : > { %1313 = vmatprep.subr.bf16.mxu0 %v4082_v35  ;;  %1354 = vmatprep.subr.bf16.mxu1 %v4084_v36 }
 0x156   : > { %1314 = vmatpush1.bf16.msra.mxu0 %v4081_v62  ;;  %1355 = vmatpush1.bf16.msra.mxu1 %v4083_v41 }
 0x157   : > { %1315 = vmatprep.subr.bf16.mxu0 %v4090_v42  ;;  %1356 = vmatprep.subr.bf16.mxu1 %v4092_v43  ;;  %v4605_v42 = vld [vmem:[#allocation9 + $0x4] ss:$16 sps:$4 sm:$0xff] (!%p4117_p7)   ;;  %v4607_v43 = vld [vmem:[#allocation9 + $0xc] ss:$16 sps:$4 sm:$0xff] (!%p4117_p7)  }
 0x15a   : > { %1316 = vmatpush1.bf16.msra.mxu0 %v4089_v48  ;;  %1357 = vmatpush1.bf16.msra.mxu1 %v4091_v49  ;;  %v4615_v48 = vld [vmem:[#allocation9 + $0x20] ss:$16 sps:$4 sm:$0xff] (!%p4117_p7)   ;;  %v4616_v49 = vld [vmem:[#allocation9 + $0x28] ss:$16 sps:$4 sm:$0xff] (!%p4117_p7)  }
 0x15b   : > { %1317 = vmatprep.subr.bf16.mxu0 %v4098_v50  ;;  %1358 = vmatprep.subr.bf16.mxu1 %v4100_v51  ;;  %v4617_v50 = vld [vmem:[#allocation9 + $0x44] ss:$16 sps:$4 sm:$0xff] (!%p4117_p7)   ;;  %v4619_v51 = vld [vmem:[#allocation9 + $0x4c] ss:$16 sps:$4 sm:$0xff] (!%p4117_p7)  }
 0x15e   : > { %1318 = vmatpush1.bf16.msra.mxu0 %v4097_v57  ;;  %1359 = vmatpush1.bf16.msra.mxu1 %v4099_v58  ;;  %v4627_v57 = vld [vmem:[#allocation9 + $0x60] ss:$16 sps:$4 sm:$0xff] (!%p4117_p7)   ;;  %v4628_v58 = vld [vmem:[#allocation9 + $0x68] ss:$16 sps:$4 sm:$0xff] (!%p4117_p7)  }
 0x15f   : > { %1319 = vmatprep.subr.bf16.mxu0 %v4106_v59  ;;  %1360 = vmatprep.subr.bf16.mxu1 %v4108_v60  ;;  %v4629_v59 = vld [vmem:[#allocation9 + $0x84] ss:$16 sps:$4 sm:$0xff] (!%p4117_p7)   ;;  %v4631_v60 = vld [vmem:[#allocation9 + $0x8c] ss:$16 sps:$4 sm:$0xff] (!%p4117_p7)  }
 0x162   : > { %1320 = vmatpush1.bf16.msra.mxu0 %v4105_v2  ;;  %1361 = vmatpush1.bf16.msra.mxu1 %v4107_v3  ;;  %v4639_v2 = vld [vmem:[#allocation9 + $0xa0] ss:$16 sps:$4 sm:$0xff] (!%p4117_p7)   ;;  %v4640_v3 = vld [vmem:[#allocation9 + $0xa8] ss:$16 sps:$4 sm:$0xff] (!%p4117_p7)  }
 0x163   : > { %1321 = vmatprep.subr.bf16.mxu0 %v4114_v4  ;;  %1362 = vmatprep.subr.bf16.mxu1 %v4116_v5  ;;  %v4641_v4 = vld [vmem:[#allocation9 + $0xc4] ss:$16 sps:$4 sm:$0xff] (!%p4117_p7)   ;;  %v4643_v5 = vld [vmem:[#allocation9 + $0xcc] ss:$16 sps:$4 sm:$0xff] (!%p4117_p7)  }
 0x166   : > { %1322 = vmatpush1.bf16.msra.mxu0 %v4113_v6  ;;  %1363 = vmatpush1.bf16.msra.mxu1 %v4115_v7  ;;  %v4645_v6 = vld [vmem:[#allocation9 + $0xc0] ss:$16 sps:$4 sm:$0xff] (!%p4117_p7)   ;;  %v4646_v7 = vld [vmem:[#allocation9 + $0xc8] ss:$16 sps:$4 sm:$0xff] (!%p4117_p7)  }
 0x167   : > { %3111 = vmatprep.subr.bf16.mxu0 (!%p4117_p7), %v4605_v42  ;;  %3275 = vmatprep.subr.bf16.mxu1 (!%p4117_p7), %v4607_v43  ;;  %v4681_v42 = vld [vmem:[#allocation9 + $0x180] ss:$16 sps:$4 sm:$0xff] (!%p4117_p7)   ;;  %v4682_v43 = vld [vmem:[#allocation9 + $0x188] ss:$16 sps:$4 sm:$0xff] (!%p4117_p7)  }
 0x169   : > { %1324 = vmatmul.mubr.bf16.vlgmr.msra.gmra.mrb[4].mxu0 %v5764_v14  ;;  %1365 = vmatmul.mubr.bf16.vlgmr.msra.gmra.mrb[4].mxu1 %v5764_v14 }
 0x16a   : > { %3112 = vmatpush1.bf16.msra.mxu0 (!%p4117_p7), %v4609_v44  ;;  %3276 = vmatpush1.bf16.msra.mxu1 (!%p4117_p7), %v4610_v45  ;;  %v4683_v45 = vld [vmem:[#allocation9 + $0x1a4] ss:$16 sps:$4 sm:$0xff] (!%p4117_p7)  }
 0x16b   : > { %3113 = vmatprep.subr.bf16.mxu0 (!%p4117_p7), %v4611_v46  ;;  %3277 = vmatprep.subr.bf16.mxu1 (!%p4117_p7), %v4613_v47  ;;  %v4685_v46 = vld [vmem:[#allocation9 + $0x1ac] ss:$16 sps:$4 sm:$0xff] (!%p4117_p7)  }
 0x16e   : > { %3114 = vmatpush1.bf16.msra.mxu0 (!%p4117_p7), %v4615_v48  ;;  %3278 = vmatpush1.bf16.msra.mxu1 (!%p4117_p7), %v4616_v49 }
 0x16f   : > { %3115 = vmatprep.subr.bf16.mxu0 (!%p4117_p7), %v4617_v50  ;;  %3279 = vmatprep.subr.bf16.mxu1 (!%p4117_p7), %v4619_v51  ;;  %v4687_v50 = vld [vmem:[#allocation9 + $0x1a0] ss:$16 sps:$4 sm:$0xff] (!%p4117_p7)   ;;  %v4688_v51 = vld [vmem:[#allocation9 + $0x1a8] ss:$16 sps:$4 sm:$0xff] (!%p4117_p7)  }
 0x172   : > { %3116 = vmatpush1.bf16.msra.mxu0 (!%p4117_p7), %v4621_v52  ;;  %3280 = vmatpush1.bf16.msra.mxu1 (!%p4117_p7), %v4622_v53  ;;  %v4689_v52 = vld [vmem:[#allocation9 + $0x1c4] ss:$16 sps:$4 sm:$0xff] (!%p4117_p7)   ;;  %v4691_v53 = vld [vmem:[#allocation9 + $0x1cc] ss:$16 sps:$4 sm:$0xff] (!%p4117_p7)  }
 0x173   : > { %3117 = vmatprep.subr.bf16.mxu0 (!%p4117_p7), %v4623_v55  ;;  %3281 = vmatprep.subr.bf16.mxu1 (!%p4117_p7), %v4625_v56 }
 0x176   : > { %3118 = vmatpush1.bf16.msra.mxu0 (!%p4117_p7), %v4627_v57  ;;  %3282 = vmatpush1.bf16.msra.mxu1 (!%p4117_p7), %v4628_v58  ;;  %v4693_v57 = vld [vmem:[#allocation9 + $0x1c0] ss:$16 sps:$4 sm:$0xff] (!%p4117_p7)   ;;  %v4694_v58 = vld [vmem:[#allocation9 + $0x1c8] ss:$16 sps:$4 sm:$0xff] (!%p4117_p7)  }
 0x177   : > { %3119 = vmatprep.subr.bf16.mxu0 (!%p4117_p7), %v4629_v59  ;;  %3283 = vmatprep.subr.bf16.mxu1 (!%p4117_p7), %v4631_v60  ;;  %v4695_v59 = vld [vmem:[#allocation9 + $0x1e4] ss:$16 sps:$4 sm:$0xff] (!%p4117_p7)   ;;  %v4697_v60 = vld [vmem:[#allocation9 + $0x1ec] ss:$16 sps:$4 sm:$0xff] (!%p4117_p7)  }
 0x17a   : > { %3120 = vmatpush1.bf16.msra.mxu0 (!%p4117_p7), %v4633_v61  ;;  %3284 = vmatpush1.bf16.msra.mxu1 (!%p4117_p7), %v4634_v63 }
 0x17b   : > { %3121 = vmatprep.subr.bf16.mxu0 (!%p4117_p7), %v4635_v0  ;;  %3285 = vmatprep.subr.bf16.mxu1 (!%p4117_p7), %v4637_v1 }
 0x17e   : > { %3122 = vmatpush1.bf16.msra.mxu0 (!%p4117_p7), %v4639_v2  ;;  %3286 = vmatpush1.bf16.msra.mxu1 (!%p4117_p7), %v4640_v3  ;;  %v4699_v2 = vld [vmem:[#allocation9 + $0x1e0] ss:$16 sps:$4 sm:$0xff] (!%p4117_p7)   ;;  %v4700_v3 = vld [vmem:[#allocation9 + $0x1e8] ss:$16 sps:$4 sm:$0xff] (!%p4117_p7)  }
 0x17f   : > { %3123 = vmatprep.subr.bf16.mxu0 (!%p4117_p7), %v4641_v4  ;;  %3287 = vmatprep.subr.bf16.mxu1 (!%p4117_p7), %v4643_v5  ;;  %v4703_v5 = vld [vmem:[#allocation9 + $0x204] ss:$16 sps:$4 sm:$0xff] (!%p4117_p7)  }
 0x182   : > { %3124 = vmatpush1.bf16.msra.mxu0 (!%p4117_p7), %v4645_v6  ;;  %3288 = vmatpush1.bf16.msra.mxu1 (!%p4117_p7), %v4646_v7  ;;  %v4706_v6 = vld [vmem:[#allocation9 + $0x20c] ss:$16 sps:$4 sm:$0xff] (!%p4117_p7)  }
 0x183   : > { %3125 = vmatprep.subr.bf16.mxu0 (!%p4117_p7), %v4647_v8  ;;  %3289 = vmatprep.subr.bf16.mxu1 (!%p4117_p7), %v4649_v9  ;;  %v4701_v9 = vld [vmem:[#allocation9 + $0x200] ss:$16 sps:$4 sm:$0xff] (!%p4117_p7)  }
 0x186   : > { %3126 = vmatpush1.bf16.msra.mxu0 (!%p4117_p7), %v4651_v11  ;;  %v4704_v11 = vld [vmem:[#allocation9 + $0x208] ss:$16 sps:$4 sm:$0xff] (!%p4117_p7)  }
 0x1fc   : > { %v1243_v13 = vpop.f32.mrb[0].mxu0  ;;  %v1284_v16 = vpop.f32.mrb[0].mxu1 }
 0x1fd   : > { %v1245_v17 = vpop.f32.mrb[1].mxu0  ;;  %v1286_v19 = vpop.f32.mrb[1].mxu1 }
 0x1fe   : > { %v1381_v18 = vcombine.low %v1243_v13, %v1245_v17  ;;  %v1247_v20 = vpop.f32.mrb[2].mxu0  ;;  %v1382_v21 = vcombine.low %v1284_v16, %v1286_v19  ;;  %v1288_v22 = vpop.f32.mrb[2].mxu1  ;;  %v4652_v13 = vld [vmem:[#allocation9 + $0xe8] ss:$16 sps:$4 sm:$0xff] (!%p4117_p7)   ;;  %v4653_v16 = vld [vmem:[#allocation9 + $0x104] ss:$16 sps:$4 sm:$0xff] (!%p4117_p7)  }
 0x1ff   : > { %v1248_v54 = vpop.f32.mrb[3].mxu0  ;;  %v1289_v23 = vpop.f32.mrb[3].mxu1  ;;  %v4655_v17 = vld [vmem:[#allocation9 + $0x10c] ss:$16 sps:$4 sm:$0xff] (!%p4117_p7)   ;;  %v4658_v19 = vld [vmem:[#allocation9 + $0x108] ss:$16 sps:$4 sm:$0xff] (!%p4117_p7)   ;;  %3290 = vmatpush1.bf16.msra.mxu1 (!%p4117_p7), %v4652_v13  ;;  %3127 = vmatprep.subr.bf16.mxu0 (!%p4117_p7), %v4653_v16 }
 0x200   : > { %v1389_v14 = vrot.slane %v1381_v18, %v5834_v15  ;;  %v1396_v24 = vrot.slane %v1382_v21, %v5834_v15  ;;  %v4657_v18 = vld [vmem:[#allocation9 + $0x100] ss:$16 sps:$4 sm:$0xff] (!%p4117_p7)   ;;  %v4659_v20 = vld [vmem:[#allocation9 + $0x124] ss:$16 sps:$4 sm:$0xff] (!%p4117_p7)   ;;  %3291 = vmatprep.subr.bf16.mxu1 (!%p4117_p7), %v4655_v17  ;;  %v4661_v21 = vld [vmem:[#allocation9 + $0x12c] ss:$16 sps:$4 sm:$0xff] (!%p4117_p7)  }
 0x201   : > { %v4663_v22 = vld [vmem:[#allocation9 + $0x120] ss:$16 sps:$4 sm:$0xff] (!%p4117_p7)   ;;  %3128 = vmatpush1.bf16.msra.mxu0 (!%p4117_p7), %v4657_v18  ;;  %v4664_v54 = vld [vmem:[#allocation9 + $0x128] ss:$16 sps:$4 sm:$0xff] (!%p4117_p7)   ;;  %v4667_v23 = vld [vmem:[#allocation9 + $0x14c] ss:$16 sps:$4 sm:$0xff] (!%p4117_p7)  }
 0x202   : > { %v1397_v26 = vcombine.low %v1389_v14, %v1396_v24  ;;  %v4665_v14 = vld [vmem:[#allocation9 + $0x144] ss:$16 sps:$4 sm:$0xff] (!%p4117_p7)   ;;  %3129 = vmatprep.subr.bf16.mxu0 (!%p4117_p7), %v4659_v20  ;;  %v4669_v24 = vld [vmem:[#allocation9 + $0x140] ss:$16 sps:$4 sm:$0xff] (!%p4117_p7)   ;;  %v4712_v16 = vld [vmem:[#allocation9 + $0x22c] ss:$16 sps:$4 sm:$0xff] (!%p4117_p7)  }
 0x203   : > { %3292 = vmatpush1.bf16.msra.mxu1 (!%p4117_p7), %v4658_v19  ;;  %v4709_v13 = vld [vmem:[#allocation9 + $0x224] ss:$16 sps:$4 sm:$0xff] (!%p4117_p7)   ;;  %v4707_v18 = vld [vmem:[#allocation9 + $0x220] ss:$16 sps:$4 sm:$0xff] (!%p4117_p7)   ;;  %v4710_v19 = vld [vmem:[#allocation9 + $0x228] ss:$16 sps:$4 sm:$0xff] (!%p4117_p7)  }
 0x204   : > { %v1417_v27 = vadd.f32 %v1397_v26, %v425_v25  ;;  %3293 = vmatprep.subr.bf16.mxu1 (!%p4117_p7), %v4661_v21  ;;  %v4670_v25 = vld [vmem:[#allocation9 + $0x148] ss:$16 sps:$4 sm:$0xff] (!%p4117_p7)   ;;  %v1431_v26 = vsub.s32 (!%p4117_p7), 0, %v5831_v12  ;;  %v4715_v20 = vld [vmem:[#allocation9 + $0x244] ss:$16 sps:$4 sm:$0xff] (!%p4117_p7)  }
 0x205   : > { %3130 = vmatpush1.bf16.msra.mxu0 (!%p4117_p7), %v4663_v22  ;;  %v4718_v21 = vld [vmem:[#allocation9 + $0x24c] ss:$16 sps:$4 sm:$0xff] (!%p4117_p7)   ;;  %v4713_v22 = vld [vmem:[#allocation9 + $0x240] ss:$16 sps:$4 sm:$0xff] (!%p4117_p7)  }
 0x206   : > { %1419 = vst [vmem:[#allocation2] sm:$0xff] %v1417_v27  ;;  %v4671_v27 = vld [vmem:[#allocation9 + $0x164] ss:$16 sps:$4 sm:$0xff] (!%p4117_p7)   ;;  %3131 = vmatprep.subr.bf16.mxu0 (!%p4117_p7), %v4665_v14 }
 0x207   : > { %3294 = vmatpush1.bf16.msra.mxu1 (!%p4117_p7), %v4664_v54  ;;  %v4716_v54 = vld [vmem:[#allocation9 + $0x248] ss:$16 sps:$4 sm:$0xff] (!%p4117_p7)   ;;  %v4721_v14 = vld [vmem:[#allocation9 + $0x264] ss:$16 sps:$4 sm:$0xff] (!%p4117_p7)  }
 0x208   : > { %3295 = vmatprep.subr.bf16.mxu1 (!%p4117_p7), %v4667_v23  ;;  %v4724_v23 = vld [vmem:[#allocation9 + $0x26c] ss:$16 sps:$4 sm:$0xff] (!%p4117_p7)  }
 0x209   : > { %3132 = vmatpush1.bf16.msra.mxu0 (!%p4117_p7), %v4669_v24  ;;  %v4719_v24 = vld [vmem:[#allocation9 + $0x260] ss:$16 sps:$4 sm:$0xff] (!%p4117_p7)  }
 0x20a   : > { %3133 = vmatprep.subr.bf16.mxu0 (!%p4117_p7), %v4671_v27  ;;  %v4727_v27 = vld [vmem:[#allocation9 + $0x284] ss:$16 sps:$4 sm:$0xff] (!%p4117_p7)  }
 0x20b   : > { %3296 = vmatpush1.bf16.msra.mxu1 (!%p4117_p7), %v4670_v25  ;;  %v4722_v25 = vld [vmem:[#allocation9 + $0x268] ss:$16 sps:$4 sm:$0xff] (!%p4117_p7)  }
 0x20d   : > { %v1425_v48 = vld [vmem:[#allocation2] sm:$0xff] (!%p4117_p7) }
 0x23c   : > { %v1325_v28 = vpop.f32.mrb[4].mxu0  ;;  %v1366_v29 = vpop.f32.mrb[4].mxu1 }
 0x23d   : > { %v1327_v30 = vpop.f32.mrb[5].mxu0  ;;  %v1368_v32 = vpop.f32.mrb[5].mxu1 }
 0x23e   : > { %v1398_v31 = vcombine.low %v1325_v28, %v1327_v30  ;;  %v1329_v33 = vpop.f32.mrb[6].mxu0  ;;  %v1399_v34 = vcombine.low %v1366_v29, %v1368_v32  ;;  %v1370_v35 = vpop.f32.mrb[6].mxu1  ;;  %v1435_v28 = vsub.s32 (!%p4117_p7), 1, %v5831_v12  ;;  %v1439_v29 = vsub.s32 (!%p4117_p7), 2, %v5831_v12  ;;  %v4673_v30 = vld [vmem:[#allocation9 + $0x16c] ss:$16 sps:$4 sm:$0xff] (!%p4117_p7)  }
 0x23f   : > { %v1330_v36 = vpop.f32.mrb[7].mxu0  ;;  %v1371_v38 = vpop.f32.mrb[7].mxu1  ;;  %v5845_v32 = vld [vmem:[#allocation8] sm:$0xff] (!%p4117_p7)  ;;  %v4675_v33 = vld [vmem:[#allocation9 + $0x160] ss:$16 sps:$4 sm:$0xff] (!%p4117_p7)   ;;  %3297 = vmatprep.subr.bf16.mxu1 (!%p4117_p7), %v4673_v30 }
 0x240   : > { %v1406_v37 = vrot.slane %v1398_v31, %v5834_v15  ;;  %v1413_v39 = vrot.slane %v1399_v34, %v5834_v15  ;;  %1424 = sbr.rel (%p4117_p7) target bundleno = 1546 (0x60a), region = 84  ;;  %v1443_v31 = vsub.s32 (!%p4117_p7), 3, %v5831_v12  ;;  %v4676_v34 = vld [vmem:[#allocation9 + $0x168] ss:$16 sps:$4 sm:$0xff] (!%p4117_p7)   ;;  %v1432_v35 = vrot.slane (!%p4117_p7), %v5845_v32, %v1431_v26  ;;  %v4677_v38 = vld [vmem:[#allocation9 + $0x184] ss:$16 sps:$4 sm:$0xff] (!%p4117_p7)   ;;  %3134 = vmatpush1.bf16.msra.mxu0 (!%p4117_p7), %v4675_v33 }
 0x241   : > { %v1436_v36 = vrot.slane (!%p4117_p7), %v5845_v32, %v1435_v28  ;;  %3298 = vmatpush1.bf16.msra.mxu1 (!%p4117_p7), %v4676_v34  ;;  %3135 = vmatprep.subr.bf16.mxu0 (!%p4117_p7), %v4677_v38  ;;  %v4730_v30 = vld [vmem:[#allocation9 + $0x28c] ss:$16 sps:$4 sm:$0xff] (!%p4117_p7)   ;;  %v4725_v33 = vld [vmem:[#allocation9 + $0x280] ss:$16 sps:$4 sm:$0xff] (!%p4117_p7)   ;;  %v4728_v34 = vld [vmem:[#allocation9 + $0x288] ss:$16 sps:$4 sm:$0xff] (!%p4117_p7)  }
 0x242   : > { %v1414_v62 = vcombine.low %v1406_v37, %v1413_v39  ;;  %v1440_v37 = vrot.slane (!%p4117_p7), %v5845_v32, %v1439_v29  ;;  %v4679_v39 = vld [vmem:[#allocation9 + $0x18c] ss:$16 sps:$4 sm:$0xff] (!%p4117_p7)   ;;  %v4734_v38 = vld [vmem:[#allocation9 + $0x2a8] ss:$16 sps:$4 sm:$0xff] (!%p4117_p7)  }
 0x243   : > { %3299 = vmatprep.subr.bf16.mxu1 (!%p4117_p7), %v4679_v39  ;;  %v4739_v39 = vld [vmem:[#allocation9 + $0x2c4] ss:$16 sps:$4 sm:$0xff] (!%p4117_p7)  }
 0x244   : > { %v1418_v41 = vadd.f32 %v1414_v62, %v426_v40  ;;  %v1444_v40 = vrot.slane (!%p4117_p7), %v5845_v32, %v1443_v31  ;;  %v1461_v62 = vcombine.low (!%p4117_p7), %v1432_v35, %v1436_v36  ;;  %3136 = vmatpush1.bf16.msra.mxu0 (!%p4117_p7), %v4681_v42  ;;  %v4733_v35 = vld [vmem:[#allocation9 + $0x2a4] ss:$16 sps:$4 sm:$0xff] (!%p4117_p7)   ;;  %v4736_v36 = vld [vmem:[#allocation9 + $0x2ac] ss:$16 sps:$4 sm:$0xff] (!%p4117_p7)  }
 0x245   : > { %3300 = vmatpush1.bf16.msra.mxu1 (!%p4117_p7), %v4682_v43  ;;  %3137 = vmatprep.subr.bf16.mxu0 (!%p4117_p7), %v4683_v45  ;;  %v4745_v42 = vld [vmem:[#allocation9 + $0x2e4] ss:$16 sps:$4 sm:$0xff] (!%p4117_p7)   ;;  %v4748_v43 = vld [vmem:[#allocation9 + $0x2ec] ss:$16 sps:$4 sm:$0xff] (!%p4117_p7)   ;;  %v4746_v45 = vld [vmem:[#allocation9 + $0x2e8] ss:$16 sps:$4 sm:$0xff] (!%p4117_p7)  }
 0x246   : > { %1420 = vst [vmem:[#allocation2 + $0x8] sm:$0xff] %v1418_v41  ;;  %v1462_v41 = vcombine.low (!%p4117_p7), %v1440_v37, %v1444_v40  ;;  %v1469_v44 = vrot.slane (!%p4117_p7), %v1461_v62, %v5834_v15  ;;  %3301 = vmatprep.subr.bf16.mxu1 (!%p4117_p7), %v4685_v46  ;;  %v4731_v37 = vld [vmem:[#allocation9 + $0x2a0] ss:$16 sps:$4 sm:$0xff] (!%p4117_p7)   ;;  %v4742_v40 = vld [vmem:[#allocation9 + $0x2cc] ss:$16 sps:$4 sm:$0xff] (!%p4117_p7)  }
 0x247   : > { %v4737_v62 = vld [vmem:[#allocation9 + $0x2c0] ss:$16 sps:$4 sm:$0xff]   ;;  %v4751_v46 = vld [vmem:[#allocation9 + $0x304] ss:$16 sps:$4 sm:$0xff]  }
 0x248   : > { %v1476_v47 = vrot.slane %v1462_v41, %v5834_v15  ;;  %3138 = vmatpush1.bf16.msra.mxu0 %v4687_v50  ;;  %v4740_v41 = vld [vmem:[#allocation9 + $0x2c8] ss:$16 sps:$4 sm:$0xff]   ;;  %v4757_v50 = vld [vmem:[#allocation9 + $0x324] ss:$16 sps:$4 sm:$0xff]  }
 0x249   : > { %3302 = vmatpush1.bf16.msra.mxu1 %v4688_v51  ;;  %3139 = vmatprep.subr.bf16.mxu0 %v4689_v52  ;;  %v4760_v51 = vld [vmem:[#allocation9 + $0x32c] ss:$16 sps:$4 sm:$0xff]   ;;  %v4755_v52 = vld [vmem:[#allocation9 + $0x320] ss:$16 sps:$4 sm:$0xff]  }
 0x24a   : > { %v1477_v49 = vcombine.low %v1469_v44, %v1476_v47  ;;  %3303 = vmatprep.subr.bf16.mxu1 %v4691_v53  ;;  %v4743_v44 = vld [vmem:[#allocation9 + $0x2e0] ss:$16 sps:$4 sm:$0xff]   ;;  %v4754_v47 = vld [vmem:[#allocation9 + $0x30c] ss:$16 sps:$4 sm:$0xff]   ;;  %v4758_v53 = vld [vmem:[#allocation9 + $0x328] ss:$16 sps:$4 sm:$0xff]  }
 0x24c   : > { %v1497_v55 = vadd.f32 %v1477_v49, %v1425_v48  ;;  %3140 = vmatpush1.bf16.msra.mxu0 %v4693_v57  ;;  %v4749_v48 = vld [vmem:[#allocation9 + $0x300] ss:$16 sps:$4 sm:$0xff]   ;;  %v4752_v49 = vld [vmem:[#allocation9 + $0x308] ss:$16 sps:$4 sm:$0xff]  }
 0x24d   : > { %3304 = vmatpush1.bf16.msra.mxu1 %v4694_v58  ;;  %3141 = vmatprep.subr.bf16.mxu0 %v4695_v59  ;;  %v4761_v57 = vld [vmem:[#allocation9 + $0x340] ss:$16 sps:$4 sm:$0xff]   ;;  %v4764_v58 = vld [vmem:[#allocation9 + $0x348] ss:$16 sps:$4 sm:$0xff]   ;;  %v4769_v59 = vld [vmem:[#allocation9 + $0x364] ss:$16 sps:$4 sm:$0xff]  }
 0x24e   : > { %v1499_v56 = vmax.f32 %v1497_v55, 0.0  ;;  %3305 = vmatprep.subr.bf16.mxu1 %v4697_v60  ;;  %v4763_v55 = vld [vmem:[#allocation9 + $0x344] ss:$16 sps:$4 sm:$0xff]   ;;  %v4772_v60 = vld [vmem:[#allocation9 + $0x36c] ss:$16 sps:$4 sm:$0xff]  }
 0x250   : > { %v1510_v61 = vrot.slane %v1499_v56, %v5834_v15  ;;  %v1503_v63 = vcombine.high %v1499_v56, %v1499_v56  ;;  %3142 = vmatpush1.bf16.msra.mxu0 %v4699_v2  ;;  %v4766_v56 = vld [vmem:[#allocation9 + $0x34c] ss:$16 sps:$4 sm:$0xff]   ;;  %v4770_v2 = vld [vmem:[#allocation9 + $0x368] ss:$16 sps:$4 sm:$0xff]  }
 0x251   : > { %3306 = vmatpush1.bf16.msra.mxu1 %v4700_v3  ;;  %3152 = vmatprep.subr.bf16.mxu0 %v4703_v5  ;;  %v1455_v3 = vsub.s32 6, %v5831_v12  ;;  %v4778_v5 = vld [vmem:[#allocation9 + $0x38c] ss:$16 sps:$4 sm:$0xff]  }
 0x252   : > { %v1518_v0 = vcombine.high %v1510_v61, %v1510_v61  ;;  %v5863_v1 = vrot.slane %v1503_v63, %v5834_v15  ;;  %v1545_v8 = vpack.c.bf16 %v1510_v61, %v1510_v61  ;;  %3316 = vmatprep.subr.bf16.mxu1 %v4706_v6  ;;  %v1447_v61 = vsub.s32 4, %v5831_v12 }
 0x253   : > { %v1451_v63 = vsub.s32 5, %v5831_v12  ;;  %v1459_v6 = vsub.s32 7, %v5831_v12 }
 0x254   : > { %v1546_v4 = vpack.c.bf16 %v1518_v0, %v1518_v0  ;;  %v1519_v7 = vcombine.high %v5863_v1, %v5863_v1  ;;  %v4767_v0 = vld [vmem:[#allocation9 + $0x360] ss:$16 sps:$4 sm:$0xff]  }
 0x256   : > { %3143 = vmatprep.mubr.bf16.mxu0 %v1546_v4  ;;  %3307 = vmatprep.mubr.bf16.mxu1 %v1546_v4  ;;  %v1548_v17 = vpack.c.bf16 %v1519_v7, %v1519_v7  ;;  %v4775_v4 = vld [vmem:[#allocation9 + $0x384] ss:$16 sps:$4 sm:$0xff]   ;;  %v4773_v7 = vld [vmem:[#allocation9 + $0x380] ss:$16 sps:$4 sm:$0xff]  }
 0x257   : > { %3144 = vmatmul.mubr.bf16.vlgmr.msra.gmra.mrb[0].mxu0 %v1545_v8  ;;  %3308 = vmatmul.mubr.bf16.vlgmr.msra.gmra.mrb[0].mxu1 %v1545_v8  ;;  %v4776_v8 = vld [vmem:[#allocation9 + $0x388] ss:$16 sps:$4 sm:$0xff]  }
 0x258   : > { %3153 = vmatpush1.bf16.msra.mxu0 %v4701_v9  ;;  %3317 = vmatpush1.bf16.msra.mxu1 %v4704_v11  ;;  %v1448_v9 = vrot.slane %v5845_v32, %v1447_v61  ;;  %v4781_v11 = vld [vmem:[#allocation9 + $0x3a4] ss:$16 sps:$4 sm:$0xff]   ;;  %v4824_v61 = vld [vmem:[#allocation9 + $0x488] ss:$16 sps:$4 sm:$0xff]  }
 0x259   : > { %3154 = vmatprep.subr.bf16.mxu0 %v4709_v13  ;;  %3318 = vmatprep.subr.bf16.mxu1 %v4712_v16  ;;  %v4784_v13 = vld [vmem:[#allocation9 + $0x3ac] ss:$16 sps:$4 sm:$0xff]   ;;  %v1452_v16 = vrot.slane %v5845_v32, %v1451_v63  ;;  %v4829_v63 = vld [vmem:[#allocation9 + $0x4a4] ss:$16 sps:$4 sm:$0xff]  }
 0x25a   : > { %3184 = vmatprep.mubr.bf16.mxu0 %v1548_v17  ;;  %3348 = vmatprep.mubr.bf16.mxu1 %v1548_v17  ;;  %v1456_v17 = vrot.slane %v5845_v32, %v1455_v3  ;;  %v4830_v3 = vld [vmem:[#allocation9 + $0x4a8] ss:$16 sps:$4 sm:$0xff]  }
 0x25c   : > { %3155 = vmatpush1.bf16.msra.mxu0 %v4707_v18  ;;  %3319 = vmatpush1.bf16.msra.mxu1 %v4710_v19  ;;  %v1460_v18 = vrot.slane %v5845_v32, %v1459_v6  ;;  %v4779_v19 = vld [vmem:[#allocation9 + $0x3a0] ss:$16 sps:$4 sm:$0xff]  }
 0x25d   : > { %3156 = vmatprep.subr.bf16.mxu0 %v4715_v20  ;;  %3320 = vmatprep.subr.bf16.mxu1 %v4718_v21  ;;  %v4782_v20 = vld [vmem:[#allocation9 + $0x3a8] ss:$16 sps:$4 sm:$0xff]   ;;  %v4787_v21 = vld [vmem:[#allocation9 + $0x3c4] ss:$16 sps:$4 sm:$0xff]   ;;  %v4833_v6 = vld [vmem:[#allocation9 + $0x4c0] ss:$16 sps:$4 sm:$0xff]  }
 0x260   : > { %3157 = vmatpush1.bf16.msra.mxu0 %v4713_v22  ;;  %3321 = vmatpush1.bf16.msra.mxu1 %v4716_v54  ;;  %v4790_v22 = vld [vmem:[#allocation9 + $0x3cc] ss:$16 sps:$4 sm:$0xff]   ;;  %v1478_v54 = vcombine.low %v1448_v9, %v1452_v16  ;;  %v4847_v16 = vld [vmem:[#allocation9 + $0x504] ss:$16 sps:$4 sm:$0xff]  }
 0x261   : > { %3158 = vmatprep.subr.bf16.mxu0 %v4721_v14  ;;  %3322 = vmatprep.subr.bf16.mxu1 %v4724_v23  ;;  %v1479_v14 = vcombine.low %v1456_v17, %v1460_v18  ;;  %v4785_v23 = vld [vmem:[#allocation9 + $0x3c0] ss:$16 sps:$4 sm:$0xff]   ;;  %v4844_v9 = vld [vmem:[#allocation9 + $0x4ec] ss:$16 sps:$4 sm:$0xff]  }
 0x262   : > { %v1486_v32 = vrot.slane %v1478_v54, %v5834_v15  ;;  %v4850_v17 = vld [vmem:[#allocation9 + $0x50c] ss:$16 sps:$4 sm:$0xff]   ;;  %v4845_v18 = vld [vmem:[#allocation9 + $0x500] ss:$16 sps:$4 sm:$0xff]   ;;  %v4854_v54 = vld [vmem:[#allocation9 + $0x528] ss:$16 sps:$4 sm:$0xff]  }
 0x264   : > { %3159 = vmatpush1.bf16.msra.mxu0 %v4719_v24  ;;  %3323 = vmatpush1.bf16.msra.mxu1 %v4722_v25  ;;  %v4788_v24 = vld [vmem:[#allocation9 + $0x3c8] ss:$16 sps:$4 sm:$0xff]   ;;  %v4793_v25 = vld [vmem:[#allocation9 + $0x3e4] ss:$16 sps:$4 sm:$0xff]  }
 0x265   : > { %3160 = vmatprep.subr.bf16.mxu0 %v4727_v27  ;;  %3324 = vmatprep.subr.bf16.mxu1 %v4730_v30  ;;  %v4796_v27 = vld [vmem:[#allocation9 + $0x3ec] ss:$16 sps:$4 sm:$0xff]   ;;  %v1493_v30 = vrot.slane %v1479_v14, %v5834_v15  ;;  %v4859_v14 = vld [vmem:[#allocation9 + $0x544] ss:$16 sps:$4 sm:$0xff]  }
 0x268   : > { %3161 = vmatpush1.bf16.msra.mxu0 %v4725_v33  ;;  %3325 = vmatpush1.bf16.msra.mxu1 %v4728_v34  ;;  %v4791_v33 = vld [vmem:[#allocation9 + $0x3e0] ss:$16 sps:$4 sm:$0xff]   ;;  %v4794_v34 = vld [vmem:[#allocation9 + $0x3e8] ss:$16 sps:$4 sm:$0xff]  }
 0x269   : > { %3162 = vmatprep.subr.bf16.mxu0 %v4733_v35  ;;  %3326 = vmatprep.subr.bf16.mxu1 %v4736_v36  ;;  %v4799_v35 = vld [vmem:[#allocation9 + $0x404] ss:$16 sps:$4 sm:$0xff]   ;;  %v4802_v36 = vld [vmem:[#allocation9 + $0x40c] ss:$16 sps:$4 sm:$0xff]  }
 0x26c   : > { %3163 = vmatpush1.bf16.msra.mxu0 %v4731_v37  ;;  %3327 = vmatpush1.bf16.msra.mxu1 %v4734_v38  ;;  %v1494_v37 = vcombine.low %v1486_v32, %v1493_v30  ;;  %v4797_v38 = vld [vmem:[#allocation9 + $0x400] ss:$16 sps:$4 sm:$0xff]   ;;  %v4868_v32 = vld [vmem:[#allocation9 + $0x56c] ss:$16 sps:$4 sm:$0xff]  }
 0x26d   : > { %3164 = vmatprep.subr.bf16.mxu0 %v4739_v39  ;;  %3328 = vmatprep.subr.bf16.mxu1 %v4742_v40  ;;  %v1547_v39 = vpack.c.bf16 %v5863_v1, %v5863_v1  ;;  %v4800_v40 = vld [vmem:[#allocation9 + $0x408] ss:$16 sps:$4 sm:$0xff]   ;;  %v4814_v1 = vld [vmem:[#allocation9 + $0x44c] ss:$16 sps:$4 sm:$0xff]   ;;  %v4863_v30 = vld [vmem:[#allocation9 + $0x560] ss:$16 sps:$4 sm:$0xff]  }
 0x270   : > { %3165 = vmatpush1.bf16.msra.mxu0 %v4737_v62  ;;  %3329 = vmatpush1.bf16.msra.mxu1 %v4740_v41  ;;  %v4805_v62 = vld [vmem:[#allocation9 + $0x424] ss:$16 sps:$4 sm:$0xff]   ;;  %v1426_v41 = vld [vmem:[#allocation2 + $0x8] sm:$0xff] }
 0x271   : > { %3166 = vmatprep.subr.bf16.mxu0 %v4745_v42  ;;  %3330 = vmatprep.subr.bf16.mxu1 %v4748_v43  ;;  %v4808_v42 = vld [vmem:[#allocation9 + $0x42c] ss:$16 sps:$4 sm:$0xff]   ;;  %v1498_v43 = vadd.f32 %v1494_v37, %v1426_v41  ;;  %v4872_v37 = vld [vmem:[#allocation9 + $0x588] ss:$16 sps:$4 sm:$0xff]   ;;  %v4883_v41 = vld [vmem:[#allocation9 + $0x5c4] ss:$16 sps:$4 sm:$0xff]  }
 0x274   : > { %3167 = vmatpush1.bf16.msra.mxu0 %v4743_v44  ;;  %3331 = vmatpush1.bf16.msra.mxu1 %v4746_v45  ;;  %v4803_v44 = vld [vmem:[#allocation9 + $0x420] ss:$16 sps:$4 sm:$0xff]   ;;  %v5879_v45 = vmax.f32 %v1498_v43, 0.0 }
 0x275   : > { %3168 = vmatprep.subr.bf16.mxu0 %v4751_v46  ;;  %3332 = vmatprep.subr.bf16.mxu1 %v4754_v47  ;;  %v4806_v46 = vld [vmem:[#allocation9 + $0x428] ss:$16 sps:$4 sm:$0xff]   ;;  %v4811_v47 = vld [vmem:[#allocation9 + $0x444] ss:$16 sps:$4 sm:$0xff]   ;;  %v4881_v43 = vld [vmem:[#allocation9 + $0x5c0] ss:$16 sps:$4 sm:$0xff]  }
 0x278   : > { %3169 = vmatpush1.bf16.msra.mxu0 %v4749_v48  ;;  %3333 = vmatpush1.bf16.msra.mxu1 %v4752_v49  ;;  %v5883_v48 = vrot.slane %v5879_v45, %v5834_v15  ;;  %v4809_v49 = vld [vmem:[#allocation9 + $0x440] ss:$16 sps:$4 sm:$0xff]  }
 0x279   : > { %3170 = vmatprep.subr.bf16.mxu0 %v4757_v50  ;;  %3334 = vmatprep.subr.bf16.mxu1 %v4760_v51  ;;  %v4812_v51 = vld [vmem:[#allocation9 + $0x448] ss:$16 sps:$4 sm:$0xff]  }
 0x27a   : > { %v1535_v50 = vcombine.high %v5883_v48, %v5883_v48 }
 0x27c   : > { %3171 = vmatpush1.bf16.msra.mxu0 %v4755_v52  ;;  %3335 = vmatpush1.bf16.msra.mxu1 %v4758_v53  ;;  %v4817_v52 = vld [vmem:[#allocation9 + $0x464] ss:$16 sps:$4 sm:$0xff]   ;;  %v4820_v53 = vld [vmem:[#allocation9 + $0x46c] ss:$16 sps:$4 sm:$0xff]  }
 0x27d   : > { %3172 = vmatprep.subr.bf16.mxu0 %v4763_v55  ;;  %3336 = vmatprep.subr.bf16.mxu1 %v4766_v56  ;;  %v1550_v55 = vpack.c.bf16 %v1535_v50, %v1535_v50  ;;  %v4815_v56 = vld [vmem:[#allocation9 + $0x460] ss:$16 sps:$4 sm:$0xff]  }
 0x280   : > { %3173 = vmatpush1.bf16.msra.mxu0 %v4761_v57  ;;  %3337 = vmatpush1.bf16.msra.mxu1 %v4764_v58  ;;  %v4818_v57 = vld [vmem:[#allocation9 + $0x468] ss:$16 sps:$4 sm:$0xff]   ;;  %v4823_v58 = vld [vmem:[#allocation9 + $0x484] ss:$16 sps:$4 sm:$0xff]  }
 0x281   : > { %3174 = vmatprep.subr.bf16.mxu0 %v4769_v59  ;;  %3338 = vmatprep.subr.bf16.mxu1 %v4772_v60  ;;  %v4826_v59 = vld [vmem:[#allocation9 + $0x48c] ss:$16 sps:$4 sm:$0xff]   ;;  %v4821_v60 = vld [vmem:[#allocation9 + $0x480] ss:$16 sps:$4 sm:$0xff]  }
 0x284   : > { %3175 = vmatpush1.bf16.msra.mxu0 %v4767_v0  ;;  %3339 = vmatpush1.bf16.msra.mxu1 %v4770_v2  ;;  %v4832_v0 = vld [vmem:[#allocation9 + $0x4ac] ss:$16 sps:$4 sm:$0xff]   ;;  %v4827_v2 = vld [vmem:[#allocation9 + $0x4a0] ss:$16 sps:$4 sm:$0xff]  }
 0x285   : > { %3176 = vmatprep.subr.bf16.mxu0 %v4775_v4  ;;  %3340 = vmatprep.subr.bf16.mxu1 %v4778_v5  ;;  %v4835_v4 = vld [vmem:[#allocation9 + $0x4c4] ss:$16 sps:$4 sm:$0xff]   ;;  %v4838_v5 = vld [vmem:[#allocation9 + $0x4cc] ss:$16 sps:$4 sm:$0xff]  }
 0x288   : > { %3177 = vmatpush1.bf16.msra.mxu0 %v4773_v7  ;;  %3341 = vmatpush1.bf16.msra.mxu1 %v4776_v8  ;;  %v4836_v7 = vld [vmem:[#allocation9 + $0x4c8] ss:$16 sps:$4 sm:$0xff]   ;;  %v4841_v8 = vld [vmem:[#allocation9 + $0x4e4] ss:$16 sps:$4 sm:$0xff]  }
 0x289   : > { %3178 = vmatprep.subr.bf16.mxu0 %v4781_v11  ;;  %3342 = vmatprep.subr.bf16.mxu1 %v4784_v13  ;;  %v4839_v11 = vld [vmem:[#allocation9 + $0x4e0] ss:$16 sps:$4 sm:$0xff]   ;;  %v4842_v13 = vld [vmem:[#allocation9 + $0x4e8] ss:$16 sps:$4 sm:$0xff]  }
 0x28c   : > { %3179 = vmatpush1.bf16.msra.mxu0 %v4779_v19  ;;  %3343 = vmatpush1.bf16.msra.mxu1 %v4782_v20  ;;  %v4848_v19 = vld [vmem:[#allocation9 + $0x508] ss:$16 sps:$4 sm:$0xff]   ;;  %v4853_v20 = vld [vmem:[#allocation9 + $0x524] ss:$16 sps:$4 sm:$0xff]  }
 0x28d   : > { %3180 = vmatprep.subr.bf16.mxu0 %v4787_v21  ;;  %3344 = vmatprep.subr.bf16.mxu1 %v4790_v22  ;;  %v4856_v21 = vld [vmem:[#allocation9 + $0x52c] ss:$16 sps:$4 sm:$0xff]   ;;  %v4851_v22 = vld [vmem:[#allocation9 + $0x520] ss:$16 sps:$4 sm:$0xff]  }
 0x290   : > { %3181 = vmatpush1.bf16.msra.mxu0 %v4785_v23  ;;  %3345 = vmatpush1.bf16.msra.mxu1 %v4788_v24  ;;  %v4862_v23 = vld [vmem:[#allocation9 + $0x54c] ss:$16 sps:$4 sm:$0xff]   ;;  %v4857_v24 = vld [vmem:[#allocation9 + $0x540] ss:$16 sps:$4 sm:$0xff]  }
 0x291   : > { %3182 = vmatprep.subr.bf16.mxu0 %v4793_v25  ;;  %3346 = vmatprep.subr.bf16.mxu1 %v4796_v27  ;;  %v4860_v25 = vld [vmem:[#allocation9 + $0x548] ss:$16 sps:$4 sm:$0xff]   ;;  %v4865_v27 = vld [vmem:[#allocation9 + $0x564] ss:$16 sps:$4 sm:$0xff]  }
 0x294   : > { %3183 = vmatpush1.bf16.msra.mxu0 %v4791_v33  ;;  %3347 = vmatpush1.bf16.msra.mxu1 %v4794_v34  ;;  %v4866_v33 = vld [vmem:[#allocation9 + $0x568] ss:$16 sps:$4 sm:$0xff]   ;;  %v4871_v34 = vld [vmem:[#allocation9 + $0x584] ss:$16 sps:$4 sm:$0xff]  }
 0x295   : > { %3193 = vmatprep.subr.bf16.mxu0 %v4799_v35  ;;  %3357 = vmatprep.subr.bf16.mxu1 %v4802_v36  ;;  %v4874_v35 = vld [vmem:[#allocation9 + $0x58c] ss:$16 sps:$4 sm:$0xff]   ;;  %v4869_v36 = vld [vmem:[#allocation9 + $0x580] ss:$16 sps:$4 sm:$0xff]  }
 0x297   : > { %3185 = vmatmul.mubr.bf16.vlgmr.msra.gmra.mrb[0].mxu0 %v1547_v39  ;;  %3349 = vmatmul.mubr.bf16.vlgmr.msra.gmra.mrb[0].mxu1 %v1547_v39  ;;  %v4880_v39 = vld [vmem:[#allocation9 + $0x5ac] ss:$16 sps:$4 sm:$0xff]  }
 0x298   : > { %3194 = vmatpush1.bf16.msra.mxu0 %v4797_v38  ;;  %3358 = vmatpush1.bf16.msra.mxu1 %v4800_v40  ;;  %v4877_v38 = vld [vmem:[#allocation9 + $0x5a4] ss:$16 sps:$4 sm:$0xff]   ;;  %v4875_v40 = vld [vmem:[#allocation9 + $0x5a0] ss:$16 sps:$4 sm:$0xff]  }
 0x299   : > { %3195 = vmatprep.subr.bf16.mxu0 %v4805_v62  ;;  %3359 = vmatprep.subr.bf16.mxu1 %v4808_v42  ;;  %v4878_v62 = vld [vmem:[#allocation9 + $0x5a8] ss:$16 sps:$4 sm:$0xff]   ;;  %v4886_v42 = vld [vmem:[#allocation9 + $0x5cc] ss:$16 sps:$4 sm:$0xff]  }
 0x29a   : > { %3225 = vmatprep.mubr.bf16.mxu0 %v1550_v55  ;;  %3389 = vmatprep.mubr.bf16.mxu1 %v1550_v55  ;;  %v4893_v55 = vld [vmem:[#allocation9 + $0x600] ss:$16 sps:$4 sm:$0xff]  }
 0x29c   : > { %3196 = vmatpush1.bf16.msra.mxu0 %v4803_v44  ;;  %3360 = vmatpush1.bf16.msra.mxu1 %v4806_v46  ;;  %v1520_v44 = vcombine.high %v5879_v45, %v5879_v45  ;;  %v4884_v46 = vld [vmem:[#allocation9 + $0x5c8] ss:$16 sps:$4 sm:$0xff]  }
 0x29d   : > { %3197 = vmatprep.subr.bf16.mxu0 %v4811_v47  ;;  %3361 = vmatprep.subr.bf16.mxu1 %v4814_v1  ;;  %v4889_v47 = vld [vmem:[#allocation9 + $0x5e4] ss:$16 sps:$4 sm:$0xff]   ;;  %v4892_v1 = vld [vmem:[#allocation9 + $0x5ec] ss:$16 sps:$4 sm:$0xff]  }
 0x29e   : > { %v5890_v50 = vrot.slane %v1520_v44, %v5834_v15  ;;  %v4904_v15 = vld [vmem:[#allocation9 + $0x62c] ss:$16 sps:$4 sm:$0xff]   ;;  %v4967_v44 = vld [vmem:[#allocation9 + $0x784] ss:$16 sps:$4 sm:$0xff]  }
 0x2a0   : > { %3198 = vmatpush1.bf16.msra.mxu0 %v4809_v49  ;;  %3362 = vmatpush1.bf16.msra.mxu1 %v4812_v51  ;;  %v4887_v49 = vld [vmem:[#allocation9 + $0x5e0] ss:$16 sps:$4 sm:$0xff]   ;;  %v4890_v51 = vld [vmem:[#allocation9 + $0x5e8] ss:$16 sps:$4 sm:$0xff]   ;;  %v1536_v45 = vcombine.high %v5890_v50, %v5890_v50 }
 0x2a1   : > { %3199 = vmatprep.subr.bf16.mxu0 %v4817_v52  ;;  %3363 = vmatprep.subr.bf16.mxu1 %v4820_v53  ;;  %v4895_v52 = vld [vmem:[#allocation9 + $0x604] ss:$16 sps:$4 sm:$0xff]   ;;  %v4898_v53 = vld [vmem:[#allocation9 + $0x60c] ss:$16 sps:$4 sm:$0xff]  }
 0x2a4   : > { %3200 = vmatpush1.bf16.msra.mxu0 %v4815_v56  ;;  %3364 = vmatpush1.bf16.msra.mxu1 %v4818_v57  ;;  %v4896_v56 = vld [vmem:[#allocation9 + $0x608] ss:$16 sps:$4 sm:$0xff]   ;;  %v1549_v57 = vpack.c.bf16 %v5883_v48, %v5883_v48  ;;  %v4913_v48 = vld [vmem:[#allocation9 + $0x664] ss:$16 sps:$4 sm:$0xff]  }
 0x2a5   : > { %3201 = vmatprep.subr.bf16.mxu0 %v4823_v58  ;;  %3365 = vmatprep.subr.bf16.mxu1 %v4826_v59  ;;  %v4901_v58 = vld [vmem:[#allocation9 + $0x624] ss:$16 sps:$4 sm:$0xff]   ;;  %v4899_v59 = vld [vmem:[#allocation9 + $0x620] ss:$16 sps:$4 sm:$0xff]  }
 0x2a8   : > { %3202 = vmatpush1.bf16.msra.mxu0 %v4821_v60  ;;  %3366 = vmatpush1.bf16.msra.mxu1 %v4824_v61  ;;  %v4902_v60 = vld [vmem:[#allocation9 + $0x628] ss:$16 sps:$4 sm:$0xff]   ;;  %v1552_v61 = vpack.c.bf16 %v1536_v45, %v1536_v45  ;;  %v4982_v45 = vld [vmem:[#allocation9 + $0x7cc] ss:$16 sps:$4 sm:$0xff]  }
 0x2a9   : > { %3203 = vmatprep.subr.bf16.mxu0 %v4829_v63  ;;  %3367 = vmatprep.subr.bf16.mxu1 %v4832_v0  ;;  %v4907_v63 = vld [vmem:[#allocation9 + $0x644] ss:$16 sps:$4 sm:$0xff]   ;;  %v4910_v0 = vld [vmem:[#allocation9 + $0x64c] ss:$16 sps:$4 sm:$0xff]  }
 0x2ac   : > { %3204 = vmatpush1.bf16.msra.mxu0 %v4827_v2  ;;  %3368 = vmatpush1.bf16.msra.mxu1 %v4830_v3  ;;  %v4905_v2 = vld [vmem:[#allocation9 + $0x640] ss:$16 sps:$4 sm:$0xff]   ;;  %v4908_v3 = vld [vmem:[#allocation9 + $0x648] ss:$16 sps:$4 sm:$0xff]  }
 0x2ad   : > { %3205 = vmatprep.subr.bf16.mxu0 %v4835_v4  ;;  %3369 = vmatprep.subr.bf16.mxu1 %v4838_v5  ;;  %v4916_v4 = vld [vmem:[#allocation9 + $0x66c] ss:$16 sps:$4 sm:$0xff]   ;;  %v4911_v5 = vld [vmem:[#allocation9 + $0x660] ss:$16 sps:$4 sm:$0xff]  }
 0x2b0   : > { %3206 = vmatpush1.bf16.msra.mxu0 %v4833_v6  ;;  %3370 = vmatpush1.bf16.msra.mxu1 %v4836_v7  ;;  %v4914_v6 = vld [vmem:[#allocation9 + $0x668] ss:$16 sps:$4 sm:$0xff]   ;;  %v4919_v7 = vld [vmem:[#allocation9 + $0x684] ss:$16 sps:$4 sm:$0xff]  }
 0x2b1   : > { %3207 = vmatprep.subr.bf16.mxu0 %v4841_v8  ;;  %3371 = vmatprep.subr.bf16.mxu1 %v4844_v9  ;;  %v4922_v8 = vld [vmem:[#allocation9 + $0x68c] ss:$16 sps:$4 sm:$0xff]   ;;  %v4917_v9 = vld [vmem:[#allocation9 + $0x680] ss:$16 sps:$4 sm:$0xff]  }
 0x2b4   : > { %3208 = vmatpush1.bf16.msra.mxu0 %v4839_v11  ;;  %3372 = vmatpush1.bf16.msra.mxu1 %v4842_v13  ;;  %v4920_v11 = vld [vmem:[#allocation9 + $0x688] ss:$16 sps:$4 sm:$0xff]   ;;  %v4925_v13 = vld [vmem:[#allocation9 + $0x6a4] ss:$16 sps:$4 sm:$0xff]  }
 0x2b5   : > { %3209 = vmatprep.subr.bf16.mxu0 %v4847_v16  ;;  %3373 = vmatprep.subr.bf16.mxu1 %v4850_v17  ;;  %v4928_v16 = vld [vmem:[#allocation9 + $0x6ac] ss:$16 sps:$4 sm:$0xff]   ;;  %v4923_v17 = vld [vmem:[#allocation9 + $0x6a0] ss:$16 sps:$4 sm:$0xff]  }
 0x2b8   : > { %3210 = vmatpush1.bf16.msra.mxu0 %v4845_v18  ;;  %3374 = vmatpush1.bf16.msra.mxu1 %v4848_v19  ;;  %v4926_v18 = vld [vmem:[#allocation9 + $0x6a8] ss:$16 sps:$4 sm:$0xff]   ;;  %v4931_v19 = vld [vmem:[#allocation9 + $0x6c4] ss:$16 sps:$4 sm:$0xff]  }
 0x2b9   : > { %3211 = vmatprep.subr.bf16.mxu0 %v4853_v20  ;;  %3375 = vmatprep.subr.bf16.mxu1 %v4856_v21  ;;  %v4934_v20 = vld [vmem:[#allocation9 + $0x6cc] ss:$16 sps:$4 sm:$0xff]   ;;  %v4929_v21 = vld [vmem:[#allocation9 + $0x6c0] ss:$16 sps:$4 sm:$0xff]  }
 0x2bc   : > { %3212 = vmatpush1.bf16.msra.mxu0 %v4851_v22  ;;  %3376 = vmatpush1.bf16.msra.mxu1 %v4854_v54  ;;  %v4932_v22 = vld [vmem:[#allocation9 + $0x6c8] ss:$16 sps:$4 sm:$0xff]   ;;  %v4937_v54 = vld [vmem:[#allocation9 + $0x6e4] ss:$16 sps:$4 sm:$0xff]  }
 0x2bd   : > { %3213 = vmatprep.subr.bf16.mxu0 %v4859_v14  ;;  %3377 = vmatprep.subr.bf16.mxu1 %v4862_v23  ;;  %v4940_v14 = vld [vmem:[#allocation9 + $0x6ec] ss:$16 sps:$4 sm:$0xff]   ;;  %v4935_v23 = vld [vmem:[#allocation9 + $0x6e0] ss:$16 sps:$4 sm:$0xff]  }
 0x2c0   : > { %3214 = vmatpush1.bf16.msra.mxu0 %v4857_v24  ;;  %3378 = vmatpush1.bf16.msra.mxu1 %v4860_v25  ;;  %v4938_v24 = vld [vmem:[#allocation9 + $0x6e8] ss:$16 sps:$4 sm:$0xff]   ;;  %v4943_v25 = vld [vmem:[#allocation9 + $0x704] ss:$16 sps:$4 sm:$0xff]  }
 0x2c1   : > { %3215 = vmatprep.subr.bf16.mxu0 %v4865_v27  ;;  %3379 = vmatprep.subr.bf16.mxu1 %v4868_v32  ;;  %v4946_v27 = vld [vmem:[#allocation9 + $0x70c] ss:$16 sps:$4 sm:$0xff]   ;;  %v4941_v32 = vld [vmem:[#allocation9 + $0x700] ss:$16 sps:$4 sm:$0xff]  }
 0x2c4   : > { %3216 = vmatpush1.bf16.msra.mxu0 %v4863_v30  ;;  %3380 = vmatpush1.bf16.msra.mxu1 %v4866_v33  ;;  %v4944_v30 = vld [vmem:[#allocation9 + $0x708] ss:$16 sps:$4 sm:$0xff]   ;;  %v4949_v33 = vld [vmem:[#allocation9 + $0x724] ss:$16 sps:$4 sm:$0xff]  }
 0x2c5   : > { %3217 = vmatprep.subr.bf16.mxu0 %v4871_v34  ;;  %3381 = vmatprep.subr.bf16.mxu1 %v4874_v35  ;;  %v4952_v34 = vld [vmem:[#allocation9 + $0x72c] ss:$16 sps:$4 sm:$0xff]   ;;  %v4947_v35 = vld [vmem:[#allocation9 + $0x720] ss:$16 sps:$4 sm:$0xff]  }
 0x2c8   : > { %3218 = vmatpush1.bf16.msra.mxu0 %v4869_v36  ;;  %3382 = vmatpush1.bf16.msra.mxu1 %v4872_v37  ;;  %v4950_v36 = vld [vmem:[#allocation9 + $0x728] ss:$16 sps:$4 sm:$0xff]   ;;  %v4955_v37 = vld [vmem:[#allocation9 + $0x744] ss:$16 sps:$4 sm:$0xff]  }
 0x2c9   : > { %3219 = vmatprep.subr.bf16.mxu0 %v4877_v38  ;;  %3383 = vmatprep.subr.bf16.mxu1 %v4880_v39  ;;  %v4958_v38 = vld [vmem:[#allocation9 + $0x74c] ss:$16 sps:$4 sm:$0xff]   ;;  %v4953_v39 = vld [vmem:[#allocation9 + $0x740] ss:$16 sps:$4 sm:$0xff]  }
 0x2cc   : > { %3220 = vmatpush1.bf16.msra.mxu0 %v4875_v40  ;;  %3384 = vmatpush1.bf16.msra.mxu1 %v4878_v62  ;;  %v4956_v40 = vld [vmem:[#allocation9 + $0x748] ss:$16 sps:$4 sm:$0xff]   ;;  %v4961_v62 = vld [vmem:[#allocation9 + $0x764] ss:$16 sps:$4 sm:$0xff]  }
 0x2cd   : > { %3221 = vmatprep.subr.bf16.mxu0 %v4883_v41  ;;  %3385 = vmatprep.subr.bf16.mxu1 %v4886_v42  ;;  %v4964_v41 = vld [vmem:[#allocation9 + $0x76c] ss:$16 sps:$4 sm:$0xff]   ;;  %v4959_v42 = vld [vmem:[#allocation9 + $0x760] ss:$16 sps:$4 sm:$0xff]  }
 0x2d0   : > { %3222 = vmatpush1.bf16.msra.mxu0 %v4881_v43  ;;  %3386 = vmatpush1.bf16.msra.mxu1 %v4884_v46  ;;  %v4962_v43 = vld [vmem:[#allocation9 + $0x768] ss:$16 sps:$4 sm:$0xff]   ;;  %v4970_v46 = vld [vmem:[#allocation9 + $0x78c] ss:$16 sps:$4 sm:$0xff]  }
 0x2d1   : > { %3223 = vmatprep.subr.bf16.mxu0 %v4889_v47  ;;  %3387 = vmatprep.subr.bf16.mxu1 %v4892_v1  ;;  %v4965_v47 = vld [vmem:[#allocation9 + $0x780] ss:$16 sps:$4 sm:$0xff]   ;;  %v4968_v1 = vld [vmem:[#allocation9 + $0x788] ss:$16 sps:$4 sm:$0xff]  }
 0x2d4   : > { %3224 = vmatpush1.bf16.msra.mxu0 %v4887_v49  ;;  %3388 = vmatpush1.bf16.msra.mxu1 %v4890_v51  ;;  %v4973_v49 = vld [vmem:[#allocation9 + $0x7a4] ss:$16 sps:$4 sm:$0xff]   ;;  %v4976_v51 = vld [vmem:[#allocation9 + $0x7ac] ss:$16 sps:$4 sm:$0xff]  }
 0x2d5   : > { %3234 = vmatprep.subr.bf16.mxu0 %v4895_v52  ;;  %3398 = vmatprep.subr.bf16.mxu1 %v4898_v53  ;;  %v4971_v52 = vld [vmem:[#allocation9 + $0x7a0] ss:$16 sps:$4 sm:$0xff]   ;;  %v4974_v53 = vld [vmem:[#allocation9 + $0x7a8] ss:$16 sps:$4 sm:$0xff]  }
 0x2d7   : > { %3226 = vmatmul.mubr.bf16.vlgmr.msra.gmra.mrb[0].mxu0 %v1549_v57  ;;  %3390 = vmatmul.mubr.bf16.vlgmr.msra.gmra.mrb[0].mxu1 %v1549_v57  ;;  %v4980_v57 = vld [vmem:[#allocation9 + $0x7c8] ss:$16 sps:$4 sm:$0xff]  }
 0x2d8   : > { %3235 = vmatpush1.bf16.msra.mxu0 %v4893_v55  ;;  %3399 = vmatpush1.bf16.msra.mxu1 %v4896_v56  ;;  %v4979_v55 = vld [vmem:[#allocation9 + $0x7c4] ss:$16 sps:$4 sm:$0xff]   ;;  %v4977_v56 = vld [vmem:[#allocation9 + $0x7c0] ss:$16 sps:$4 sm:$0xff]  }
 0x2d9   : > { %3236 = vmatprep.subr.bf16.mxu0 %v4901_v58  ;;  %3400 = vmatprep.subr.bf16.mxu1 %v4904_v15  ;;  %v4985_v58 = vld [vmem:[#allocation9 + $0x7e4] ss:$16 sps:$4 sm:$0xff]   ;;  %v4988_v15 = vld [vmem:[#allocation9 + $0x7ec] ss:$16 sps:$4 sm:$0xff]  }
 0x2da   : > { %3266 = vmatprep.mubr.bf16.mxu0 %v1552_v61  ;;  %3430 = vmatprep.mubr.bf16.mxu1 %v1552_v61  ;;  %v4989_v61 = vld [vmem:[#allocation12 + $0x40] sm:$0xff]  }
 0x2dc   : > { %3237 = vmatpush1.bf16.msra.mxu0 %v4899_v59  ;;  %3401 = vmatpush1.bf16.msra.mxu1 %v4902_v60  ;;  %v4983_v59 = vld [vmem:[#allocation9 + $0x7e0] ss:$16 sps:$4 sm:$0xff]   ;;  %v4986_v60 = vld [vmem:[#allocation9 + $0x7e8] ss:$16 sps:$4 sm:$0xff]  }
 0x2dd   : > { %3238 = vmatprep.subr.bf16.mxu0 %v4907_v63  ;;  %3402 = vmatprep.subr.bf16.mxu1 %v4910_v0  ;;  %v4990_v63 = vld [vmem:[#allocation12 + $0xc0] sm:$0xff]   ;;  %v1551_v0 = vpack.c.bf16 %v5890_v50, %v5890_v50  ;;  %v4999_v50 = vld [vmem:[#allocation12 + $0x10] sm:$0xff]  }
 0x2e0   : > { %3239 = vmatpush1.bf16.msra.mxu0 %v4905_v2  ;;  %3403 = vmatpush1.bf16.msra.mxu1 %v4908_v3  ;;  %v4991_v2 = vld [vmem:[#allocation12] sm:$0xff]  }
 0x2e1   : > { %3240 = vmatprep.subr.bf16.mxu0 %v4913_v48  ;;  %3404 = vmatprep.subr.bf16.mxu1 %v4916_v4  ;;  %v4992_v3 = vld [vmem:[#allocation12 + $0x80] sm:$0xff]   ;;  %v4993_v48 = vld [vmem:[#allocation12 + $0x48] sm:$0xff]  }
 0x2e2   : > { %v4994_v4 = vld [vmem:[#allocation12 + $0xc8] sm:$0xff]  }
 0x2e4   : > { %3241 = vmatpush1.bf16.msra.mxu0 %v4911_v5  ;;  %3405 = vmatpush1.bf16.msra.mxu1 %v4914_v6  ;;  %v4995_v5 = vld [vmem:[#allocation12 + $0x8] sm:$0xff]  }
 0x2e5   : > { %3242 = vmatprep.subr.bf16.mxu0 %v4919_v7  ;;  %3406 = vmatprep.subr.bf16.mxu1 %v4922_v8  ;;  %v4996_v6 = vld [vmem:[#allocation12 + $0x88] sm:$0xff]   ;;  %v4997_v7 = vld [vmem:[#allocation12 + $0x50] sm:$0xff]  }
 0x2e6   : > { %v4998_v8 = vld [vmem:[#allocation12 + $0xd0] sm:$0xff]  }
 0x2e8   : > { %3243 = vmatpush1.bf16.msra.mxu0 %v4917_v9  ;;  %3407 = vmatpush1.bf16.msra.mxu1 %v4920_v11  ;;  %v5000_v9 = vld [vmem:[#allocation12 + $0x90] sm:$0xff]   ;;  %v5001_v11 = vld [vmem:[#allocation12 + $0x58] sm:$0xff]  }
 0x2e9   : > { %3244 = vmatprep.subr.bf16.mxu0 %v4925_v13  ;;  %3408 = vmatprep.subr.bf16.mxu1 %v4928_v16  ;;  %v5002_v13 = vld [vmem:[#allocation12 + $0xd8] sm:$0xff]  }
 0x2ea   : > { %v5003_v16 = vld [vmem:[#allocation12 + $0x18] sm:$0xff]  }
 0x2ec   : > { %3245 = vmatpush1.bf16.msra.mxu0 %v4923_v17  ;;  %3409 = vmatpush1.bf16.msra.mxu1 %v4926_v18  ;;  %v5004_v17 = vld [vmem:[#allocation12 + $0x98] sm:$0xff]   ;;  %v5005_v18 = vld [vmem:[#allocation12 + $0x60] sm:$0xff]  }
 0x2ed   : > { %3246 = vmatprep.subr.bf16.mxu0 %v4931_v19  ;;  %3410 = vmatprep.subr.bf16.mxu1 %v4934_v20  ;;  %v5006_v19 = vld [vmem:[#allocation12 + $0xe0] sm:$0xff]  }
 0x2ee   : > { %v5007_v20 = vld [vmem:[#allocation12 + $0x20] sm:$0xff]  }
 0x2f0   : > { %3247 = vmatpush1.bf16.msra.mxu0 %v4929_v21  ;;  %3411 = vmatpush1.bf16.msra.mxu1 %v4932_v22  ;;  %v5008_v21 = vld [vmem:[#allocation12 + $0xa0] sm:$0xff]   ;;  %v5009_v22 = vld [vmem:[#allocation12 + $0x68] sm:$0xff]  }
 0x2f1   : > { %3248 = vmatprep.subr.bf16.mxu0 %v4937_v54  ;;  %3412 = vmatprep.subr.bf16.mxu1 %v4940_v14  ;;  %v5010_v54 = vld [vmem:[#allocation12 + $0xe8] sm:$0xff]  }
 0x2f2   : > { %v5011_v14 = vld [vmem:[#allocation12 + $0x28] sm:$0xff]  }
 0x2f4   : > { %3249 = vmatpush1.bf16.msra.mxu0 %v4935_v23  ;;  %3413 = vmatpush1.bf16.msra.mxu1 %v4938_v24  ;;  %v5012_v23 = vld [vmem:[#allocation12 + $0xa8] sm:$0xff]   ;;  %v5013_v24 = vld [vmem:[#allocation12 + $0x70] sm:$0xff]  }
 0x2f5   : > { %3250 = vmatprep.subr.bf16.mxu0 %v4943_v25  ;;  %3414 = vmatprep.subr.bf16.mxu1 %v4946_v27  ;;  %v5014_v25 = vld [vmem:[#allocation12 + $0xf0] sm:$0xff]  }
 0x2f6   : > { %v5015_v27 = vld [vmem:[#allocation12 + $0x30] sm:$0xff]  }
 0x2f8   : > { %3251 = vmatpush1.bf16.msra.mxu0 %v4941_v32  ;;  %3415 = vmatpush1.bf16.msra.mxu1 %v4944_v30  ;;  %v5016_v32 = vld [vmem:[#allocation12 + $0xb0] sm:$0xff]   ;;  %v5017_v30 = vld [vmem:[#allocation12 + $0x78] sm:$0xff]  }
 0x2f9   : > { %3252 = vmatprep.subr.bf16.mxu0 %v4949_v33  ;;  %3416 = vmatprep.subr.bf16.mxu1 %v4952_v34  ;;  %v5018_v33 = vld [vmem:[#allocation12 + $0xf8] sm:$0xff]  }
 0x2fa   : > { %v5019_v34 = vld [vmem:[#allocation12 + $0x38] sm:$0xff]  }
 0x2fc   : > { %3253 = vmatpush1.bf16.msra.mxu0 %v4947_v35  ;;  %3417 = vmatpush1.bf16.msra.mxu1 %v4950_v36  ;;  %v5020_v35 = vld [vmem:[#allocation12 + $0xb8] sm:$0xff]  }
 0x2fd   : > { %3254 = vmatprep.subr.bf16.mxu0 %v4955_v37  ;;  %3418 = vmatprep.subr.bf16.mxu1 %v4958_v38  ;;  %v1809_v36 = vld [vmem:[#allocation11] sm:$0xf] }
 0x2fe   : > { %v1814_v37 = vrot.slane %v1809_v36, %v1431_v26  ;;  %v1822_v38 = vrot.slane %v1809_v36, %v1439_v29 }
 0x300   : > { %3255 = vmatpush1.bf16.msra.mxu0 %v4953_v39  ;;  %3419 = vmatpush1.bf16.msra.mxu1 %v4956_v40  ;;  %v1818_v39 = vrot.slane %v1809_v36, %v1435_v28  ;;  %v1826_v40 = vrot.slane %v1809_v36, %v1443_v31 }
 0x301   : > { %3256 = vmatprep.subr.bf16.mxu0 %v4961_v62  ;;  %3420 = vmatprep.subr.bf16.mxu1 %v4964_v41 }
 0x304   : > { %3257 = vmatpush1.bf16.msra.mxu0 %v4959_v42  ;;  %3421 = vmatpush1.bf16.msra.mxu1 %v4962_v43 }
 0x305   : > { %3258 = vmatprep.subr.bf16.mxu0 %v4967_v44  ;;  %3422 = vmatprep.subr.bf16.mxu1 %v4970_v46 }
 0x308   : > { %3259 = vmatpush1.bf16.msra.mxu0 %v4965_v47  ;;  %3423 = vmatpush1.bf16.msra.mxu1 %v4968_v1 }
 0x309   : > { %3260 = vmatprep.subr.bf16.mxu0 %v4973_v49  ;;  %3424 = vmatprep.subr.bf16.mxu1 %v4976_v51 }
 0x30c   : > { %3261 = vmatpush1.bf16.msra.mxu0 %v4971_v52  ;;  %3425 = vmatpush1.bf16.msra.mxu1 %v4974_v53 }
 0x30d   : > { %3262 = vmatprep.subr.bf16.mxu0 %v4979_v55  ;;  %3426 = vmatprep.subr.bf16.mxu1 %v4982_v45 }
 0x310   : > { %3263 = vmatpush1.bf16.msra.mxu0 %v4977_v56  ;;  %3427 = vmatpush1.bf16.msra.mxu1 %v4980_v57 }
 0x311   : > { %3264 = vmatprep.subr.bf16.mxu0 %v4985_v58  ;;  %3428 = vmatprep.subr.bf16.mxu1 %v4988_v15  ;;  %v4374_v15 = vld [vmem:[#allocation14] ss:$0 sm:$0xff] }
 0x314   : > { %3265 = vmatpush1.bf16.msra.mxu0 %v4983_v59  ;;  %3429 = vmatpush1.bf16.msra.mxu1 %v4986_v60 }
 0x315   : > { %4416 = vmatprep.subr.bf16.mxu0 %v4989_v61  ;;  %4438 = vmatprep.subr.bf16.mxu1 %v4990_v63  ;;  %v3791_v61 = vand.u32 127, %v1386_v10 }
 0x317   : > { %3267 = vmatmul.mubr.bf16.vlgmr.msra.gmra.mrb[0].mxu0 %v1551_v0  ;;  %3431 = vmatmul.mubr.bf16.vlgmr.msra.gmra.mrb[0].mxu1 %v1551_v0  ;;  %vm3807_vm0 = vcmp.eq.s32.totalorder %v3791_v61, 65  ;;  %vm3792_vm1 = vcmp.lt.s32.totalorder %v3791_v61, 65 }
 0x318   : > { %4417 = vmatpush3.bf16.msra.mxu0 %v4991_v2  ;;  %4439 = vmatpush3.bf16.msra.mxu1 %v4992_v3 }
 0x319   : > { %4418 = vmatprep.subr.bf16.mxu0 %v4993_v48  ;;  %4440 = vmatprep.subr.bf16.mxu1 %v4994_v4 }
 0x31c   : > { %4419 = vmatpush3.bf16.msra.mxu0 %v4995_v5  ;;  %4441 = vmatpush3.bf16.msra.mxu1 %v4996_v6 }
 0x31d   : > { %4420 = vmatprep.subr.bf16.mxu0 %v4997_v7  ;;  %4442 = vmatprep.subr.bf16.mxu1 %v4998_v8 }
 0x320   : > { %4421 = vmatpush3.bf16.msra.mxu0 %v4999_v50  ;;  %4443 = vmatpush3.bf16.msra.mxu1 %v5000_v9 }
 0x321   : > { %4422 = vmatprep.subr.bf16.mxu0 %v5001_v11  ;;  %4444 = vmatprep.subr.bf16.mxu1 %v5002_v13 }
 0x324   : > { %4423 = vmatpush3.bf16.msra.mxu0 %v5003_v16  ;;  %4445 = vmatpush3.bf16.msra.mxu1 %v5004_v17 }
 0x325   : > { %4424 = vmatprep.subr.bf16.mxu0 %v5005_v18  ;;  %4446 = vmatprep.subr.bf16.mxu1 %v5006_v19 }
 0x328   : > { %4425 = vmatpush3.bf16.msra.mxu0 %v5007_v20  ;;  %4447 = vmatpush3.bf16.msra.mxu1 %v5008_v21 }
 0x329   : > { %4426 = vmatprep.subr.bf16.mxu0 %v5009_v22  ;;  %4448 = vmatprep.subr.bf16.mxu1 %v5010_v54 }
 0x32c   : > { %4427 = vmatpush3.bf16.msra.mxu0 %v5011_v14  ;;  %4449 = vmatpush3.bf16.msra.mxu1 %v5012_v23 }
 0x32d   : > { %4428 = vmatprep.subr.bf16.mxu0 %v5013_v24  ;;  %4450 = vmatprep.subr.bf16.mxu1 %v5014_v25 }
 0x330   : > { %4429 = vmatpush3.bf16.msra.mxu0 %v5015_v27  ;;  %4451 = vmatpush3.bf16.msra.mxu1 %v5016_v32 }
 0x331   : > { %4430 = vmatprep.subr.bf16.mxu0 %v5017_v30  ;;  %4452 = vmatprep.subr.bf16.mxu1 %v5018_v33 }
 0x334   : > { %4431 = vmatpush3.bf16.msra.mxu0 %v5019_v34  ;;  %4453 = vmatpush3.bf16.msra.mxu1 %v5020_v35 }
 0x3ea   : > { %v3268_v62 = vpop.f32.mrb[0].mxu0  ;;  %v3432_v41 = vpop.f32.mrb[0].mxu1 }
 0x3eb   : > { %v4460_v42 = vadd.f32 %v3268_v62, %v1814_v37  ;;  %v4462_v43 = vadd.f32 %v3432_v41, %v1822_v38  ;;  %v3270_v44 = vpop.f32.mrb[1].mxu0  ;;  %v3434_v46 = vpop.f32.mrb[1].mxu1 }
 0x3ec   : > { %v4461_v47 = vadd.f32 %v3270_v44, %v1818_v39  ;;  %v4463_v1 = vadd.f32 %v3434_v46, %v1826_v40  ;;  %v3272_v49 = vpop.f32.mrb[2].mxu0  ;;  %v3436_v51 = vpop.f32.mrb[2].mxu1 }
 0x3ed   : > { %v3439_v26 = vmax.f32 %v4460_v42, 0.0  ;;  %v3441_v52 = vmax.f32 %v4462_v43, 0.0  ;;  %v3273_v53 = vpop.f32.mrb[3].mxu0  ;;  %v3437_v29 = vpop.f32.mrb[3].mxu1 }
 0x3ee   : > { %v3440_v55 = vmax.f32 %v4461_v47, 0.0  ;;  %v3442_v45 = vmax.f32 %v4463_v1, 0.0 }
 0x3ef   : > { %v3443_v12 = vpack.c.bf16 %v3439_v26, %v3439_v26  ;;  %v3445_v31 = vpack.c.bf16 %v3441_v52, %v3441_v52 }
 0x3f0   : > { %v3444_v28 = vpack.c.bf16 %v3440_v55, %v3440_v55  ;;  %v3446_v56 = vpack.c.bf16 %v3442_v45, %v3442_v45 }
 0x3f2   : > { %3742 = vmatprep.mubr.bf16.mxu0 %v3444_v28  ;;  %3782 = vmatprep.mubr.bf16.mxu1 %v3446_v56 }
 0x3f3   : > { %3743 = vmatmul.mubr.bf16.vlgmr.msra.gmra.mrb[4].mxu0 %v3443_v12  ;;  %3783 = vmatmul.mubr.bf16.vlgmr.msra.gmra.mrb[4].mxu1 %v3445_v31 }
 0x4c6   : > { %v4432_v57 = vpop.f32.mrb[4].mxu0  ;;  %v4454_v58 = vpop.f32.mrb[4].mxu1 }
 0x4c7   : > { %v4433_v59 = vpop.f32.mrb[5].mxu0  ;;  %v4455_v60 = vpop.f32.mrb[5].mxu1 }
 0x4c8   : > { %v4434_v63 = vadd.f32 %v4433_v59, %v4432_v57  ;;  %v4456_v0 = vadd.f32 %v4455_v60, %v4454_v58  ;;  %v4435_v2 = vpop.f32.mrb[6].mxu0  ;;  %v4457_v3 = vpop.f32.mrb[6].mxu1 }
 0x4c9   : > { %v4436_v48 = vpop.f32.mrb[7].mxu0  ;;  %v4458_v4 = vpop.f32.mrb[7].mxu1 }
 0x4ca   : > { %v3745_v5 = vadd.f32 %v4434_v63, %v4374_v15 }
 0x4cc   : > { %v3785_v6 = vadd.f32 %v4456_v0, %v3745_v5 }
 0x4ce   : > { %v3808_v7 = vsel %vm3807_vm0, %v3785_v6, 0.0  ;;  %v3793_v8 = vsel %vm3792_vm1, %v3785_v6, -1e+30 }
 0x4cf   : > { %v3809_v50 = vsel %vm3794_vm2, %v3808_v7, 0.0  ;;  %v3795_v9 = vsel %vm3794_vm2, %v3793_v8, -inf }
 0x4d0   : > { %3810 = vadd.xlane.f32.xlu1 %v3809_v50  ;;  %3796 = vmax.xlane.f32.xlu0 %v3795_v9 }
 0x55d   : > { %v3811_v10 = vpop.xlane.xlu1 %3810  ;;  %v3797_v11 = vpop.xlane.xlu0 %3796 }
 0x55e   : > { %5021 = vtanh.f32 %v3811_v10  ;;  %v3798_v13 = vsub.f32 %v3793_v8, %v3797_v11 }
 0x560   : > { %v3799_v16 = vmul.f32 1.442695, %v3798_v13 }
 0x562   : > { %5023 = vpow2.f32 %v3799_v16 }
 0x568   : > { %v5022_v17 = vpop.eup %5021 }
 0x569   : > { %3814 = vst.msk [vmem:[#allocation16] sm:$0x3] %vm3813_vm3, %v5022_v17 }
 0x56c   : > { %v5024_v18 = vpop.eup %5023 }
 0x56d   : > { %v3801_v19 = vsel %vm3794_vm2, %v5024_v18, 0.0 }
 0x56e   : > { %3802 = vadd.xlane.f32.xlu0 %v3801_v19 }
 0x5fb   : > { %v3803_v20 = vpop.xlane.xlu0 %3802 }
 0x5fc   : > { %5025 = vrcp.f32 %v3803_v20 }
 0x606   : > { %v5026_v21 = vpop.eup %5025 }
 0x607   : > { %v3805_v22 = vmul.f32 %v5026_v21, %v5024_v18 }
 0x609   : > { %3806 = vst [vmem:[#allocation15] sm:$0x3] %v3805_v22 }
 0x60a PF: > { %p4554_p2 = scmp.eq.s32.totalorder %s5422_s11, 1  ;;  %s5354_s12 = smov [#allocation15]  }
 0x60b   : > { %s3822_s10 = sshll.u32 %s5354_s12, 4  ;;  %s5355_s26 = smov [#allocation16]   ;;  %s3823_s10 = int_to_ptr.vmem [resolvable:$true] %s3822_s10 }
 0x60c   : > { %s3833_s20 = sshll.u32 %s5355_s26, 4  ;;  %s5227_s16 = scalar_lea.vmem %s3823_s10, 32  ;;  %s3834_s20 = int_to_ptr.vmem [resolvable:$true] %s3833_s20 }
 0x60d   : > { %p5228_p9 = scmp.ne.s32.totalorder %s3823_s10, %s5227_s16  ;;  %p5234_p11 = scmp.lt.s32.totalorder %s3823_s10, %s3823_s10 }
 0x60e   : > { %p5235_p13 = scmp.lt.s32.totalorder %s5227_s16, %s5227_s16 }
 0x60f   : > { %p5229_p1 = pnand %p5228_p9, %p4554_p2 }
 0x610   : > { %p5236_p6 = por %p5235_p13, %p5234_p11 }
 0x611   : > { %p5230_p4 = pneg %p5229_p1 }
 0x613   : > { %p5237_p3 = pnand %p5236_p6, %p5230_p4 }
 0x615   : > { %5240 = shalt.err (!%p5237_p3)
}
 0x616   : > { %s5241_s24 = scalar_lea.hbm %s5975_s7, 32 }
 0x617   : > { %p5242_p12 = scmp.ne.s32.totalorder %s5975_s7, %s5241_s24  ;;  %p5247_p8 = scmp.lt.u32.totalorder %s5241_s24, %s5975_s7 }
 0x619   : > { %p5243_p0 = pnand %p5242_p12, %p4554_p2 }
 0x61b   : > { %p5244_p5 = pneg %p5243_p0 }
 0x61d   : > { %p5249_p10 = pnand %p5247_p8, %p5244_p5 }
 0x61f   : > { %5252 = shalt.err (!%p5249_p10)
}
 0x620   : > { %4513 = dma.vmem_to_hbm [thread:$0]  (%p4554_p2), %s3823_s10, 32, %s5975_s7, [#allocation5]  }
 0x621   : > { %s5253_s27 = scalar_lea.vmem %s3834_s20, 32  ;;  %p5260_p4 = scmp.lt.s32.totalorder %s3834_s20, %s3834_s20 }
 0x622   : > { %p5254_p7 = scmp.ne.s32.totalorder %s3834_s20, %s5253_s27  ;;  %p5261_p11 = scmp.lt.s32.totalorder %s5253_s27, %s5253_s27 }
 0x624   : > { %p5255_p9 = pnand %p5254_p7, %p4554_p2  ;;  %p5262_p13 = por %p5261_p11, %p5260_p4 }
 0x626   : > { %p5256_p1 = pneg %p5255_p9 }
 0x628   : > { %p5263_p6 = pnand %p5262_p13, %p5256_p1 }
 0x62a   : > { %5266 = shalt.err (!%p5263_p6)
}
 0x62b   : > { %s5267_s15 = scalar_lea.hbm %s5976_s8, 32 }
 0x62c   : > { %p5268_p3 = scmp.ne.s32.totalorder %s5976_s8, %s5267_s15  ;;  %p5273_p5 = scmp.lt.u32.totalorder %s5267_s15, %s5976_s8 }
 0x62e   : > { %p5269_p12 = pnand %p5268_p3, %p4554_p2 }
 0x630   : > { %p5270_p0 = pneg %p5269_p12 }
 0x632   : > { %p5275_p8 = pnand %p5273_p5, %p5270_p0 }
 0x634   : > { %5278 = shalt.err (!%p5275_p8)
}
 0x635   : > { %4515 = dma.vmem_to_hbm [thread:$0]  (%p4554_p2), %s3834_s20, 32, %s5976_s8, [#allocation17]  }
 0x636   : > { %5316 = dma.done.wait (%p4554_p2), [#allocation5], 32  }
 0x637   : > { %5318 = vsyncadd (%p4554_p2), [#allocation5], 4294967264 }
 0x638   : > { %5320 = dma.done.wait (%p4554_p2), [#allocation17], 32  }
 0x639   : > { %5322 = vsyncadd (%p4554_p2), [#allocation17], 4294967264 }
 0x63a PF: > { %p26_p10 = scmp.ge.s32.totalorder %s5551_s23, 4   ;;  %s5997_s27 = smov %s5329_s28 }
 0x63b   : > { %s5998_s28 = smov %s5333_s29  ;;  %s5999_s29 = smov %s5562_s17 }
 0x63c   : > { %s6000_s30 = smov %s5551_s23  ;;  %28 = sbr.rel (!%p26_p10) target bundleno = 12 (0xc), region = 134 }
 0x643   :  { %3850 = vsyncpa [#allocation4], 1 }
 0x644   :  { %3852 = vsyncpa [#allocation4 + $0x1], 1 }
 0x645   :  { %3853 = vsyncpa [#allocation7], 1 }
 0x646   :  { %3855 = vsyncpa [#allocation7 + $0x1], 1 }
 0x647   :  { %3856 = vsyncpa [#allocation10], 1 }
 0x648   :  { %3857 = vsyncpa [#allocation13], 1 }
 0x649   :  { %3858 = vsyncpa [#allocation5], 1 }
 0x64a   :  { %3860 = vsyncpa [#allocation5 + $0x1], 1 }
 0x64b   :  { %3861 = vsyncpa [#allocation17], 1 }

</bundles_post_ra>
